<compile_context>
chip_gen: v7x
topology: tpu7x:2x2x1
jax: 0.10.0
libtpu: 0.0.40
codegen_flags: <defaults>
</compile_context>

<pallas_src>
import math

import jax
import jax.numpy as jnp
from jax.experimental import pallas as pl
from jax.experimental.pallas import tpu as pltpu

# ------------------------- hyper-parameters (small) -------------------------
MEL = 16           # mel_channels
DIM = 64           # d_model
MLP = 4            # mlp_factor
HID = DIM * MLP    # dim_feedforward / hidden of 1x1-conv stacks
CDIM = 32          # condition_dim
NLAYERS = 2        # num_layers
NHEAD = 8
DH = DIM // NHEAD  # head dim
EPS = 1e-5         # layer_norm_eps (PyTorch default)
SCALE = 1.0 / math.sqrt(DH)

# weights, in the exact order the kernel expects them after the 9 data operands
_WEIGHT_NAMES = (
    "inp_w1", "inp_b1", "inp_w2", "inp_b2",
    "cond_w1", "cond_b1", "cond_w2", "cond_b2",
    "diff_w1", "diff_b1", "diff_w2", "diff_b2",
    "out_w1", "out_b1", "out_w2", "out_b2",
    "sa_wqkv", "sa_bqkv", "sa_wo", "sa_bo",
    "ca_wq", "ca_bq", "ca_wkv", "ca_bkv", "ca_wo", "ca_bo",
    "ln1_w", "ln1_b", "ln2_w", "ln2_b", "ln3_w", "ln3_b",
    "ff_w1", "ff_b1", "ff_w2", "ff_b2",
)


# ------------------------------ kernel helpers --------------------------------
def _gelu_exact(x):
    # torch.nn.GELU() (exact, erf-based).  erf via Abramowitz & Stegun 7.1.26
    # (|err| < 1.5e-7) using only exp/abs/where (all VPU/EUP friendly).
    z = x * 0.7071067811865476
    a = jnp.abs(z)
    t = 1.0 / (1.0 + 0.3275911 * a)
    poly = t * (0.254829592 + t * (-0.284496736 + t * (1.421413741
               + t * (-1.453152027 + t * 1.061405429))))
    erf_a = 1.0 - poly * jnp.exp(-a * a)
    erf_z = jnp.where(z >= 0, erf_a, -erf_a)
    return 0.5 * x * (1.0 + erf_z)


# ------------------------------- fused kernel ---------------------------------
def _denoiser_kernel(
    # per-batch data blocks
    x_ref, c_ref, demb_ref, posq_ref, posk_ref,
    xkeep_ref, ckeep_ref, xbias_ref, cbias_ref,
    # global projection weights (VMEM resident)
    inp_w1, inp_b1, inp_w2, inp_b2,
    cnd_w1, cnd_b1, cnd_w2, cnd_b2,
    dif_w1, dif_b1, dif_w2, dif_b2,
    outp_w1, outp_b1, outp_w2, outp_b2,
    # per-layer stacked weights (leading dim NLAYERS, VMEM resident)
    sa_wqkv, sa_bqkv, sa_wo, sa_bo,
    ca_wq, ca_bq, ca_wkv, ca_bkv, ca_wo, ca_bo,
    ln1_w, ln1_b, ln2_w, ln2_b, ln3_w, ln3_b,
    ff_w1, ff_b1, ff_w2, ff_b2,
    # output
    o_ref,
):
    def mlp(x, w1, b1, w2, b2):
        # Linear -> GELU -> Linear (1x1 Conv1d stacks / FF block / diffusion MLP)
        hh = jnp.dot(x, w1, preferred_element_type=jnp.float32) + b1
        hh = _gelu_exact(hh)
        return jnp.dot(hh, w2, preferred_element_type=jnp.float32) + b2

    def layer_norm(y, g, bb):
        mu = jnp.mean(y, axis=-1, keepdims=True)
        var = jnp.mean(jnp.square(y - mu), axis=-1, keepdims=True)
        return (y - mu) * jax.lax.rsqrt(var + EPS) * g + bb

    def attend(q, k, v, bias):
        # q already scaled by 1/sqrt(DH); heads are static lane slices.
        outs = []
        for hd in range(NHEAD):
            sl = slice(hd * DH, (hd + 1) * DH)
            s = jax.lax.dot_general(q[:, sl], k[:, sl], (((1,), (1,)), ((), ())),
                                    preferred_element_type=jnp.float32)
            s = s + bias                                    # key-padding bias [1, Tk]
            m = jnp.max(s, axis=-1, keepdims=True)
            p = jnp.exp(s - m)
            p = p * pl.reciprocal(jnp.sum(p, axis=-1, keepdims=True), approx=True)
            outs.append(jnp.dot(p, v[:, sl], preferred_element_type=jnp.float32))
        return jnp.concatenate(outs, axis=-1)               # [Tq, DIM]

    xkeep = xkeep_ref[0]          # [T, 1]   1.0 = keep, 0.0 = padded
    ckeep = ckeep_ref[0]          # [E, 1]
    xbias = xbias_ref[0]          # [1, T]   additive key-padding bias
    cbias = cbias_ref[0]          # [1, E]

    # --- input / condition / diffusion-step projections ------------------------
    h = mlp(x_ref[0], inp_w1[...], inp_b1[...], inp_w2[...], inp_b2[...])    # [T, DIM]
    h = (h + posq_ref[...]) * xkeep

    cond = mlp(c_ref[0], cnd_w1[...], cnd_b1[...], cnd_w2[...], cnd_b2[...])  # [E, DIM]
    dstep = mlp(demb_ref[0], dif_w1[...], dif_b1[...], dif_w2[...], dif_b2[...])  # [1, DIM]
    cond = (cond + posk_ref[...] + dstep) * ckeep

    # --- nn.TransformerDecoderLayer stack (post-norm, gelu, eval: no dropout) ---
    for l in range(NLAYERS):
        # self-attention (packed QKV) + residual + LN1
        qkv = jnp.dot(h, sa_wqkv[l], preferred_element_type=jnp.float32) + sa_bqkv[l]
        sa = attend(qkv[:, :DIM] * SCALE, qkv[:, DIM:2 * DIM], qkv[:, 2 * DIM:], xbias)
        sa = jnp.dot(sa, sa_wo[l], preferred_element_type=jnp.float32) + sa_bo[l]
        h = layer_norm(h + sa, ln1_w[l], ln1_b[l])

        # cross-attention (packed KV over the condition) + residual + LN2
        q = (jnp.dot(h, ca_wq[l], preferred_element_type=jnp.float32) + ca_bq[l]) * SCALE
        kv = jnp.dot(cond, ca_wkv[l], preferred_element_type=jnp.float32) + ca_bkv[l]
        ca = attend(q, kv[:, :DIM], kv[:, DIM:], cbias)
        ca = jnp.dot(ca, ca_wo[l], preferred_element_type=jnp.float32) + ca_bo[l]
        h = layer_norm(h + ca, ln2_w[l], ln2_b[l])

        # feed-forward + residual + LN3
        f = mlp(h, ff_w1[l], ff_b1[l], ff_w2[l], ff_b2[l])
        h = layer_norm(h + f, ln3_w[l], ln3_b[l])

    # --- output projection + final mask ----------------------------------------
    out = mlp(h, outp_w1[...], outp_b1[...], outp_w2[...], outp_b2[...])      # [T, MEL]
    o_ref[0] = out * xkeep


# ------------------------------ pallas wrapper --------------------------------
def _run_denoiser(params, x_t, cond_t, demb, posq, posk, x_keep, c_keep, x_bias, c_bias):
    b, t, mel = x_t.shape

    def batch_spec(a):
        nd = a.ndim
        return pl.BlockSpec((1,) + a.shape[1:], lambda i, nd=nd: (i,) + (0,) * (nd - 1))

    def const_spec(a):
        nd = a.ndim
        return pl.BlockSpec(a.shape, lambda i, nd=nd: (0,) * nd)

    operands, specs = [], []

    def add(a, spec_fn):
        operands.append(a)
        specs.append(spec_fn(a))

    # data operands (order must match the kernel signature)
    add(x_t, batch_spec)
    add(cond_t, batch_spec)
    add(demb, batch_spec)
    add(posq, const_spec)
    add(posk, const_spec)
    add(x_keep, batch_spec)
    add(c_keep, batch_spec)
    add(x_bias, batch_spec)
    add(c_bias, batch_spec)
    # weights: VMEM resident across the whole grid
    for name in _WEIGHT_NAMES:
        add(params[name], const_spec)

    return pl.pallas_call(
        _denoiser_kernel,
        out_shape=jax.ShapeDtypeStruct((b, t, mel), jnp.float32),
        grid=(b,),
        in_specs=specs,
        out_specs=pl.BlockSpec((1, t, mel), lambda i: (i, 0, 0)),
        compiler_params=pltpu.CompilerParams(dimension_semantics=("parallel",)),
    )(*operands)


# --------------------------- parameterless glue --------------------------------
def sinusoidal_table(dim, num_embeddings=4096):
    half = dim // 2
    emb = math.log(10000.0) / (half - 1)
    freqs = jnp.exp(jnp.arange(half, dtype=jnp.float32) * -emb)
    ang = jnp.arange(num_embeddings, dtype=jnp.float32)[:, None] * freqs[None, :]
    return jnp.concatenate([jnp.sin(ang), jnp.cos(ang)], axis=1)


def diffusion_embedding(steps, dim):
    half = dim // 2
    emb = math.log(10000.0) / (half - 1)
    freqs = jnp.exp(jnp.arange(half, dtype=jnp.float32) * -emb)
    ang = steps.astype(jnp.float32)[:, None] * freqs[None, :]
    return jnp.concatenate([jnp.sin(ang), jnp.cos(ang)], axis=-1)


# ---------------------------------- forward ------------------------------------
def forward(params, x, diffusion_step, conditioner, x_masks=None, cond_masks=None):
    """x: [B, mel, T], diffusion_step: [B], conditioner: [B, cond_dim, E]."""
    b, _, t = x.shape
    e = conditioner.shape[2]

    # layout plumbing (tiny one-time XLA ops; everything else is in the kernel)
    x_t = jnp.transpose(x, (0, 2, 1))                       # [B, T, MEL]
    cond_t = jnp.transpose(conditioner, (0, 2, 1))          # [B, E, CDIM]
    demb = diffusion_embedding(diffusion_step, DIM)[:, None, :]   # [B, 1, DIM]
    posq = params["pos_emb"][:t] * params["pos_scale_q"]    # [T, DIM]
    posk = params["pos_emb"][:e] * params["pos_scale_k"]    # [E, DIM]

    if x_masks is None:
        x_masks = jnp.zeros((b, t), bool)
    if cond_masks is None:
        cond_masks = jnp.zeros((b, e), bool)
    x_keep = (~x_masks).astype(jnp.float32)[:, :, None]     # [B, T, 1]
    c_keep = (~cond_masks).astype(jnp.float32)[:, :, None]  # [B, E, 1]
    x_bias = jnp.where(x_masks, -1e30, 0.0).astype(jnp.float32)[:, None, :]    # [B, 1, T]
    c_bias = jnp.where(cond_masks, -1e30, 0.0).astype(jnp.float32)[:, None, :]  # [B, 1, E]

    out = _run_denoiser(params, x_t, cond_t, demb, posq, posk,
                        x_keep, c_keep, x_bias, c_bias)     # [B, T, MEL]
    return jnp.transpose(out, (0, 2, 1))                    # [B, MEL, T]


# ------------------------------- init params ------------------------------------
def init_params(key):
    keys = iter(jax.random.split(key, 64))

    def w(shape, scale=0.02):
        return scale * jax.random.normal(next(keys), shape, jnp.float32)

    def z(shape):
        return jnp.zeros(shape, jnp.float32)

    def ones(shape):
        return jnp.ones(shape, jnp.float32)

    L = NLAYERS
    return dict(
        pos_emb=sinusoidal_table(DIM),
        pos_scale_q=ones((1,)), pos_scale_k=ones((1,)),
        # input_projection / condition_projection / diffusion MLP / output_projection
        inp_w1=w((MEL, HID)), inp_b1=z((1, HID)), inp_w2=w((HID, DIM)), inp_b2=z((1, DIM)),
        cond_w1=w((CDIM, HID)), cond_b1=z((1, HID)), cond_w2=w((HID, DIM)), cond_b2=z((1, DIM)),
        diff_w1=w((DIM, HID)), diff_b1=z((1, HID)), diff_w2=w((HID, DIM)), diff_b2=z((1, DIM)),
        out_w1=w((DIM, DIM)), out_b1=z((1, DIM)), out_w2=w((DIM, MEL)), out_b2=z((1, MEL)),
        # decoder layers, stacked over NLAYERS; QKV / KV packed along the out dim
        sa_wqkv=w((L, DIM, 3 * DIM)), sa_bqkv=z((L, 1, 3 * DIM)),
        sa_wo=w((L, DIM, DIM)), sa_bo=z((L, 1, DIM)),
        ca_wq=w((L, DIM, DIM)), ca_bq=z((L, 1, DIM)),
        ca_wkv=w((L, DIM, 2 * DIM)), ca_bkv=z((L, 1, 2 * DIM)),
        ca_wo=w((L, DIM, DIM)), ca_bo=z((L, 1, DIM)),
        ln1_w=ones((L, 1, DIM)), ln1_b=z((L, 1, DIM)),
        ln2_w=ones((L, 1, DIM)), ln2_b=z((L, 1, DIM)),
        ln3_w=ones((L, 1, DIM)), ln3_b=z((L, 1, DIM)),
        ff_w1=w((L, DIM, HID)), ff_b1=z((L, 1, HID)),
        ff_w2=w((L, HID, DIM)), ff_b2=z((L, 1, DIM)),
    )


# ----------------------------------- main ---------------------------------------
if __name__ == "__main__":
    B, T, E = 2, 16, 8
    key = jax.random.PRNGKey(0)
    kp, kx, kc, kd = jax.random.split(key, 4)
    params = init_params(kp)

    x = jax.random.normal(kx, (B, MEL, T), jnp.float32)
    conditioner = jax.random.normal(kc, (B, CDIM, E), jnp.float32)
    diffusion_step = jax.random.randint(kd, (B,), 0, 1000)
    x_masks = jnp.zeros((B, T), bool).at[1, -3:].set(True)       # pad tail of batch 1
    cond_masks = jnp.zeros((B, E), bool).at[0, -2:].set(True)    # pad tail of batch 0

    fwd = jax.jit(forward)
    out = fwd(params, x, diffusion_step, conditioner, x_masks, cond_masks)
    jax.block_until_ready(out)
    assert out.shape == (B, MEL, T) and out.dtype == jnp.float32
    print("KERNEL_OK")
</pallas_src>

<mosaic_0001>
module attributes {stable_mosaic.version = 11 : i64} {
  func.func @_denoiser_kernel(%arg0: i32, %arg1: memref<1x16x16xf32, #tpu.memory_space<vmem>>, %arg2: memref<1x8x32xf32, #tpu.memory_space<vmem>>, %arg3: memref<1x1x64xf32, #tpu.memory_space<vmem>>, %arg4: memref<16x64xf32, #tpu.memory_space<vmem>>, %arg5: memref<8x64xf32, #tpu.memory_space<vmem>>, %arg6: memref<1x16x1xf32, #tpu.memory_space<vmem>>, %arg7: memref<1x8x1xf32, #tpu.memory_space<vmem>>, %arg8: memref<1x1x16xf32, #tpu.memory_space<vmem>>, %arg9: memref<1x1x8xf32, #tpu.memory_space<vmem>>, %arg10: memref<16x256xf32, #tpu.memory_space<vmem>>, %arg11: memref<1x256xf32, #tpu.memory_space<vmem>>, %arg12: memref<256x64xf32, #tpu.memory_space<vmem>>, %arg13: memref<1x64xf32, #tpu.memory_space<vmem>>, %arg14: memref<32x256xf32, #tpu.memory_space<vmem>>, %arg15: memref<1x256xf32, #tpu.memory_space<vmem>>, %arg16: memref<256x64xf32, #tpu.memory_space<vmem>>, %arg17: memref<1x64xf32, #tpu.memory_space<vmem>>, %arg18: memref<64x256xf32, #tpu.memory_space<vmem>>, %arg19: memref<1x256xf32, #tpu.memory_space<vmem>>, %arg20: memref<256x64xf32, #tpu.memory_space<vmem>>, %arg21: memref<1x64xf32, #tpu.memory_space<vmem>>, %arg22: memref<64x64xf32, #tpu.memory_space<vmem>>, %arg23: memref<1x64xf32, #tpu.memory_space<vmem>>, %arg24: memref<64x16xf32, #tpu.memory_space<vmem>>, %arg25: memref<1x16xf32, #tpu.memory_space<vmem>>, %arg26: memref<2x64x192xf32, #tpu.memory_space<vmem>>, %arg27: memref<2x1x192xf32, #tpu.memory_space<vmem>>, %arg28: memref<2x64x64xf32, #tpu.memory_space<vmem>>, %arg29: memref<2x1x64xf32, #tpu.memory_space<vmem>>, %arg30: memref<2x64x64xf32, #tpu.memory_space<vmem>>, %arg31: memref<2x1x64xf32, #tpu.memory_space<vmem>>, %arg32: memref<2x64x128xf32, #tpu.memory_space<vmem>>, %arg33: memref<2x1x128xf32, #tpu.memory_space<vmem>>, %arg34: memref<2x64x64xf32, #tpu.memory_space<vmem>>, %arg35: memref<2x1x64xf32, #tpu.memory_space<vmem>>, %arg36: memref<2x1x64xf32, #tpu.memory_space<vmem>>, %arg37: memref<2x1x64xf32, #tpu.memory_space<vmem>>, %arg38: memref<2x1x64xf32, #tpu.memory_space<vmem>>, %arg39: memref<2x1x64xf32, #tpu.memory_space<vmem>>, %arg40: memref<2x1x64xf32, #tpu.memory_space<vmem>>, %arg41: memref<2x1x64xf32, #tpu.memory_space<vmem>>, %arg42: memref<2x64x256xf32, #tpu.memory_space<vmem>>, %arg43: memref<2x1x256xf32, #tpu.memory_space<vmem>>, %arg44: memref<2x256x64xf32, #tpu.memory_space<vmem>>, %arg45: memref<2x1x64xf32, #tpu.memory_space<vmem>>, %arg46: memref<1x16x16xf32, #tpu.memory_space<vmem>>) attributes {dimension_semantics = [#tpu.dimension_semantics<parallel>], iteration_bounds = array<i64: 2>, scalar_prefetch = 0 : i64, scratch_operands = 0 : i64, tpu.core_type = #tpu.core_type<tc>, window_params = [{transform_indices = @transform_0, window_bounds = array<i64: 1, 16, 16>}, {transform_indices = @transform_1, window_bounds = array<i64: 1, 8, 32>}, {transform_indices = @transform_2, window_bounds = array<i64: 1, 1, 64>}, {pipeline_mode = #tpu.pipeline_mode<synchronous>, transform_indices = @transform_3, window_bounds = array<i64: 16, 64>}, {pipeline_mode = #tpu.pipeline_mode<synchronous>, transform_indices = @transform_4, window_bounds = array<i64: 8, 64>}, {transform_indices = @transform_5, window_bounds = array<i64: 1, 16, 1>}, {transform_indices = @transform_6, window_bounds = array<i64: 1, 8, 1>}, {transform_indices = @transform_7, window_bounds = array<i64: 1, 1, 16>}, {transform_indices = @transform_8, window_bounds = array<i64: 1, 1, 8>}, {pipeline_mode = #tpu.pipeline_mode<synchronous>, transform_indices = @transform_9, window_bounds = array<i64: 16, 256>}, {pipeline_mode = #tpu.pipeline_mode<synchronous>, transform_indices = @transform_10, window_bounds = array<i64: 1, 256>}, {pipeline_mode = #tpu.pipeline_mode<synchronous>, transform_indices = @transform_11, window_bounds = array<i64: 256, 64>}, {pipeline_mode = #tpu.pipeline_mode<synchronous>, transform_indices = @transform_12, window_bounds = array<i64: 1, 64>}, {pipeline_mode = #tpu.pipeline_mode<synchronous>, transform_indices = @transform_13, window_bounds = array<i64: 32, 256>}, {pipeline_mode = #tpu.pipeline_mode<synchronous>, transform_indices = @transform_14, window_bounds = array<i64: 1, 256>}, {pipeline_mode = #tpu.pipeline_mode<synchronous>, transform_indices = @transform_15, window_bounds = array<i64: 256, 64>}, {pipeline_mode = #tpu.pipeline_mode<synchronous>, transform_indices = @transform_16, window_bounds = array<i64: 1, 64>}, {pipeline_mode = #tpu.pipeline_mode<synchronous>, transform_indices = @transform_17, window_bounds = array<i64: 64, 256>}, {pipeline_mode = #tpu.pipeline_mode<synchronous>, transform_indices = @transform_18, window_bounds = array<i64: 1, 256>}, {pipeline_mode = #tpu.pipeline_mode<synchronous>, transform_indices = @transform_19, window_bounds = array<i64: 256, 64>}, {pipeline_mode = #tpu.pipeline_mode<synchronous>, transform_indices = @transform_20, window_bounds = array<i64: 1, 64>}, {pipeline_mode = #tpu.pipeline_mode<synchronous>, transform_indices = @transform_21, window_bounds = array<i64: 64, 64>}, {pipeline_mode = #tpu.pipeline_mode<synchronous>, transform_indices = @transform_22, window_bounds = array<i64: 1, 64>}, {pipeline_mode = #tpu.pipeline_mode<synchronous>, transform_indices = @transform_23, window_bounds = array<i64: 64, 16>}, {pipeline_mode = #tpu.pipeline_mode<synchronous>, transform_indices = @transform_24, window_bounds = array<i64: 1, 16>}, {pipeline_mode = #tpu.pipeline_mode<synchronous>, transform_indices = @transform_25, window_bounds = array<i64: 2, 64, 192>}, {pipeline_mode = #tpu.pipeline_mode<synchronous>, transform_indices = @transform_26, window_bounds = array<i64: 2, 1, 192>}, {pipeline_mode = #tpu.pipeline_mode<synchronous>, transform_indices = @transform_27, window_bounds = array<i64: 2, 64, 64>}, {pipeline_mode = #tpu.pipeline_mode<synchronous>, transform_indices = @transform_28, window_bounds = array<i64: 2, 1, 64>}, {pipeline_mode = #tpu.pipeline_mode<synchronous>, transform_indices = @transform_29, window_bounds = array<i64: 2, 64, 64>}, {pipeline_mode = #tpu.pipeline_mode<synchronous>, transform_indices = @transform_30, window_bounds = array<i64: 2, 1, 64>}, {pipeline_mode = #tpu.pipeline_mode<synchronous>, transform_indices = @transform_31, window_bounds = array<i64: 2, 64, 128>}, {pipeline_mode = #tpu.pipeline_mode<synchronous>, transform_indices = @transform_32, window_bounds = array<i64: 2, 1, 128>}, {pipeline_mode = #tpu.pipeline_mode<synchronous>, transform_indices = @transform_33, window_bounds = array<i64: 2, 64, 64>}, {pipeline_mode = #tpu.pipeline_mode<synchronous>, transform_indices = @transform_34, window_bounds = array<i64: 2, 1, 64>}, {pipeline_mode = #tpu.pipeline_mode<synchronous>, transform_indices = @transform_35, window_bounds = array<i64: 2, 1, 64>}, {pipeline_mode = #tpu.pipeline_mode<synchronous>, transform_indices = @transform_36, window_bounds = array<i64: 2, 1, 64>}, {pipeline_mode = #tpu.pipeline_mode<synchronous>, transform_indices = @transform_37, window_bounds = array<i64: 2, 1, 64>}, {pipeline_mode = #tpu.pipeline_mode<synchronous>, transform_indices = @transform_38, window_bounds = array<i64: 2, 1, 64>}, {pipeline_mode = #tpu.pipeline_mode<synchronous>, transform_indices = @transform_39, window_bounds = array<i64: 2, 1, 64>}, {pipeline_mode = #tpu.pipeline_mode<synchronous>, transform_indices = @transform_40, window_bounds = array<i64: 2, 1, 64>}, {pipeline_mode = #tpu.pipeline_mode<synchronous>, transform_indices = @transform_41, window_bounds = array<i64: 2, 64, 256>}, {pipeline_mode = #tpu.pipeline_mode<synchronous>, transform_indices = @transform_42, window_bounds = array<i64: 2, 1, 256>}, {pipeline_mode = #tpu.pipeline_mode<synchronous>, transform_indices = @transform_43, window_bounds = array<i64: 2, 256, 64>}, {pipeline_mode = #tpu.pipeline_mode<synchronous>, transform_indices = @transform_44, window_bounds = array<i64: 2, 1, 64>}, {transform_indices = @transform_45, window_bounds = array<i64: 1, 16, 16>}]} {
    %c0 = arith.constant 0 : index
    %c0_0 = arith.constant 0 : index
    %c0_1 = arith.constant 0 : index
    %0 = vector.load %arg6[%c0, %c0_0, %c0_1] : memref<1x16x1xf32, #tpu.memory_space<vmem>>, vector<1x16x1xf32>
    %1 = vector.shape_cast %0 : vector<1x16x1xf32> to vector<16x1xf32>
    %c0_2 = arith.constant 0 : index
    %c0_3 = arith.constant 0 : index
    %c0_4 = arith.constant 0 : index
    %2 = vector.load %arg7[%c0_2, %c0_3, %c0_4] : memref<1x8x1xf32, #tpu.memory_space<vmem>>, vector<1x8x1xf32>
    %3 = vector.shape_cast %2 : vector<1x8x1xf32> to vector<8x1xf32>
    %c0_5 = arith.constant 0 : index
    %c0_6 = arith.constant 0 : index
    %c0_7 = arith.constant 0 : index
    %4 = vector.load %arg8[%c0_5, %c0_6, %c0_7] : memref<1x1x16xf32, #tpu.memory_space<vmem>>, vector<1x1x16xf32>
    %5 = vector.shape_cast %4 : vector<1x1x16xf32> to vector<1x16xf32>
    %c0_8 = arith.constant 0 : index
    %c0_9 = arith.constant 0 : index
    %c0_10 = arith.constant 0 : index
    %6 = vector.load %arg9[%c0_8, %c0_9, %c0_10] : memref<1x1x8xf32, #tpu.memory_space<vmem>>, vector<1x1x8xf32>
    %7 = vector.shape_cast %6 : vector<1x1x8xf32> to vector<1x8xf32>
    %c0_11 = arith.constant 0 : index
    %c0_12 = arith.constant 0 : index
    %c0_13 = arith.constant 0 : index
    %8 = vector.load %arg1[%c0_11, %c0_12, %c0_13] : memref<1x16x16xf32, #tpu.memory_space<vmem>>, vector<1x16x16xf32>
    %9 = vector.shape_cast %8 : vector<1x16x16xf32> to vector<16x16xf32>
    %c0_14 = arith.constant 0 : index
    %c0_15 = arith.constant 0 : index
    %10 = vector.load %arg10[%c0_14, %c0_15] : memref<16x256xf32, #tpu.memory_space<vmem>>, vector<16x256xf32>
    %c0_16 = arith.constant 0 : index
    %c0_17 = arith.constant 0 : index
    %11 = vector.load %arg11[%c0_16, %c0_17] : memref<1x256xf32, #tpu.memory_space<vmem>>, vector<1x256xf32>
    %c0_18 = arith.constant 0 : index
    %c0_19 = arith.constant 0 : index
    %12 = vector.load %arg12[%c0_18, %c0_19] : memref<256x64xf32, #tpu.memory_space<vmem>>, vector<256x64xf32>
    %c0_20 = arith.constant 0 : index
    %c0_21 = arith.constant 0 : index
    %13 = vector.load %arg13[%c0_20, %c0_21] : memref<1x64xf32, #tpu.memory_space<vmem>>, vector<1x64xf32>
    %cst = arith.constant dense<0.000000e+00> : vector<16x256xf32>
    %14 = tpu.matmul %9, %10, %cst {dimension_numbers = #tpu.dot_dimension_numbers<[1], [0], [0], [1], [0, 0, 1, 1], [], []>} : vector<16x16xf32>, vector<16x256xf32>, vector<16x256xf32> -> vector<16x256xf32>
    %15 = vector.broadcast %11 : vector<1x256xf32> to vector<16x256xf32>
    %16 = arith.addf %14, %15 : vector<16x256xf32>
    %cst_22 = arith.constant 0.707106769 : f32
    %17 = vector.broadcast %cst_22 : f32 to vector<16x256xf32>
    %18 = arith.mulf %16, %17 : vector<16x256xf32>
    %19 = math.absf %18 : vector<16x256xf32>
    %cst_23 = arith.constant 0.327591091 : f32
    %20 = vector.broadcast %cst_23 : f32 to vector<16x256xf32>
    %21 = arith.mulf %20, %19 : vector<16x256xf32>
    %cst_24 = arith.constant 1.000000e+00 : f32
    %22 = vector.broadcast %cst_24 : f32 to vector<16x256xf32>
    %23 = arith.addf %22, %21 : vector<16x256xf32>
    %cst_25 = arith.constant 1.000000e+00 : f32
    %24 = vector.broadcast %cst_25 : f32 to vector<16x256xf32>
    %25 = arith.divf %24, %23 : vector<16x256xf32>
    %cst_26 = arith.constant 1.06140542 : f32
    %26 = vector.broadcast %cst_26 : f32 to vector<16x256xf32>
    %27 = arith.mulf %25, %26 : vector<16x256xf32>
    %cst_27 = arith.constant -1.45315206 : f32
    %28 = vector.broadcast %cst_27 : f32 to vector<16x256xf32>
    %29 = arith.addf %28, %27 : vector<16x256xf32>
    %30 = arith.mulf %25, %29 : vector<16x256xf32>
    %cst_28 = arith.constant 1.42141378 : f32
    %31 = vector.broadcast %cst_28 : f32 to vector<16x256xf32>
    %32 = arith.addf %31, %30 : vector<16x256xf32>
    %33 = arith.mulf %25, %32 : vector<16x256xf32>
    %cst_29 = arith.constant -0.284496725 : f32
    %34 = vector.broadcast %cst_29 : f32 to vector<16x256xf32>
    %35 = arith.addf %34, %33 : vector<16x256xf32>
    %36 = arith.mulf %25, %35 : vector<16x256xf32>
    %cst_30 = arith.constant 0.254829586 : f32
    %37 = vector.broadcast %cst_30 : f32 to vector<16x256xf32>
    %38 = arith.addf %37, %36 : vector<16x256xf32>
    %39 = arith.mulf %25, %38 : vector<16x256xf32>
    %cst_31 = arith.constant 0.000000e+00 : f32
    %40 = vector.broadcast %cst_31 : f32 to vector<16x256xf32>
    %41 = arith.subf %40, %19 : vector<16x256xf32>
    %42 = arith.mulf %41, %19 : vector<16x256xf32>
    %43 = math.exp %42 : vector<16x256xf32>
    %44 = arith.mulf %39, %43 : vector<16x256xf32>
    %cst_32 = arith.constant 1.000000e+00 : f32
    %45 = vector.broadcast %cst_32 : f32 to vector<16x256xf32>
    %46 = arith.subf %45, %44 : vector<16x256xf32>
    %cst_33 = arith.constant 0.000000e+00 : f32
    %47 = vector.broadcast %cst_33 : f32 to vector<16x256xf32>
    %48 = arith.cmpf oge, %18, %47 : vector<16x256xf32>
    %cst_34 = arith.constant 0.000000e+00 : f32
    %49 = vector.broadcast %cst_34 : f32 to vector<16x256xf32>
    %50 = arith.subf %49, %46 : vector<16x256xf32>
    %51 = arith.select %48, %46, %50 : vector<16x256xi1>, vector<16x256xf32>
    %cst_35 = arith.constant 5.000000e-01 : f32
    %52 = vector.broadcast %cst_35 : f32 to vector<16x256xf32>
    %53 = arith.mulf %52, %16 : vector<16x256xf32>
    %cst_36 = arith.constant 1.000000e+00 : f32
    %54 = vector.broadcast %cst_36 : f32 to vector<16x256xf32>
    %55 = arith.addf %54, %51 : vector<16x256xf32>
    %56 = arith.mulf %53, %55 : vector<16x256xf32>
    %cst_37 = arith.constant dense<0.000000e+00> : vector<16x64xf32>
    %57 = tpu.matmul %56, %12, %cst_37 {dimension_numbers = #tpu.dot_dimension_numbers<[1], [0], [0], [1], [0, 0, 1, 1], [], []>} : vector<16x256xf32>, vector<256x64xf32>, vector<16x64xf32> -> vector<16x64xf32>
    %58 = vector.broadcast %13 : vector<1x64xf32> to vector<16x64xf32>
    %59 = arith.addf %57, %58 : vector<16x64xf32>
    %c0_38 = arith.constant 0 : index
    %c0_39 = arith.constant 0 : index
    %60 = vector.load %arg4[%c0_38, %c0_39] : memref<16x64xf32, #tpu.memory_space<vmem>>, vector<16x64xf32>
    %61 = arith.addf %59, %60 : vector<16x64xf32>
    %62 = vector.broadcast %1 : vector<16x1xf32> to vector<16x64xf32>
    %63 = arith.mulf %61, %62 : vector<16x64xf32>
    %c0_40 = arith.constant 0 : index
    %c0_41 = arith.constant 0 : index
    %c0_42 = arith.constant 0 : index
    %64 = vector.load %arg2[%c0_40, %c0_41, %c0_42] : memref<1x8x32xf32, #tpu.memory_space<vmem>>, vector<1x8x32xf32>
    %65 = vector.shape_cast %64 : vector<1x8x32xf32> to vector<8x32xf32>
    %c0_43 = arith.constant 0 : index
    %c0_44 = arith.constant 0 : index
    %66 = vector.load %arg14[%c0_43, %c0_44] : memref<32x256xf32, #tpu.memory_space<vmem>>, vector<32x256xf32>
    %c0_45 = arith.constant 0 : index
    %c0_46 = arith.constant 0 : index
    %67 = vector.load %arg15[%c0_45, %c0_46] : memref<1x256xf32, #tpu.memory_space<vmem>>, vector<1x256xf32>
    %c0_47 = arith.constant 0 : index
    %c0_48 = arith.constant 0 : index
    %68 = vector.load %arg16[%c0_47, %c0_48] : memref<256x64xf32, #tpu.memory_space<vmem>>, vector<256x64xf32>
    %c0_49 = arith.constant 0 : index
    %c0_50 = arith.constant 0 : index
    %69 = vector.load %arg17[%c0_49, %c0_50] : memref<1x64xf32, #tpu.memory_space<vmem>>, vector<1x64xf32>
    %cst_51 = arith.constant dense<0.000000e+00> : vector<8x256xf32>
    %70 = tpu.matmul %65, %66, %cst_51 {dimension_numbers = #tpu.dot_dimension_numbers<[1], [0], [0], [1], [0, 0, 1, 1], [], []>} : vector<8x32xf32>, vector<32x256xf32>, vector<8x256xf32> -> vector<8x256xf32>
    %71 = vector.broadcast %67 : vector<1x256xf32> to vector<8x256xf32>
    %72 = arith.addf %70, %71 : vector<8x256xf32>
    %cst_52 = arith.constant 0.707106769 : f32
    %73 = vector.broadcast %cst_52 : f32 to vector<8x256xf32>
    %74 = arith.mulf %72, %73 : vector<8x256xf32>
    %75 = math.absf %74 : vector<8x256xf32>
    %cst_53 = arith.constant 0.327591091 : f32
    %76 = vector.broadcast %cst_53 : f32 to vector<8x256xf32>
    %77 = arith.mulf %76, %75 : vector<8x256xf32>
    %cst_54 = arith.constant 1.000000e+00 : f32
    %78 = vector.broadcast %cst_54 : f32 to vector<8x256xf32>
    %79 = arith.addf %78, %77 : vector<8x256xf32>
    %cst_55 = arith.constant 1.000000e+00 : f32
    %80 = vector.broadcast %cst_55 : f32 to vector<8x256xf32>
    %81 = arith.divf %80, %79 : vector<8x256xf32>
    %cst_56 = arith.constant 1.06140542 : f32
    %82 = vector.broadcast %cst_56 : f32 to vector<8x256xf32>
    %83 = arith.mulf %81, %82 : vector<8x256xf32>
    %cst_57 = arith.constant -1.45315206 : f32
    %84 = vector.broadcast %cst_57 : f32 to vector<8x256xf32>
    %85 = arith.addf %84, %83 : vector<8x256xf32>
    %86 = arith.mulf %81, %85 : vector<8x256xf32>
    %cst_58 = arith.constant 1.42141378 : f32
    %87 = vector.broadcast %cst_58 : f32 to vector<8x256xf32>
    %88 = arith.addf %87, %86 : vector<8x256xf32>
    %89 = arith.mulf %81, %88 : vector<8x256xf32>
    %cst_59 = arith.constant -0.284496725 : f32
    %90 = vector.broadcast %cst_59 : f32 to vector<8x256xf32>
    %91 = arith.addf %90, %89 : vector<8x256xf32>
    %92 = arith.mulf %81, %91 : vector<8x256xf32>
    %cst_60 = arith.constant 0.254829586 : f32
    %93 = vector.broadcast %cst_60 : f32 to vector<8x256xf32>
    %94 = arith.addf %93, %92 : vector<8x256xf32>
    %95 = arith.mulf %81, %94 : vector<8x256xf32>
    %cst_61 = arith.constant 0.000000e+00 : f32
    %96 = vector.broadcast %cst_61 : f32 to vector<8x256xf32>
    %97 = arith.subf %96, %75 : vector<8x256xf32>
    %98 = arith.mulf %97, %75 : vector<8x256xf32>
    %99 = math.exp %98 : vector<8x256xf32>
    %100 = arith.mulf %95, %99 : vector<8x256xf32>
    %cst_62 = arith.constant 1.000000e+00 : f32
    %101 = vector.broadcast %cst_62 : f32 to vector<8x256xf32>
    %102 = arith.subf %101, %100 : vector<8x256xf32>
    %cst_63 = arith.constant 0.000000e+00 : f32
    %103 = vector.broadcast %cst_63 : f32 to vector<8x256xf32>
    %104 = arith.cmpf oge, %74, %103 : vector<8x256xf32>
    %cst_64 = arith.constant 0.000000e+00 : f32
    %105 = vector.broadcast %cst_64 : f32 to vector<8x256xf32>
    %106 = arith.subf %105, %102 : vector<8x256xf32>
    %107 = arith.select %104, %102, %106 : vector<8x256xi1>, vector<8x256xf32>
    %cst_65 = arith.constant 5.000000e-01 : f32
    %108 = vector.broadcast %cst_65 : f32 to vector<8x256xf32>
    %109 = arith.mulf %108, %72 : vector<8x256xf32>
    %cst_66 = arith.constant 1.000000e+00 : f32
    %110 = vector.broadcast %cst_66 : f32 to vector<8x256xf32>
    %111 = arith.addf %110, %107 : vector<8x256xf32>
    %112 = arith.mulf %109, %111 : vector<8x256xf32>
    %cst_67 = arith.constant dense<0.000000e+00> : vector<8x64xf32>
    %113 = tpu.matmul %112, %68, %cst_67 {dimension_numbers = #tpu.dot_dimension_numbers<[1], [0], [0], [1], [0, 0, 1, 1], [], []>} : vector<8x256xf32>, vector<256x64xf32>, vector<8x64xf32> -> vector<8x64xf32>
    %114 = vector.broadcast %69 : vector<1x64xf32> to vector<8x64xf32>
    %115 = arith.addf %113, %114 : vector<8x64xf32>
    %c0_68 = arith.constant 0 : index
    %c0_69 = arith.constant 0 : index
    %c0_70 = arith.constant 0 : index
    %116 = vector.load %arg3[%c0_68, %c0_69, %c0_70] : memref<1x1x64xf32, #tpu.memory_space<vmem>>, vector<1x1x64xf32>
    %117 = vector.shape_cast %116 : vector<1x1x64xf32> to vector<1x64xf32>
    %c0_71 = arith.constant 0 : index
    %c0_72 = arith.constant 0 : index
    %118 = vector.load %arg18[%c0_71, %c0_72] : memref<64x256xf32, #tpu.memory_space<vmem>>, vector<64x256xf32>
    %c0_73 = arith.constant 0 : index
    %c0_74 = arith.constant 0 : index
    %119 = vector.load %arg19[%c0_73, %c0_74] : memref<1x256xf32, #tpu.memory_space<vmem>>, vector<1x256xf32>
    %c0_75 = arith.constant 0 : index
    %c0_76 = arith.constant 0 : index
    %120 = vector.load %arg20[%c0_75, %c0_76] : memref<256x64xf32, #tpu.memory_space<vmem>>, vector<256x64xf32>
    %c0_77 = arith.constant 0 : index
    %c0_78 = arith.constant 0 : index
    %121 = vector.load %arg21[%c0_77, %c0_78] : memref<1x64xf32, #tpu.memory_space<vmem>>, vector<1x64xf32>
    %cst_79 = arith.constant dense<0.000000e+00> : vector<1x256xf32>
    %122 = tpu.matmul %117, %118, %cst_79 {dimension_numbers = #tpu.dot_dimension_numbers<[1], [0], [0], [1], [0, 0, 1, 1], [], []>} : vector<1x64xf32>, vector<64x256xf32>, vector<1x256xf32> -> vector<1x256xf32>
    %123 = arith.addf %122, %119 : vector<1x256xf32>
    %cst_80 = arith.constant 0.707106769 : f32
    %124 = vector.broadcast %cst_80 : f32 to vector<1x256xf32>
    %125 = arith.mulf %123, %124 : vector<1x256xf32>
    %126 = math.absf %125 : vector<1x256xf32>
    %cst_81 = arith.constant 0.327591091 : f32
    %127 = vector.broadcast %cst_81 : f32 to vector<1x256xf32>
    %128 = arith.mulf %127, %126 : vector<1x256xf32>
    %cst_82 = arith.constant 1.000000e+00 : f32
    %129 = vector.broadcast %cst_82 : f32 to vector<1x256xf32>
    %130 = arith.addf %129, %128 : vector<1x256xf32>
    %cst_83 = arith.constant 1.000000e+00 : f32
    %131 = vector.broadcast %cst_83 : f32 to vector<1x256xf32>
    %132 = arith.divf %131, %130 : vector<1x256xf32>
    %cst_84 = arith.constant 1.06140542 : f32
    %133 = vector.broadcast %cst_84 : f32 to vector<1x256xf32>
    %134 = arith.mulf %132, %133 : vector<1x256xf32>
    %cst_85 = arith.constant -1.45315206 : f32
    %135 = vector.broadcast %cst_85 : f32 to vector<1x256xf32>
    %136 = arith.addf %135, %134 : vector<1x256xf32>
    %137 = arith.mulf %132, %136 : vector<1x256xf32>
    %cst_86 = arith.constant 1.42141378 : f32
    %138 = vector.broadcast %cst_86 : f32 to vector<1x256xf32>
    %139 = arith.addf %138, %137 : vector<1x256xf32>
    %140 = arith.mulf %132, %139 : vector<1x256xf32>
    %cst_87 = arith.constant -0.284496725 : f32
    %141 = vector.broadcast %cst_87 : f32 to vector<1x256xf32>
    %142 = arith.addf %141, %140 : vector<1x256xf32>
    %143 = arith.mulf %132, %142 : vector<1x256xf32>
    %cst_88 = arith.constant 0.254829586 : f32
    %144 = vector.broadcast %cst_88 : f32 to vector<1x256xf32>
    %145 = arith.addf %144, %143 : vector<1x256xf32>
    %146 = arith.mulf %132, %145 : vector<1x256xf32>
    %cst_89 = arith.constant 0.000000e+00 : f32
    %147 = vector.broadcast %cst_89 : f32 to vector<1x256xf32>
    %148 = arith.subf %147, %126 : vector<1x256xf32>
    %149 = arith.mulf %148, %126 : vector<1x256xf32>
    %150 = math.exp %149 : vector<1x256xf32>
    %151 = arith.mulf %146, %150 : vector<1x256xf32>
    %cst_90 = arith.constant 1.000000e+00 : f32
    %152 = vector.broadcast %cst_90 : f32 to vector<1x256xf32>
    %153 = arith.subf %152, %151 : vector<1x256xf32>
    %cst_91 = arith.constant 0.000000e+00 : f32
    %154 = vector.broadcast %cst_91 : f32 to vector<1x256xf32>
    %155 = arith.cmpf oge, %125, %154 : vector<1x256xf32>
    %cst_92 = arith.constant 0.000000e+00 : f32
    %156 = vector.broadcast %cst_92 : f32 to vector<1x256xf32>
    %157 = arith.subf %156, %153 : vector<1x256xf32>
    %158 = arith.select %155, %153, %157 : vector<1x256xi1>, vector<1x256xf32>
    %cst_93 = arith.constant 5.000000e-01 : f32
    %159 = vector.broadcast %cst_93 : f32 to vector<1x256xf32>
    %160 = arith.mulf %159, %123 : vector<1x256xf32>
    %cst_94 = arith.constant 1.000000e+00 : f32
    %161 = vector.broadcast %cst_94 : f32 to vector<1x256xf32>
    %162 = arith.addf %161, %158 : vector<1x256xf32>
    %163 = arith.mulf %160, %162 : vector<1x256xf32>
    %cst_95 = arith.constant dense<0.000000e+00> : vector<1x64xf32>
    %164 = tpu.matmul %163, %120, %cst_95 {dimension_numbers = #tpu.dot_dimension_numbers<[1], [0], [0], [1], [0, 0, 1, 1], [], []>} : vector<1x256xf32>, vector<256x64xf32>, vector<1x64xf32> -> vector<1x64xf32>
    %165 = arith.addf %164, %121 : vector<1x64xf32>
    %c0_96 = arith.constant 0 : index
    %c0_97 = arith.constant 0 : index
    %166 = vector.load %arg5[%c0_96, %c0_97] : memref<8x64xf32, #tpu.memory_space<vmem>>, vector<8x64xf32>
    %167 = arith.addf %115, %166 : vector<8x64xf32>
    %168 = vector.broadcast %165 : vector<1x64xf32> to vector<8x64xf32>
    %169 = arith.addf %167, %168 : vector<8x64xf32>
    %170 = vector.broadcast %3 : vector<8x1xf32> to vector<8x64xf32>
    %171 = arith.mulf %169, %170 : vector<8x64xf32>
    %c0_98 = arith.constant 0 : index
    %c0_99 = arith.constant 0 : index
    %c0_100 = arith.constant 0 : index
    %172 = vector.load %arg26[%c0_98, %c0_99, %c0_100] : memref<2x64x192xf32, #tpu.memory_space<vmem>>, vector<1x64x192xf32>
    %173 = vector.shape_cast %172 : vector<1x64x192xf32> to vector<64x192xf32>
    %cst_101 = arith.constant dense<0.000000e+00> : vector<16x192xf32>
    %174 = tpu.matmul %63, %173, %cst_101 {dimension_numbers = #tpu.dot_dimension_numbers<[1], [0], [0], [1], [0, 0, 1, 1], [], []>} : vector<16x64xf32>, vector<64x192xf32>, vector<16x192xf32> -> vector<16x192xf32>
    %c0_102 = arith.constant 0 : index
    %c0_103 = arith.constant 0 : index
    %c0_104 = arith.constant 0 : index
    %175 = vector.load %arg27[%c0_102, %c0_103, %c0_104] : memref<2x1x192xf32, #tpu.memory_space<vmem>>, vector<1x1x192xf32>
    %176 = vector.shape_cast %175 : vector<1x1x192xf32> to vector<1x192xf32>
    %177 = vector.broadcast %176 : vector<1x192xf32> to vector<16x192xf32>
    %178 = arith.addf %174, %177 : vector<16x192xf32>
    %179 = vector.extract_strided_slice %178 {offsets = [0, 0], sizes = [16, 64], strides = [1, 1]} : vector<16x192xf32> to vector<16x64xf32>
    %cst_105 = arith.constant 0.353553385 : f32
    %180 = vector.broadcast %cst_105 : f32 to vector<16x64xf32>
    %181 = arith.mulf %179, %180 : vector<16x64xf32>
    %182 = vector.extract_strided_slice %178 {offsets = [0, 64], sizes = [16, 64], strides = [1, 1]} : vector<16x192xf32> to vector<16x64xf32>
    %183 = vector.extract_strided_slice %178 {offsets = [0, 128], sizes = [16, 64], strides = [1, 1]} : vector<16x192xf32> to vector<16x64xf32>
    %184 = vector.extract_strided_slice %181 {offsets = [0, 0], sizes = [16, 8], strides = [1, 1]} : vector<16x64xf32> to vector<16x8xf32>
    %185 = vector.extract_strided_slice %182 {offsets = [0, 0], sizes = [16, 8], strides = [1, 1]} : vector<16x64xf32> to vector<16x8xf32>
    %cst_106 = arith.constant dense<0.000000e+00> : vector<16x16xf32>
    %186 = tpu.matmul %184, %185, %cst_106 {dimension_numbers = #tpu.dot_dimension_numbers<[1], [1], [0], [0], [0, 0, 1, 0], [], []>} : vector<16x8xf32>, vector<16x8xf32>, vector<16x16xf32> -> vector<16x16xf32>
    %187 = vector.broadcast %5 : vector<1x16xf32> to vector<16x16xf32>
    %188 = arith.addf %186, %187 : vector<16x16xf32>
    %cst_107 = arith.constant dense<0xFF800000> : vector<16xf32>
    %189 = vector.multi_reduction <maximumf>, %188, %cst_107 [1] : vector<16x16xf32> to vector<16xf32>
    %190 = vector.shape_cast %189 : vector<16xf32> to vector<16x1xf32>
    %191 = vector.broadcast %190 : vector<16x1xf32> to vector<16x16xf32>
    %192 = arith.subf %188, %191 : vector<16x16xf32>
    %193 = math.exp %192 : vector<16x16xf32>
    %cst_108 = arith.constant dense<0.000000e+00> : vector<16xf32>
    %194 = vector.multi_reduction <add>, %193, %cst_108 [1] : vector<16x16xf32> to vector<16xf32>
    %195 = vector.shape_cast %194 : vector<16xf32> to vector<16x1xf32>
    %196 = tpu.reciprocal %195 {approx = true} : vector<16x1xf32> -> vector<16x1xf32>
    %197 = vector.broadcast %196 : vector<16x1xf32> to vector<16x16xf32>
    %198 = arith.mulf %193, %197 : vector<16x16xf32>
    %199 = vector.extract_strided_slice %183 {offsets = [0, 0], sizes = [16, 8], strides = [1, 1]} : vector<16x64xf32> to vector<16x8xf32>
    %cst_109 = arith.constant dense<0.000000e+00> : vector<16x8xf32>
    %200 = tpu.matmul %198, %199, %cst_109 {dimension_numbers = #tpu.dot_dimension_numbers<[1], [0], [0], [1], [0, 0, 1, 1], [], []>} : vector<16x16xf32>, vector<16x8xf32>, vector<16x8xf32> -> vector<16x8xf32>
    %201 = vector.extract_strided_slice %181 {offsets = [0, 8], sizes = [16, 8], strides = [1, 1]} : vector<16x64xf32> to vector<16x8xf32>
    %202 = vector.extract_strided_slice %182 {offsets = [0, 8], sizes = [16, 8], strides = [1, 1]} : vector<16x64xf32> to vector<16x8xf32>
    %cst_110 = arith.constant dense<0.000000e+00> : vector<16x16xf32>
    %203 = tpu.matmul %201, %202, %cst_110 {dimension_numbers = #tpu.dot_dimension_numbers<[1], [1], [0], [0], [0, 0, 1, 0], [], []>} : vector<16x8xf32>, vector<16x8xf32>, vector<16x16xf32> -> vector<16x16xf32>
    %204 = vector.broadcast %5 : vector<1x16xf32> to vector<16x16xf32>
    %205 = arith.addf %203, %204 : vector<16x16xf32>
    %cst_111 = arith.constant dense<0xFF800000> : vector<16xf32>
    %206 = vector.multi_reduction <maximumf>, %205, %cst_111 [1] : vector<16x16xf32> to vector<16xf32>
    %207 = vector.shape_cast %206 : vector<16xf32> to vector<16x1xf32>
    %208 = vector.broadcast %207 : vector<16x1xf32> to vector<16x16xf32>
    %209 = arith.subf %205, %208 : vector<16x16xf32>
    %210 = math.exp %209 : vector<16x16xf32>
    %cst_112 = arith.constant dense<0.000000e+00> : vector<16xf32>
    %211 = vector.multi_reduction <add>, %210, %cst_112 [1] : vector<16x16xf32> to vector<16xf32>
    %212 = vector.shape_cast %211 : vector<16xf32> to vector<16x1xf32>
    %213 = tpu.reciprocal %212 {approx = true} : vector<16x1xf32> -> vector<16x1xf32>
    %214 = vector.broadcast %213 : vector<16x1xf32> to vector<16x16xf32>
    %215 = arith.mulf %210, %214 : vector<16x16xf32>
    %216 = vector.extract_strided_slice %183 {offsets = [0, 8], sizes = [16, 8], strides = [1, 1]} : vector<16x64xf32> to vector<16x8xf32>
    %cst_113 = arith.constant dense<0.000000e+00> : vector<16x8xf32>
    %217 = tpu.matmul %215, %216, %cst_113 {dimension_numbers = #tpu.dot_dimension_numbers<[1], [0], [0], [1], [0, 0, 1, 1], [], []>} : vector<16x16xf32>, vector<16x8xf32>, vector<16x8xf32> -> vector<16x8xf32>
    %218 = vector.extract_strided_slice %181 {offsets = [0, 16], sizes = [16, 8], strides = [1, 1]} : vector<16x64xf32> to vector<16x8xf32>
    %219 = vector.extract_strided_slice %182 {offsets = [0, 16], sizes = [16, 8], strides = [1, 1]} : vector<16x64xf32> to vector<16x8xf32>
    %cst_114 = arith.constant dense<0.000000e+00> : vector<16x16xf32>
    %220 = tpu.matmul %218, %219, %cst_114 {dimension_numbers = #tpu.dot_dimension_numbers<[1], [1], [0], [0], [0, 0, 1, 0], [], []>} : vector<16x8xf32>, vector<16x8xf32>, vector<16x16xf32> -> vector<16x16xf32>
    %221 = vector.broadcast %5 : vector<1x16xf32> to vector<16x16xf32>
    %222 = arith.addf %220, %221 : vector<16x16xf32>
    %cst_115 = arith.constant dense<0xFF800000> : vector<16xf32>
    %223 = vector.multi_reduction <maximumf>, %222, %cst_115 [1] : vector<16x16xf32> to vector<16xf32>
    %224 = vector.shape_cast %223 : vector<16xf32> to vector<16x1xf32>
    %225 = vector.broadcast %224 : vector<16x1xf32> to vector<16x16xf32>
    %226 = arith.subf %222, %225 : vector<16x16xf32>
    %227 = math.exp %226 : vector<16x16xf32>
    %cst_116 = arith.constant dense<0.000000e+00> : vector<16xf32>
    %228 = vector.multi_reduction <add>, %227, %cst_116 [1] : vector<16x16xf32> to vector<16xf32>
    %229 = vector.shape_cast %228 : vector<16xf32> to vector<16x1xf32>
    %230 = tpu.reciprocal %229 {approx = true} : vector<16x1xf32> -> vector<16x1xf32>
    %231 = vector.broadcast %230 : vector<16x1xf32> to vector<16x16xf32>
    %232 = arith.mulf %227, %231 : vector<16x16xf32>
    %233 = vector.extract_strided_slice %183 {offsets = [0, 16], sizes = [16, 8], strides = [1, 1]} : vector<16x64xf32> to vector<16x8xf32>
    %cst_117 = arith.constant dense<0.000000e+00> : vector<16x8xf32>
    %234 = tpu.matmul %232, %233, %cst_117 {dimension_numbers = #tpu.dot_dimension_numbers<[1], [0], [0], [1], [0, 0, 1, 1], [], []>} : vector<16x16xf32>, vector<16x8xf32>, vector<16x8xf32> -> vector<16x8xf32>
    %235 = vector.extract_strided_slice %181 {offsets = [0, 24], sizes = [16, 8], strides = [1, 1]} : vector<16x64xf32> to vector<16x8xf32>
    %236 = vector.extract_strided_slice %182 {offsets = [0, 24], sizes = [16, 8], strides = [1, 1]} : vector<16x64xf32> to vector<16x8xf32>
    %cst_118 = arith.constant dense<0.000000e+00> : vector<16x16xf32>
    %237 = tpu.matmul %235, %236, %cst_118 {dimension_numbers = #tpu.dot_dimension_numbers<[1], [1], [0], [0], [0, 0, 1, 0], [], []>} : vector<16x8xf32>, vector<16x8xf32>, vector<16x16xf32> -> vector<16x16xf32>
    %238 = vector.broadcast %5 : vector<1x16xf32> to vector<16x16xf32>
    %239 = arith.addf %237, %238 : vector<16x16xf32>
    %cst_119 = arith.constant dense<0xFF800000> : vector<16xf32>
    %240 = vector.multi_reduction <maximumf>, %239, %cst_119 [1] : vector<16x16xf32> to vector<16xf32>
    %241 = vector.shape_cast %240 : vector<16xf32> to vector<16x1xf32>
    %242 = vector.broadcast %241 : vector<16x1xf32> to vector<16x16xf32>
    %243 = arith.subf %239, %242 : vector<16x16xf32>
    %244 = math.exp %243 : vector<16x16xf32>
    %cst_120 = arith.constant dense<0.000000e+00> : vector<16xf32>
    %245 = vector.multi_reduction <add>, %244, %cst_120 [1] : vector<16x16xf32> to vector<16xf32>
    %246 = vector.shape_cast %245 : vector<16xf32> to vector<16x1xf32>
    %247 = tpu.reciprocal %246 {approx = true} : vector<16x1xf32> -> vector<16x1xf32>
    %248 = vector.broadcast %247 : vector<16x1xf32> to vector<16x16xf32>
    %249 = arith.mulf %244, %248 : vector<16x16xf32>
    %250 = vector.extract_strided_slice %183 {offsets = [0, 24], sizes = [16, 8], strides = [1, 1]} : vector<16x64xf32> to vector<16x8xf32>
    %cst_121 = arith.constant dense<0.000000e+00> : vector<16x8xf32>
    %251 = tpu.matmul %249, %250, %cst_121 {dimension_numbers = #tpu.dot_dimension_numbers<[1], [0], [0], [1], [0, 0, 1, 1], [], []>} : vector<16x16xf32>, vector<16x8xf32>, vector<16x8xf32> -> vector<16x8xf32>
    %252 = vector.extract_strided_slice %181 {offsets = [0, 32], sizes = [16, 8], strides = [1, 1]} : vector<16x64xf32> to vector<16x8xf32>
    %253 = vector.extract_strided_slice %182 {offsets = [0, 32], sizes = [16, 8], strides = [1, 1]} : vector<16x64xf32> to vector<16x8xf32>
    %cst_122 = arith.constant dense<0.000000e+00> : vector<16x16xf32>
    %254 = tpu.matmul %252, %253, %cst_122 {dimension_numbers = #tpu.dot_dimension_numbers<[1], [1], [0], [0], [0, 0, 1, 0], [], []>} : vector<16x8xf32>, vector<16x8xf32>, vector<16x16xf32> -> vector<16x16xf32>
    %255 = vector.broadcast %5 : vector<1x16xf32> to vector<16x16xf32>
    %256 = arith.addf %254, %255 : vector<16x16xf32>
    %cst_123 = arith.constant dense<0xFF800000> : vector<16xf32>
    %257 = vector.multi_reduction <maximumf>, %256, %cst_123 [1] : vector<16x16xf32> to vector<16xf32>
    %258 = vector.shape_cast %257 : vector<16xf32> to vector<16x1xf32>
    %259 = vector.broadcast %258 : vector<16x1xf32> to vector<16x16xf32>
    %260 = arith.subf %256, %259 : vector<16x16xf32>
    %261 = math.exp %260 : vector<16x16xf32>
    %cst_124 = arith.constant dense<0.000000e+00> : vector<16xf32>
    %262 = vector.multi_reduction <add>, %261, %cst_124 [1] : vector<16x16xf32> to vector<16xf32>
    %263 = vector.shape_cast %262 : vector<16xf32> to vector<16x1xf32>
    %264 = tpu.reciprocal %263 {approx = true} : vector<16x1xf32> -> vector<16x1xf32>
    %265 = vector.broadcast %264 : vector<16x1xf32> to vector<16x16xf32>
    %266 = arith.mulf %261, %265 : vector<16x16xf32>
    %267 = vector.extract_strided_slice %183 {offsets = [0, 32], sizes = [16, 8], strides = [1, 1]} : vector<16x64xf32> to vector<16x8xf32>
    %cst_125 = arith.constant dense<0.000000e+00> : vector<16x8xf32>
    %268 = tpu.matmul %266, %267, %cst_125 {dimension_numbers = #tpu.dot_dimension_numbers<[1], [0], [0], [1], [0, 0, 1, 1], [], []>} : vector<16x16xf32>, vector<16x8xf32>, vector<16x8xf32> -> vector<16x8xf32>
    %269 = vector.extract_strided_slice %181 {offsets = [0, 40], sizes = [16, 8], strides = [1, 1]} : vector<16x64xf32> to vector<16x8xf32>
    %270 = vector.extract_strided_slice %182 {offsets = [0, 40], sizes = [16, 8], strides = [1, 1]} : vector<16x64xf32> to vector<16x8xf32>
    %cst_126 = arith.constant dense<0.000000e+00> : vector<16x16xf32>
    %271 = tpu.matmul %269, %270, %cst_126 {dimension_numbers = #tpu.dot_dimension_numbers<[1], [1], [0], [0], [0, 0, 1, 0], [], []>} : vector<16x8xf32>, vector<16x8xf32>, vector<16x16xf32> -> vector<16x16xf32>
    %272 = vector.broadcast %5 : vector<1x16xf32> to vector<16x16xf32>
    %273 = arith.addf %271, %272 : vector<16x16xf32>
    %cst_127 = arith.constant dense<0xFF800000> : vector<16xf32>
    %274 = vector.multi_reduction <maximumf>, %273, %cst_127 [1] : vector<16x16xf32> to vector<16xf32>
    %275 = vector.shape_cast %274 : vector<16xf32> to vector<16x1xf32>
    %276 = vector.broadcast %275 : vector<16x1xf32> to vector<16x16xf32>
    %277 = arith.subf %273, %276 : vector<16x16xf32>
    %278 = math.exp %277 : vector<16x16xf32>
    %cst_128 = arith.constant dense<0.000000e+00> : vector<16xf32>
    %279 = vector.multi_reduction <add>, %278, %cst_128 [1] : vector<16x16xf32> to vector<16xf32>
    %280 = vector.shape_cast %279 : vector<16xf32> to vector<16x1xf32>
    %281 = tpu.reciprocal %280 {approx = true} : vector<16x1xf32> -> vector<16x1xf32>
    %282 = vector.broadcast %281 : vector<16x1xf32> to vector<16x16xf32>
    %283 = arith.mulf %278, %282 : vector<16x16xf32>
    %284 = vector.extract_strided_slice %183 {offsets = [0, 40], sizes = [16, 8], strides = [1, 1]} : vector<16x64xf32> to vector<16x8xf32>
    %cst_129 = arith.constant dense<0.000000e+00> : vector<16x8xf32>
    %285 = tpu.matmul %283, %284, %cst_129 {dimension_numbers = #tpu.dot_dimension_numbers<[1], [0], [0], [1], [0, 0, 1, 1], [], []>} : vector<16x16xf32>, vector<16x8xf32>, vector<16x8xf32> -> vector<16x8xf32>
    %286 = vector.extract_strided_slice %181 {offsets = [0, 48], sizes = [16, 8], strides = [1, 1]} : vector<16x64xf32> to vector<16x8xf32>
    %287 = vector.extract_strided_slice %182 {offsets = [0, 48], sizes = [16, 8], strides = [1, 1]} : vector<16x64xf32> to vector<16x8xf32>
    %cst_130 = arith.constant dense<0.000000e+00> : vector<16x16xf32>
    %288 = tpu.matmul %286, %287, %cst_130 {dimension_numbers = #tpu.dot_dimension_numbers<[1], [1], [0], [0], [0, 0, 1, 0], [], []>} : vector<16x8xf32>, vector<16x8xf32>, vector<16x16xf32> -> vector<16x16xf32>
    %289 = vector.broadcast %5 : vector<1x16xf32> to vector<16x16xf32>
    %290 = arith.addf %288, %289 : vector<16x16xf32>
    %cst_131 = arith.constant dense<0xFF800000> : vector<16xf32>
    %291 = vector.multi_reduction <maximumf>, %290, %cst_131 [1] : vector<16x16xf32> to vector<16xf32>
    %292 = vector.shape_cast %291 : vector<16xf32> to vector<16x1xf32>
    %293 = vector.broadcast %292 : vector<16x1xf32> to vector<16x16xf32>
    %294 = arith.subf %290, %293 : vector<16x16xf32>
    %295 = math.exp %294 : vector<16x16xf32>
    %cst_132 = arith.constant dense<0.000000e+00> : vector<16xf32>
    %296 = vector.multi_reduction <add>, %295, %cst_132 [1] : vector<16x16xf32> to vector<16xf32>
    %297 = vector.shape_cast %296 : vector<16xf32> to vector<16x1xf32>
    %298 = tpu.reciprocal %297 {approx = true} : vector<16x1xf32> -> vector<16x1xf32>
    %299 = vector.broadcast %298 : vector<16x1xf32> to vector<16x16xf32>
    %300 = arith.mulf %295, %299 : vector<16x16xf32>
    %301 = vector.extract_strided_slice %183 {offsets = [0, 48], sizes = [16, 8], strides = [1, 1]} : vector<16x64xf32> to vector<16x8xf32>
    %cst_133 = arith.constant dense<0.000000e+00> : vector<16x8xf32>
    %302 = tpu.matmul %300, %301, %cst_133 {dimension_numbers = #tpu.dot_dimension_numbers<[1], [0], [0], [1], [0, 0, 1, 1], [], []>} : vector<16x16xf32>, vector<16x8xf32>, vector<16x8xf32> -> vector<16x8xf32>
    %303 = vector.extract_strided_slice %181 {offsets = [0, 56], sizes = [16, 8], strides = [1, 1]} : vector<16x64xf32> to vector<16x8xf32>
    %304 = vector.extract_strided_slice %182 {offsets = [0, 56], sizes = [16, 8], strides = [1, 1]} : vector<16x64xf32> to vector<16x8xf32>
    %cst_134 = arith.constant dense<0.000000e+00> : vector<16x16xf32>
    %305 = tpu.matmul %303, %304, %cst_134 {dimension_numbers = #tpu.dot_dimension_numbers<[1], [1], [0], [0], [0, 0, 1, 0], [], []>} : vector<16x8xf32>, vector<16x8xf32>, vector<16x16xf32> -> vector<16x16xf32>
    %306 = vector.broadcast %5 : vector<1x16xf32> to vector<16x16xf32>
    %307 = arith.addf %305, %306 : vector<16x16xf32>
    %cst_135 = arith.constant dense<0xFF800000> : vector<16xf32>
    %308 = vector.multi_reduction <maximumf>, %307, %cst_135 [1] : vector<16x16xf32> to vector<16xf32>
    %309 = vector.shape_cast %308 : vector<16xf32> to vector<16x1xf32>
    %310 = vector.broadcast %309 : vector<16x1xf32> to vector<16x16xf32>
    %311 = arith.subf %307, %310 : vector<16x16xf32>
    %312 = math.exp %311 : vector<16x16xf32>
    %cst_136 = arith.constant dense<0.000000e+00> : vector<16xf32>
    %313 = vector.multi_reduction <add>, %312, %cst_136 [1] : vector<16x16xf32> to vector<16xf32>
    %314 = vector.shape_cast %313 : vector<16xf32> to vector<16x1xf32>
    %315 = tpu.reciprocal %314 {approx = true} : vector<16x1xf32> -> vector<16x1xf32>
    %316 = vector.broadcast %315 : vector<16x1xf32> to vector<16x16xf32>
    %317 = arith.mulf %312, %316 : vector<16x16xf32>
    %318 = vector.extract_strided_slice %183 {offsets = [0, 56], sizes = [16, 8], strides = [1, 1]} : vector<16x64xf32> to vector<16x8xf32>
    %cst_137 = arith.constant dense<0.000000e+00> : vector<16x8xf32>
    %319 = tpu.matmul %317, %318, %cst_137 {dimension_numbers = #tpu.dot_dimension_numbers<[1], [0], [0], [1], [0, 0, 1, 1], [], []>} : vector<16x16xf32>, vector<16x8xf32>, vector<16x8xf32> -> vector<16x8xf32>
    %320 = tpu.concatenate %200, %217, %234, %251, %268, %285, %302, %319 in 1 : vector<16x8xf32>, vector<16x8xf32>, vector<16x8xf32>, vector<16x8xf32>, vector<16x8xf32>, vector<16x8xf32>, vector<16x8xf32>, vector<16x8xf32> -> vector<16x64xf32>
    %c0_138 = arith.constant 0 : index
    %c0_139 = arith.constant 0 : index
    %c0_140 = arith.constant 0 : index
    %321 = vector.load %arg28[%c0_138, %c0_139, %c0_140] : memref<2x64x64xf32, #tpu.memory_space<vmem>>, vector<1x64x64xf32>
    %322 = vector.shape_cast %321 : vector<1x64x64xf32> to vector<64x64xf32>
    %cst_141 = arith.constant dense<0.000000e+00> : vector<16x64xf32>
    %323 = tpu.matmul %320, %322, %cst_141 {dimension_numbers = #tpu.dot_dimension_numbers<[1], [0], [0], [1], [0, 0, 1, 1], [], []>} : vector<16x64xf32>, vector<64x64xf32>, vector<16x64xf32> -> vector<16x64xf32>
    %c0_142 = arith.constant 0 : index
    %c0_143 = arith.constant 0 : index
    %c0_144 = arith.constant 0 : index
    %324 = vector.load %arg29[%c0_142, %c0_143, %c0_144] : memref<2x1x64xf32, #tpu.memory_space<vmem>>, vector<1x1x64xf32>
    %325 = vector.shape_cast %324 : vector<1x1x64xf32> to vector<1x64xf32>
    %326 = vector.broadcast %325 : vector<1x64xf32> to vector<16x64xf32>
    %327 = arith.addf %323, %326 : vector<16x64xf32>
    %328 = arith.addf %63, %327 : vector<16x64xf32>
    %c0_145 = arith.constant 0 : index
    %c0_146 = arith.constant 0 : index
    %c0_147 = arith.constant 0 : index
    %329 = vector.load %arg36[%c0_145, %c0_146, %c0_147] : memref<2x1x64xf32, #tpu.memory_space<vmem>>, vector<1x1x64xf32>
    %330 = vector.shape_cast %329 : vector<1x1x64xf32> to vector<1x64xf32>
    %c0_148 = arith.constant 0 : index
    %c0_149 = arith.constant 0 : index
    %c0_150 = arith.constant 0 : index
    %331 = vector.load %arg37[%c0_148, %c0_149, %c0_150] : memref<2x1x64xf32, #tpu.memory_space<vmem>>, vector<1x1x64xf32>
    %332 = vector.shape_cast %331 : vector<1x1x64xf32> to vector<1x64xf32>
    %cst_151 = arith.constant dense<0.000000e+00> : vector<16xf32>
    %333 = vector.multi_reduction <add>, %328, %cst_151 [1] : vector<16x64xf32> to vector<16xf32>
    %334 = vector.shape_cast %333 : vector<16xf32> to vector<16x1xf32>
    %cst_152 = arith.constant 6.400000e+01 : f32
    %335 = vector.broadcast %cst_152 : f32 to vector<16x1xf32>
    %336 = arith.divf %334, %335 : vector<16x1xf32>
    %337 = vector.broadcast %336 : vector<16x1xf32> to vector<16x64xf32>
    %338 = arith.subf %328, %337 : vector<16x64xf32>
    %339 = arith.mulf %338, %338 : vector<16x64xf32>
    %cst_153 = arith.constant dense<0.000000e+00> : vector<16xf32>
    %340 = vector.multi_reduction <add>, %339, %cst_153 [1] : vector<16x64xf32> to vector<16xf32>
    %341 = vector.shape_cast %340 : vector<16xf32> to vector<16x1xf32>
    %cst_154 = arith.constant 6.400000e+01 : f32
    %342 = vector.broadcast %cst_154 : f32 to vector<16x1xf32>
    %343 = arith.divf %341, %342 : vector<16x1xf32>
    %344 = vector.broadcast %336 : vector<16x1xf32> to vector<16x64xf32>
    %345 = arith.subf %328, %344 : vector<16x64xf32>
    %cst_155 = arith.constant 9.99999974E-6 : f32
    %346 = vector.broadcast %cst_155 : f32 to vector<16x1xf32>
    %347 = arith.addf %343, %346 : vector<16x1xf32>
    %348 = math.rsqrt %347 : vector<16x1xf32>
    %349 = vector.broadcast %348 : vector<16x1xf32> to vector<16x64xf32>
    %350 = arith.mulf %345, %349 : vector<16x64xf32>
    %351 = vector.broadcast %330 : vector<1x64xf32> to vector<16x64xf32>
    %352 = arith.mulf %350, %351 : vector<16x64xf32>
    %353 = vector.broadcast %332 : vector<1x64xf32> to vector<16x64xf32>
    %354 = arith.addf %352, %353 : vector<16x64xf32>
    %c0_156 = arith.constant 0 : index
    %c0_157 = arith.constant 0 : index
    %c0_158 = arith.constant 0 : index
    %355 = vector.load %arg30[%c0_156, %c0_157, %c0_158] : memref<2x64x64xf32, #tpu.memory_space<vmem>>, vector<1x64x64xf32>
    %356 = vector.shape_cast %355 : vector<1x64x64xf32> to vector<64x64xf32>
    %cst_159 = arith.constant dense<0.000000e+00> : vector<16x64xf32>
    %357 = tpu.matmul %354, %356, %cst_159 {dimension_numbers = #tpu.dot_dimension_numbers<[1], [0], [0], [1], [0, 0, 1, 1], [], []>} : vector<16x64xf32>, vector<64x64xf32>, vector<16x64xf32> -> vector<16x64xf32>
    %c0_160 = arith.constant 0 : index
    %c0_161 = arith.constant 0 : index
    %c0_162 = arith.constant 0 : index
    %358 = vector.load %arg31[%c0_160, %c0_161, %c0_162] : memref<2x1x64xf32, #tpu.memory_space<vmem>>, vector<1x1x64xf32>
    %359 = vector.shape_cast %358 : vector<1x1x64xf32> to vector<1x64xf32>
    %360 = vector.broadcast %359 : vector<1x64xf32> to vector<16x64xf32>
    %361 = arith.addf %357, %360 : vector<16x64xf32>
    %cst_163 = arith.constant 0.353553385 : f32
    %362 = vector.broadcast %cst_163 : f32 to vector<16x64xf32>
    %363 = arith.mulf %361, %362 : vector<16x64xf32>
    %c0_164 = arith.constant 0 : index
    %c0_165 = arith.constant 0 : index
    %c0_166 = arith.constant 0 : index
    %364 = vector.load %arg32[%c0_164, %c0_165, %c0_166] : memref<2x64x128xf32, #tpu.memory_space<vmem>>, vector<1x64x128xf32>
    %365 = vector.shape_cast %364 : vector<1x64x128xf32> to vector<64x128xf32>
    %cst_167 = arith.constant dense<0.000000e+00> : vector<8x128xf32>
    %366 = tpu.matmul %171, %365, %cst_167 {dimension_numbers = #tpu.dot_dimension_numbers<[1], [0], [0], [1], [0, 0, 1, 1], [], []>} : vector<8x64xf32>, vector<64x128xf32>, vector<8x128xf32> -> vector<8x128xf32>
    %c0_168 = arith.constant 0 : index
    %c0_169 = arith.constant 0 : index
    %c0_170 = arith.constant 0 : index
    %367 = vector.load %arg33[%c0_168, %c0_169, %c0_170] : memref<2x1x128xf32, #tpu.memory_space<vmem>>, vector<1x1x128xf32>
    %368 = vector.shape_cast %367 : vector<1x1x128xf32> to vector<1x128xf32>
    %369 = vector.broadcast %368 : vector<1x128xf32> to vector<8x128xf32>
    %370 = arith.addf %366, %369 : vector<8x128xf32>
    %371 = vector.extract_strided_slice %370 {offsets = [0, 0], sizes = [8, 64], strides = [1, 1]} : vector<8x128xf32> to vector<8x64xf32>
    %372 = vector.extract_strided_slice %370 {offsets = [0, 64], sizes = [8, 64], strides = [1, 1]} : vector<8x128xf32> to vector<8x64xf32>
    %373 = vector.extract_strided_slice %363 {offsets = [0, 0], sizes = [16, 8], strides = [1, 1]} : vector<16x64xf32> to vector<16x8xf32>
    %374 = vector.extract_strided_slice %371 {offsets = [0, 0], sizes = [8, 8], strides = [1, 1]} : vector<8x64xf32> to vector<8x8xf32>
    %cst_171 = arith.constant dense<0.000000e+00> : vector<16x8xf32>
    %375 = tpu.matmul %373, %374, %cst_171 {dimension_numbers = #tpu.dot_dimension_numbers<[1], [1], [0], [0], [0, 0, 1, 0], [], []>} : vector<16x8xf32>, vector<8x8xf32>, vector<16x8xf32> -> vector<16x8xf32>
    %376 = vector.broadcast %7 : vector<1x8xf32> to vector<16x8xf32>
    %377 = arith.addf %375, %376 : vector<16x8xf32>
    %cst_172 = arith.constant dense<0xFF800000> : vector<16xf32>
    %378 = vector.multi_reduction <maximumf>, %377, %cst_172 [1] : vector<16x8xf32> to vector<16xf32>
    %379 = vector.shape_cast %378 : vector<16xf32> to vector<16x1xf32>
    %380 = vector.broadcast %379 : vector<16x1xf32> to vector<16x8xf32>
    %381 = arith.subf %377, %380 : vector<16x8xf32>
    %382 = math.exp %381 : vector<16x8xf32>
    %cst_173 = arith.constant dense<0.000000e+00> : vector<16xf32>
    %383 = vector.multi_reduction <add>, %382, %cst_173 [1] : vector<16x8xf32> to vector<16xf32>
    %384 = vector.shape_cast %383 : vector<16xf32> to vector<16x1xf32>
    %385 = tpu.reciprocal %384 {approx = true} : vector<16x1xf32> -> vector<16x1xf32>
    %386 = vector.broadcast %385 : vector<16x1xf32> to vector<16x8xf32>
    %387 = arith.mulf %382, %386 : vector<16x8xf32>
    %388 = vector.extract_strided_slice %372 {offsets = [0, 0], sizes = [8, 8], strides = [1, 1]} : vector<8x64xf32> to vector<8x8xf32>
    %cst_174 = arith.constant dense<0.000000e+00> : vector<16x8xf32>
    %389 = tpu.matmul %387, %388, %cst_174 {dimension_numbers = #tpu.dot_dimension_numbers<[1], [0], [0], [1], [0, 0, 1, 1], [], []>} : vector<16x8xf32>, vector<8x8xf32>, vector<16x8xf32> -> vector<16x8xf32>
    %390 = vector.extract_strided_slice %363 {offsets = [0, 8], sizes = [16, 8], strides = [1, 1]} : vector<16x64xf32> to vector<16x8xf32>
    %391 = vector.extract_strided_slice %371 {offsets = [0, 8], sizes = [8, 8], strides = [1, 1]} : vector<8x64xf32> to vector<8x8xf32>
    %cst_175 = arith.constant dense<0.000000e+00> : vector<16x8xf32>
    %392 = tpu.matmul %390, %391, %cst_175 {dimension_numbers = #tpu.dot_dimension_numbers<[1], [1], [0], [0], [0, 0, 1, 0], [], []>} : vector<16x8xf32>, vector<8x8xf32>, vector<16x8xf32> -> vector<16x8xf32>
    %393 = vector.broadcast %7 : vector<1x8xf32> to vector<16x8xf32>
    %394 = arith.addf %392, %393 : vector<16x8xf32>
    %cst_176 = arith.constant dense<0xFF800000> : vector<16xf32>
    %395 = vector.multi_reduction <maximumf>, %394, %cst_176 [1] : vector<16x8xf32> to vector<16xf32>
    %396 = vector.shape_cast %395 : vector<16xf32> to vector<16x1xf32>
    %397 = vector.broadcast %396 : vector<16x1xf32> to vector<16x8xf32>
    %398 = arith.subf %394, %397 : vector<16x8xf32>
    %399 = math.exp %398 : vector<16x8xf32>
    %cst_177 = arith.constant dense<0.000000e+00> : vector<16xf32>
    %400 = vector.multi_reduction <add>, %399, %cst_177 [1] : vector<16x8xf32> to vector<16xf32>
    %401 = vector.shape_cast %400 : vector<16xf32> to vector<16x1xf32>
    %402 = tpu.reciprocal %401 {approx = true} : vector<16x1xf32> -> vector<16x1xf32>
    %403 = vector.broadcast %402 : vector<16x1xf32> to vector<16x8xf32>
    %404 = arith.mulf %399, %403 : vector<16x8xf32>
    %405 = vector.extract_strided_slice %372 {offsets = [0, 8], sizes = [8, 8], strides = [1, 1]} : vector<8x64xf32> to vector<8x8xf32>
    %cst_178 = arith.constant dense<0.000000e+00> : vector<16x8xf32>
    %406 = tpu.matmul %404, %405, %cst_178 {dimension_numbers = #tpu.dot_dimension_numbers<[1], [0], [0], [1], [0, 0, 1, 1], [], []>} : vector<16x8xf32>, vector<8x8xf32>, vector<16x8xf32> -> vector<16x8xf32>
    %407 = vector.extract_strided_slice %363 {offsets = [0, 16], sizes = [16, 8], strides = [1, 1]} : vector<16x64xf32> to vector<16x8xf32>
    %408 = vector.extract_strided_slice %371 {offsets = [0, 16], sizes = [8, 8], strides = [1, 1]} : vector<8x64xf32> to vector<8x8xf32>
    %cst_179 = arith.constant dense<0.000000e+00> : vector<16x8xf32>
    %409 = tpu.matmul %407, %408, %cst_179 {dimension_numbers = #tpu.dot_dimension_numbers<[1], [1], [0], [0], [0, 0, 1, 0], [], []>} : vector<16x8xf32>, vector<8x8xf32>, vector<16x8xf32> -> vector<16x8xf32>
    %410 = vector.broadcast %7 : vector<1x8xf32> to vector<16x8xf32>
    %411 = arith.addf %409, %410 : vector<16x8xf32>
    %cst_180 = arith.constant dense<0xFF800000> : vector<16xf32>
    %412 = vector.multi_reduction <maximumf>, %411, %cst_180 [1] : vector<16x8xf32> to vector<16xf32>
    %413 = vector.shape_cast %412 : vector<16xf32> to vector<16x1xf32>
    %414 = vector.broadcast %413 : vector<16x1xf32> to vector<16x8xf32>
    %415 = arith.subf %411, %414 : vector<16x8xf32>
    %416 = math.exp %415 : vector<16x8xf32>
    %cst_181 = arith.constant dense<0.000000e+00> : vector<16xf32>
    %417 = vector.multi_reduction <add>, %416, %cst_181 [1] : vector<16x8xf32> to vector<16xf32>
    %418 = vector.shape_cast %417 : vector<16xf32> to vector<16x1xf32>
    %419 = tpu.reciprocal %418 {approx = true} : vector<16x1xf32> -> vector<16x1xf32>
    %420 = vector.broadcast %419 : vector<16x1xf32> to vector<16x8xf32>
    %421 = arith.mulf %416, %420 : vector<16x8xf32>
    %422 = vector.extract_strided_slice %372 {offsets = [0, 16], sizes = [8, 8], strides = [1, 1]} : vector<8x64xf32> to vector<8x8xf32>
    %cst_182 = arith.constant dense<0.000000e+00> : vector<16x8xf32>
    %423 = tpu.matmul %421, %422, %cst_182 {dimension_numbers = #tpu.dot_dimension_numbers<[1], [0], [0], [1], [0, 0, 1, 1], [], []>} : vector<16x8xf32>, vector<8x8xf32>, vector<16x8xf32> -> vector<16x8xf32>
    %424 = vector.extract_strided_slice %363 {offsets = [0, 24], sizes = [16, 8], strides = [1, 1]} : vector<16x64xf32> to vector<16x8xf32>
    %425 = vector.extract_strided_slice %371 {offsets = [0, 24], sizes = [8, 8], strides = [1, 1]} : vector<8x64xf32> to vector<8x8xf32>
    %cst_183 = arith.constant dense<0.000000e+00> : vector<16x8xf32>
    %426 = tpu.matmul %424, %425, %cst_183 {dimension_numbers = #tpu.dot_dimension_numbers<[1], [1], [0], [0], [0, 0, 1, 0], [], []>} : vector<16x8xf32>, vector<8x8xf32>, vector<16x8xf32> -> vector<16x8xf32>
    %427 = vector.broadcast %7 : vector<1x8xf32> to vector<16x8xf32>
    %428 = arith.addf %426, %427 : vector<16x8xf32>
    %cst_184 = arith.constant dense<0xFF800000> : vector<16xf32>
    %429 = vector.multi_reduction <maximumf>, %428, %cst_184 [1] : vector<16x8xf32> to vector<16xf32>
    %430 = vector.shape_cast %429 : vector<16xf32> to vector<16x1xf32>
    %431 = vector.broadcast %430 : vector<16x1xf32> to vector<16x8xf32>
    %432 = arith.subf %428, %431 : vector<16x8xf32>
    %433 = math.exp %432 : vector<16x8xf32>
    %cst_185 = arith.constant dense<0.000000e+00> : vector<16xf32>
    %434 = vector.multi_reduction <add>, %433, %cst_185 [1] : vector<16x8xf32> to vector<16xf32>
    %435 = vector.shape_cast %434 : vector<16xf32> to vector<16x1xf32>
    %436 = tpu.reciprocal %435 {approx = true} : vector<16x1xf32> -> vector<16x1xf32>
    %437 = vector.broadcast %436 : vector<16x1xf32> to vector<16x8xf32>
    %438 = arith.mulf %433, %437 : vector<16x8xf32>
    %439 = vector.extract_strided_slice %372 {offsets = [0, 24], sizes = [8, 8], strides = [1, 1]} : vector<8x64xf32> to vector<8x8xf32>
    %cst_186 = arith.constant dense<0.000000e+00> : vector<16x8xf32>
    %440 = tpu.matmul %438, %439, %cst_186 {dimension_numbers = #tpu.dot_dimension_numbers<[1], [0], [0], [1], [0, 0, 1, 1], [], []>} : vector<16x8xf32>, vector<8x8xf32>, vector<16x8xf32> -> vector<16x8xf32>
    %441 = vector.extract_strided_slice %363 {offsets = [0, 32], sizes = [16, 8], strides = [1, 1]} : vector<16x64xf32> to vector<16x8xf32>
    %442 = vector.extract_strided_slice %371 {offsets = [0, 32], sizes = [8, 8], strides = [1, 1]} : vector<8x64xf32> to vector<8x8xf32>
    %cst_187 = arith.constant dense<0.000000e+00> : vector<16x8xf32>
    %443 = tpu.matmul %441, %442, %cst_187 {dimension_numbers = #tpu.dot_dimension_numbers<[1], [1], [0], [0], [0, 0, 1, 0], [], []>} : vector<16x8xf32>, vector<8x8xf32>, vector<16x8xf32> -> vector<16x8xf32>
    %444 = vector.broadcast %7 : vector<1x8xf32> to vector<16x8xf32>
    %445 = arith.addf %443, %444 : vector<16x8xf32>
    %cst_188 = arith.constant dense<0xFF800000> : vector<16xf32>
    %446 = vector.multi_reduction <maximumf>, %445, %cst_188 [1] : vector<16x8xf32> to vector<16xf32>
    %447 = vector.shape_cast %446 : vector<16xf32> to vector<16x1xf32>
    %448 = vector.broadcast %447 : vector<16x1xf32> to vector<16x8xf32>
    %449 = arith.subf %445, %448 : vector<16x8xf32>
    %450 = math.exp %449 : vector<16x8xf32>
    %cst_189 = arith.constant dense<0.000000e+00> : vector<16xf32>
    %451 = vector.multi_reduction <add>, %450, %cst_189 [1] : vector<16x8xf32> to vector<16xf32>
    %452 = vector.shape_cast %451 : vector<16xf32> to vector<16x1xf32>
    %453 = tpu.reciprocal %452 {approx = true} : vector<16x1xf32> -> vector<16x1xf32>
    %454 = vector.broadcast %453 : vector<16x1xf32> to vector<16x8xf32>
    %455 = arith.mulf %450, %454 : vector<16x8xf32>
    %456 = vector.extract_strided_slice %372 {offsets = [0, 32], sizes = [8, 8], strides = [1, 1]} : vector<8x64xf32> to vector<8x8xf32>
    %cst_190 = arith.constant dense<0.000000e+00> : vector<16x8xf32>
    %457 = tpu.matmul %455, %456, %cst_190 {dimension_numbers = #tpu.dot_dimension_numbers<[1], [0], [0], [1], [0, 0, 1, 1], [], []>} : vector<16x8xf32>, vector<8x8xf32>, vector<16x8xf32> -> vector<16x8xf32>
    %458 = vector.extract_strided_slice %363 {offsets = [0, 40], sizes = [16, 8], strides = [1, 1]} : vector<16x64xf32> to vector<16x8xf32>
    %459 = vector.extract_strided_slice %371 {offsets = [0, 40], sizes = [8, 8], strides = [1, 1]} : vector<8x64xf32> to vector<8x8xf32>
    %cst_191 = arith.constant dense<0.000000e+00> : vector<16x8xf32>
    %460 = tpu.matmul %458, %459, %cst_191 {dimension_numbers = #tpu.dot_dimension_numbers<[1], [1], [0], [0], [0, 0, 1, 0], [], []>} : vector<16x8xf32>, vector<8x8xf32>, vector<16x8xf32> -> vector<16x8xf32>
    %461 = vector.broadcast %7 : vector<1x8xf32> to vector<16x8xf32>
    %462 = arith.addf %460, %461 : vector<16x8xf32>
    %cst_192 = arith.constant dense<0xFF800000> : vector<16xf32>
    %463 = vector.multi_reduction <maximumf>, %462, %cst_192 [1] : vector<16x8xf32> to vector<16xf32>
    %464 = vector.shape_cast %463 : vector<16xf32> to vector<16x1xf32>
    %465 = vector.broadcast %464 : vector<16x1xf32> to vector<16x8xf32>
    %466 = arith.subf %462, %465 : vector<16x8xf32>
    %467 = math.exp %466 : vector<16x8xf32>
    %cst_193 = arith.constant dense<0.000000e+00> : vector<16xf32>
    %468 = vector.multi_reduction <add>, %467, %cst_193 [1] : vector<16x8xf32> to vector<16xf32>
    %469 = vector.shape_cast %468 : vector<16xf32> to vector<16x1xf32>
    %470 = tpu.reciprocal %469 {approx = true} : vector<16x1xf32> -> vector<16x1xf32>
    %471 = vector.broadcast %470 : vector<16x1xf32> to vector<16x8xf32>
    %472 = arith.mulf %467, %471 : vector<16x8xf32>
    %473 = vector.extract_strided_slice %372 {offsets = [0, 40], sizes = [8, 8], strides = [1, 1]} : vector<8x64xf32> to vector<8x8xf32>
    %cst_194 = arith.constant dense<0.000000e+00> : vector<16x8xf32>
    %474 = tpu.matmul %472, %473, %cst_194 {dimension_numbers = #tpu.dot_dimension_numbers<[1], [0], [0], [1], [0, 0, 1, 1], [], []>} : vector<16x8xf32>, vector<8x8xf32>, vector<16x8xf32> -> vector<16x8xf32>
    %475 = vector.extract_strided_slice %363 {offsets = [0, 48], sizes = [16, 8], strides = [1, 1]} : vector<16x64xf32> to vector<16x8xf32>
    %476 = vector.extract_strided_slice %371 {offsets = [0, 48], sizes = [8, 8], strides = [1, 1]} : vector<8x64xf32> to vector<8x8xf32>
    %cst_195 = arith.constant dense<0.000000e+00> : vector<16x8xf32>
    %477 = tpu.matmul %475, %476, %cst_195 {dimension_numbers = #tpu.dot_dimension_numbers<[1], [1], [0], [0], [0, 0, 1, 0], [], []>} : vector<16x8xf32>, vector<8x8xf32>, vector<16x8xf32> -> vector<16x8xf32>
    %478 = vector.broadcast %7 : vector<1x8xf32> to vector<16x8xf32>
    %479 = arith.addf %477, %478 : vector<16x8xf32>
    %cst_196 = arith.constant dense<0xFF800000> : vector<16xf32>
    %480 = vector.multi_reduction <maximumf>, %479, %cst_196 [1] : vector<16x8xf32> to vector<16xf32>
    %481 = vector.shape_cast %480 : vector<16xf32> to vector<16x1xf32>
    %482 = vector.broadcast %481 : vector<16x1xf32> to vector<16x8xf32>
    %483 = arith.subf %479, %482 : vector<16x8xf32>
    %484 = math.exp %483 : vector<16x8xf32>
    %cst_197 = arith.constant dense<0.000000e+00> : vector<16xf32>
    %485 = vector.multi_reduction <add>, %484, %cst_197 [1] : vector<16x8xf32> to vector<16xf32>
    %486 = vector.shape_cast %485 : vector<16xf32> to vector<16x1xf32>
    %487 = tpu.reciprocal %486 {approx = true} : vector<16x1xf32> -> vector<16x1xf32>
    %488 = vector.broadcast %487 : vector<16x1xf32> to vector<16x8xf32>
    %489 = arith.mulf %484, %488 : vector<16x8xf32>
    %490 = vector.extract_strided_slice %372 {offsets = [0, 48], sizes = [8, 8], strides = [1, 1]} : vector<8x64xf32> to vector<8x8xf32>
    %cst_198 = arith.constant dense<0.000000e+00> : vector<16x8xf32>
    %491 = tpu.matmul %489, %490, %cst_198 {dimension_numbers = #tpu.dot_dimension_numbers<[1], [0], [0], [1], [0, 0, 1, 1], [], []>} : vector<16x8xf32>, vector<8x8xf32>, vector<16x8xf32> -> vector<16x8xf32>
    %492 = vector.extract_strided_slice %363 {offsets = [0, 56], sizes = [16, 8], strides = [1, 1]} : vector<16x64xf32> to vector<16x8xf32>
    %493 = vector.extract_strided_slice %371 {offsets = [0, 56], sizes = [8, 8], strides = [1, 1]} : vector<8x64xf32> to vector<8x8xf32>
    %cst_199 = arith.constant dense<0.000000e+00> : vector<16x8xf32>
    %494 = tpu.matmul %492, %493, %cst_199 {dimension_numbers = #tpu.dot_dimension_numbers<[1], [1], [0], [0], [0, 0, 1, 0], [], []>} : vector<16x8xf32>, vector<8x8xf32>, vector<16x8xf32> -> vector<16x8xf32>
    %495 = vector.broadcast %7 : vector<1x8xf32> to vector<16x8xf32>
    %496 = arith.addf %494, %495 : vector<16x8xf32>
    %cst_200 = arith.constant dense<0xFF800000> : vector<16xf32>
    %497 = vector.multi_reduction <maximumf>, %496, %cst_200 [1] : vector<16x8xf32> to vector<16xf32>
    %498 = vector.shape_cast %497 : vector<16xf32> to vector<16x1xf32>
    %499 = vector.broadcast %498 : vector<16x1xf32> to vector<16x8xf32>
    %500 = arith.subf %496, %499 : vector<16x8xf32>
    %501 = math.exp %500 : vector<16x8xf32>
    %cst_201 = arith.constant dense<0.000000e+00> : vector<16xf32>
    %502 = vector.multi_reduction <add>, %501, %cst_201 [1] : vector<16x8xf32> to vector<16xf32>
    %503 = vector.shape_cast %502 : vector<16xf32> to vector<16x1xf32>
    %504 = tpu.reciprocal %503 {approx = true} : vector<16x1xf32> -> vector<16x1xf32>
    %505 = vector.broadcast %504 : vector<16x1xf32> to vector<16x8xf32>
    %506 = arith.mulf %501, %505 : vector<16x8xf32>
    %507 = vector.extract_strided_slice %372 {offsets = [0, 56], sizes = [8, 8], strides = [1, 1]} : vector<8x64xf32> to vector<8x8xf32>
    %cst_202 = arith.constant dense<0.000000e+00> : vector<16x8xf32>
    %508 = tpu.matmul %506, %507, %cst_202 {dimension_numbers = #tpu.dot_dimension_numbers<[1], [0], [0], [1], [0, 0, 1, 1], [], []>} : vector<16x8xf32>, vector<8x8xf32>, vector<16x8xf32> -> vector<16x8xf32>
    %509 = tpu.concatenate %389, %406, %423, %440, %457, %474, %491, %508 in 1 : vector<16x8xf32>, vector<16x8xf32>, vector<16x8xf32>, vector<16x8xf32>, vector<16x8xf32>, vector<16x8xf32>, vector<16x8xf32>, vector<16x8xf32> -> vector<16x64xf32>
    %c0_203 = arith.constant 0 : index
    %c0_204 = arith.constant 0 : index
    %c0_205 = arith.constant 0 : index
    %510 = vector.load %arg34[%c0_203, %c0_204, %c0_205] : memref<2x64x64xf32, #tpu.memory_space<vmem>>, vector<1x64x64xf32>
    %511 = vector.shape_cast %510 : vector<1x64x64xf32> to vector<64x64xf32>
    %cst_206 = arith.constant dense<0.000000e+00> : vector<16x64xf32>
    %512 = tpu.matmul %509, %511, %cst_206 {dimension_numbers = #tpu.dot_dimension_numbers<[1], [0], [0], [1], [0, 0, 1, 1], [], []>} : vector<16x64xf32>, vector<64x64xf32>, vector<16x64xf32> -> vector<16x64xf32>
    %c0_207 = arith.constant 0 : index
    %c0_208 = arith.constant 0 : index
    %c0_209 = arith.constant 0 : index
    %513 = vector.load %arg35[%c0_207, %c0_208, %c0_209] : memref<2x1x64xf32, #tpu.memory_space<vmem>>, vector<1x1x64xf32>
    %514 = vector.shape_cast %513 : vector<1x1x64xf32> to vector<1x64xf32>
    %515 = vector.broadcast %514 : vector<1x64xf32> to vector<16x64xf32>
    %516 = arith.addf %512, %515 : vector<16x64xf32>
    %517 = arith.addf %354, %516 : vector<16x64xf32>
    %c0_210 = arith.constant 0 : index
    %c0_211 = arith.constant 0 : index
    %c0_212 = arith.constant 0 : index
    %518 = vector.load %arg38[%c0_210, %c0_211, %c0_212] : memref<2x1x64xf32, #tpu.memory_space<vmem>>, vector<1x1x64xf32>
    %519 = vector.shape_cast %518 : vector<1x1x64xf32> to vector<1x64xf32>
    %c0_213 = arith.constant 0 : index
    %c0_214 = arith.constant 0 : index
    %c0_215 = arith.constant 0 : index
    %520 = vector.load %arg39[%c0_213, %c0_214, %c0_215] : memref<2x1x64xf32, #tpu.memory_space<vmem>>, vector<1x1x64xf32>
    %521 = vector.shape_cast %520 : vector<1x1x64xf32> to vector<1x64xf32>
    %cst_216 = arith.constant dense<0.000000e+00> : vector<16xf32>
    %522 = vector.multi_reduction <add>, %517, %cst_216 [1] : vector<16x64xf32> to vector<16xf32>
    %523 = vector.shape_cast %522 : vector<16xf32> to vector<16x1xf32>
    %cst_217 = arith.constant 6.400000e+01 : f32
    %524 = vector.broadcast %cst_217 : f32 to vector<16x1xf32>
    %525 = arith.divf %523, %524 : vector<16x1xf32>
    %526 = vector.broadcast %525 : vector<16x1xf32> to vector<16x64xf32>
    %527 = arith.subf %517, %526 : vector<16x64xf32>
    %528 = arith.mulf %527, %527 : vector<16x64xf32>
    %cst_218 = arith.constant dense<0.000000e+00> : vector<16xf32>
    %529 = vector.multi_reduction <add>, %528, %cst_218 [1] : vector<16x64xf32> to vector<16xf32>
    %530 = vector.shape_cast %529 : vector<16xf32> to vector<16x1xf32>
    %cst_219 = arith.constant 6.400000e+01 : f32
    %531 = vector.broadcast %cst_219 : f32 to vector<16x1xf32>
    %532 = arith.divf %530, %531 : vector<16x1xf32>
    %533 = vector.broadcast %525 : vector<16x1xf32> to vector<16x64xf32>
    %534 = arith.subf %517, %533 : vector<16x64xf32>
    %cst_220 = arith.constant 9.99999974E-6 : f32
    %535 = vector.broadcast %cst_220 : f32 to vector<16x1xf32>
    %536 = arith.addf %532, %535 : vector<16x1xf32>
    %537 = math.rsqrt %536 : vector<16x1xf32>
    %538 = vector.broadcast %537 : vector<16x1xf32> to vector<16x64xf32>
    %539 = arith.mulf %534, %538 : vector<16x64xf32>
    %540 = vector.broadcast %519 : vector<1x64xf32> to vector<16x64xf32>
    %541 = arith.mulf %539, %540 : vector<16x64xf32>
    %542 = vector.broadcast %521 : vector<1x64xf32> to vector<16x64xf32>
    %543 = arith.addf %541, %542 : vector<16x64xf32>
    %c0_221 = arith.constant 0 : index
    %c0_222 = arith.constant 0 : index
    %c0_223 = arith.constant 0 : index
    %544 = vector.load %arg42[%c0_221, %c0_222, %c0_223] : memref<2x64x256xf32, #tpu.memory_space<vmem>>, vector<1x64x256xf32>
    %545 = vector.shape_cast %544 : vector<1x64x256xf32> to vector<64x256xf32>
    %c0_224 = arith.constant 0 : index
    %c0_225 = arith.constant 0 : index
    %c0_226 = arith.constant 0 : index
    %546 = vector.load %arg43[%c0_224, %c0_225, %c0_226] : memref<2x1x256xf32, #tpu.memory_space<vmem>>, vector<1x1x256xf32>
    %547 = vector.shape_cast %546 : vector<1x1x256xf32> to vector<1x256xf32>
    %c0_227 = arith.constant 0 : index
    %c0_228 = arith.constant 0 : index
    %c0_229 = arith.constant 0 : index
    %548 = vector.load %arg44[%c0_227, %c0_228, %c0_229] : memref<2x256x64xf32, #tpu.memory_space<vmem>>, vector<1x256x64xf32>
    %549 = vector.shape_cast %548 : vector<1x256x64xf32> to vector<256x64xf32>
    %c0_230 = arith.constant 0 : index
    %c0_231 = arith.constant 0 : index
    %c0_232 = arith.constant 0 : index
    %550 = vector.load %arg45[%c0_230, %c0_231, %c0_232] : memref<2x1x64xf32, #tpu.memory_space<vmem>>, vector<1x1x64xf32>
    %551 = vector.shape_cast %550 : vector<1x1x64xf32> to vector<1x64xf32>
    %cst_233 = arith.constant dense<0.000000e+00> : vector<16x256xf32>
    %552 = tpu.matmul %543, %545, %cst_233 {dimension_numbers = #tpu.dot_dimension_numbers<[1], [0], [0], [1], [0, 0, 1, 1], [], []>} : vector<16x64xf32>, vector<64x256xf32>, vector<16x256xf32> -> vector<16x256xf32>
    %553 = vector.broadcast %547 : vector<1x256xf32> to vector<16x256xf32>
    %554 = arith.addf %552, %553 : vector<16x256xf32>
    %cst_234 = arith.constant 0.707106769 : f32
    %555 = vector.broadcast %cst_234 : f32 to vector<16x256xf32>
    %556 = arith.mulf %554, %555 : vector<16x256xf32>
    %557 = math.absf %556 : vector<16x256xf32>
    %cst_235 = arith.constant 0.327591091 : f32
    %558 = vector.broadcast %cst_235 : f32 to vector<16x256xf32>
    %559 = arith.mulf %558, %557 : vector<16x256xf32>
    %cst_236 = arith.constant 1.000000e+00 : f32
    %560 = vector.broadcast %cst_236 : f32 to vector<16x256xf32>
    %561 = arith.addf %560, %559 : vector<16x256xf32>
    %cst_237 = arith.constant 1.000000e+00 : f32
    %562 = vector.broadcast %cst_237 : f32 to vector<16x256xf32>
    %563 = arith.divf %562, %561 : vector<16x256xf32>
    %cst_238 = arith.constant 1.06140542 : f32
    %564 = vector.broadcast %cst_238 : f32 to vector<16x256xf32>
    %565 = arith.mulf %563, %564 : vector<16x256xf32>
    %cst_239 = arith.constant -1.45315206 : f32
    %566 = vector.broadcast %cst_239 : f32 to vector<16x256xf32>
    %567 = arith.addf %566, %565 : vector<16x256xf32>
    %568 = arith.mulf %563, %567 : vector<16x256xf32>
    %cst_240 = arith.constant 1.42141378 : f32
    %569 = vector.broadcast %cst_240 : f32 to vector<16x256xf32>
    %570 = arith.addf %569, %568 : vector<16x256xf32>
    %571 = arith.mulf %563, %570 : vector<16x256xf32>
    %cst_241 = arith.constant -0.284496725 : f32
    %572 = vector.broadcast %cst_241 : f32 to vector<16x256xf32>
    %573 = arith.addf %572, %571 : vector<16x256xf32>
    %574 = arith.mulf %563, %573 : vector<16x256xf32>
    %cst_242 = arith.constant 0.254829586 : f32
    %575 = vector.broadcast %cst_242 : f32 to vector<16x256xf32>
    %576 = arith.addf %575, %574 : vector<16x256xf32>
    %577 = arith.mulf %563, %576 : vector<16x256xf32>
    %cst_243 = arith.constant 0.000000e+00 : f32
    %578 = vector.broadcast %cst_243 : f32 to vector<16x256xf32>
    %579 = arith.subf %578, %557 : vector<16x256xf32>
    %580 = arith.mulf %579, %557 : vector<16x256xf32>
    %581 = math.exp %580 : vector<16x256xf32>
    %582 = arith.mulf %577, %581 : vector<16x256xf32>
    %cst_244 = arith.constant 1.000000e+00 : f32
    %583 = vector.broadcast %cst_244 : f32 to vector<16x256xf32>
    %584 = arith.subf %583, %582 : vector<16x256xf32>
    %cst_245 = arith.constant 0.000000e+00 : f32
    %585 = vector.broadcast %cst_245 : f32 to vector<16x256xf32>
    %586 = arith.cmpf oge, %556, %585 : vector<16x256xf32>
    %cst_246 = arith.constant 0.000000e+00 : f32
    %587 = vector.broadcast %cst_246 : f32 to vector<16x256xf32>
    %588 = arith.subf %587, %584 : vector<16x256xf32>
    %589 = arith.select %586, %584, %588 : vector<16x256xi1>, vector<16x256xf32>
    %cst_247 = arith.constant 5.000000e-01 : f32
    %590 = vector.broadcast %cst_247 : f32 to vector<16x256xf32>
    %591 = arith.mulf %590, %554 : vector<16x256xf32>
    %cst_248 = arith.constant 1.000000e+00 : f32
    %592 = vector.broadcast %cst_248 : f32 to vector<16x256xf32>
    %593 = arith.addf %592, %589 : vector<16x256xf32>
    %594 = arith.mulf %591, %593 : vector<16x256xf32>
    %cst_249 = arith.constant dense<0.000000e+00> : vector<16x64xf32>
    %595 = tpu.matmul %594, %549, %cst_249 {dimension_numbers = #tpu.dot_dimension_numbers<[1], [0], [0], [1], [0, 0, 1, 1], [], []>} : vector<16x256xf32>, vector<256x64xf32>, vector<16x64xf32> -> vector<16x64xf32>
    %596 = vector.broadcast %551 : vector<1x64xf32> to vector<16x64xf32>
    %597 = arith.addf %595, %596 : vector<16x64xf32>
    %598 = arith.addf %543, %597 : vector<16x64xf32>
    %c0_250 = arith.constant 0 : index
    %c0_251 = arith.constant 0 : index
    %c0_252 = arith.constant 0 : index
    %599 = vector.load %arg40[%c0_250, %c0_251, %c0_252] : memref<2x1x64xf32, #tpu.memory_space<vmem>>, vector<1x1x64xf32>
    %600 = vector.shape_cast %599 : vector<1x1x64xf32> to vector<1x64xf32>
    %c0_253 = arith.constant 0 : index
    %c0_254 = arith.constant 0 : index
    %c0_255 = arith.constant 0 : index
    %601 = vector.load %arg41[%c0_253, %c0_254, %c0_255] : memref<2x1x64xf32, #tpu.memory_space<vmem>>, vector<1x1x64xf32>
    %602 = vector.shape_cast %601 : vector<1x1x64xf32> to vector<1x64xf32>
    %cst_256 = arith.constant dense<0.000000e+00> : vector<16xf32>
    %603 = vector.multi_reduction <add>, %598, %cst_256 [1] : vector<16x64xf32> to vector<16xf32>
    %604 = vector.shape_cast %603 : vector<16xf32> to vector<16x1xf32>
    %cst_257 = arith.constant 6.400000e+01 : f32
    %605 = vector.broadcast %cst_257 : f32 to vector<16x1xf32>
    %606 = arith.divf %604, %605 : vector<16x1xf32>
    %607 = vector.broadcast %606 : vector<16x1xf32> to vector<16x64xf32>
    %608 = arith.subf %598, %607 : vector<16x64xf32>
    %609 = arith.mulf %608, %608 : vector<16x64xf32>
    %cst_258 = arith.constant dense<0.000000e+00> : vector<16xf32>
    %610 = vector.multi_reduction <add>, %609, %cst_258 [1] : vector<16x64xf32> to vector<16xf32>
    %611 = vector.shape_cast %610 : vector<16xf32> to vector<16x1xf32>
    %cst_259 = arith.constant 6.400000e+01 : f32
    %612 = vector.broadcast %cst_259 : f32 to vector<16x1xf32>
    %613 = arith.divf %611, %612 : vector<16x1xf32>
    %614 = vector.broadcast %606 : vector<16x1xf32> to vector<16x64xf32>
    %615 = arith.subf %598, %614 : vector<16x64xf32>
    %cst_260 = arith.constant 9.99999974E-6 : f32
    %616 = vector.broadcast %cst_260 : f32 to vector<16x1xf32>
    %617 = arith.addf %613, %616 : vector<16x1xf32>
    %618 = math.rsqrt %617 : vector<16x1xf32>
    %619 = vector.broadcast %618 : vector<16x1xf32> to vector<16x64xf32>
    %620 = arith.mulf %615, %619 : vector<16x64xf32>
    %621 = vector.broadcast %600 : vector<1x64xf32> to vector<16x64xf32>
    %622 = arith.mulf %620, %621 : vector<16x64xf32>
    %623 = vector.broadcast %602 : vector<1x64xf32> to vector<16x64xf32>
    %624 = arith.addf %622, %623 : vector<16x64xf32>
    %c1 = arith.constant 1 : index
    %c0_261 = arith.constant 0 : index
    %c0_262 = arith.constant 0 : index
    %625 = vector.load %arg26[%c1, %c0_261, %c0_262] : memref<2x64x192xf32, #tpu.memory_space<vmem>>, vector<1x64x192xf32>
    %626 = vector.shape_cast %625 : vector<1x64x192xf32> to vector<64x192xf32>
    %cst_263 = arith.constant dense<0.000000e+00> : vector<16x192xf32>
    %627 = tpu.matmul %624, %626, %cst_263 {dimension_numbers = #tpu.dot_dimension_numbers<[1], [0], [0], [1], [0, 0, 1, 1], [], []>} : vector<16x64xf32>, vector<64x192xf32>, vector<16x192xf32> -> vector<16x192xf32>
    %c1_264 = arith.constant 1 : index
    %c0_265 = arith.constant 0 : index
    %c0_266 = arith.constant 0 : index
    %628 = vector.load %arg27[%c1_264, %c0_265, %c0_266] : memref<2x1x192xf32, #tpu.memory_space<vmem>>, vector<1x1x192xf32>
    %629 = vector.shape_cast %628 : vector<1x1x192xf32> to vector<1x192xf32>
    %630 = vector.broadcast %629 : vector<1x192xf32> to vector<16x192xf32>
    %631 = arith.addf %627, %630 : vector<16x192xf32>
    %632 = vector.extract_strided_slice %631 {offsets = [0, 0], sizes = [16, 64], strides = [1, 1]} : vector<16x192xf32> to vector<16x64xf32>
    %cst_267 = arith.constant 0.353553385 : f32
    %633 = vector.broadcast %cst_267 : f32 to vector<16x64xf32>
    %634 = arith.mulf %632, %633 : vector<16x64xf32>
    %635 = vector.extract_strided_slice %631 {offsets = [0, 64], sizes = [16, 64], strides = [1, 1]} : vector<16x192xf32> to vector<16x64xf32>
    %636 = vector.extract_strided_slice %631 {offsets = [0, 128], sizes = [16, 64], strides = [1, 1]} : vector<16x192xf32> to vector<16x64xf32>
    %637 = vector.extract_strided_slice %634 {offsets = [0, 0], sizes = [16, 8], strides = [1, 1]} : vector<16x64xf32> to vector<16x8xf32>
    %638 = vector.extract_strided_slice %635 {offsets = [0, 0], sizes = [16, 8], strides = [1, 1]} : vector<16x64xf32> to vector<16x8xf32>
    %cst_268 = arith.constant dense<0.000000e+00> : vector<16x16xf32>
    %639 = tpu.matmul %637, %638, %cst_268 {dimension_numbers = #tpu.dot_dimension_numbers<[1], [1], [0], [0], [0, 0, 1, 0], [], []>} : vector<16x8xf32>, vector<16x8xf32>, vector<16x16xf32> -> vector<16x16xf32>
    %640 = vector.broadcast %5 : vector<1x16xf32> to vector<16x16xf32>
    %641 = arith.addf %639, %640 : vector<16x16xf32>
    %cst_269 = arith.constant dense<0xFF800000> : vector<16xf32>
    %642 = vector.multi_reduction <maximumf>, %641, %cst_269 [1] : vector<16x16xf32> to vector<16xf32>
    %643 = vector.shape_cast %642 : vector<16xf32> to vector<16x1xf32>
    %644 = vector.broadcast %643 : vector<16x1xf32> to vector<16x16xf32>
    %645 = arith.subf %641, %644 : vector<16x16xf32>
    %646 = math.exp %645 : vector<16x16xf32>
    %cst_270 = arith.constant dense<0.000000e+00> : vector<16xf32>
    %647 = vector.multi_reduction <add>, %646, %cst_270 [1] : vector<16x16xf32> to vector<16xf32>
    %648 = vector.shape_cast %647 : vector<16xf32> to vector<16x1xf32>
    %649 = tpu.reciprocal %648 {approx = true} : vector<16x1xf32> -> vector<16x1xf32>
    %650 = vector.broadcast %649 : vector<16x1xf32> to vector<16x16xf32>
    %651 = arith.mulf %646, %650 : vector<16x16xf32>
    %652 = vector.extract_strided_slice %636 {offsets = [0, 0], sizes = [16, 8], strides = [1, 1]} : vector<16x64xf32> to vector<16x8xf32>
    %cst_271 = arith.constant dense<0.000000e+00> : vector<16x8xf32>
    %653 = tpu.matmul %651, %652, %cst_271 {dimension_numbers = #tpu.dot_dimension_numbers<[1], [0], [0], [1], [0, 0, 1, 1], [], []>} : vector<16x16xf32>, vector<16x8xf32>, vector<16x8xf32> -> vector<16x8xf32>
    %654 = vector.extract_strided_slice %634 {offsets = [0, 8], sizes = [16, 8], strides = [1, 1]} : vector<16x64xf32> to vector<16x8xf32>
    %655 = vector.extract_strided_slice %635 {offsets = [0, 8], sizes = [16, 8], strides = [1, 1]} : vector<16x64xf32> to vector<16x8xf32>
    %cst_272 = arith.constant dense<0.000000e+00> : vector<16x16xf32>
    %656 = tpu.matmul %654, %655, %cst_272 {dimension_numbers = #tpu.dot_dimension_numbers<[1], [1], [0], [0], [0, 0, 1, 0], [], []>} : vector<16x8xf32>, vector<16x8xf32>, vector<16x16xf32> -> vector<16x16xf32>
    %657 = vector.broadcast %5 : vector<1x16xf32> to vector<16x16xf32>
    %658 = arith.addf %656, %657 : vector<16x16xf32>
    %cst_273 = arith.constant dense<0xFF800000> : vector<16xf32>
    %659 = vector.multi_reduction <maximumf>, %658, %cst_273 [1] : vector<16x16xf32> to vector<16xf32>
    %660 = vector.shape_cast %659 : vector<16xf32> to vector<16x1xf32>
    %661 = vector.broadcast %660 : vector<16x1xf32> to vector<16x16xf32>
    %662 = arith.subf %658, %661 : vector<16x16xf32>
    %663 = math.exp %662 : vector<16x16xf32>
    %cst_274 = arith.constant dense<0.000000e+00> : vector<16xf32>
    %664 = vector.multi_reduction <add>, %663, %cst_274 [1] : vector<16x16xf32> to vector<16xf32>
    %665 = vector.shape_cast %664 : vector<16xf32> to vector<16x1xf32>
    %666 = tpu.reciprocal %665 {approx = true} : vector<16x1xf32> -> vector<16x1xf32>
    %667 = vector.broadcast %666 : vector<16x1xf32> to vector<16x16xf32>
    %668 = arith.mulf %663, %667 : vector<16x16xf32>
    %669 = vector.extract_strided_slice %636 {offsets = [0, 8], sizes = [16, 8], strides = [1, 1]} : vector<16x64xf32> to vector<16x8xf32>
    %cst_275 = arith.constant dense<0.000000e+00> : vector<16x8xf32>
    %670 = tpu.matmul %668, %669, %cst_275 {dimension_numbers = #tpu.dot_dimension_numbers<[1], [0], [0], [1], [0, 0, 1, 1], [], []>} : vector<16x16xf32>, vector<16x8xf32>, vector<16x8xf32> -> vector<16x8xf32>
    %671 = vector.extract_strided_slice %634 {offsets = [0, 16], sizes = [16, 8], strides = [1, 1]} : vector<16x64xf32> to vector<16x8xf32>
    %672 = vector.extract_strided_slice %635 {offsets = [0, 16], sizes = [16, 8], strides = [1, 1]} : vector<16x64xf32> to vector<16x8xf32>
    %cst_276 = arith.constant dense<0.000000e+00> : vector<16x16xf32>
    %673 = tpu.matmul %671, %672, %cst_276 {dimension_numbers = #tpu.dot_dimension_numbers<[1], [1], [0], [0], [0, 0, 1, 0], [], []>} : vector<16x8xf32>, vector<16x8xf32>, vector<16x16xf32> -> vector<16x16xf32>
    %674 = vector.broadcast %5 : vector<1x16xf32> to vector<16x16xf32>
    %675 = arith.addf %673, %674 : vector<16x16xf32>
    %cst_277 = arith.constant dense<0xFF800000> : vector<16xf32>
    %676 = vector.multi_reduction <maximumf>, %675, %cst_277 [1] : vector<16x16xf32> to vector<16xf32>
    %677 = vector.shape_cast %676 : vector<16xf32> to vector<16x1xf32>
    %678 = vector.broadcast %677 : vector<16x1xf32> to vector<16x16xf32>
    %679 = arith.subf %675, %678 : vector<16x16xf32>
    %680 = math.exp %679 : vector<16x16xf32>
    %cst_278 = arith.constant dense<0.000000e+00> : vector<16xf32>
    %681 = vector.multi_reduction <add>, %680, %cst_278 [1] : vector<16x16xf32> to vector<16xf32>
    %682 = vector.shape_cast %681 : vector<16xf32> to vector<16x1xf32>
    %683 = tpu.reciprocal %682 {approx = true} : vector<16x1xf32> -> vector<16x1xf32>
    %684 = vector.broadcast %683 : vector<16x1xf32> to vector<16x16xf32>
    %685 = arith.mulf %680, %684 : vector<16x16xf32>
    %686 = vector.extract_strided_slice %636 {offsets = [0, 16], sizes = [16, 8], strides = [1, 1]} : vector<16x64xf32> to vector<16x8xf32>
    %cst_279 = arith.constant dense<0.000000e+00> : vector<16x8xf32>
    %687 = tpu.matmul %685, %686, %cst_279 {dimension_numbers = #tpu.dot_dimension_numbers<[1], [0], [0], [1], [0, 0, 1, 1], [], []>} : vector<16x16xf32>, vector<16x8xf32>, vector<16x8xf32> -> vector<16x8xf32>
    %688 = vector.extract_strided_slice %634 {offsets = [0, 24], sizes = [16, 8], strides = [1, 1]} : vector<16x64xf32> to vector<16x8xf32>
    %689 = vector.extract_strided_slice %635 {offsets = [0, 24], sizes = [16, 8], strides = [1, 1]} : vector<16x64xf32> to vector<16x8xf32>
    %cst_280 = arith.constant dense<0.000000e+00> : vector<16x16xf32>
    %690 = tpu.matmul %688, %689, %cst_280 {dimension_numbers = #tpu.dot_dimension_numbers<[1], [1], [0], [0], [0, 0, 1, 0], [], []>} : vector<16x8xf32>, vector<16x8xf32>, vector<16x16xf32> -> vector<16x16xf32>
    %691 = vector.broadcast %5 : vector<1x16xf32> to vector<16x16xf32>
    %692 = arith.addf %690, %691 : vector<16x16xf32>
    %cst_281 = arith.constant dense<0xFF800000> : vector<16xf32>
    %693 = vector.multi_reduction <maximumf>, %692, %cst_281 [1] : vector<16x16xf32> to vector<16xf32>
    %694 = vector.shape_cast %693 : vector<16xf32> to vector<16x1xf32>
    %695 = vector.broadcast %694 : vector<16x1xf32> to vector<16x16xf32>
    %696 = arith.subf %692, %695 : vector<16x16xf32>
    %697 = math.exp %696 : vector<16x16xf32>
    %cst_282 = arith.constant dense<0.000000e+00> : vector<16xf32>
    %698 = vector.multi_reduction <add>, %697, %cst_282 [1] : vector<16x16xf32> to vector<16xf32>
    %699 = vector.shape_cast %698 : vector<16xf32> to vector<16x1xf32>
    %700 = tpu.reciprocal %699 {approx = true} : vector<16x1xf32> -> vector<16x1xf32>
    %701 = vector.broadcast %700 : vector<16x1xf32> to vector<16x16xf32>
    %702 = arith.mulf %697, %701 : vector<16x16xf32>
    %703 = vector.extract_strided_slice %636 {offsets = [0, 24], sizes = [16, 8], strides = [1, 1]} : vector<16x64xf32> to vector<16x8xf32>
    %cst_283 = arith.constant dense<0.000000e+00> : vector<16x8xf32>
    %704 = tpu.matmul %702, %703, %cst_283 {dimension_numbers = #tpu.dot_dimension_numbers<[1], [0], [0], [1], [0, 0, 1, 1], [], []>} : vector<16x16xf32>, vector<16x8xf32>, vector<16x8xf32> -> vector<16x8xf32>
    %705 = vector.extract_strided_slice %634 {offsets = [0, 32], sizes = [16, 8], strides = [1, 1]} : vector<16x64xf32> to vector<16x8xf32>
    %706 = vector.extract_strided_slice %635 {offsets = [0, 32], sizes = [16, 8], strides = [1, 1]} : vector<16x64xf32> to vector<16x8xf32>
    %cst_284 = arith.constant dense<0.000000e+00> : vector<16x16xf32>
    %707 = tpu.matmul %705, %706, %cst_284 {dimension_numbers = #tpu.dot_dimension_numbers<[1], [1], [0], [0], [0, 0, 1, 0], [], []>} : vector<16x8xf32>, vector<16x8xf32>, vector<16x16xf32> -> vector<16x16xf32>
    %708 = vector.broadcast %5 : vector<1x16xf32> to vector<16x16xf32>
    %709 = arith.addf %707, %708 : vector<16x16xf32>
    %cst_285 = arith.constant dense<0xFF800000> : vector<16xf32>
    %710 = vector.multi_reduction <maximumf>, %709, %cst_285 [1] : vector<16x16xf32> to vector<16xf32>
    %711 = vector.shape_cast %710 : vector<16xf32> to vector<16x1xf32>
    %712 = vector.broadcast %711 : vector<16x1xf32> to vector<16x16xf32>
    %713 = arith.subf %709, %712 : vector<16x16xf32>
    %714 = math.exp %713 : vector<16x16xf32>
    %cst_286 = arith.constant dense<0.000000e+00> : vector<16xf32>
    %715 = vector.multi_reduction <add>, %714, %cst_286 [1] : vector<16x16xf32> to vector<16xf32>
    %716 = vector.shape_cast %715 : vector<16xf32> to vector<16x1xf32>
    %717 = tpu.reciprocal %716 {approx = true} : vector<16x1xf32> -> vector<16x1xf32>
    %718 = vector.broadcast %717 : vector<16x1xf32> to vector<16x16xf32>
    %719 = arith.mulf %714, %718 : vector<16x16xf32>
    %720 = vector.extract_strided_slice %636 {offsets = [0, 32], sizes = [16, 8], strides = [1, 1]} : vector<16x64xf32> to vector<16x8xf32>
    %cst_287 = arith.constant dense<0.000000e+00> : vector<16x8xf32>
    %721 = tpu.matmul %719, %720, %cst_287 {dimension_numbers = #tpu.dot_dimension_numbers<[1], [0], [0], [1], [0, 0, 1, 1], [], []>} : vector<16x16xf32>, vector<16x8xf32>, vector<16x8xf32> -> vector<16x8xf32>
    %722 = vector.extract_strided_slice %634 {offsets = [0, 40], sizes = [16, 8], strides = [1, 1]} : vector<16x64xf32> to vector<16x8xf32>
    %723 = vector.extract_strided_slice %635 {offsets = [0, 40], sizes = [16, 8], strides = [1, 1]} : vector<16x64xf32> to vector<16x8xf32>
    %cst_288 = arith.constant dense<0.000000e+00> : vector<16x16xf32>
    %724 = tpu.matmul %722, %723, %cst_288 {dimension_numbers = #tpu.dot_dimension_numbers<[1], [1], [0], [0], [0, 0, 1, 0], [], []>} : vector<16x8xf32>, vector<16x8xf32>, vector<16x16xf32> -> vector<16x16xf32>
    %725 = vector.broadcast %5 : vector<1x16xf32> to vector<16x16xf32>
    %726 = arith.addf %724, %725 : vector<16x16xf32>
    %cst_289 = arith.constant dense<0xFF800000> : vector<16xf32>
    %727 = vector.multi_reduction <maximumf>, %726, %cst_289 [1] : vector<16x16xf32> to vector<16xf32>
    %728 = vector.shape_cast %727 : vector<16xf32> to vector<16x1xf32>
    %729 = vector.broadcast %728 : vector<16x1xf32> to vector<16x16xf32>
    %730 = arith.subf %726, %729 : vector<16x16xf32>
    %731 = math.exp %730 : vector<16x16xf32>
    %cst_290 = arith.constant dense<0.000000e+00> : vector<16xf32>
    %732 = vector.multi_reduction <add>, %731, %cst_290 [1] : vector<16x16xf32> to vector<16xf32>
    %733 = vector.shape_cast %732 : vector<16xf32> to vector<16x1xf32>
    %734 = tpu.reciprocal %733 {approx = true} : vector<16x1xf32> -> vector<16x1xf32>
    %735 = vector.broadcast %734 : vector<16x1xf32> to vector<16x16xf32>
    %736 = arith.mulf %731, %735 : vector<16x16xf32>
    %737 = vector.extract_strided_slice %636 {offsets = [0, 40], sizes = [16, 8], strides = [1, 1]} : vector<16x64xf32> to vector<16x8xf32>
    %cst_291 = arith.constant dense<0.000000e+00> : vector<16x8xf32>
    %738 = tpu.matmul %736, %737, %cst_291 {dimension_numbers = #tpu.dot_dimension_numbers<[1], [0], [0], [1], [0, 0, 1, 1], [], []>} : vector<16x16xf32>, vector<16x8xf32>, vector<16x8xf32> -> vector<16x8xf32>
    %739 = vector.extract_strided_slice %634 {offsets = [0, 48], sizes = [16, 8], strides = [1, 1]} : vector<16x64xf32> to vector<16x8xf32>
    %740 = vector.extract_strided_slice %635 {offsets = [0, 48], sizes = [16, 8], strides = [1, 1]} : vector<16x64xf32> to vector<16x8xf32>
    %cst_292 = arith.constant dense<0.000000e+00> : vector<16x16xf32>
    %741 = tpu.matmul %739, %740, %cst_292 {dimension_numbers = #tpu.dot_dimension_numbers<[1], [1], [0], [0], [0, 0, 1, 0], [], []>} : vector<16x8xf32>, vector<16x8xf32>, vector<16x16xf32> -> vector<16x16xf32>
    %742 = vector.broadcast %5 : vector<1x16xf32> to vector<16x16xf32>
    %743 = arith.addf %741, %742 : vector<16x16xf32>
    %cst_293 = arith.constant dense<0xFF800000> : vector<16xf32>
    %744 = vector.multi_reduction <maximumf>, %743, %cst_293 [1] : vector<16x16xf32> to vector<16xf32>
    %745 = vector.shape_cast %744 : vector<16xf32> to vector<16x1xf32>
    %746 = vector.broadcast %745 : vector<16x1xf32> to vector<16x16xf32>
    %747 = arith.subf %743, %746 : vector<16x16xf32>
    %748 = math.exp %747 : vector<16x16xf32>
    %cst_294 = arith.constant dense<0.000000e+00> : vector<16xf32>
    %749 = vector.multi_reduction <add>, %748, %cst_294 [1] : vector<16x16xf32> to vector<16xf32>
    %750 = vector.shape_cast %749 : vector<16xf32> to vector<16x1xf32>
    %751 = tpu.reciprocal %750 {approx = true} : vector<16x1xf32> -> vector<16x1xf32>
    %752 = vector.broadcast %751 : vector<16x1xf32> to vector<16x16xf32>
    %753 = arith.mulf %748, %752 : vector<16x16xf32>
    %754 = vector.extract_strided_slice %636 {offsets = [0, 48], sizes = [16, 8], strides = [1, 1]} : vector<16x64xf32> to vector<16x8xf32>
    %cst_295 = arith.constant dense<0.000000e+00> : vector<16x8xf32>
    %755 = tpu.matmul %753, %754, %cst_295 {dimension_numbers = #tpu.dot_dimension_numbers<[1], [0], [0], [1], [0, 0, 1, 1], [], []>} : vector<16x16xf32>, vector<16x8xf32>, vector<16x8xf32> -> vector<16x8xf32>
    %756 = vector.extract_strided_slice %634 {offsets = [0, 56], sizes = [16, 8], strides = [1, 1]} : vector<16x64xf32> to vector<16x8xf32>
    %757 = vector.extract_strided_slice %635 {offsets = [0, 56], sizes = [16, 8], strides = [1, 1]} : vector<16x64xf32> to vector<16x8xf32>
    %cst_296 = arith.constant dense<0.000000e+00> : vector<16x16xf32>
    %758 = tpu.matmul %756, %757, %cst_296 {dimension_numbers = #tpu.dot_dimension_numbers<[1], [1], [0], [0], [0, 0, 1, 0], [], []>} : vector<16x8xf32>, vector<16x8xf32>, vector<16x16xf32> -> vector<16x16xf32>
    %759 = vector.broadcast %5 : vector<1x16xf32> to vector<16x16xf32>
    %760 = arith.addf %758, %759 : vector<16x16xf32>
    %cst_297 = arith.constant dense<0xFF800000> : vector<16xf32>
    %761 = vector.multi_reduction <maximumf>, %760, %cst_297 [1] : vector<16x16xf32> to vector<16xf32>
    %762 = vector.shape_cast %761 : vector<16xf32> to vector<16x1xf32>
    %763 = vector.broadcast %762 : vector<16x1xf32> to vector<16x16xf32>
    %764 = arith.subf %760, %763 : vector<16x16xf32>
    %765 = math.exp %764 : vector<16x16xf32>
    %cst_298 = arith.constant dense<0.000000e+00> : vector<16xf32>
    %766 = vector.multi_reduction <add>, %765, %cst_298 [1] : vector<16x16xf32> to vector<16xf32>
    %767 = vector.shape_cast %766 : vector<16xf32> to vector<16x1xf32>
    %768 = tpu.reciprocal %767 {approx = true} : vector<16x1xf32> -> vector<16x1xf32>
    %769 = vector.broadcast %768 : vector<16x1xf32> to vector<16x16xf32>
    %770 = arith.mulf %765, %769 : vector<16x16xf32>
    %771 = vector.extract_strided_slice %636 {offsets = [0, 56], sizes = [16, 8], strides = [1, 1]} : vector<16x64xf32> to vector<16x8xf32>
    %cst_299 = arith.constant dense<0.000000e+00> : vector<16x8xf32>
    %772 = tpu.matmul %770, %771, %cst_299 {dimension_numbers = #tpu.dot_dimension_numbers<[1], [0], [0], [1], [0, 0, 1, 1], [], []>} : vector<16x16xf32>, vector<16x8xf32>, vector<16x8xf32> -> vector<16x8xf32>
    %773 = tpu.concatenate %653, %670, %687, %704, %721, %738, %755, %772 in 1 : vector<16x8xf32>, vector<16x8xf32>, vector<16x8xf32>, vector<16x8xf32>, vector<16x8xf32>, vector<16x8xf32>, vector<16x8xf32>, vector<16x8xf32> -> vector<16x64xf32>
    %c1_300 = arith.constant 1 : index
    %c0_301 = arith.constant 0 : index
    %c0_302 = arith.constant 0 : index
    %774 = vector.load %arg28[%c1_300, %c0_301, %c0_302] : memref<2x64x64xf32, #tpu.memory_space<vmem>>, vector<1x64x64xf32>
    %775 = vector.shape_cast %774 : vector<1x64x64xf32> to vector<64x64xf32>
    %cst_303 = arith.constant dense<0.000000e+00> : vector<16x64xf32>
    %776 = tpu.matmul %773, %775, %cst_303 {dimension_numbers = #tpu.dot_dimension_numbers<[1], [0], [0], [1], [0, 0, 1, 1], [], []>} : vector<16x64xf32>, vector<64x64xf32>, vector<16x64xf32> -> vector<16x64xf32>
    %c1_304 = arith.constant 1 : index
    %c0_305 = arith.constant 0 : index
    %c0_306 = arith.constant 0 : index
    %777 = vector.load %arg29[%c1_304, %c0_305, %c0_306] : memref<2x1x64xf32, #tpu.memory_space<vmem>>, vector<1x1x64xf32>
    %778 = vector.shape_cast %777 : vector<1x1x64xf32> to vector<1x64xf32>
    %779 = vector.broadcast %778 : vector<1x64xf32> to vector<16x64xf32>
    %780 = arith.addf %776, %779 : vector<16x64xf32>
    %781 = arith.addf %624, %780 : vector<16x64xf32>
    %c1_307 = arith.constant 1 : index
    %c0_308 = arith.constant 0 : index
    %c0_309 = arith.constant 0 : index
    %782 = vector.load %arg36[%c1_307, %c0_308, %c0_309] : memref<2x1x64xf32, #tpu.memory_space<vmem>>, vector<1x1x64xf32>
    %783 = vector.shape_cast %782 : vector<1x1x64xf32> to vector<1x64xf32>
    %c1_310 = arith.constant 1 : index
    %c0_311 = arith.constant 0 : index
    %c0_312 = arith.constant 0 : index
    %784 = vector.load %arg37[%c1_310, %c0_311, %c0_312] : memref<2x1x64xf32, #tpu.memory_space<vmem>>, vector<1x1x64xf32>
    %785 = vector.shape_cast %784 : vector<1x1x64xf32> to vector<1x64xf32>
    %cst_313 = arith.constant dense<0.000000e+00> : vector<16xf32>
    %786 = vector.multi_reduction <add>, %781, %cst_313 [1] : vector<16x64xf32> to vector<16xf32>
    %787 = vector.shape_cast %786 : vector<16xf32> to vector<16x1xf32>
    %cst_314 = arith.constant 6.400000e+01 : f32
    %788 = vector.broadcast %cst_314 : f32 to vector<16x1xf32>
    %789 = arith.divf %787, %788 : vector<16x1xf32>
    %790 = vector.broadcast %789 : vector<16x1xf32> to vector<16x64xf32>
    %791 = arith.subf %781, %790 : vector<16x64xf32>
    %792 = arith.mulf %791, %791 : vector<16x64xf32>
    %cst_315 = arith.constant dense<0.000000e+00> : vector<16xf32>
    %793 = vector.multi_reduction <add>, %792, %cst_315 [1] : vector<16x64xf32> to vector<16xf32>
    %794 = vector.shape_cast %793 : vector<16xf32> to vector<16x1xf32>
    %cst_316 = arith.constant 6.400000e+01 : f32
    %795 = vector.broadcast %cst_316 : f32 to vector<16x1xf32>
    %796 = arith.divf %794, %795 : vector<16x1xf32>
    %797 = vector.broadcast %789 : vector<16x1xf32> to vector<16x64xf32>
    %798 = arith.subf %781, %797 : vector<16x64xf32>
    %cst_317 = arith.constant 9.99999974E-6 : f32
    %799 = vector.broadcast %cst_317 : f32 to vector<16x1xf32>
    %800 = arith.addf %796, %799 : vector<16x1xf32>
    %801 = math.rsqrt %800 : vector<16x1xf32>
    %802 = vector.broadcast %801 : vector<16x1xf32> to vector<16x64xf32>
    %803 = arith.mulf %798, %802 : vector<16x64xf32>
    %804 = vector.broadcast %783 : vector<1x64xf32> to vector<16x64xf32>
    %805 = arith.mulf %803, %804 : vector<16x64xf32>
    %806 = vector.broadcast %785 : vector<1x64xf32> to vector<16x64xf32>
    %807 = arith.addf %805, %806 : vector<16x64xf32>
    %c1_318 = arith.constant 1 : index
    %c0_319 = arith.constant 0 : index
    %c0_320 = arith.constant 0 : index
    %808 = vector.load %arg30[%c1_318, %c0_319, %c0_320] : memref<2x64x64xf32, #tpu.memory_space<vmem>>, vector<1x64x64xf32>
    %809 = vector.shape_cast %808 : vector<1x64x64xf32> to vector<64x64xf32>
    %cst_321 = arith.constant dense<0.000000e+00> : vector<16x64xf32>
    %810 = tpu.matmul %807, %809, %cst_321 {dimension_numbers = #tpu.dot_dimension_numbers<[1], [0], [0], [1], [0, 0, 1, 1], [], []>} : vector<16x64xf32>, vector<64x64xf32>, vector<16x64xf32> -> vector<16x64xf32>
    %c1_322 = arith.constant 1 : index
    %c0_323 = arith.constant 0 : index
    %c0_324 = arith.constant 0 : index
    %811 = vector.load %arg31[%c1_322, %c0_323, %c0_324] : memref<2x1x64xf32, #tpu.memory_space<vmem>>, vector<1x1x64xf32>
    %812 = vector.shape_cast %811 : vector<1x1x64xf32> to vector<1x64xf32>
    %813 = vector.broadcast %812 : vector<1x64xf32> to vector<16x64xf32>
    %814 = arith.addf %810, %813 : vector<16x64xf32>
    %cst_325 = arith.constant 0.353553385 : f32
    %815 = vector.broadcast %cst_325 : f32 to vector<16x64xf32>
    %816 = arith.mulf %814, %815 : vector<16x64xf32>
    %c1_326 = arith.constant 1 : index
    %c0_327 = arith.constant 0 : index
    %c0_328 = arith.constant 0 : index
    %817 = vector.load %arg32[%c1_326, %c0_327, %c0_328] : memref<2x64x128xf32, #tpu.memory_space<vmem>>, vector<1x64x128xf32>
    %818 = vector.shape_cast %817 : vector<1x64x128xf32> to vector<64x128xf32>
    %cst_329 = arith.constant dense<0.000000e+00> : vector<8x128xf32>
    %819 = tpu.matmul %171, %818, %cst_329 {dimension_numbers = #tpu.dot_dimension_numbers<[1], [0], [0], [1], [0, 0, 1, 1], [], []>} : vector<8x64xf32>, vector<64x128xf32>, vector<8x128xf32> -> vector<8x128xf32>
    %c1_330 = arith.constant 1 : index
    %c0_331 = arith.constant 0 : index
    %c0_332 = arith.constant 0 : index
    %820 = vector.load %arg33[%c1_330, %c0_331, %c0_332] : memref<2x1x128xf32, #tpu.memory_space<vmem>>, vector<1x1x128xf32>
    %821 = vector.shape_cast %820 : vector<1x1x128xf32> to vector<1x128xf32>
    %822 = vector.broadcast %821 : vector<1x128xf32> to vector<8x128xf32>
    %823 = arith.addf %819, %822 : vector<8x128xf32>
    %824 = vector.extract_strided_slice %823 {offsets = [0, 0], sizes = [8, 64], strides = [1, 1]} : vector<8x128xf32> to vector<8x64xf32>
    %825 = vector.extract_strided_slice %823 {offsets = [0, 64], sizes = [8, 64], strides = [1, 1]} : vector<8x128xf32> to vector<8x64xf32>
    %826 = vector.extract_strided_slice %816 {offsets = [0, 0], sizes = [16, 8], strides = [1, 1]} : vector<16x64xf32> to vector<16x8xf32>
    %827 = vector.extract_strided_slice %824 {offsets = [0, 0], sizes = [8, 8], strides = [1, 1]} : vector<8x64xf32> to vector<8x8xf32>
    %cst_333 = arith.constant dense<0.000000e+00> : vector<16x8xf32>
    %828 = tpu.matmul %826, %827, %cst_333 {dimension_numbers = #tpu.dot_dimension_numbers<[1], [1], [0], [0], [0, 0, 1, 0], [], []>} : vector<16x8xf32>, vector<8x8xf32>, vector<16x8xf32> -> vector<16x8xf32>
    %829 = vector.broadcast %7 : vector<1x8xf32> to vector<16x8xf32>
    %830 = arith.addf %828, %829 : vector<16x8xf32>
    %cst_334 = arith.constant dense<0xFF800000> : vector<16xf32>
    %831 = vector.multi_reduction <maximumf>, %830, %cst_334 [1] : vector<16x8xf32> to vector<16xf32>
    %832 = vector.shape_cast %831 : vector<16xf32> to vector<16x1xf32>
    %833 = vector.broadcast %832 : vector<16x1xf32> to vector<16x8xf32>
    %834 = arith.subf %830, %833 : vector<16x8xf32>
    %835 = math.exp %834 : vector<16x8xf32>
    %cst_335 = arith.constant dense<0.000000e+00> : vector<16xf32>
    %836 = vector.multi_reduction <add>, %835, %cst_335 [1] : vector<16x8xf32> to vector<16xf32>
    %837 = vector.shape_cast %836 : vector<16xf32> to vector<16x1xf32>
    %838 = tpu.reciprocal %837 {approx = true} : vector<16x1xf32> -> vector<16x1xf32>
    %839 = vector.broadcast %838 : vector<16x1xf32> to vector<16x8xf32>
    %840 = arith.mulf %835, %839 : vector<16x8xf32>
    %841 = vector.extract_strided_slice %825 {offsets = [0, 0], sizes = [8, 8], strides = [1, 1]} : vector<8x64xf32> to vector<8x8xf32>
    %cst_336 = arith.constant dense<0.000000e+00> : vector<16x8xf32>
    %842 = tpu.matmul %840, %841, %cst_336 {dimension_numbers = #tpu.dot_dimension_numbers<[1], [0], [0], [1], [0, 0, 1, 1], [], []>} : vector<16x8xf32>, vector<8x8xf32>, vector<16x8xf32> -> vector<16x8xf32>
    %843 = vector.extract_strided_slice %816 {offsets = [0, 8], sizes = [16, 8], strides = [1, 1]} : vector<16x64xf32> to vector<16x8xf32>
    %844 = vector.extract_strided_slice %824 {offsets = [0, 8], sizes = [8, 8], strides = [1, 1]} : vector<8x64xf32> to vector<8x8xf32>
    %cst_337 = arith.constant dense<0.000000e+00> : vector<16x8xf32>
    %845 = tpu.matmul %843, %844, %cst_337 {dimension_numbers = #tpu.dot_dimension_numbers<[1], [1], [0], [0], [0, 0, 1, 0], [], []>} : vector<16x8xf32>, vector<8x8xf32>, vector<16x8xf32> -> vector<16x8xf32>
    %846 = vector.broadcast %7 : vector<1x8xf32> to vector<16x8xf32>
    %847 = arith.addf %845, %846 : vector<16x8xf32>
    %cst_338 = arith.constant dense<0xFF800000> : vector<16xf32>
    %848 = vector.multi_reduction <maximumf>, %847, %cst_338 [1] : vector<16x8xf32> to vector<16xf32>
    %849 = vector.shape_cast %848 : vector<16xf32> to vector<16x1xf32>
    %850 = vector.broadcast %849 : vector<16x1xf32> to vector<16x8xf32>
    %851 = arith.subf %847, %850 : vector<16x8xf32>
    %852 = math.exp %851 : vector<16x8xf32>
    %cst_339 = arith.constant dense<0.000000e+00> : vector<16xf32>
    %853 = vector.multi_reduction <add>, %852, %cst_339 [1] : vector<16x8xf32> to vector<16xf32>
    %854 = vector.shape_cast %853 : vector<16xf32> to vector<16x1xf32>
    %855 = tpu.reciprocal %854 {approx = true} : vector<16x1xf32> -> vector<16x1xf32>
    %856 = vector.broadcast %855 : vector<16x1xf32> to vector<16x8xf32>
    %857 = arith.mulf %852, %856 : vector<16x8xf32>
    %858 = vector.extract_strided_slice %825 {offsets = [0, 8], sizes = [8, 8], strides = [1, 1]} : vector<8x64xf32> to vector<8x8xf32>
    %cst_340 = arith.constant dense<0.000000e+00> : vector<16x8xf32>
    %859 = tpu.matmul %857, %858, %cst_340 {dimension_numbers = #tpu.dot_dimension_numbers<[1], [0], [0], [1], [0, 0, 1, 1], [], []>} : vector<16x8xf32>, vector<8x8xf32>, vector<16x8xf32> -> vector<16x8xf32>
    %860 = vector.extract_strided_slice %816 {offsets = [0, 16], sizes = [16, 8], strides = [1, 1]} : vector<16x64xf32> to vector<16x8xf32>
    %861 = vector.extract_strided_slice %824 {offsets = [0, 16], sizes = [8, 8], strides = [1, 1]} : vector<8x64xf32> to vector<8x8xf32>
    %cst_341 = arith.constant dense<0.000000e+00> : vector<16x8xf32>
    %862 = tpu.matmul %860, %861, %cst_341 {dimension_numbers = #tpu.dot_dimension_numbers<[1], [1], [0], [0], [0, 0, 1, 0], [], []>} : vector<16x8xf32>, vector<8x8xf32>, vector<16x8xf32> -> vector<16x8xf32>
    %863 = vector.broadcast %7 : vector<1x8xf32> to vector<16x8xf32>
    %864 = arith.addf %862, %863 : vector<16x8xf32>
    %cst_342 = arith.constant dense<0xFF800000> : vector<16xf32>
    %865 = vector.multi_reduction <maximumf>, %864, %cst_342 [1] : vector<16x8xf32> to vector<16xf32>
    %866 = vector.shape_cast %865 : vector<16xf32> to vector<16x1xf32>
    %867 = vector.broadcast %866 : vector<16x1xf32> to vector<16x8xf32>
    %868 = arith.subf %864, %867 : vector<16x8xf32>
    %869 = math.exp %868 : vector<16x8xf32>
    %cst_343 = arith.constant dense<0.000000e+00> : vector<16xf32>
    %870 = vector.multi_reduction <add>, %869, %cst_343 [1] : vector<16x8xf32> to vector<16xf32>
    %871 = vector.shape_cast %870 : vector<16xf32> to vector<16x1xf32>
    %872 = tpu.reciprocal %871 {approx = true} : vector<16x1xf32> -> vector<16x1xf32>
    %873 = vector.broadcast %872 : vector<16x1xf32> to vector<16x8xf32>
    %874 = arith.mulf %869, %873 : vector<16x8xf32>
    %875 = vector.extract_strided_slice %825 {offsets = [0, 16], sizes = [8, 8], strides = [1, 1]} : vector<8x64xf32> to vector<8x8xf32>
    %cst_344 = arith.constant dense<0.000000e+00> : vector<16x8xf32>
    %876 = tpu.matmul %874, %875, %cst_344 {dimension_numbers = #tpu.dot_dimension_numbers<[1], [0], [0], [1], [0, 0, 1, 1], [], []>} : vector<16x8xf32>, vector<8x8xf32>, vector<16x8xf32> -> vector<16x8xf32>
    %877 = vector.extract_strided_slice %816 {offsets = [0, 24], sizes = [16, 8], strides = [1, 1]} : vector<16x64xf32> to vector<16x8xf32>
    %878 = vector.extract_strided_slice %824 {offsets = [0, 24], sizes = [8, 8], strides = [1, 1]} : vector<8x64xf32> to vector<8x8xf32>
    %cst_345 = arith.constant dense<0.000000e+00> : vector<16x8xf32>
    %879 = tpu.matmul %877, %878, %cst_345 {dimension_numbers = #tpu.dot_dimension_numbers<[1], [1], [0], [0], [0, 0, 1, 0], [], []>} : vector<16x8xf32>, vector<8x8xf32>, vector<16x8xf32> -> vector<16x8xf32>
    %880 = vector.broadcast %7 : vector<1x8xf32> to vector<16x8xf32>
    %881 = arith.addf %879, %880 : vector<16x8xf32>
    %cst_346 = arith.constant dense<0xFF800000> : vector<16xf32>
    %882 = vector.multi_reduction <maximumf>, %881, %cst_346 [1] : vector<16x8xf32> to vector<16xf32>
    %883 = vector.shape_cast %882 : vector<16xf32> to vector<16x1xf32>
    %884 = vector.broadcast %883 : vector<16x1xf32> to vector<16x8xf32>
    %885 = arith.subf %881, %884 : vector<16x8xf32>
    %886 = math.exp %885 : vector<16x8xf32>
    %cst_347 = arith.constant dense<0.000000e+00> : vector<16xf32>
    %887 = vector.multi_reduction <add>, %886, %cst_347 [1] : vector<16x8xf32> to vector<16xf32>
    %888 = vector.shape_cast %887 : vector<16xf32> to vector<16x1xf32>
    %889 = tpu.reciprocal %888 {approx = true} : vector<16x1xf32> -> vector<16x1xf32>
    %890 = vector.broadcast %889 : vector<16x1xf32> to vector<16x8xf32>
    %891 = arith.mulf %886, %890 : vector<16x8xf32>
    %892 = vector.extract_strided_slice %825 {offsets = [0, 24], sizes = [8, 8], strides = [1, 1]} : vector<8x64xf32> to vector<8x8xf32>
    %cst_348 = arith.constant dense<0.000000e+00> : vector<16x8xf32>
    %893 = tpu.matmul %891, %892, %cst_348 {dimension_numbers = #tpu.dot_dimension_numbers<[1], [0], [0], [1], [0, 0, 1, 1], [], []>} : vector<16x8xf32>, vector<8x8xf32>, vector<16x8xf32> -> vector<16x8xf32>
    %894 = vector.extract_strided_slice %816 {offsets = [0, 32], sizes = [16, 8], strides = [1, 1]} : vector<16x64xf32> to vector<16x8xf32>
    %895 = vector.extract_strided_slice %824 {offsets = [0, 32], sizes = [8, 8], strides = [1, 1]} : vector<8x64xf32> to vector<8x8xf32>
    %cst_349 = arith.constant dense<0.000000e+00> : vector<16x8xf32>
    %896 = tpu.matmul %894, %895, %cst_349 {dimension_numbers = #tpu.dot_dimension_numbers<[1], [1], [0], [0], [0, 0, 1, 0], [], []>} : vector<16x8xf32>, vector<8x8xf32>, vector<16x8xf32> -> vector<16x8xf32>
    %897 = vector.broadcast %7 : vector<1x8xf32> to vector<16x8xf32>
    %898 = arith.addf %896, %897 : vector<16x8xf32>
    %cst_350 = arith.constant dense<0xFF800000> : vector<16xf32>
    %899 = vector.multi_reduction <maximumf>, %898, %cst_350 [1] : vector<16x8xf32> to vector<16xf32>
    %900 = vector.shape_cast %899 : vector<16xf32> to vector<16x1xf32>
    %901 = vector.broadcast %900 : vector<16x1xf32> to vector<16x8xf32>
    %902 = arith.subf %898, %901 : vector<16x8xf32>
    %903 = math.exp %902 : vector<16x8xf32>
    %cst_351 = arith.constant dense<0.000000e+00> : vector<16xf32>
    %904 = vector.multi_reduction <add>, %903, %cst_351 [1] : vector<16x8xf32> to vector<16xf32>
    %905 = vector.shape_cast %904 : vector<16xf32> to vector<16x1xf32>
    %906 = tpu.reciprocal %905 {approx = true} : vector<16x1xf32> -> vector<16x1xf32>
    %907 = vector.broadcast %906 : vector<16x1xf32> to vector<16x8xf32>
    %908 = arith.mulf %903, %907 : vector<16x8xf32>
    %909 = vector.extract_strided_slice %825 {offsets = [0, 32], sizes = [8, 8], strides = [1, 1]} : vector<8x64xf32> to vector<8x8xf32>
    %cst_352 = arith.constant dense<0.000000e+00> : vector<16x8xf32>
    %910 = tpu.matmul %908, %909, %cst_352 {dimension_numbers = #tpu.dot_dimension_numbers<[1], [0], [0], [1], [0, 0, 1, 1], [], []>} : vector<16x8xf32>, vector<8x8xf32>, vector<16x8xf32> -> vector<16x8xf32>
    %911 = vector.extract_strided_slice %816 {offsets = [0, 40], sizes = [16, 8], strides = [1, 1]} : vector<16x64xf32> to vector<16x8xf32>
    %912 = vector.extract_strided_slice %824 {offsets = [0, 40], sizes = [8, 8], strides = [1, 1]} : vector<8x64xf32> to vector<8x8xf32>
    %cst_353 = arith.constant dense<0.000000e+00> : vector<16x8xf32>
    %913 = tpu.matmul %911, %912, %cst_353 {dimension_numbers = #tpu.dot_dimension_numbers<[1], [1], [0], [0], [0, 0, 1, 0], [], []>} : vector<16x8xf32>, vector<8x8xf32>, vector<16x8xf32> -> vector<16x8xf32>
    %914 = vector.broadcast %7 : vector<1x8xf32> to vector<16x8xf32>
    %915 = arith.addf %913, %914 : vector<16x8xf32>
    %cst_354 = arith.constant dense<0xFF800000> : vector<16xf32>
    %916 = vector.multi_reduction <maximumf>, %915, %cst_354 [1] : vector<16x8xf32> to vector<16xf32>
    %917 = vector.shape_cast %916 : vector<16xf32> to vector<16x1xf32>
    %918 = vector.broadcast %917 : vector<16x1xf32> to vector<16x8xf32>
    %919 = arith.subf %915, %918 : vector<16x8xf32>
    %920 = math.exp %919 : vector<16x8xf32>
    %cst_355 = arith.constant dense<0.000000e+00> : vector<16xf32>
    %921 = vector.multi_reduction <add>, %920, %cst_355 [1] : vector<16x8xf32> to vector<16xf32>
    %922 = vector.shape_cast %921 : vector<16xf32> to vector<16x1xf32>
    %923 = tpu.reciprocal %922 {approx = true} : vector<16x1xf32> -> vector<16x1xf32>
    %924 = vector.broadcast %923 : vector<16x1xf32> to vector<16x8xf32>
    %925 = arith.mulf %920, %924 : vector<16x8xf32>
    %926 = vector.extract_strided_slice %825 {offsets = [0, 40], sizes = [8, 8], strides = [1, 1]} : vector<8x64xf32> to vector<8x8xf32>
    %cst_356 = arith.constant dense<0.000000e+00> : vector<16x8xf32>
    %927 = tpu.matmul %925, %926, %cst_356 {dimension_numbers = #tpu.dot_dimension_numbers<[1], [0], [0], [1], [0, 0, 1, 1], [], []>} : vector<16x8xf32>, vector<8x8xf32>, vector<16x8xf32> -> vector<16x8xf32>
    %928 = vector.extract_strided_slice %816 {offsets = [0, 48], sizes = [16, 8], strides = [1, 1]} : vector<16x64xf32> to vector<16x8xf32>
    %929 = vector.extract_strided_slice %824 {offsets = [0, 48], sizes = [8, 8], strides = [1, 1]} : vector<8x64xf32> to vector<8x8xf32>
    %cst_357 = arith.constant dense<0.000000e+00> : vector<16x8xf32>
    %930 = tpu.matmul %928, %929, %cst_357 {dimension_numbers = #tpu.dot_dimension_numbers<[1], [1], [0], [0], [0, 0, 1, 0], [], []>} : vector<16x8xf32>, vector<8x8xf32>, vector<16x8xf32> -> vector<16x8xf32>
    %931 = vector.broadcast %7 : vector<1x8xf32> to vector<16x8xf32>
    %932 = arith.addf %930, %931 : vector<16x8xf32>
    %cst_358 = arith.constant dense<0xFF800000> : vector<16xf32>
    %933 = vector.multi_reduction <maximumf>, %932, %cst_358 [1] : vector<16x8xf32> to vector<16xf32>
    %934 = vector.shape_cast %933 : vector<16xf32> to vector<16x1xf32>
    %935 = vector.broadcast %934 : vector<16x1xf32> to vector<16x8xf32>
    %936 = arith.subf %932, %935 : vector<16x8xf32>
    %937 = math.exp %936 : vector<16x8xf32>
    %cst_359 = arith.constant dense<0.000000e+00> : vector<16xf32>
    %938 = vector.multi_reduction <add>, %937, %cst_359 [1] : vector<16x8xf32> to vector<16xf32>
    %939 = vector.shape_cast %938 : vector<16xf32> to vector<16x1xf32>
    %940 = tpu.reciprocal %939 {approx = true} : vector<16x1xf32> -> vector<16x1xf32>
    %941 = vector.broadcast %940 : vector<16x1xf32> to vector<16x8xf32>
    %942 = arith.mulf %937, %941 : vector<16x8xf32>
    %943 = vector.extract_strided_slice %825 {offsets = [0, 48], sizes = [8, 8], strides = [1, 1]} : vector<8x64xf32> to vector<8x8xf32>
    %cst_360 = arith.constant dense<0.000000e+00> : vector<16x8xf32>
    %944 = tpu.matmul %942, %943, %cst_360 {dimension_numbers = #tpu.dot_dimension_numbers<[1], [0], [0], [1], [0, 0, 1, 1], [], []>} : vector<16x8xf32>, vector<8x8xf32>, vector<16x8xf32> -> vector<16x8xf32>
    %945 = vector.extract_strided_slice %816 {offsets = [0, 56], sizes = [16, 8], strides = [1, 1]} : vector<16x64xf32> to vector<16x8xf32>
    %946 = vector.extract_strided_slice %824 {offsets = [0, 56], sizes = [8, 8], strides = [1, 1]} : vector<8x64xf32> to vector<8x8xf32>
    %cst_361 = arith.constant dense<0.000000e+00> : vector<16x8xf32>
    %947 = tpu.matmul %945, %946, %cst_361 {dimension_numbers = #tpu.dot_dimension_numbers<[1], [1], [0], [0], [0, 0, 1, 0], [], []>} : vector<16x8xf32>, vector<8x8xf32>, vector<16x8xf32> -> vector<16x8xf32>
    %948 = vector.broadcast %7 : vector<1x8xf32> to vector<16x8xf32>
    %949 = arith.addf %947, %948 : vector<16x8xf32>
    %cst_362 = arith.constant dense<0xFF800000> : vector<16xf32>
    %950 = vector.multi_reduction <maximumf>, %949, %cst_362 [1] : vector<16x8xf32> to vector<16xf32>
    %951 = vector.shape_cast %950 : vector<16xf32> to vector<16x1xf32>
    %952 = vector.broadcast %951 : vector<16x1xf32> to vector<16x8xf32>
    %953 = arith.subf %949, %952 : vector<16x8xf32>
    %954 = math.exp %953 : vector<16x8xf32>
    %cst_363 = arith.constant dense<0.000000e+00> : vector<16xf32>
    %955 = vector.multi_reduction <add>, %954, %cst_363 [1] : vector<16x8xf32> to vector<16xf32>
    %956 = vector.shape_cast %955 : vector<16xf32> to vector<16x1xf32>
    %957 = tpu.reciprocal %956 {approx = true} : vector<16x1xf32> -> vector<16x1xf32>
    %958 = vector.broadcast %957 : vector<16x1xf32> to vector<16x8xf32>
    %959 = arith.mulf %954, %958 : vector<16x8xf32>
    %960 = vector.extract_strided_slice %825 {offsets = [0, 56], sizes = [8, 8], strides = [1, 1]} : vector<8x64xf32> to vector<8x8xf32>
    %cst_364 = arith.constant dense<0.000000e+00> : vector<16x8xf32>
    %961 = tpu.matmul %959, %960, %cst_364 {dimension_numbers = #tpu.dot_dimension_numbers<[1], [0], [0], [1], [0, 0, 1, 1], [], []>} : vector<16x8xf32>, vector<8x8xf32>, vector<16x8xf32> -> vector<16x8xf32>
    %962 = tpu.concatenate %842, %859, %876, %893, %910, %927, %944, %961 in 1 : vector<16x8xf32>, vector<16x8xf32>, vector<16x8xf32>, vector<16x8xf32>, vector<16x8xf32>, vector<16x8xf32>, vector<16x8xf32>, vector<16x8xf32> -> vector<16x64xf32>
    %c1_365 = arith.constant 1 : index
    %c0_366 = arith.constant 0 : index
    %c0_367 = arith.constant 0 : index
    %963 = vector.load %arg34[%c1_365, %c0_366, %c0_367] : memref<2x64x64xf32, #tpu.memory_space<vmem>>, vector<1x64x64xf32>
    %964 = vector.shape_cast %963 : vector<1x64x64xf32> to vector<64x64xf32>
    %cst_368 = arith.constant dense<0.000000e+00> : vector<16x64xf32>
    %965 = tpu.matmul %962, %964, %cst_368 {dimension_numbers = #tpu.dot_dimension_numbers<[1], [0], [0], [1], [0, 0, 1, 1], [], []>} : vector<16x64xf32>, vector<64x64xf32>, vector<16x64xf32> -> vector<16x64xf32>
    %c1_369 = arith.constant 1 : index
    %c0_370 = arith.constant 0 : index
    %c0_371 = arith.constant 0 : index
    %966 = vector.load %arg35[%c1_369, %c0_370, %c0_371] : memref<2x1x64xf32, #tpu.memory_space<vmem>>, vector<1x1x64xf32>
    %967 = vector.shape_cast %966 : vector<1x1x64xf32> to vector<1x64xf32>
    %968 = vector.broadcast %967 : vector<1x64xf32> to vector<16x64xf32>
    %969 = arith.addf %965, %968 : vector<16x64xf32>
    %970 = arith.addf %807, %969 : vector<16x64xf32>
    %c1_372 = arith.constant 1 : index
    %c0_373 = arith.constant 0 : index
    %c0_374 = arith.constant 0 : index
    %971 = vector.load %arg38[%c1_372, %c0_373, %c0_374] : memref<2x1x64xf32, #tpu.memory_space<vmem>>, vector<1x1x64xf32>
    %972 = vector.shape_cast %971 : vector<1x1x64xf32> to vector<1x64xf32>
    %c1_375 = arith.constant 1 : index
    %c0_376 = arith.constant 0 : index
    %c0_377 = arith.constant 0 : index
    %973 = vector.load %arg39[%c1_375, %c0_376, %c0_377] : memref<2x1x64xf32, #tpu.memory_space<vmem>>, vector<1x1x64xf32>
    %974 = vector.shape_cast %973 : vector<1x1x64xf32> to vector<1x64xf32>
    %cst_378 = arith.constant dense<0.000000e+00> : vector<16xf32>
    %975 = vector.multi_reduction <add>, %970, %cst_378 [1] : vector<16x64xf32> to vector<16xf32>
    %976 = vector.shape_cast %975 : vector<16xf32> to vector<16x1xf32>
    %cst_379 = arith.constant 6.400000e+01 : f32
    %977 = vector.broadcast %cst_379 : f32 to vector<16x1xf32>
    %978 = arith.divf %976, %977 : vector<16x1xf32>
    %979 = vector.broadcast %978 : vector<16x1xf32> to vector<16x64xf32>
    %980 = arith.subf %970, %979 : vector<16x64xf32>
    %981 = arith.mulf %980, %980 : vector<16x64xf32>
    %cst_380 = arith.constant dense<0.000000e+00> : vector<16xf32>
    %982 = vector.multi_reduction <add>, %981, %cst_380 [1] : vector<16x64xf32> to vector<16xf32>
    %983 = vector.shape_cast %982 : vector<16xf32> to vector<16x1xf32>
    %cst_381 = arith.constant 6.400000e+01 : f32
    %984 = vector.broadcast %cst_381 : f32 to vector<16x1xf32>
    %985 = arith.divf %983, %984 : vector<16x1xf32>
    %986 = vector.broadcast %978 : vector<16x1xf32> to vector<16x64xf32>
    %987 = arith.subf %970, %986 : vector<16x64xf32>
    %cst_382 = arith.constant 9.99999974E-6 : f32
    %988 = vector.broadcast %cst_382 : f32 to vector<16x1xf32>
    %989 = arith.addf %985, %988 : vector<16x1xf32>
    %990 = math.rsqrt %989 : vector<16x1xf32>
    %991 = vector.broadcast %990 : vector<16x1xf32> to vector<16x64xf32>
    %992 = arith.mulf %987, %991 : vector<16x64xf32>
    %993 = vector.broadcast %972 : vector<1x64xf32> to vector<16x64xf32>
    %994 = arith.mulf %992, %993 : vector<16x64xf32>
    %995 = vector.broadcast %974 : vector<1x64xf32> to vector<16x64xf32>
    %996 = arith.addf %994, %995 : vector<16x64xf32>
    %c1_383 = arith.constant 1 : index
    %c0_384 = arith.constant 0 : index
    %c0_385 = arith.constant 0 : index
    %997 = vector.load %arg42[%c1_383, %c0_384, %c0_385] : memref<2x64x256xf32, #tpu.memory_space<vmem>>, vector<1x64x256xf32>
    %998 = vector.shape_cast %997 : vector<1x64x256xf32> to vector<64x256xf32>
    %c1_386 = arith.constant 1 : index
    %c0_387 = arith.constant 0 : index
    %c0_388 = arith.constant 0 : index
    %999 = vector.load %arg43[%c1_386, %c0_387, %c0_388] : memref<2x1x256xf32, #tpu.memory_space<vmem>>, vector<1x1x256xf32>
    %1000 = vector.shape_cast %999 : vector<1x1x256xf32> to vector<1x256xf32>
    %c1_389 = arith.constant 1 : index
    %c0_390 = arith.constant 0 : index
    %c0_391 = arith.constant 0 : index
    %1001 = vector.load %arg44[%c1_389, %c0_390, %c0_391] : memref<2x256x64xf32, #tpu.memory_space<vmem>>, vector<1x256x64xf32>
    %1002 = vector.shape_cast %1001 : vector<1x256x64xf32> to vector<256x64xf32>
    %c1_392 = arith.constant 1 : index
    %c0_393 = arith.constant 0 : index
    %c0_394 = arith.constant 0 : index
    %1003 = vector.load %arg45[%c1_392, %c0_393, %c0_394] : memref<2x1x64xf32, #tpu.memory_space<vmem>>, vector<1x1x64xf32>
    %1004 = vector.shape_cast %1003 : vector<1x1x64xf32> to vector<1x64xf32>
    %cst_395 = arith.constant dense<0.000000e+00> : vector<16x256xf32>
    %1005 = tpu.matmul %996, %998, %cst_395 {dimension_numbers = #tpu.dot_dimension_numbers<[1], [0], [0], [1], [0, 0, 1, 1], [], []>} : vector<16x64xf32>, vector<64x256xf32>, vector<16x256xf32> -> vector<16x256xf32>
    %1006 = vector.broadcast %1000 : vector<1x256xf32> to vector<16x256xf32>
    %1007 = arith.addf %1005, %1006 : vector<16x256xf32>
    %cst_396 = arith.constant 0.707106769 : f32
    %1008 = vector.broadcast %cst_396 : f32 to vector<16x256xf32>
    %1009 = arith.mulf %1007, %1008 : vector<16x256xf32>
    %1010 = math.absf %1009 : vector<16x256xf32>
    %cst_397 = arith.constant 0.327591091 : f32
    %1011 = vector.broadcast %cst_397 : f32 to vector<16x256xf32>
    %1012 = arith.mulf %1011, %1010 : vector<16x256xf32>
    %cst_398 = arith.constant 1.000000e+00 : f32
    %1013 = vector.broadcast %cst_398 : f32 to vector<16x256xf32>
    %1014 = arith.addf %1013, %1012 : vector<16x256xf32>
    %cst_399 = arith.constant 1.000000e+00 : f32
    %1015 = vector.broadcast %cst_399 : f32 to vector<16x256xf32>
    %1016 = arith.divf %1015, %1014 : vector<16x256xf32>
    %cst_400 = arith.constant 1.06140542 : f32
    %1017 = vector.broadcast %cst_400 : f32 to vector<16x256xf32>
    %1018 = arith.mulf %1016, %1017 : vector<16x256xf32>
    %cst_401 = arith.constant -1.45315206 : f32
    %1019 = vector.broadcast %cst_401 : f32 to vector<16x256xf32>
    %1020 = arith.addf %1019, %1018 : vector<16x256xf32>
    %1021 = arith.mulf %1016, %1020 : vector<16x256xf32>
    %cst_402 = arith.constant 1.42141378 : f32
    %1022 = vector.broadcast %cst_402 : f32 to vector<16x256xf32>
    %1023 = arith.addf %1022, %1021 : vector<16x256xf32>
    %1024 = arith.mulf %1016, %1023 : vector<16x256xf32>
    %cst_403 = arith.constant -0.284496725 : f32
    %1025 = vector.broadcast %cst_403 : f32 to vector<16x256xf32>
    %1026 = arith.addf %1025, %1024 : vector<16x256xf32>
    %1027 = arith.mulf %1016, %1026 : vector<16x256xf32>
    %cst_404 = arith.constant 0.254829586 : f32
    %1028 = vector.broadcast %cst_404 : f32 to vector<16x256xf32>
    %1029 = arith.addf %1028, %1027 : vector<16x256xf32>
    %1030 = arith.mulf %1016, %1029 : vector<16x256xf32>
    %cst_405 = arith.constant 0.000000e+00 : f32
    %1031 = vector.broadcast %cst_405 : f32 to vector<16x256xf32>
    %1032 = arith.subf %1031, %1010 : vector<16x256xf32>
    %1033 = arith.mulf %1032, %1010 : vector<16x256xf32>
    %1034 = math.exp %1033 : vector<16x256xf32>
    %1035 = arith.mulf %1030, %1034 : vector<16x256xf32>
    %cst_406 = arith.constant 1.000000e+00 : f32
    %1036 = vector.broadcast %cst_406 : f32 to vector<16x256xf32>
    %1037 = arith.subf %1036, %1035 : vector<16x256xf32>
    %cst_407 = arith.constant 0.000000e+00 : f32
    %1038 = vector.broadcast %cst_407 : f32 to vector<16x256xf32>
    %1039 = arith.cmpf oge, %1009, %1038 : vector<16x256xf32>
    %cst_408 = arith.constant 0.000000e+00 : f32
    %1040 = vector.broadcast %cst_408 : f32 to vector<16x256xf32>
    %1041 = arith.subf %1040, %1037 : vector<16x256xf32>
    %1042 = arith.select %1039, %1037, %1041 : vector<16x256xi1>, vector<16x256xf32>
    %cst_409 = arith.constant 5.000000e-01 : f32
    %1043 = vector.broadcast %cst_409 : f32 to vector<16x256xf32>
    %1044 = arith.mulf %1043, %1007 : vector<16x256xf32>
    %cst_410 = arith.constant 1.000000e+00 : f32
    %1045 = vector.broadcast %cst_410 : f32 to vector<16x256xf32>
    %1046 = arith.addf %1045, %1042 : vector<16x256xf32>
    %1047 = arith.mulf %1044, %1046 : vector<16x256xf32>
    %cst_411 = arith.constant dense<0.000000e+00> : vector<16x64xf32>
    %1048 = tpu.matmul %1047, %1002, %cst_411 {dimension_numbers = #tpu.dot_dimension_numbers<[1], [0], [0], [1], [0, 0, 1, 1], [], []>} : vector<16x256xf32>, vector<256x64xf32>, vector<16x64xf32> -> vector<16x64xf32>
    %1049 = vector.broadcast %1004 : vector<1x64xf32> to vector<16x64xf32>
    %1050 = arith.addf %1048, %1049 : vector<16x64xf32>
    %1051 = arith.addf %996, %1050 : vector<16x64xf32>
    %c1_412 = arith.constant 1 : index
    %c0_413 = arith.constant 0 : index
    %c0_414 = arith.constant 0 : index
    %1052 = vector.load %arg40[%c1_412, %c0_413, %c0_414] : memref<2x1x64xf32, #tpu.memory_space<vmem>>, vector<1x1x64xf32>
    %1053 = vector.shape_cast %1052 : vector<1x1x64xf32> to vector<1x64xf32>
    %c1_415 = arith.constant 1 : index
    %c0_416 = arith.constant 0 : index
    %c0_417 = arith.constant 0 : index
    %1054 = vector.load %arg41[%c1_415, %c0_416, %c0_417] : memref<2x1x64xf32, #tpu.memory_space<vmem>>, vector<1x1x64xf32>
    %1055 = vector.shape_cast %1054 : vector<1x1x64xf32> to vector<1x64xf32>
    %cst_418 = arith.constant dense<0.000000e+00> : vector<16xf32>
    %1056 = vector.multi_reduction <add>, %1051, %cst_418 [1] : vector<16x64xf32> to vector<16xf32>
    %1057 = vector.shape_cast %1056 : vector<16xf32> to vector<16x1xf32>
    %cst_419 = arith.constant 6.400000e+01 : f32
    %1058 = vector.broadcast %cst_419 : f32 to vector<16x1xf32>
    %1059 = arith.divf %1057, %1058 : vector<16x1xf32>
    %1060 = vector.broadcast %1059 : vector<16x1xf32> to vector<16x64xf32>
    %1061 = arith.subf %1051, %1060 : vector<16x64xf32>
    %1062 = arith.mulf %1061, %1061 : vector<16x64xf32>
    %cst_420 = arith.constant dense<0.000000e+00> : vector<16xf32>
    %1063 = vector.multi_reduction <add>, %1062, %cst_420 [1] : vector<16x64xf32> to vector<16xf32>
    %1064 = vector.shape_cast %1063 : vector<16xf32> to vector<16x1xf32>
    %cst_421 = arith.constant 6.400000e+01 : f32
    %1065 = vector.broadcast %cst_421 : f32 to vector<16x1xf32>
    %1066 = arith.divf %1064, %1065 : vector<16x1xf32>
    %1067 = vector.broadcast %1059 : vector<16x1xf32> to vector<16x64xf32>
    %1068 = arith.subf %1051, %1067 : vector<16x64xf32>
    %cst_422 = arith.constant 9.99999974E-6 : f32
    %1069 = vector.broadcast %cst_422 : f32 to vector<16x1xf32>
    %1070 = arith.addf %1066, %1069 : vector<16x1xf32>
    %1071 = math.rsqrt %1070 : vector<16x1xf32>
    %1072 = vector.broadcast %1071 : vector<16x1xf32> to vector<16x64xf32>
    %1073 = arith.mulf %1068, %1072 : vector<16x64xf32>
    %1074 = vector.broadcast %1053 : vector<1x64xf32> to vector<16x64xf32>
    %1075 = arith.mulf %1073, %1074 : vector<16x64xf32>
    %1076 = vector.broadcast %1055 : vector<1x64xf32> to vector<16x64xf32>
    %1077 = arith.addf %1075, %1076 : vector<16x64xf32>
    %c0_423 = arith.constant 0 : index
    %c0_424 = arith.constant 0 : index
    %1078 = vector.load %arg22[%c0_423, %c0_424] : memref<64x64xf32, #tpu.memory_space<vmem>>, vector<64x64xf32>
    %c0_425 = arith.constant 0 : index
    %c0_426 = arith.constant 0 : index
    %1079 = vector.load %arg23[%c0_425, %c0_426] : memref<1x64xf32, #tpu.memory_space<vmem>>, vector<1x64xf32>
    %c0_427 = arith.constant 0 : index
    %c0_428 = arith.constant 0 : index
    %1080 = vector.load %arg24[%c0_427, %c0_428] : memref<64x16xf32, #tpu.memory_space<vmem>>, vector<64x16xf32>
    %c0_429 = arith.constant 0 : index
    %c0_430 = arith.constant 0 : index
    %1081 = vector.load %arg25[%c0_429, %c0_430] : memref<1x16xf32, #tpu.memory_space<vmem>>, vector<1x16xf32>
    %cst_431 = arith.constant dense<0.000000e+00> : vector<16x64xf32>
    %1082 = tpu.matmul %1077, %1078, %cst_431 {dimension_numbers = #tpu.dot_dimension_numbers<[1], [0], [0], [1], [0, 0, 1, 1], [], []>} : vector<16x64xf32>, vector<64x64xf32>, vector<16x64xf32> -> vector<16x64xf32>
    %1083 = vector.broadcast %1079 : vector<1x64xf32> to vector<16x64xf32>
    %1084 = arith.addf %1082, %1083 : vector<16x64xf32>
    %cst_432 = arith.constant 0.707106769 : f32
    %1085 = vector.broadcast %cst_432 : f32 to vector<16x64xf32>
    %1086 = arith.mulf %1084, %1085 : vector<16x64xf32>
    %1087 = math.absf %1086 : vector<16x64xf32>
    %cst_433 = arith.constant 0.327591091 : f32
    %1088 = vector.broadcast %cst_433 : f32 to vector<16x64xf32>
    %1089 = arith.mulf %1088, %1087 : vector<16x64xf32>
    %cst_434 = arith.constant 1.000000e+00 : f32
    %1090 = vector.broadcast %cst_434 : f32 to vector<16x64xf32>
    %1091 = arith.addf %1090, %1089 : vector<16x64xf32>
    %cst_435 = arith.constant 1.000000e+00 : f32
    %1092 = vector.broadcast %cst_435 : f32 to vector<16x64xf32>
    %1093 = arith.divf %1092, %1091 : vector<16x64xf32>
    %cst_436 = arith.constant 1.06140542 : f32
    %1094 = vector.broadcast %cst_436 : f32 to vector<16x64xf32>
    %1095 = arith.mulf %1093, %1094 : vector<16x64xf32>
    %cst_437 = arith.constant -1.45315206 : f32
    %1096 = vector.broadcast %cst_437 : f32 to vector<16x64xf32>
    %1097 = arith.addf %1096, %1095 : vector<16x64xf32>
    %1098 = arith.mulf %1093, %1097 : vector<16x64xf32>
    %cst_438 = arith.constant 1.42141378 : f32
    %1099 = vector.broadcast %cst_438 : f32 to vector<16x64xf32>
    %1100 = arith.addf %1099, %1098 : vector<16x64xf32>
    %1101 = arith.mulf %1093, %1100 : vector<16x64xf32>
    %cst_439 = arith.constant -0.284496725 : f32
    %1102 = vector.broadcast %cst_439 : f32 to vector<16x64xf32>
    %1103 = arith.addf %1102, %1101 : vector<16x64xf32>
    %1104 = arith.mulf %1093, %1103 : vector<16x64xf32>
    %cst_440 = arith.constant 0.254829586 : f32
    %1105 = vector.broadcast %cst_440 : f32 to vector<16x64xf32>
    %1106 = arith.addf %1105, %1104 : vector<16x64xf32>
    %1107 = arith.mulf %1093, %1106 : vector<16x64xf32>
    %cst_441 = arith.constant 0.000000e+00 : f32
    %1108 = vector.broadcast %cst_441 : f32 to vector<16x64xf32>
    %1109 = arith.subf %1108, %1087 : vector<16x64xf32>
    %1110 = arith.mulf %1109, %1087 : vector<16x64xf32>
    %1111 = math.exp %1110 : vector<16x64xf32>
    %1112 = arith.mulf %1107, %1111 : vector<16x64xf32>
    %cst_442 = arith.constant 1.000000e+00 : f32
    %1113 = vector.broadcast %cst_442 : f32 to vector<16x64xf32>
    %1114 = arith.subf %1113, %1112 : vector<16x64xf32>
    %cst_443 = arith.constant 0.000000e+00 : f32
    %1115 = vector.broadcast %cst_443 : f32 to vector<16x64xf32>
    %1116 = arith.cmpf oge, %1086, %1115 : vector<16x64xf32>
    %cst_444 = arith.constant 0.000000e+00 : f32
    %1117 = vector.broadcast %cst_444 : f32 to vector<16x64xf32>
    %1118 = arith.subf %1117, %1114 : vector<16x64xf32>
    %1119 = arith.select %1116, %1114, %1118 : vector<16x64xi1>, vector<16x64xf32>
    %cst_445 = arith.constant 5.000000e-01 : f32
    %1120 = vector.broadcast %cst_445 : f32 to vector<16x64xf32>
    %1121 = arith.mulf %1120, %1084 : vector<16x64xf32>
    %cst_446 = arith.constant 1.000000e+00 : f32
    %1122 = vector.broadcast %cst_446 : f32 to vector<16x64xf32>
    %1123 = arith.addf %1122, %1119 : vector<16x64xf32>
    %1124 = arith.mulf %1121, %1123 : vector<16x64xf32>
    %cst_447 = arith.constant dense<0.000000e+00> : vector<16x16xf32>
    %1125 = tpu.matmul %1124, %1080, %cst_447 {dimension_numbers = #tpu.dot_dimension_numbers<[1], [0], [0], [1], [0, 0, 1, 1], [], []>} : vector<16x64xf32>, vector<64x16xf32>, vector<16x16xf32> -> vector<16x16xf32>
    %1126 = vector.broadcast %1081 : vector<1x16xf32> to vector<16x16xf32>
    %1127 = arith.addf %1125, %1126 : vector<16x16xf32>
    %1128 = vector.broadcast %1 : vector<16x1xf32> to vector<16x16xf32>
    %1129 = arith.mulf %1127, %1128 : vector<16x16xf32>
    %c0_448 = arith.constant 0 : index
    %c0_449 = arith.constant 0 : index
    %c0_450 = arith.constant 0 : index
    %1130 = vector.load %arg46[%c0_448, %c0_449, %c0_450] : memref<1x16x16xf32, #tpu.memory_space<vmem>>, vector<1x16x16xf32>
    %1131 = vector.shape_cast %1130 : vector<1x16x16xf32> to vector<16x16xf32>
    %1132 = vector.shape_cast %1129 : vector<16x16xf32> to vector<1x16x16xf32>
    tpu.vector_store %arg46[%c0_448, %c0_449, %c0_450], %1132 {strides = array<i32>} : memref<1x16x16xf32, #tpu.memory_space<vmem>>, vector<1x16x16xf32>,
    return
  }
  func.func @transform_0(%arg0: i32) -> (i32, i32, i32) {
    %c0_i32 = arith.constant 0 : i32
    %c0_i32_0 = arith.constant 0 : i32
    %c0_i32_1 = arith.constant 0 : i32
    return %arg0, %c0_i32, %c0_i32_0 : i32, i32, i32
  }
  func.func @transform_1(%arg0: i32) -> (i32, i32, i32) {
    %c0_i32 = arith.constant 0 : i32
    %c0_i32_0 = arith.constant 0 : i32
    %c0_i32_1 = arith.constant 0 : i32
    return %arg0, %c0_i32, %c0_i32_0 : i32, i32, i32
  }
  func.func @transform_2(%arg0: i32) -> (i32, i32, i32) {
    %c0_i32 = arith.constant 0 : i32
    %c0_i32_0 = arith.constant 0 : i32
    %c0_i32_1 = arith.constant 0 : i32
    return %arg0, %c0_i32, %c0_i32_0 : i32, i32, i32
  }
  func.func @transform_3(%arg0: i32) -> (i32, i32) {
    %c0_i32 = arith.constant 0 : i32
    %c0_i32_0 = arith.constant 0 : i32
    %c0_i32_1 = arith.constant 0 : i32
    return %c0_i32, %c0_i32_0 : i32, i32
  }
  func.func @transform_4(%arg0: i32) -> (i32, i32) {
    %c0_i32 = arith.constant 0 : i32
    %c0_i32_0 = arith.constant 0 : i32
    %c0_i32_1 = arith.constant 0 : i32
    return %c0_i32, %c0_i32_0 : i32, i32
  }
  func.func @transform_5(%arg0: i32) -> (i32, i32, i32) {
    %c0_i32 = arith.constant 0 : i32
    %c0_i32_0 = arith.constant 0 : i32
    %c0_i32_1 = arith.constant 0 : i32
    return %arg0, %c0_i32, %c0_i32_0 : i32, i32, i32
  }
  func.func @transform_6(%arg0: i32) -> (i32, i32, i32) {
    %c0_i32 = arith.constant 0 : i32
    %c0_i32_0 = arith.constant 0 : i32
    %c0_i32_1 = arith.constant 0 : i32
    return %arg0, %c0_i32, %c0_i32_0 : i32, i32, i32
  }
  func.func @transform_7(%arg0: i32) -> (i32, i32, i32) {
    %c0_i32 = arith.constant 0 : i32
    %c0_i32_0 = arith.constant 0 : i32
    %c0_i32_1 = arith.constant 0 : i32
    return %arg0, %c0_i32, %c0_i32_0 : i32, i32, i32
  }
  func.func @transform_8(%arg0: i32) -> (i32, i32, i32) {
    %c0_i32 = arith.constant 0 : i32
    %c0_i32_0 = arith.constant 0 : i32
    %c0_i32_1 = arith.constant 0 : i32
    return %arg0, %c0_i32, %c0_i32_0 : i32, i32, i32
  }
  func.func @transform_9(%arg0: i32) -> (i32, i32) {
    %c0_i32 = arith.constant 0 : i32
    %c0_i32_0 = arith.constant 0 : i32
    %c0_i32_1 = arith.constant 0 : i32
    return %c0_i32, %c0_i32_0 : i32, i32
  }
  func.func @transform_10(%arg0: i32) -> (i32, i32) {
    %c0_i32 = arith.constant 0 : i32
    %c0_i32_0 = arith.constant 0 : i32
    %c0_i32_1 = arith.constant 0 : i32
    return %c0_i32, %c0_i32_0 : i32, i32
  }
  func.func @transform_11(%arg0: i32) -> (i32, i32) {
    %c0_i32 = arith.constant 0 : i32
    %c0_i32_0 = arith.constant 0 : i32
    %c0_i32_1 = arith.constant 0 : i32
    return %c0_i32, %c0_i32_0 : i32, i32
  }
  func.func @transform_12(%arg0: i32) -> (i32, i32) {
    %c0_i32 = arith.constant 0 : i32
    %c0_i32_0 = arith.constant 0 : i32
    %c0_i32_1 = arith.constant 0 : i32
    return %c0_i32, %c0_i32_0 : i32, i32
  }
  func.func @transform_13(%arg0: i32) -> (i32, i32) {
    %c0_i32 = arith.constant 0 : i32
    %c0_i32_0 = arith.constant 0 : i32
    %c0_i32_1 = arith.constant 0 : i32
    return %c0_i32, %c0_i32_0 : i32, i32
  }
  func.func @transform_14(%arg0: i32) -> (i32, i32) {
    %c0_i32 = arith.constant 0 : i32
    %c0_i32_0 = arith.constant 0 : i32
    %c0_i32_1 = arith.constant 0 : i32
    return %c0_i32, %c0_i32_0 : i32, i32
  }
  func.func @transform_15(%arg0: i32) -> (i32, i32) {
    %c0_i32 = arith.constant 0 : i32
    %c0_i32_0 = arith.constant 0 : i32
    %c0_i32_1 = arith.constant 0 : i32
    return %c0_i32, %c0_i32_0 : i32, i32
  }
  func.func @transform_16(%arg0: i32) -> (i32, i32) {
    %c0_i32 = arith.constant 0 : i32
    %c0_i32_0 = arith.constant 0 : i32
    %c0_i32_1 = arith.constant 0 : i32
    return %c0_i32, %c0_i32_0 : i32, i32
  }
  func.func @transform_17(%arg0: i32) -> (i32, i32) {
    %c0_i32 = arith.constant 0 : i32
    %c0_i32_0 = arith.constant 0 : i32
    %c0_i32_1 = arith.constant 0 : i32
    return %c0_i32, %c0_i32_0 : i32, i32
  }
  func.func @transform_18(%arg0: i32) -> (i32, i32) {
    %c0_i32 = arith.constant 0 : i32
    %c0_i32_0 = arith.constant 0 : i32
    %c0_i32_1 = arith.constant 0 : i32
    return %c0_i32, %c0_i32_0 : i32, i32
  }
  func.func @transform_19(%arg0: i32) -> (i32, i32) {
    %c0_i32 = arith.constant 0 : i32
    %c0_i32_0 = arith.constant 0 : i32
    %c0_i32_1 = arith.constant 0 : i32
    return %c0_i32, %c0_i32_0 : i32, i32
  }
  func.func @transform_20(%arg0: i32) -> (i32, i32) {
    %c0_i32 = arith.constant 0 : i32
    %c0_i32_0 = arith.constant 0 : i32
    %c0_i32_1 = arith.constant 0 : i32
    return %c0_i32, %c0_i32_0 : i32, i32
  }
  func.func @transform_21(%arg0: i32) -> (i32, i32) {
    %c0_i32 = arith.constant 0 : i32
    %c0_i32_0 = arith.constant 0 : i32
    %c0_i32_1 = arith.constant 0 : i32
    return %c0_i32, %c0_i32_0 : i32, i32
  }
  func.func @transform_22(%arg0: i32) -> (i32, i32) {
    %c0_i32 = arith.constant 0 : i32
    %c0_i32_0 = arith.constant 0 : i32
    %c0_i32_1 = arith.constant 0 : i32
    return %c0_i32, %c0_i32_0 : i32, i32
  }
  func.func @transform_23(%arg0: i32) -> (i32, i32) {
    %c0_i32 = arith.constant 0 : i32
    %c0_i32_0 = arith.constant 0 : i32
    %c0_i32_1 = arith.constant 0 : i32
    return %c0_i32, %c0_i32_0 : i32, i32
  }
  func.func @transform_24(%arg0: i32) -> (i32, i32) {
    %c0_i32 = arith.constant 0 : i32
    %c0_i32_0 = arith.constant 0 : i32
    %c0_i32_1 = arith.constant 0 : i32
    return %c0_i32, %c0_i32_0 : i32, i32
  }
  func.func @transform_25(%arg0: i32) -> (i32, i32, i32) {
    %c0_i32 = arith.constant 0 : i32
    %c0_i32_0 = arith.constant 0 : i32
    %c0_i32_1 = arith.constant 0 : i32
    %c0_i32_2 = arith.constant 0 : i32
    return %c0_i32, %c0_i32_0, %c0_i32_1 : i32, i32, i32
  }
  func.func @transform_26(%arg0: i32) -> (i32, i32, i32) {
    %c0_i32 = arith.constant 0 : i32
    %c0_i32_0 = arith.constant 0 : i32
    %c0_i32_1 = arith.constant 0 : i32
    %c0_i32_2 = arith.constant 0 : i32
    return %c0_i32, %c0_i32_0, %c0_i32_1 : i32, i32, i32
  }
  func.func @transform_27(%arg0: i32) -> (i32, i32, i32) {
    %c0_i32 = arith.constant 0 : i32
    %c0_i32_0 = arith.constant 0 : i32
    %c0_i32_1 = arith.constant 0 : i32
    %c0_i32_2 = arith.constant 0 : i32
    return %c0_i32, %c0_i32_0, %c0_i32_1 : i32, i32, i32
  }
  func.func @transform_28(%arg0: i32) -> (i32, i32, i32) {
    %c0_i32 = arith.constant 0 : i32
    %c0_i32_0 = arith.constant 0 : i32
    %c0_i32_1 = arith.constant 0 : i32
    %c0_i32_2 = arith.constant 0 : i32
    return %c0_i32, %c0_i32_0, %c0_i32_1 : i32, i32, i32
  }
  func.func @transform_29(%arg0: i32) -> (i32, i32, i32) {
    %c0_i32 = arith.constant 0 : i32
    %c0_i32_0 = arith.constant 0 : i32
    %c0_i32_1 = arith.constant 0 : i32
    %c0_i32_2 = arith.constant 0 : i32
    return %c0_i32, %c0_i32_0, %c0_i32_1 : i32, i32, i32
  }
  func.func @transform_30(%arg0: i32) -> (i32, i32, i32) {
    %c0_i32 = arith.constant 0 : i32
    %c0_i32_0 = arith.constant 0 : i32
    %c0_i32_1 = arith.constant 0 : i32
    %c0_i32_2 = arith.constant 0 : i32
    return %c0_i32, %c0_i32_0, %c0_i32_1 : i32, i32, i32
  }
  func.func @transform_31(%arg0: i32) -> (i32, i32, i32) {
    %c0_i32 = arith.constant 0 : i32
    %c0_i32_0 = arith.constant 0 : i32
    %c0_i32_1 = arith.constant 0 : i32
    %c0_i32_2 = arith.constant 0 : i32
    return %c0_i32, %c0_i32_0, %c0_i32_1 : i32, i32, i32
  }
  func.func @transform_32(%arg0: i32) -> (i32, i32, i32) {
    %c0_i32 = arith.constant 0 : i32
    %c0_i32_0 = arith.constant 0 : i32
    %c0_i32_1 = arith.constant 0 : i32
    %c0_i32_2 = arith.constant 0 : i32
    return %c0_i32, %c0_i32_0, %c0_i32_1 : i32, i32, i32
  }
  func.func @transform_33(%arg0: i32) -> (i32, i32, i32) {
    %c0_i32 = arith.constant 0 : i32
    %c0_i32_0 = arith.constant 0 : i32
    %c0_i32_1 = arith.constant 0 : i32
    %c0_i32_2 = arith.constant 0 : i32
    return %c0_i32, %c0_i32_0, %c0_i32_1 : i32, i32, i32
  }
  func.func @transform_34(%arg0: i32) -> (i32, i32, i32) {
    %c0_i32 = arith.constant 0 : i32
    %c0_i32_0 = arith.constant 0 : i32
    %c0_i32_1 = arith.constant 0 : i32
    %c0_i32_2 = arith.constant 0 : i32
    return %c0_i32, %c0_i32_0, %c0_i32_1 : i32, i32, i32
  }
  func.func @transform_35(%arg0: i32) -> (i32, i32, i32) {
    %c0_i32 = arith.constant 0 : i32
    %c0_i32_0 = arith.constant 0 : i32
    %c0_i32_1 = arith.constant 0 : i32
    %c0_i32_2 = arith.constant 0 : i32
    return %c0_i32, %c0_i32_0, %c0_i32_1 : i32, i32, i32
  }
  func.func @transform_36(%arg0: i32) -> (i32, i32, i32) {
    %c0_i32 = arith.constant 0 : i32
    %c0_i32_0 = arith.constant 0 : i32
    %c0_i32_1 = arith.constant 0 : i32
    %c0_i32_2 = arith.constant 0 : i32
    return %c0_i32, %c0_i32_0, %c0_i32_1 : i32, i32, i32
  }
  func.func @transform_37(%arg0: i32) -> (i32, i32, i32) {
    %c0_i32 = arith.constant 0 : i32
    %c0_i32_0 = arith.constant 0 : i32
    %c0_i32_1 = arith.constant 0 : i32
    %c0_i32_2 = arith.constant 0 : i32
    return %c0_i32, %c0_i32_0, %c0_i32_1 : i32, i32, i32
  }
  func.func @transform_38(%arg0: i32) -> (i32, i32, i32) {
    %c0_i32 = arith.constant 0 : i32
    %c0_i32_0 = arith.constant 0 : i32
    %c0_i32_1 = arith.constant 0 : i32
    %c0_i32_2 = arith.constant 0 : i32
    return %c0_i32, %c0_i32_0, %c0_i32_1 : i32, i32, i32
  }
  func.func @transform_39(%arg0: i32) -> (i32, i32, i32) {
    %c0_i32 = arith.constant 0 : i32
    %c0_i32_0 = arith.constant 0 : i32
    %c0_i32_1 = arith.constant 0 : i32
    %c0_i32_2 = arith.constant 0 : i32
    return %c0_i32, %c0_i32_0, %c0_i32_1 : i32, i32, i32
  }
  func.func @transform_40(%arg0: i32) -> (i32, i32, i32) {
    %c0_i32 = arith.constant 0 : i32
    %c0_i32_0 = arith.constant 0 : i32
    %c0_i32_1 = arith.constant 0 : i32
    %c0_i32_2 = arith.constant 0 : i32
    return %c0_i32, %c0_i32_0, %c0_i32_1 : i32, i32, i32
  }
  func.func @transform_41(%arg0: i32) -> (i32, i32, i32) {
    %c0_i32 = arith.constant 0 : i32
    %c0_i32_0 = arith.constant 0 : i32
    %c0_i32_1 = arith.constant 0 : i32
    %c0_i32_2 = arith.constant 0 : i32
    return %c0_i32, %c0_i32_0, %c0_i32_1 : i32, i32, i32
  }
  func.func @transform_42(%arg0: i32) -> (i32, i32, i32) {
    %c0_i32 = arith.constant 0 : i32
    %c0_i32_0 = arith.constant 0 : i32
    %c0_i32_1 = arith.constant 0 : i32
    %c0_i32_2 = arith.constant 0 : i32
    return %c0_i32, %c0_i32_0, %c0_i32_1 : i32, i32, i32
  }
  func.func @transform_43(%arg0: i32) -> (i32, i32, i32) {
    %c0_i32 = arith.constant 0 : i32
    %c0_i32_0 = arith.constant 0 : i32
    %c0_i32_1 = arith.constant 0 : i32
    %c0_i32_2 = arith.constant 0 : i32
    return %c0_i32, %c0_i32_0, %c0_i32_1 : i32, i32, i32
  }
  func.func @transform_44(%arg0: i32) -> (i32, i32, i32) {
    %c0_i32 = arith.constant 0 : i32
    %c0_i32_0 = arith.constant 0 : i32
    %c0_i32_1 = arith.constant 0 : i32
    %c0_i32_2 = arith.constant 0 : i32
    return %c0_i32, %c0_i32_0, %c0_i32_1 : i32, i32, i32
  }
  func.func @transform_45(%arg0: i32) -> (i32, i32, i32) {
    %c0_i32 = arith.constant 0 : i32
    %c0_i32_0 = arith.constant 0 : i32
    %c0_i32_1 = arith.constant 0 : i32
    return %arg0, %c0_i32, %c0_i32_0 : i32, i32, i32
  }
}

</mosaic_0001>

<bundles_post_ra>
// kernel: forward.1
= control target key start
LH: loop header
LB: loop body
LE: loop exit
PB: predicated region body
PF: predicated region fallthrough
CT: control target
= control target key end

     0   :  { %s13841_s6 = smov 1   ;;  %s13842_s10 = smov 2   ;;  %s15868_s0 = inlined_call_operand.smem [shape: u32[46], index: -1, kind: input, shape index: {}] }
   0x1   :  { %s13913_s5 = sld [smem:[%s15868_s0]]   ;;  %s13843_s14 = smov 3  }
   0x2   :  { %s13918_s9 = sld [smem:[%s15868_s0 + %s13841_s6]]   ;;  %s13844_s18 = smov 4  }
   0x3   :  { %s13923_s13 = sld [smem:[%s15868_s0 + %s13842_s10]]   ;;  %s13845_s22 = smov 5  }
   0x4   :  { %s13928_s17 = sld [smem:[%s15868_s0 + %s13843_s14]]   ;;  %s13846_s26 = smov 6  }
   0x5   :  { %s13933_s21 = sld [smem:[%s15868_s0 + %s13844_s18]]   ;;  %s13847_s30 = smov 7  }
   0x6   :  { %s13938_s25 = sld [smem:[%s15868_s0 + %s13845_s22]]   ;;  %s13848_s4 = smov 8  }
   0x7   :  { %15931 = sst [smem:[#allocation2_spill]] %s13913_s5  ;;  %s13849_s10 = smov 9  }
   0x8   :  { %15932 = sst [smem:[#allocation3_spill]] %s13918_s9  ;;  %s13850_s15 = smov 10  }
   0x9   :  { %15933 = sst [smem:[#allocation4_spill]] %s13923_s13  ;;  %s13851_s20 = smov 11  }
   0xa   :  { %15934 = sst [smem:[#allocation5_spill]] %s13928_s17  ;;  %s13853_s1 = smov 13  }
   0xb   :  { %15935 = sst [smem:[#allocation6_spill]] %s13933_s21  ;;  %s13854_s7 = smov 14  }
   0xc   :  { %15936 = sst [smem:[#allocation7_spill]] %s13938_s25  ;;  %s13856_s22 = smov 16  }
   0xd   :  { %s13943_s29 = sld [smem:[%s15868_s0 + %s13846_s26]]   ;;  %s13852_s26 = smov 12  }
   0xe   :  { %s13948_s3 = sld [smem:[%s15868_s0 + %s13847_s30]]   ;;  %s13857_s28 = smov 17  }
   0xf   :  { %s13953_s8 = sld [smem:[%s15868_s0 + %s13848_s4]]  }
  0x10   :  { %s13958_s14 = sld [smem:[%s15868_s0 + %s13849_s10]]  }
  0x11   :  { %s13963_s19 = sld [smem:[%s15868_s0 + %s13850_s15]]   ;;  %s13855_s15 = smov 15  }
  0x12   :  { %s13968_s24 = sld [smem:[%s15868_s0 + %s13851_s20]]  }
  0x13   :  { %15937 = sst [smem:[#allocation8_spill]] %s13943_s29 }
  0x14   :  { %15938 = sst [smem:[#allocation9_spill]] %s13948_s3 }
  0x15   :  { %15939 = sst [smem:[#allocation10_spill]] %s13953_s8 }
  0x16   :  { %15940 = sst [smem:[#allocation11_spill]] %s13958_s14 }
  0x17   :  { %15941 = sst [smem:[#allocation12_spill]] %s13963_s19 }
  0x18   :  { %15942 = sst [smem:[#allocation13_spill]] %s13968_s24 }
  0x19   :  { %s13973_s30 = sld [smem:[%s15868_s0 + %s13852_s26]]  }
  0x1a   :  { %s13978_s6 = sld [smem:[%s15868_s0 + %s13853_s1]]  }
  0x1b   :  { %s13983_s12 = sld [smem:[%s15868_s0 + %s13854_s7]]   ;;  %s13858_s7 = smov 18  }
  0x1c   :  { %s13988_s20 = sld [smem:[%s15868_s0 + %s13855_s15]]   ;;  %s13859_s15 = smov 19  }
  0x1d   :  { %s13993_s27 = sld [smem:[%s15868_s0 + %s13856_s22]]   ;;  %s13860_s22 = smov 20  }
  0x1e   :  { %s13998_s4 = sld [smem:[%s15868_s0 + %s13857_s28]]   ;;  %s13861_s28 = smov 21  }
  0x1f   :  { %15943 = sst [smem:[#allocation14_spill]] %s13973_s30 }
  0x20   :  { %15944 = sst [smem:[#allocation15_spill]] %s13978_s6 }
  0x21   :  { %15945 = sst [smem:[#allocation16_spill]] %s13983_s12 }
  0x22   :  { %15946 = sst [smem:[#allocation17_spill]] %s13988_s20 }
  0x23   :  { %15947 = sst [smem:[#allocation18_spill]] %s13993_s27 }
  0x24   :  { %15948 = sst [smem:[#allocation19_spill]] %s13998_s4 }
  0x25   :  { %s14003_s8 = sld [smem:[%s15868_s0 + %s13858_s7]]   ;;  %s13862_s7 = smov 22  }
  0x26   :  { %s14008_s29 = sld [smem:[%s15868_s0 + %s13859_s15]]   ;;  %s13863_s15 = smov 23  }
  0x27   :  { %s14013_s3 = sld [smem:[%s15868_s0 + %s13860_s22]]   ;;  %s13864_s22 = smov 24  }
  0x28   :  { %s14018_s21 = sld [smem:[%s15868_s0 + %s13861_s28]]   ;;  %s13865_s28 = smov 25  }
  0x29   :  { %s14023_s27 = sld [smem:[%s15868_s0 + %s13862_s7]]   ;;  %s13866_s7 = smov 26  }
  0x2b   :  { %15949 = sst [smem:[#allocation20_spill]] %s14003_s8 }
  0x2c   :  { %15950 = sst [smem:[#allocation21_spill]] %s14008_s29 }
  0x2d   :  { %15951 = sst [smem:[#allocation22_spill]] %s14013_s3 }
  0x2e   :  { %15952 = sst [smem:[#allocation23_spill]] %s14018_s21 }
  0x2f   :  { %15953 = sst [smem:[#allocation24_spill]] %s14023_s27 }
  0x30   :  { %s14028_s8 = sld [smem:[%s15868_s0 + %s13863_s15]]   ;;  %s13867_s15 = smov 27  }
  0x31   :  { %s14033_s3 = sld [smem:[%s15868_s0 + %s13864_s22]]   ;;  %s13868_s22 = smov 28  }
  0x32   :  { %s14038_s21 = sld [smem:[%s15868_s0 + %s13865_s28]]   ;;  %s13869_s28 = smov 29  }
  0x33   :  { %s14043_s27 = sld [smem:[%s15868_s0 + %s13866_s7]]   ;;  %s13870_s7 = smov 30  }
  0x34   :  { %s14058_s17 = sld [smem:[%s15868_s0 + %s13869_s28]]   ;;  %s13873_s28 = smov 33  }
  0x36   :  { %15954 = sst [smem:[#allocation25_spill]] %s14028_s8 }
  0x37   :  { %15955 = sst [smem:[#allocation26_spill]] %s14033_s3 }
  0x38   :  { %s14048_s8 = sld [smem:[%s15868_s0 + %s13867_s15]]   ;;  %s13871_s15 = smov 31  }
  0x39   :  { %15956 = sst [smem:[#allocation27_spill]] %s14043_s27 }
  0x3a   :  { %s14053_s3 = sld [smem:[%s15868_s0 + %s13868_s22]]   ;;  %s13872_s22 = smov 32  }
  0x3b   :  { %15959 = sst [smem:[#allocation30_spill]] %s14058_s17 }
  0x3c   :  { %s14063_s27 = sld [smem:[%s15868_s0 + %s13870_s7]]   ;;  %s13874_s7 = smov 34  }
  0x3d   :  { %s14078_s17 = sld [smem:[%s15868_s0 + %s13873_s28]]   ;;  %s13877_s28 = smov 37  }
  0x3e   :  { %15957 = sst [smem:[#allocation28_spill]] %s14048_s8 }
  0x3f   :  { %s14068_s8 = sld [smem:[%s15868_s0 + %s13871_s15]]   ;;  %s13875_s15 = smov 35  }
  0x40   :  { %15958 = sst [smem:[#allocation29_spill]] %s14053_s3 }
  0x41   :  { %s14073_s3 = sld [smem:[%s15868_s0 + %s13872_s22]]   ;;  %s13876_s22 = smov 36  }
  0x42   :  { %15960 = sst [smem:[#allocation31_spill]] %s14063_s27 }
  0x43   :  { %15963 = sst [smem:[#allocation34_spill]] %s14078_s17 }
  0x44   :  { %s14083_s27 = sld [smem:[%s15868_s0 + %s13874_s7]]   ;;  %s13878_s7 = smov 38  }
  0x45   :  { %15961 = sst [smem:[#allocation32_spill]] %s14068_s8 }
  0x46   :  { %s14088_s8 = sld [smem:[%s15868_s0 + %s13875_s15]]   ;;  %s13879_s15 = smov 39  }
  0x47   :  { %15962 = sst [smem:[#allocation33_spill]] %s14073_s3 }
  0x48   :  { %s14093_s3 = sld [smem:[%s15868_s0 + %s13876_s22]]   ;;  %s13880_s22 = smov 40  }
  0x49   :  { %s14098_s17 = sld [smem:[%s15868_s0 + %s13877_s28]]   ;;  %s13881_s28 = smov 41  }
  0x4a   :  { %15964 = sst [smem:[#allocation35_spill]] %s14083_s27 }
  0x4b   :  { %s14103_s27 = sld [smem:[%s15868_s0 + %s13878_s7]]   ;;  %s13882_s7 = smov 42  }
  0x4c   :  { %15965 = sst [smem:[#allocation36_spill]] %s14088_s8 }
  0x4d   :  { %s14108_s8 = sld [smem:[%s15868_s0 + %s13879_s15]]   ;;  %s13883_s15 = smov 43  }
  0x4e   :  { %15966 = sst [smem:[#allocation37_spill]] %s14093_s3 }
  0x4f   :  { %15967 = sst [smem:[#allocation38_spill]] %s14098_s17 }
  0x50   :  { %s14113_s3 = sld [smem:[%s15868_s0 + %s13880_s22]]   ;;  %s13884_s22 = smov 44  }
  0x51   :  { %15968 = sst [smem:[#allocation39_spill]] %s14103_s27 }
  0x52   :  { %s14118_s17 = sld [smem:[%s15868_s0 + %s13881_s28]]   ;;  %s13885_s28 = smov 45  }
  0x53   :  { %15969 = sst [smem:[#allocation40_spill]] %s14108_s8 }
  0x54   :  { %s14123_s27 = sld [smem:[%s15868_s0 + %s13882_s7]]   ;;  %s14140_s7 = smov 0  }
  0x55   :  { %s14128_s8 = sld [smem:[%s15868_s0 + %s13883_s15]]  }
  0x56   :  { %15970 = sst [smem:[#allocation41_spill]] %s14113_s3 }
  0x57   :  { %s14133_s3 = sld [smem:[%s15868_s0 + %s13884_s22]]  }
  0x58   :  { %15971 = sst [smem:[#allocation42_spill]] %s14118_s17 }
  0x59   :  { %s14138_s17 = sld [smem:[%s15868_s0 + %s13885_s28]]  }
  0x5a   :  { %15972 = sst [smem:[#allocation43_spill]] %s14123_s27 }
  0x5d   :  { %15973 = sst [smem:[#allocation44_spill]] %s14133_s3 }
  0x5f   :  { %15974 = sst [smem:[#allocation45_spill]] %s14138_s17 }
  0x60 LB: > { %s15975_s29 = sld [smem:[#allocation21_spill]]  ;;  %s15977_s20 = sld [smem:[#allocation17_spill]]  ;;  %s13839_s7 = sphi %s14140_s7, %s101_s7  }
  0x61   : > { %s15976_s24 = sld [smem:[#allocation13_spill]]  ;;  %s15978_s14 = sld [smem:[#allocation11_spill]] }
  0x62   : > { %s15979_s6 = sld [smem:[#allocation15_spill]]  ;;  %s15980_s4 = sld [smem:[#allocation19_spill]] }
  0x63   : > { %15981 = sst [smem:[#allocation46_spill]] %s13839_s7  ;;  %s11251_s10 = sadd.s32 4294967295, %s13839_s7  }
  0x64   : > { %p11255_p0 = scmp.ge.s32.totalorder %s13839_s7, 1  ;;  %p1285_p1 = scmp.lt.s32.totalorder %s13839_s7, 3 }
  0x66   : > { %p1286_p2 = pnand %p11255_p0, %p1285_p1 }
  0x68   : > { %1289 = sbr.rel (%p1286_p2) target bundleno = 17255 (0x4367), region = 200 }
  0x6f   : > { %s15982_s5 = sld [smem:[#allocation2_spill]]  ;;  %v1455_v0 = vld [vmem:[%s15978_s14 + $0x8] sm:$0xff]  ;;  %v1457_v1 = vld [vmem:[%s15978_s14 + $0x18] sm:$0xff]  ;;  %v1454_v2 = vld [vmem:[%s15978_s14] sm:$0xff]  ;;  %p1415_p3 = scmp.lt.s32.totalorder %s11251_s10, 1  ;;  %v13886_v5 = vmov 0.0  }
  0x70   : > { %v12692_v3 = vpack.c.bf16 %v1457_v1, %v1455_v0  ;;  %v1456_v4 = vld [vmem:[%s15978_s14 + $0x10] sm:$0xff]  ;;  %1574 = vmatprep.mubr.f32.mxu0 %v13886_v5  ;;  %vm1503_vm0 = vcmask 130048   ;;  %v1475_v9 = vld [vmem:[%s15976_s24 + $0x80] sm:$0xff]  ;;  %v1476_v10 = vld [vmem:[%s15976_s24 + $0x88] sm:$0xff]  ;;  %s15984_s25 = sld [smem:[#allocation7_spill]]  ;;  %v13887_v60 = vmov 0  }
  0x71   : > { %v12694_v6 = vpack.c.bf16 %v1456_v4, %v1454_v2  ;;  %s16049_s10 = smov (!%p1415_p3, %s11251_s10), 1  ;;  %v1459_v11 = vld [vmem:[%s15976_s24] sm:$0xff]  ;;  %v12696_v12 = vpack.c.bf16 %v1476_v10, %v1475_v9  ;;  %v1460_v13 = vld [vmem:[%s15976_s24 + $0x8] sm:$0xff]  ;;  %v1477_v14 = vld [vmem:[%s15976_s24 + $0x90] sm:$0xff]  ;;  %13328 = vset.pattern.permute.xlu0 %v13887_v60  ;;  %s15985_s9 = sld [smem:[#allocation3_spill]]  ;;  %vm1846_vm1 = vcmask 261120  }
  0x72   : > { %12693 = vmatprep.subr.bf16.mxu0 %v12692_v3  ;;  %s14156_s0 = sshll.u32 %s16049_s10, 4  ;;  %v1478_v15 = vld [vmem:[%s15976_s24 + $0x98] sm:$0xff]  ;;  %v12698_v16 = vpack.c.bf16 %v1460_v13, %v1459_v11  ;;  %v1461_v18 = vld [vmem:[%s15976_s24 + $0x10] sm:$0xff]  ;;  %v1479_v20 = vld [vmem:[%s15976_s24 + $0xa0] sm:$0xff]  ;;  %s15898_s16 = sshll.u32 %s16049_s10, 3  ;;  %v1493_v13 = vlaneseq  ;;  %vm2113_vm6 = vcmask 523264  }
  0x73   : > { %12695 = vmatpush1.bf16.msra.mxu0 %v12694_v6  ;;  %15983 = sst [smem:[#allocation47_spill]] %s14156_s0  ;;  %v12700_v17 = vpack.c.bf16 %v1478_v15, %v1477_v14  ;;  %v1462_v19 = vld [vmem:[%s15976_s24 + $0x18] sm:$0xff]  ;;  %12697 = vmatprep.subr.bf16.mxu1 %v12696_v12  ;;  %v1480_v21 = vld [vmem:[%s15976_s24 + $0xa8] sm:$0xff]  ;;  %v1463_v24 = vld [vmem:[%s15976_s24 + $0x20] sm:$0xff]  ;;  %s15986_s19 = sld [smem:[#allocation12_spill]]  ;;  %vm2450_vm11 = vcmask 64512  }
  0x74   : > { %12699 = vmatpush3.bf16.msra.mxu1 %v12698_v16  ;;  %v12702_v22 = vpack.c.bf16 %v1462_v19, %v1461_v18  ;;  %v12704_v23 = vpack.c.bf16 %v1480_v21, %v1479_v20  ;;  %v1464_v25 = vld [vmem:[%s15976_s24 + $0x28] sm:$0xff]  ;;  %v1481_v26 = vld [vmem:[%s15976_s24 + $0xb0] sm:$0xff]  ;;  %v1482_v27 = vld [vmem:[%s15976_s24 + $0xb8] sm:$0xff]  ;;  %v1494_v14 = vshrl.u32 %v1493_v13, 7  ;;  %s15987_s13 = sld [smem:[#allocation4_spill]]  ;;  %s15988_s12 = sld [smem:[#allocation16_spill]] }
  0x75   : > { %s1419_s11 = scalar_lea.vmem %s15982_s5, %s14156_s0  ;;  %12701 = vmatprep.subr.bf16.mxu1 %v12700_v17  ;;  %v12706_v28 = vpack.c.bf16 %v1464_v25, %v1463_v24  ;;  %v12708_v29 = vpack.c.bf16 %v1482_v27, %v1481_v26  ;;  %v1465_v30 = vld [vmem:[%s15976_s24 + $0x30] sm:$0xff]  ;;  %v1466_v31 = vld [vmem:[%s15976_s24 + $0x38] sm:$0xff]  ;;  %v1483_v32 = vld [vmem:[%s15976_s24 + $0xc0] sm:$0xff]  ;;  %s15989_s30 = sld [smem:[#allocation14_spill]]  ;;  %vm4101_vm13 = vcmask 195584   ;;  %vm4106_vm14 = vcmask 326656  }
  0x76   : > { %v1452_v7 = vld [vmem:[%s1419_s11] sm:$0xff]  ;;  %v1453_v8 = vld [vmem:[%s1419_s11 + $0x8] sm:$0xff]  ;;  %v12710_v34 = vpack.c.bf16 %v1466_v31, %v1465_v30  ;;  %v1485_v38 = vld [vmem:[%s15976_s24 + $0xd0] sm:$0xff]  ;;  %s1431_s15 = scalar_lea.vmem %s15984_s25, %s14156_s0  ;;  %v14213_v15 = vsub.s32 0, %v1494_v14  ;;  %v14216_v17 = vsub.s32 1, %v1494_v14  ;;  %s15990_s23 = sld [smem:[#allocation5_spill]] }
  0x77   : > { %11264 = vmatmul.mubr.msk.f32.vlgmr.msra.gmra.mrb[0].mxu0 %vm1503_vm0, %v1452_v7  ;;  %v1484_v33 = vld [vmem:[%s15976_s24 + $0xc8] sm:$0xff]  ;;  %v1467_v36 = vld [vmem:[%s15976_s24 + $0x40] sm:$0xff]  ;;  %v1486_v39 = vld [vmem:[%s15976_s24 + $0xd8] sm:$0xff]  ;;  %s1423_s18 = scalar_lea.vmem %s15985_s9, %s15898_s16  ;;  %s15991_s26 = sld [smem:[#allocation20_spill]]  ;;  %vm4109_vm15 = vcmask 392192  }
  0x78   : > { %1580 = vmatprep.mubr.f32.mxu0 %v13886_v5  ;;  %12703 = vmatpush3.bf16.msra.mxu1 %v12702_v22  ;;  %v12712_v35 = vpack.c.bf16 %v1484_v33, %v1483_v32  ;;  %v1468_v37 = vld [vmem:[%s15976_s24 + $0x48] sm:$0xff]  ;;  %v12716_v41 = vpack.c.bf16 %v1486_v39, %v1485_v38  ;;  %v1469_v42 = vld [vmem:[%s15976_s24 + $0x50] sm:$0xff]  ;;  %v1470_v43 = vld [vmem:[%s15976_s24 + $0x58] sm:$0xff]  ;;  %s15992_s28 = sld [smem:[#allocation27_spill]]  ;;  %s15894_s1 = smov 120  }
  0x79   : > { %12705 = vmatprep.subr.bf16.mxu1 %v12704_v23  ;;  %v12714_v40 = vpack.c.bf16 %v1468_v37, %v1467_v36  ;;  %v1487_v44 = vld [vmem:[%s15976_s24 + $0xe0] sm:$0xff]  ;;  %v1488_v45 = vld [vmem:[%s15976_s24 + $0xe8] sm:$0xff]  ;;  %v12718_v46 = vpack.c.bf16 %v1470_v43, %v1469_v42  ;;  %v1489_v50 = vld [vmem:[%s15976_s24 + $0xf0] sm:$0xff]  ;;  %s15993_s2 = sld [smem:[#allocation18_spill]]  ;;  %s15994_s11 = sld [smem:[#allocation22_spill]] }
  0x7a   : > { %v12720_v47 = vpack.c.bf16 %v1488_v45, %v1487_v44  ;;  %v1471_v48 = vld [vmem:[%s15976_s24 + $0x60] sm:$0xff]  ;;  %v1472_v49 = vld [vmem:[%s15976_s24 + $0x68] sm:$0xff]  ;;  %v1490_v51 = vld [vmem:[%s15976_s24 + $0xf8] sm:$0xff]  ;;  %s1426_s22 = scalar_lea.vmem %s15987_s13, %s16049_s10  ;;  %s15903_s16 = smov 80  }
  0x7b   : > { %11265 = vmatmul.mubr.msk.f32.gmra.mrb[2].mxu0 %vm1503_vm0, %v1453_v8  ;;  %v12722_v52 = vpack.c.bf16 %v1472_v49, %v1471_v48  ;;  %v12724_v53 = vpack.c.bf16 %v1490_v51, %v1489_v50  ;;  %v1473_v54 = vld [vmem:[%s15976_s24 + $0x70] sm:$0xff]  ;;  %v1474_v55 = vld [vmem:[%s15976_s24 + $0x78] sm:$0xff]  ;;  %v1794_v57 = vld [vmem:[%s15979_s6 + $0x8] sm:$0xff]  ;;  %s16009_s5 = sld [smem:[#allocation31_spill]]  ;;  %s16011_s9 = smov 112  }
  0x7c   : > { %1914 = vmatprep.mubr.f32.mxu0 %v13886_v5  ;;  %12707 = vmatpush3.bf16.msra.mxu1 %v12706_v28  ;;  %v12726_v56 = vpack.c.bf16 %v1474_v55, %v1473_v54  ;;  %v1796_v58 = vld [vmem:[%s15979_s6 + $0x18] sm:$0xff]  ;;  %v1793_v59 = vld [vmem:[%s15979_s6] sm:$0xff]  ;;  %v1795_v63 = vld [vmem:[%s15979_s6 + $0x10] sm:$0xff]  ;;  %s16013_s13 = smov 104   ;;  %s16014_s14 = smov 96  }
  0x7d   : > { %12709 = vmatprep.subr.bf16.mxu1 %v12708_v29  ;;  %v1447_v61 = vld [vmem:[%s1431_s15] sm:$0xff]  ;;  %v12728_v62 = vpack.c.bf16 %v1796_v58, %v1794_v57  ;;  %v12730_v0 = vpack.c.bf16 %v1795_v63, %v1793_v59  ;;  %v1798_v1 = vld [vmem:[%s15979_s6 + $0x28] sm:$0xff]  ;;  %v1800_v2 = vld [vmem:[%s15979_s6 + $0x38] sm:$0xff]  ;;  %s16019_s25 = smov 64   ;;  %s16024_s7 = smov 32  }
  0x7e   : > { %1782 = vperm.xlu0 %13328, %v1447_v61   ;;  %v1797_v3 = vld [vmem:[%s15979_s6 + $0x20] sm:$0xff]  ;;  %v1448_v4 = vld [vmem:[%s1431_s15 + $0x8] sm:$0xff]  ;;  %v12732_v6 = vpack.c.bf16 %v1800_v2, %v1798_v1  ;;  %v1799_v7 = vld [vmem:[%s15979_s6 + $0x30] sm:$0xff]  ;;  %s15888_s15 = smov 64   ;;  %s16010_s6 = smov 120  }
  0x7f   : > { %12729 = vmatprep.subr.bf16.mxu0 %v12728_v62  ;;  %v2053_v8 = vld [vmem:[%s15980_s4 + $0x8] sm:$0xff]  ;;  %v12734_v9 = vpack.c.bf16 %v1799_v7, %v1797_v3  ;;  %v2055_v10 = vld [vmem:[%s15980_s4 + $0x18] sm:$0xff]  ;;  %v1792_v12 = vld [vmem:[%s1423_s18] sm:$0xff]  ;;  %s15995_s18 = sld [smem:[#allocation6_spill]]  ;;  %s16025_s17 = smov 16  }
  0x80   : > { %12711 = vmatpush3.bf16.msra.mxu1 %v12710_v34  ;;  %12731 = vmatpush1.bf16.msra.mxu0 %v12730_v0  ;;  %v12768_v11 = vpack.c.bf16 %v2055_v10, %v2053_v8  ;;  %v1458_v16 = vld [vmem:[%s15986_s19] sm:$0x3]  ;;  %vm14421_vm12 = vmpackc.low %vm2450_vm11, %vm2450_vm11  ;;  %s16015_s19 = smov 88   ;;  %s16026_s0 = sld [smem:[#allocation34_spill]] }
  0x81   : > { %12713 = vmatprep.subr.bf16.mxu1 %v12712_v35  ;;  %12733 = vmatprep.subr.bf16.mxu0 %v12732_v6  ;;  %v1496_v18 = vrot.slane %v1458_v16, %v14213_v15  ;;  %v1500_v19 = vrot.slane %v1458_v16, %v14216_v17  ;;  %s16031_s27 = sld [smem:[#allocation43_spill]]  ;;  %s16032_s3 = sld [smem:[#allocation44_spill]] }
  0x82   : > { %1787 = vperm.xlu0 %13328, %v1448_v4  }
  0x84   : > { %12715 = vmatpush3.bf16.msra.mxu1 %v12714_v40  ;;  %12735 = vmatpush1.bf16.msra.mxu0 %v12734_v9 }
  0x85   : > { %12717 = vmatprep.subr.bf16.mxu1 %v12716_v41 }
  0x87   : > { %11267 = vmatmul.mubr.msk.f32.vlgmr.msra.gmra.mrb[4].mxu0 %vm1846_vm1, %v1792_v12 }
  0x88   : > { %12719 = vmatpush3.bf16.msra.mxu1 %v12718_v46 }
  0x89   : > { %12721 = vmatprep.subr.bf16.mxu1 %v12720_v47 }
  0x8c   : > { %12723 = vmatpush3.bf16.msra.mxu1 %v12722_v52 }
  0x8d   : > { %12725 = vmatprep.subr.bf16.mxu1 %v12724_v53 }
  0x90   : > { %12727 = vmatpush3.bf16.msra.mxu1 %v12726_v56 }
  0x91   : > { %12769 = vmatprep.subr.bf16.mxu1 %v12768_v11 }
 0x14a   : > { %v1576_v20 = vpop.f32.mrb[0].mxu0 }
 0x14b   : > { %v14220_v21 = vadd.f32 %v1576_v20, %v1496_v18  ;;  %v1578_v22 = vpop.f32.mrb[1].mxu0 }
 0x14c   : > { %v14222_v23 = vadd.f32 %v1578_v22, %v1500_v19 }
 0x14d   : > { %v14225_v24 = vmul.f32 0.70710677, %v14220_v21 }
 0x14e   : > { %v14228_v25 = vmul.f32 0.70710677, %v14222_v23  ;;  %v1582_v26 = vpop.f32.mrb[2].mxu0 }
 0x14f   : > { %v1591_v27 = vand.u32 2147483647, %v14225_v24  ;;  %v14231_v28 = vadd.f32 %v1582_v26, %v1496_v18  ;;  %v1584_v29 = vpop.f32.mrb[3].mxu0  ;;  %vm1671_vm2 = vcmp.ge.f32.partialorder %v14225_v24, 0.0  ;;  %v1683_v24 = vmul.f32 0.5, %v14220_v21 }
 0x150   : > { %v1592_v30 = vand.u32 2147483647, %v14228_v25  ;;  %v14234_v31 = vadd.f32 %v1584_v29, %v1500_v19  ;;  %vm1672_vm3 = vcmp.ge.f32.partialorder %v14228_v25, 0.0 }
 0x151   : > { %v1595_v32 = vmul.f32 0.3275911, %v1591_v27  ;;  %v14237_v33 = vmul.f32 0.70710677, %v14231_v28  ;;  %v1647_v44 = vsub.f32 0.0, %v1591_v27 }
 0x152   : > { %v1596_v34 = vmul.f32 0.3275911, %v1592_v30  ;;  %v14240_v35 = vmul.f32 0.70710677, %v14234_v31  ;;  %v1648_v45 = vsub.f32 0.0, %v1592_v30  ;;  %v1686_v21 = vmul.f32 0.5, %v14234_v31 }
 0x153   : > { %v1599_v36 = vadd.f32 1.0, %v1595_v32  ;;  %v1593_v37 = vand.u32 2147483647, %v14237_v33  ;;  %v1651_v47 = vmul.f32 %v1647_v44, %v1591_v27  ;;  %vm1673_vm4 = vcmp.ge.f32.partialorder %v14237_v33, 0.0  ;;  %v2060_v31 = vld [vmem:[%s15980_s4 + $0x40] sm:$0xff] }
 0x154   : > { %v1600_v38 = vadd.f32 1.0, %v1596_v34  ;;  %v1594_v39 = vand.u32 2147483647, %v14240_v35  ;;  %v1652_v50 = vmul.f32 %v1648_v45, %v1592_v30  ;;  %vm1674_vm5 = vcmp.ge.f32.partialorder %v14240_v35, 0.0 }
 0x155   : > { %13479 = vrcp.f32 %v1599_v36  ;;  %v1597_v40 = vmul.f32 0.3275911, %v1593_v37  ;;  %v1649_v48 = vsub.f32 0.0, %v1593_v37  ;;  %v1655_v56 = vmul.f32 1.442695, %v1651_v47 }
 0x156   : > { %13481 = vrcp.f32 %v1600_v38  ;;  %v1598_v41 = vmul.f32 0.3275911, %v1594_v39  ;;  %v1650_v51 = vsub.f32 0.0, %v1594_v39  ;;  %v1657_v60 = vmul.f32 1.442695, %v1652_v50 }
 0x157   : > { %v1601_v42 = vadd.f32 1.0, %v1597_v40  ;;  %v1653_v57 = vmul.f32 %v1649_v48, %v1593_v37  ;;  %v1685_v35 = vmul.f32 0.5, %v14231_v28 }
 0x158   : > { %v1602_v43 = vadd.f32 1.0, %v1598_v41  ;;  %v1654_v61 = vmul.f32 %v1650_v51, %v1594_v39 }
 0x159   : > { %13483 = vrcp.f32 %v1601_v42  ;;  %v1659_v4 = vmul.f32 1.442695, %v1653_v57 }
 0x15a   : > { %13485 = vrcp.f32 %v1602_v43  ;;  %v1661_v8 = vmul.f32 1.442695, %v1654_v61  ;;  %v2052_v61 = vld [vmem:[%s15980_s4] sm:$0xff] }
 0x15b   : > { %13487 = vpow2.f32 %v1655_v56 }
 0x15c   : > { %13489 = vpow2.f32 %v1657_v60 }
 0x15d   : > { %13491 = vpow2.f32 %v1659_v4 }
 0x15e   : > { %13493 = vpow2.f32 %v1661_v8 }
 0x15f   : > { %v13480_v46 = vpop.eup %13479 }
 0x160   : > { %v13482_v49 = vpop.eup %13481  ;;  %v1611_v52 = vmul.f32 1.0614054, %v13480_v46 }
 0x161   : > { %v1612_v53 = vmul.f32 1.0614054, %v13482_v49 }
 0x162   : > { %v1615_v54 = vadd.f32 -1.4531521, %v1611_v52 }
 0x163   : > { %v13484_v55 = vpop.eup %13483  ;;  %v1616_v58 = vadd.f32 -1.4531521, %v1612_v53 }
 0x164   : > { %v13486_v59 = vpop.eup %13485  ;;  %v1619_v62 = vmul.f32 %v13480_v46, %v1615_v54  ;;  %v1613_v63 = vmul.f32 1.0614054, %v13484_v55 }
 0x165   : > { %v1620_v0 = vmul.f32 %v13482_v49, %v1616_v58  ;;  %v1614_v1 = vmul.f32 1.0614054, %v13486_v59  ;;  %v13488_v37 = vpop.eup %13487 }
 0x166   : > { %v1623_v2 = vadd.f32 1.4214138, %v1619_v62  ;;  %v1617_v3 = vadd.f32 -1.4531521, %v1613_v63  ;;  %v13490_v40 = vpop.eup %13489  ;;  %v2054_v62 = vld [vmem:[%s15980_s4 + $0x10] sm:$0xff] }
 0x167   : > { %v1624_v6 = vadd.f32 1.4214138, %v1620_v0  ;;  %v1618_v7 = vadd.f32 -1.4531521, %v1614_v1  ;;  %v13492_v48 = vpop.eup %13491  ;;  %v2057_v1 = vld [vmem:[%s15980_s4 + $0x28] sm:$0xff] }
 0x168   : > { %v1627_v9 = vmul.f32 %v13480_v46, %v1623_v2  ;;  %v1621_v10 = vmul.f32 %v13484_v55, %v1617_v3  ;;  %v13494_v52 = vpop.eup %13493  ;;  %v2059_v2 = vld [vmem:[%s15980_s4 + $0x38] sm:$0xff] }
 0x169   : > { %v1628_v11 = vmul.f32 %v13482_v49, %v1624_v6  ;;  %v1622_v12 = vmul.f32 %v13486_v59, %v1618_v7  ;;  %v12770_v6 = vpack.c.bf16 %v2054_v62, %v2052_v61  ;;  %v1801_v61 = vld [vmem:[%s15988_s12] sm:$0x3]  ;;  %s16012_s12 = sld [smem:[#allocation10_spill]] }
 0x16a   : > { %v1631_v13 = vadd.f32 -0.28449672, %v1627_v9  ;;  %v1625_v14 = vadd.f32 1.4214138, %v1621_v10  ;;  %v12772_v9 = vpack.c.bf16 %v2059_v2, %v2057_v1  ;;  %v2056_v10 = vld [vmem:[%s15980_s4 + $0x20] sm:$0xff] }
 0x16b   : > { %v1632_v16 = vadd.f32 -0.28449672, %v1628_v11  ;;  %v1626_v18 = vadd.f32 1.4214138, %v1622_v12  ;;  %v2058_v11 = vld [vmem:[%s15980_s4 + $0x30] sm:$0xff]  ;;  %v2061_v12 = vld [vmem:[%s15980_s4 + $0x48] sm:$0xff] }
 0x16c   : > { %v1635_v19 = vmul.f32 %v13480_v46, %v1631_v13  ;;  %v1629_v20 = vmul.f32 %v13484_v55, %v1625_v14  ;;  %v2063_v13 = vld [vmem:[%s15980_s4 + $0x58] sm:$0xff]  ;;  %v1818_v62 = vld [vmem:[%s15977_s20 + $0x80] sm:$0xff] }
 0x16d   : > { %v1636_v22 = vmul.f32 %v13482_v49, %v1632_v16  ;;  %v1630_v26 = vmul.f32 %v13486_v59, %v1626_v18  ;;  %v12774_v16 = vpack.c.bf16 %v2058_v11, %v2056_v10  ;;  %v1802_v2 = vld [vmem:[%s15977_s20] sm:$0xff]  ;;  %v1823_v11 = vld [vmem:[%s15977_s20 + $0xa8] sm:$0xff] }
 0x16e   : > { %v1639_v27 = vadd.f32 0.2548296, %v1635_v19  ;;  %v1633_v29 = vadd.f32 -0.28449672, %v1629_v20  ;;  %v12776_v19 = vpack.c.bf16 %v2063_v13, %v2061_v12  ;;  %v2062_v20 = vld [vmem:[%s15980_s4 + $0x50] sm:$0xff]  ;;  %v1822_v10 = vld [vmem:[%s15977_s20 + $0xa0] sm:$0xff] }
 0x16f   : > { %v1640_v30 = vadd.f32 0.2548296, %v1636_v22  ;;  %v1634_v32 = vadd.f32 -0.28449672, %v1630_v26  ;;  %v2065_v22 = vld [vmem:[%s15980_s4 + $0x68] sm:$0xff]  ;;  %v2067_v26 = vld [vmem:[%s15980_s4 + $0x78] sm:$0xff]  ;;  %v12778_v28 = vpack.c.bf16 %v2062_v20, %v2060_v31  ;;  %v12744_v12 = vpack.c.bf16 %v1823_v11, %v1822_v10  ;;  %s14764_s24 = scalar_lea.vmem %s16012_s12, %s16049_s10 }
 0x170   : > { %v1643_v34 = vmul.f32 %v13480_v46, %v1639_v27  ;;  %v1637_v36 = vmul.f32 %v13484_v55, %v1633_v29  ;;  %v12780_v27 = vpack.c.bf16 %v2067_v26, %v2065_v22  ;;  %v2064_v29 = vld [vmem:[%s15980_s4 + $0x60] sm:$0xff]  ;;  %v1843_v31 = vrot.slane %v1801_v61, %v14216_v17  ;;  %16018 = sst [smem:[#allocation48_spill]] %s14764_s24  ;;  %s16020_s12 = smov 48  }
 0x171   : > { %v1644_v38 = vmul.f32 %v13482_v49, %v1640_v30  ;;  %v1638_v39 = vmul.f32 %v13486_v59, %v1634_v32  ;;  %v2066_v30 = vld [vmem:[%s15980_s4 + $0x70] sm:$0xff]  ;;  %v2326_v32 = vld [vmem:[%s14038_s21 + $0x8] sm:$0xff]  ;;  %v1806_v13 = vld [vmem:[%s15977_s20 + $0x20] sm:$0xff] }
 0x172   : > { %v1663_v41 = vmul.f32 %v13488_v37, %v1643_v34  ;;  %v1641_v42 = vadd.f32 0.2548296, %v1637_v36  ;;  %v2328_v34 = vld [vmem:[%s14038_s21 + $0x18] sm:$0xff]  ;;  %v12782_v36 = vpack.c.bf16 %v2066_v30, %v2064_v29 }
 0x173   : > { %v1664_v43 = vmul.f32 %v13490_v40, %v1644_v38  ;;  %v1642_v44 = vadd.f32 0.2548296, %v1638_v39  ;;  %v12816_v37 = vpack.c.bf16 %v2328_v34, %v2326_v32  ;;  %v2325_v38 = vld [vmem:[%s14038_s21] sm:$0xff]  ;;  %v2327_v39 = vld [vmem:[%s14038_s21 + $0x10] sm:$0xff]  ;;  %v2330_v40 = vld [vmem:[%s14038_s21 + $0x28] sm:$0xff] }
 0x174   : > { %v1667_v45 = vsub.f32 1.0, %v1663_v41  ;;  %v1645_v47 = vmul.f32 %v13484_v55, %v1641_v42  ;;  %v2332_v41 = vld [vmem:[%s14038_s21 + $0x38] sm:$0xff]  ;;  %v2051_v42 = vld [vmem:[%s1426_s22] sm:$0x1]  ;;  %s15901_s22 = smov 56  }
 0x175   : > { %v1668_v50 = vsub.f32 1.0, %v1664_v43  ;;  %v1646_v51 = vmul.f32 %v13486_v59, %v1642_v44  ;;  %v1684_v59 = vmul.f32 0.5, %v14222_v23  ;;  %v12818_v43 = vpack.c.bf16 %v2327_v39, %v2325_v38 }
 0x176   : > { %v1675_v53 = vsub.f32 0.0, %v1667_v45  ;;  %v1665_v46 = vmul.f32 %v13492_v48, %v1645_v47  ;;  %v12820_v44 = vpack.c.bf16 %v2332_v41, %v2330_v40  ;;  %v2331_v47 = vld [vmem:[%s14038_s21 + $0x30] sm:$0xff] }
 0x177   : > { %v1676_v49 = vsub.f32 0.0, %v1668_v50  ;;  %v1666_v54 = vmul.f32 %v13494_v52, %v1646_v51  ;;  %v2336_v51 = vld [vmem:[%s14038_s21 + $0x58] sm:$0xff] }
 0x178   : > { %v1679_v56 = vsel %vm1671_vm2, %v1667_v45, %v1675_v53  ;;  %v1669_v57 = vsub.f32 1.0, %v1665_v46  ;;  %v2329_v45 = vld [vmem:[%s14038_s21 + $0x20] sm:$0xff]  ;;  %v2335_v46 = vld [vmem:[%s14038_s21 + $0x50] sm:$0xff]  ;;  %vm4112_vm2 = vcmask 457728  }
 0x179   : > { %v1680_v58 = vsel %vm1672_vm3, %v1668_v50, %v1676_v49  ;;  %v1687_v55 = vadd.f32 1.0, %v1679_v56  ;;  %v1670_v60 = vsub.f32 1.0, %v1666_v54  ;;  %v12822_v48 = vpack.c.bf16 %v2331_v47, %v2329_v45  ;;  %v2334_v50 = vld [vmem:[%s14038_s21 + $0x48] sm:$0xff]  ;;  %v2333_v53 = vld [vmem:[%s14038_s21 + $0x40] sm:$0xff]  ;;  %v2340_v56 = vld [vmem:[%s14038_s21 + $0x78] sm:$0xff] }
 0x17a   : > { %v1688_v63 = vadd.f32 1.0, %v1680_v58  ;;  %v1677_v0 = vsub.f32 0.0, %v1669_v57  ;;  %v12824_v52 = vpack.c.bf16 %v2336_v51, %v2334_v50  ;;  %v12826_v49 = vpack.c.bf16 %v2335_v46, %v2333_v53  ;;  %v2338_v54 = vld [vmem:[%s14038_s21 + $0x68] sm:$0xff]  ;;  %v2337_v58 = vld [vmem:[%s14038_s21 + $0x60] sm:$0xff]  ;;  %v1825_v50 = vld [vmem:[%s15977_s20 + $0xb8] sm:$0xff] }
 0x17b   : > { %v1678_v25 = vsub.f32 0.0, %v1670_v60  ;;  %v1691_v7 = vmul.f32 %v1687_v55, %v1683_v24  ;;  %v2339_v55 = vld [vmem:[%s14038_s21 + $0x70] sm:$0xff]  ;;  %v1803_v24 = vld [vmem:[%s15977_s20 + $0x8] sm:$0xff]  ;;  %vm13904_vm3 = vmmov 0  }
 0x17c   : > { %v1692_v3 = vmul.f32 %v1688_v63, %v1684_v59  ;;  %v1681_v4 = vsel %vm1673_vm4, %v1669_v57, %v1677_v0  ;;  %v12828_v57 = vpack.c.bf16 %v2340_v56, %v2338_v54  ;;  %v1819_v59 = vld [vmem:[%s15977_s20 + $0x88] sm:$0xff]  ;;  %v1839_v63 = vrot.slane %v1801_v61, %v14213_v15  ;;  %v1916_v0 = vpop.f32.mrb[4].mxu0  ;;  %v1808_v51 = vld [vmem:[%s15977_s20 + $0x30] sm:$0xff]  ;;  %v1826_v54 = vld [vmem:[%s15977_s20 + $0xc0] sm:$0xff] }
 0x17d   : > { %v1682_v23 = vsel %vm1674_vm5, %v1670_v60, %v1678_v25  ;;  %v1689_v8 = vadd.f32 1.0, %v1681_v4  ;;  %v12830_v60 = vpack.c.bf16 %v2339_v55, %v2337_v58  ;;  %v12736_v1 = vpack.c.bf16 %v1819_v59, %v1818_v62  ;;  %v1820_v25 = vld [vmem:[%s15977_s20 + $0x90] sm:$0xff]  ;;  %v1827_v56 = vld [vmem:[%s15977_s20 + $0xc8] sm:$0xff]  ;;  %v1810_v55 = vld [vmem:[%s15977_s20 + $0x40] sm:$0xff] }
 0x17e   : > { %1765 = vmatprep.mubr.f32.mxu1 %v1692_v3  ;;  %v1690_v33 = vadd.f32 1.0, %v1682_v23  ;;  %v1918_v3 = vpop.f32.mrb[5].mxu0  ;;  %v12738_v4 = vpack.c.bf16 %v1803_v24, %v1802_v2  ;;  %v1805_v23 = vld [vmem:[%s15977_s20 + $0x18] sm:$0xff]  ;;  %v12752_v58 = vpack.c.bf16 %v1827_v56, %v1826_v54  ;;  %v1828_v61 = vld [vmem:[%s15977_s20 + $0xd0] sm:$0xff]  ;;  %v2089_v56 = vld [vmem:[%s15975_s29 + $0xa0] sm:$0xff] }
 0x17f   : > { %1766 = vmatmul.mubr.f32.vlgmr.msra.gmra.mrb[0].mxu1 %v1691_v7  ;;  %v1693_v18 = vmul.f32 %v1689_v8, %v1685_v35  ;;  %v1804_v7 = vld [vmem:[%s15977_s20 + $0x10] sm:$0xff]  ;;  %v14297_v8 = vadd.f32 %v1916_v0, %v1839_v63  ;;  %12737 = vmatprep.subr.bf16.mxu0 %v12736_v1  ;;  %v1807_v35 = vld [vmem:[%s15977_s20 + $0x28] sm:$0xff]  ;;  %v14308_v20 = vadd.f32 %v1918_v3, %v1843_v31  ;;  %v1829_v63 = vld [vmem:[%s15977_s20 + $0xd8] sm:$0xff] }
 0x180   : > { %v1694_v14 = vmul.f32 %v1690_v33, %v1686_v21  ;;  %12771 = vmatpush1.bf16.msra.mxu1 %v12770_v6  ;;  %v1821_v6 = vld [vmem:[%s15977_s20 + $0x98] sm:$0xff]  ;;  %12739 = vmatpush3.bf16.msra.mxu0 %v12738_v4  ;;  %v12742_v21 = vpack.c.bf16 %v1805_v23, %v1804_v7  ;;  %v12756_v24 = vpack.c.bf16 %v1829_v63, %v1828_v61  ;;  %v1830_v4 = vld [vmem:[%s15977_s20 + $0xe0] sm:$0xff]  ;;  %v2091_v61 = vld [vmem:[%s15975_s29 + $0xb0] sm:$0xff] }
 0x181   : > { %12773 = vmatprep.subr.bf16.mxu1 %v12772_v9  ;;  %v12740_v9 = vpack.c.bf16 %v1821_v6, %v1820_v25  ;;  %v14302_v33 = vmul.f32 0.70710677, %v14297_v8  ;;  %v14311_v22 = vmul.f32 0.70710677, %v14308_v20  ;;  %v1812_v25 = vld [vmem:[%s15977_s20 + $0x50] sm:$0xff]  ;;  %v1813_v3 = vld [vmem:[%s15977_s20 + $0x58] sm:$0xff] }
 0x182   : > { %1770 = vmatprep.mubr.f32.mxu1 %v1694_v14  ;;  %v1831_v6 = vld [vmem:[%s15977_s20 + $0xe8] sm:$0xff]  ;;  %v2072_v54 = vld [vmem:[%s15975_s29 + $0x18] sm:$0xff] }
 0x183   : > { %1771 = vmatmul.mubr.f32.gmra.mrb[2].mxu1 %v1693_v18  ;;  %12741 = vmatprep.subr.bf16.mxu0 %v12740_v9  ;;  %v1923_v14 = vand.u32 2147483647, %v14302_v33  ;;  %v1924_v29 = vand.u32 2147483647, %v14311_v22  ;;  %v12758_v9 = vpack.c.bf16 %v1813_v3, %v1812_v25  ;;  %v12760_v11 = vpack.c.bf16 %v1831_v6, %v1830_v4  ;;  %v2077_v4 = vld [vmem:[%s15975_s29 + $0x40] sm:$0xff]  ;;  %v2078_v6 = vld [vmem:[%s15975_s29 + $0x48] sm:$0xff] }
 0x184   : > { %12775 = vmatpush1.bf16.msra.mxu1 %v12774_v16  ;;  %2181 = vmatprep.mubr.f32.mxu1 %v13886_v5  ;;  %v12746_v16 = vpack.c.bf16 %v1807_v35, %v1806_v13  ;;  %v1832_v13 = vld [vmem:[%s15977_s20 + $0xf0] sm:$0xff]  ;;  %v1833_v35 = vld [vmem:[%s15977_s20 + $0xf8] sm:$0xff]  ;;  %vm1963_vm7 = vcmp.ge.f32.partialorder %v14302_v33, 0.0  ;;  %vm1964_vm8 = vcmp.ge.f32.partialorder %v14311_v22, 0.0  ;;  %v1969_v33 = vmul.f32 0.5, %v14297_v8 }
 0x185   : > { %12777 = vmatprep.subr.bf16.mxu1 %v12776_v19  ;;  %12743 = vmatpush3.bf16.msra.mxu0 %v12742_v21  ;;  %v1925_v18 = vmul.f32 0.3275911, %v1923_v14  ;;  %v1926_v32 = vmul.f32 0.3275911, %v1924_v29  ;;  %v1951_v34 = vsub.f32 0.0, %v1923_v14  ;;  %v1814_v21 = vld [vmem:[%s15977_s20 + $0x60] sm:$0xff]  ;;  %v12764_v31 = vpack.c.bf16 %v1833_v35, %v1832_v13 }
 0x186   : > { %12745 = vmatprep.subr.bf16.mxu0 %v12744_v12  ;;  %v1815_v12 = vld [vmem:[%s15977_s20 + $0x68] sm:$0xff] }
 0x187   : > { %v1927_v19 = vadd.f32 1.0, %v1925_v18  ;;  %v1953_v38 = vmul.f32 %v1951_v34, %v1923_v14  ;;  %v12762_v18 = vpack.c.bf16 %v1815_v12, %v1814_v21  ;;  %v2080_v21 = vld [vmem:[%s15975_s29 + $0x58] sm:$0xff]  ;;  %v2097_v12 = vld [vmem:[%s15975_s29 + $0xe0] sm:$0xff]  ;;  %v2098_v13 = vld [vmem:[%s15975_s29 + $0xe8] sm:$0xff] }
 0x188   : > { %12779 = vmatpush1.bf16.msra.mxu1 %v12778_v28 }
 0x189   : > { %12781 = vmatprep.subr.bf16.mxu1 %v12780_v27  ;;  %12747 = vmatpush3.bf16.msra.mxu0 %v12746_v16  ;;  %13495 = vrcp.f32 %v1927_v19  ;;  %v1955_v40 = vmul.f32 1.442695, %v1953_v38 }
 0x18c   : > { %12783 = vmatpush1.bf16.msra.mxu1 %v12782_v36 }
 0x18d   : > { %12817 = vmatprep.subr.bf16.mxu1 %v12816_v37  ;;  %v1928_v37 = vadd.f32 1.0, %v1926_v32 }
 0x18f   : > { %11269 = vmatmul.mubr.msk.f32.vlgmr.msra.gmra.mrb[4].mxu1 %vm2113_vm6, %v2051_v42  ;;  %13497 = vrcp.f32 %v1928_v37  ;;  %v1952_v42 = vsub.f32 0.0, %v1924_v29 }
 0x190   : > { %12819 = vmatpush1.bf16.msra.mxu1 %v12818_v43  ;;  %2423 = vmatprep.mubr.f32.mxu1 %v13886_v5  ;;  %13499 = vpow2.f32 %v1955_v40 }
 0x191   : > { %12821 = vmatprep.subr.bf16.mxu1 %v12820_v44  ;;  %v1954_v45 = vmul.f32 %v1952_v42, %v1924_v29  ;;  %v2085_v29 = vld [vmem:[%s15975_s29 + $0x80] sm:$0xff] }
 0x193   : > { %v13496_v26 = vpop.eup %13495  ;;  %v1957_v53 = vmul.f32 1.442695, %v1954_v45 }
 0x194   : > { %12823 = vmatpush1.bf16.msra.mxu1 %v12822_v48  ;;  %v1933_v28 = vmul.f32 1.0614054, %v13496_v26  ;;  %v1824_v48 = vld [vmem:[%s15977_s20 + $0xb0] sm:$0xff] }
 0x195   : > { %12825 = vmatprep.subr.bf16.mxu1 %v12824_v52  ;;  %v12748_v46 = vpack.c.bf16 %v1825_v50, %v1824_v48  ;;  %13501 = vpow2.f32 %v1957_v53  ;;  %v2070_v48 = vld [vmem:[%s15975_s29 + $0x8] sm:$0xff] }
 0x196   : > { %v1935_v27 = vadd.f32 -1.4531521, %v1933_v28  ;;  %v1817_v28 = vld [vmem:[%s15977_s20 + $0x78] sm:$0xff] }
 0x197   : > { %12749 = vmatprep.subr.bf16.mxu0 %v12748_v46 }
 0x198   : > { %12827 = vmatpush1.bf16.msra.mxu1 %v12826_v49  ;;  %v1937_v30 = vmul.f32 %v13496_v26, %v1935_v27  ;;  %v1809_v49 = vld [vmem:[%s15977_s20 + $0x38] sm:$0xff] }
 0x199   : > { %12829 = vmatprep.subr.bf16.mxu1 %v12828_v57  ;;  %v13498_v44 = vpop.eup %13497  ;;  %v12750_v57 = vpack.c.bf16 %v1809_v49, %v1808_v51  ;;  %v2087_v51 = vld [vmem:[%s15975_s29 + $0x90] sm:$0xff] }
 0x19a   : > { %v1939_v36 = vadd.f32 1.4214138, %v1937_v30  ;;  %v1934_v52 = vmul.f32 1.0614054, %v13498_v44  ;;  %v13500_v0 = vpop.eup %13499  ;;  %v2086_v30 = vld [vmem:[%s15975_s29 + $0x88] sm:$0xff]  ;;  %v2071_v49 = vld [vmem:[%s15975_s29 + $0x10] sm:$0xff] }
 0x19b   : > { %12751 = vmatpush3.bf16.msra.mxu0 %v12750_v57  ;;  %v12784_v38 = vpack.c.bf16 %v2086_v30, %v2085_v29  ;;  %v12790_v57 = vpack.c.bf16 %v2072_v54, %v2071_v49  ;;  %v2084_v29 = vld [vmem:[%s15975_s29 + $0x78] sm:$0xff] }
 0x19c   : > { %12831 = vmatpush1.bf16.msra.mxu1 %v12830_v60  ;;  %v1941_v39 = vmul.f32 %v13496_v26, %v1939_v36  ;;  %v1811_v60 = vld [vmem:[%s15977_s20 + $0x48] sm:$0xff]  ;;  %v1936_v62 = vadd.f32 -1.4531521, %v1934_v52  ;;  %12753 = vmatprep.subr.bf16.mxu0 %v12752_v58  ;;  %v2088_v52 = vld [vmem:[%s15975_s29 + $0x98] sm:$0xff] }
 0x19d   : > { %v12754_v1 = vpack.c.bf16 %v1811_v60, %v1810_v55  ;;  %v12788_v8 = vpack.c.bf16 %v2088_v52, %v2087_v51  ;;  %v2073_v55 = vld [vmem:[%s15975_s29 + $0x20] sm:$0xff]  ;;  %v2074_v60 = vld [vmem:[%s15975_s29 + $0x28] sm:$0xff] }
 0x19e   : > { %v1943_v41 = vadd.f32 -0.28449672, %v1941_v39  ;;  %v1938_v2 = vmul.f32 %v13498_v44, %v1936_v62  ;;  %v2092_v62 = vld [vmem:[%s15975_s29 + $0xb8] sm:$0xff] }
 0x19f   : > { %12755 = vmatpush3.bf16.msra.mxu0 %v12754_v1  ;;  %v13502_v32 = vpop.eup %13501  ;;  %v12796_v63 = vpack.c.bf16 %v2092_v62, %v2091_v61  ;;  %v2076_v1 = vld [vmem:[%s15975_s29 + $0x38] sm:$0xff] }
 0x1a0   : > { %v1945_v43 = vmul.f32 %v13496_v26, %v1943_v41  ;;  %v1940_v7 = vadd.f32 1.4214138, %v1938_v2  ;;  %12757 = vmatprep.subr.bf16.mxu0 %v12756_v24  ;;  %v2093_v2 = vld [vmem:[%s15975_s29 + $0xc0] sm:$0xff]  ;;  %v2094_v24 = vld [vmem:[%s15975_s29 + $0xc8] sm:$0xff] }
 0x1a1   : > { %v12800_v3 = vpack.c.bf16 %v2094_v24, %v2093_v2 }
 0x1a2   : > { %v1947_v47 = vadd.f32 0.2548296, %v1945_v43  ;;  %v1942_v10 = vmul.f32 %v13498_v44, %v1940_v7  ;;  %v2095_v7 = vld [vmem:[%s15975_s29 + $0xd0] sm:$0xff] }
 0x1a3   : > { %12759 = vmatpush3.bf16.msra.mxu0 %v12758_v9  ;;  %v12802_v9 = vpack.c.bf16 %v2078_v6, %v2077_v4 }
 0x1a4   : > { %v1949_v59 = vmul.f32 %v13496_v26, %v1947_v47  ;;  %v1944_v14 = vadd.f32 -0.28449672, %v1942_v10  ;;  %12761 = vmatprep.subr.bf16.mxu0 %v12760_v11  ;;  %v1816_v26 = vld [vmem:[%s15977_s20 + $0x70] sm:$0xff]  ;;  %v2069_v47 = vld [vmem:[%s15975_s29] sm:$0xff]  ;;  %s16016_s20 = smov 80  }
 0x1a5   : > { %v12766_v36 = vpack.c.bf16 %v1817_v28, %v1816_v26  ;;  %v12786_v46 = vpack.c.bf16 %v2070_v48, %v2069_v47  ;;  %v2079_v11 = vld [vmem:[%s15975_s29 + $0x50] sm:$0xff] }
 0x1a6   : > { %v1959_v23 = vmul.f32 %v13500_v0, %v1949_v59  ;;  %v1946_v19 = vmul.f32 %v13498_v44, %v1944_v14  ;;  %v12794_v59 = vpack.c.bf16 %v2074_v60, %v2073_v55  ;;  %v2075_v0 = vld [vmem:[%s15975_s29 + $0x30] sm:$0xff]  ;;  %v12806_v35 = vpack.c.bf16 %v2080_v21, %v2079_v11 }
 0x1a7   : > { %12763 = vmatpush3.bf16.msra.mxu0 %v12762_v18  ;;  %v12798_v25 = vpack.c.bf16 %v2076_v1, %v2075_v0  ;;  %v12808_v14 = vpack.c.bf16 %v2098_v13, %v2097_v12  ;;  %v2082_v18 = vld [vmem:[%s15975_s29 + $0x68] sm:$0xff] }
 0x1a8   : > { %v1961_v16 = vsub.f32 1.0, %v1959_v23  ;;  %v1948_v27 = vadd.f32 0.2548296, %v1946_v19  ;;  %12765 = vmatprep.subr.bf16.mxu0 %v12764_v31  ;;  %v2096_v23 = vld [vmem:[%s15975_s29 + $0xd8] sm:$0xff]  ;;  %v2099_v19 = vld [vmem:[%s15975_s29 + $0xf0] sm:$0xff] }
 0x1a9   : > { %v12804_v10 = vpack.c.bf16 %v2096_v23, %v2095_v7  ;;  %v2100_v31 = vld [vmem:[%s15975_s29 + $0xf8] sm:$0xff] }
 0x1aa   : > { %v1965_v34 = vsub.f32 0.0, %v1961_v16  ;;  %v1950_v37 = vmul.f32 %v13498_v44, %v1948_v27  ;;  %v1970_v44 = vmul.f32 0.5, %v14308_v20  ;;  %v2090_v20 = vld [vmem:[%s15975_s29 + $0xa8] sm:$0xff]  ;;  %v12812_v28 = vpack.c.bf16 %v2100_v31, %v2099_v19  ;;  %v2083_v27 = vld [vmem:[%s15975_s29 + $0x70] sm:$0xff] }
 0x1ab   : > { %12767 = vmatpush3.bf16.msra.mxu0 %v12766_v36  ;;  %v12792_v58 = vpack.c.bf16 %v2090_v20, %v2089_v56  ;;  %v12814_v30 = vpack.c.bf16 %v2084_v29, %v2083_v27 }
 0x1ac   : > { %v1960_v39 = vmul.f32 %v13502_v32, %v1950_v37  ;;  %v1967_v40 = vsel %vm1963_vm7, %v1961_v16, %v1965_v34  ;;  %12785 = vmatprep.subr.bf16.mxu0 %v12784_v38  ;;  %v2081_v16 = vld [vmem:[%s15975_s29 + $0x60] sm:$0xff]  ;;  %s16022_s29 = smov 8  }
 0x1ad   : > { %v1971_v42 = vadd.f32 1.0, %v1967_v40  ;;  %v12810_v26 = vpack.c.bf16 %v2082_v18, %v2081_v16  ;;  %v11266_v34 = vld [vmem:[%s15989_s30] ss:$0 sm:$0xff]  ;;  %s16023_s30 = smov 40  }
 0x1ae   : > { %v1962_v41 = vsub.f32 1.0, %v1960_v39  ;;  %v1776_v38 = vld [vmem:[%s15990_s23] sm:$0xff] }
 0x1af   : > { %v1973_v22 = vmul.f32 %v1971_v42, %v1969_v33 }
 0x1b0   : > { %v1966_v43 = vsub.f32 0.0, %v1962_v41 }
 0x1b2   : > { %v1968_v45 = vsel %vm1964_vm8, %v1962_v41, %v1966_v43  ;;  %v14372_v41 = vpop.permute.xlu0 %1782 }
 0x1b3   : > { %v1972_v50 = vadd.f32 1.0, %v1968_v45 }
 0x1b5   : > { %v1974_v53 = vmul.f32 %v1972_v50, %v1970_v44  ;;  %v1777_v44 = vld [vmem:[%s15990_s23 + $0x8] sm:$0xff]  ;;  %v2068_v50 = vld [vmem:[%s15991_s26] sm:$0x3]  ;;  %s15996_s26 = sld [smem:[#allocation9_spill]]  ;;  %s16017_s23 = smov 72  }
 0x1b6   : > { %v14381_v51 = vpop.permute.xlu0 %1787 }
 0x1b7   : > { %2045 = vmatprep.mubr.f32.mxu0 %v1974_v53  ;;  %v2110_v53 = vrot.slane %v2068_v50, %v14216_v17 }
 0x1b8   : > { %2046 = vmatmul.mubr.f32.vlgmr.msra.gmra.mrb[6].mxu0 %v1973_v22  ;;  %v2106_v22 = vrot.slane %v2068_v50, %v14213_v15  ;;  %v2341_v50 = vld [vmem:[%s15992_s28] sm:$0x3] }
 0x1b9   : > { %12787 = vmatpush3.bf16.msra.mxu0 %v12786_v46 }
 0x1ba   : > { %12789 = vmatprep.subr.bf16.mxu0 %v12788_v8 }
 0x1bd   : > { %12791 = vmatpush3.bf16.msra.mxu0 %v12790_v57 }
 0x1be   : > { %12793 = vmatprep.subr.bf16.mxu0 %v12792_v58 }
 0x1c1   : > { %12795 = vmatpush3.bf16.msra.mxu0 %v12794_v59 }
 0x1c2   : > { %12797 = vmatprep.subr.bf16.mxu0 %v12796_v63 }
 0x1c5   : > { %12799 = vmatpush3.bf16.msra.mxu0 %v12798_v25 }
 0x1c6   : > { %12801 = vmatprep.subr.bf16.mxu0 %v12800_v3 }
 0x1c9   : > { %12803 = vmatpush3.bf16.msra.mxu0 %v12802_v9 }
 0x1ca   : > { %12805 = vmatprep.subr.bf16.mxu0 %v12804_v10 }
 0x1cd   : > { %12807 = vmatpush3.bf16.msra.mxu0 %v12806_v35 }
 0x1ce   : > { %12809 = vmatprep.subr.bf16.mxu0 %v12808_v14 }
 0x1d1   : > { %12811 = vmatpush3.bf16.msra.mxu0 %v12810_v26 }
 0x1d2   : > { %12813 = vmatprep.subr.bf16.mxu0 %v12812_v28 }
 0x1d5   : > { %12815 = vmatpush3.bf16.msra.mxu0 %v12814_v30 }
 0x252   : > { %v11644_v32 = vpop.f32.mrb[0].mxu1 }
 0x253   : > { %v11645_v36 = vpop.f32.mrb[1].mxu1 }
 0x254   : > { %v11646_v37 = vadd.f32 %v11645_v36, %v11644_v32 }
 0x256   : > { %v1768_v39 = vadd.f32 %v11646_v37, %v11266_v34  ;;  %v11647_v40 = vpop.f32.mrb[2].mxu1 }
 0x257   : > { %v11648_v33 = vpop.f32.mrb[3].mxu1 }
 0x258   : > { %v1778_v42 = vadd.f32 %v1776_v38, %v1768_v39  ;;  %v11649_v43 = vadd.f32 %v11648_v33, %v11647_v40 }
 0x25a   : > { %v14376_v45 = vmul.f32 %v14372_v41, %v1778_v42  ;;  %v1773_v47 = vadd.f32 %v11649_v43, %v11266_v34 }
 0x25c   : > { %v1779_v48 = vadd.f32 %v1777_v44, %v1773_v47  ;;  %11270 = vmatmul.mubr.msk.f32.vlgmr.msra.gmra.mrb[6].mxu1 %vm2113_vm6, %v14376_v45 }
 0x25d   : > { %2429 = vmatprep.mubr.f32.mxu1 %v13886_v5 }
 0x25e   : > { %v14385_v52 = vmul.f32 %v14381_v51, %v1779_v48 }
 0x260   : > { %11271 = vmatmul.mubr.msk.f32.gmra.mrb[8].mxu1 %vm2113_vm6, %v14385_v52 }
 0x262   : > { %v2183_v46 = vpop.f32.mrb[4].mxu1 }
 0x263   : > { %v2184_v8 = vadd.f32 %v2183_v46, %v2106_v22  ;;  %v2185_v49 = vpop.f32.mrb[5].mxu1  ;;  %v2346_v22 = vrot.slane %v2341_v50, %v14213_v15 }
 0x264   : > { %v2186_v54 = vadd.f32 %v2185_v49, %v2110_v53 }
 0x265   : > { %v2188_v56 = vmul.f32 0.70710677, %v2184_v8  ;;  %v2236_v38 = vmul.f32 0.5, %v2184_v8 }
 0x266   : > { %v2189_v20 = vmul.f32 0.70710677, %v2186_v54  ;;  %v2237_v33 = vmul.f32 0.5, %v2186_v54 }
 0x267   : > { %v2190_v57 = vand.u32 2147483647, %v2188_v56  ;;  %vm2230_vm9 = vcmp.ge.f32.partialorder %v2188_v56, 0.0  ;;  %v2350_v56 = vrot.slane %v2341_v50, %v14216_v17 }
 0x268   : > { %v2191_v58 = vand.u32 2147483647, %v2189_v20  ;;  %vm2231_vm10 = vcmp.ge.f32.partialorder %v2189_v20, 0.0 }
 0x269   : > { %v2192_v55 = vmul.f32 0.3275911, %v2190_v57  ;;  %v2218_v59 = vsub.f32 0.0, %v2190_v57 }
 0x26a   : > { %v2193_v60 = vmul.f32 0.3275911, %v2191_v58  ;;  %v2219_v63 = vsub.f32 0.0, %v2191_v58 }
 0x26b   : > { %v2194_v61 = vadd.f32 1.0, %v2192_v55  ;;  %v2220_v0 = vmul.f32 %v2218_v59, %v2190_v57 }
 0x26c   : > { %v2195_v62 = vadd.f32 1.0, %v2193_v60  ;;  %v2221_v1 = vmul.f32 %v2219_v63, %v2191_v58 }
 0x26d   : > { %13503 = vrcp.f32 %v2194_v61  ;;  %v2222_v3 = vmul.f32 1.442695, %v2220_v0 }
 0x26e   : > { %13505 = vrcp.f32 %v2195_v62  ;;  %v2224_v7 = vmul.f32 1.442695, %v2221_v1 }
 0x26f   : > { %13507 = vpow2.f32 %v2222_v3  ;;  %v11268_v3 = vld [vmem:[%s15993_s2] ss:$0 sm:$0xff]  ;;  %s14438_s2 = scalar_lea.vmem %s15996_s26, %s16049_s10  ;;  %s15892_s26 = smov 104  }
 0x270   : > { %13509 = vpow2.f32 %v2224_v7 }
 0x277   : > { %v13504_v2 = vpop.eup %13503 }
 0x278   : > { %v13506_v24 = vpop.eup %13505  ;;  %v2200_v25 = vmul.f32 1.0614054, %v13504_v2 }
 0x279   : > { %v2201_v4 = vmul.f32 1.0614054, %v13506_v24  ;;  %v13508_v31 = vpop.eup %13507 }
 0x27a   : > { %v2202_v6 = vadd.f32 -1.4531521, %v2200_v25  ;;  %v13510_v28 = vpop.eup %13509 }
 0x27b   : > { %v2203_v23 = vadd.f32 -1.4531521, %v2201_v4  ;;  %v2101_v4 = vld [vmem:[%s15994_s11] sm:$0x1]  ;;  %s15890_s11 = smov 112  }
 0x27c   : > { %v2204_v9 = vmul.f32 %v13504_v2, %v2202_v6 }
 0x27d   : > { %v2205_v10 = vmul.f32 %v13506_v24, %v2203_v23  ;;  %v2312_v23 = vld [vmem:[%s15995_s18] sm:$0xff]  ;;  %s15917_s18 = smov 48  }
 0x27e   : > { %v2206_v11 = vadd.f32 1.4214138, %v2204_v9 }
 0x27f   : > { %v2207_v21 = vadd.f32 1.4214138, %v2205_v10 }
 0x280   : > { %v2208_v12 = vmul.f32 %v13504_v2, %v2206_v11 }
 0x281   : > { %v2209_v13 = vmul.f32 %v13506_v24, %v2207_v21 }
 0x282   : > { %v2210_v35 = vadd.f32 -0.28449672, %v2208_v12 }
 0x283   : > { %v2211_v14 = vadd.f32 -0.28449672, %v2209_v13 }
 0x284   : > { %v2212_v16 = vmul.f32 %v13504_v2, %v2210_v35 }
 0x285   : > { %v2213_v18 = vmul.f32 %v13506_v24, %v2211_v14 }
 0x286   : > { %v2214_v19 = vadd.f32 0.2548296, %v2212_v16 }
 0x287   : > { %v2215_v26 = vadd.f32 0.2548296, %v2213_v18 }
 0x288   : > { %v2216_v27 = vmul.f32 %v13504_v2, %v2214_v19 }
 0x289   : > { %v2217_v29 = vmul.f32 %v13506_v24, %v2215_v26 }
 0x28a   : > { %v2226_v30 = vmul.f32 %v13508_v31, %v2216_v27  ;;  %v14441_v27 = vld [vmem:[%s14438_s2] ss:$0 sm:$0xff] }
 0x28b   : > { %v2227_v32 = vmul.f32 %v13510_v28, %v2217_v29  ;;  %v11682_v59 = vpop.f32.mrb[6].mxu0 }
 0x28c   : > { %v2228_v34 = vsub.f32 1.0, %v2226_v30  ;;  %v11683_v63 = vpop.f32.mrb[7].mxu0 }
 0x28d   : > { %v2229_v36 = vsub.f32 1.0, %v2227_v32  ;;  %v11684_v0 = vadd.f32 %v11683_v63, %v11682_v59 }
 0x28e   : > { %v2232_v37 = vsub.f32 0.0, %v2228_v34 }
 0x28f   : > { %v2233_v39 = vsub.f32 0.0, %v2229_v36  ;;  %v2048_v6 = vadd.f32 %v11684_v0, %v11268_v3 }
 0x290   : > { %v2234_v40 = vsel %vm2230_vm9, %v2228_v34, %v2232_v37 }
 0x291   : > { %v2238_v42 = vadd.f32 1.0, %v2234_v40  ;;  %v2235_v43 = vsel %vm2231_vm10, %v2229_v36, %v2233_v39  ;;  %v2313_v9 = vadd.f32 %v2312_v23, %v2048_v6 }
 0x292   : > { %v2239_v44 = vadd.f32 1.0, %v2235_v43 }
 0x293   : > { %v2240_v47 = vmul.f32 %v2238_v42, %v2236_v38 }
 0x294   : > { %v2241_v48 = vmul.f32 %v2239_v44, %v2237_v33 }
 0x296   : > { %2306 = vmatprep.mubr.f32.mxu0 %v2241_v48 }
 0x297   : > { %2307 = vmatmul.mubr.f32.vlgmr.msra.gmra.mrb[8].mxu0 %v2240_v47 }
 0x32f   : > { %v2425_v53 = vpop.f32.mrb[6].mxu1 }
 0x330   : > { %v2426_v46 = vadd.f32 %v2425_v53, %v2346_v22  ;;  %v2427_v49 = vpop.f32.mrb[7].mxu1 }
 0x331   : > { %v2428_v58 = vadd.f32 %v2427_v49, %v2350_v56 }
 0x332   : > { %v14394_v8 = vmul.f32 0.35355338, %v2426_v46 }
 0x333   : > { %v2431_v20 = vpop.f32.mrb[8].mxu1 }
 0x334   : > { %v2432_v54 = vadd.f32 %v2431_v20, %v2346_v22  ;;  %v2433_v57 = vpop.f32.mrb[9].mxu1  ;;  %2639 = vrot.lane.b32.xlu0 %v14394_v8, %s15894_s1  ;;  %12122 = vmatprep.mubr.msk.f32.mxu1 %vm2450_vm11, %v14394_v8 }
 0x335   : > { %v2434_v55 = vadd.f32 %v2433_v57, %v2350_v56 }
 0x336   : > { %v14400_v60 = vpack.i.bf16 %v2432_v54, %v2426_v46  ;;  %v14408_v1 = vmul.f32 0.35355338, %v2432_v54 }
 0x337   : > { %v12838_v61 = vpack.c.bf16 %v2434_v55, %v2428_v58  ;;  %v14402_v62 = vpack.i.bf16 %v2434_v55, %v2428_v58 }
 0x338   : > { %13330 = vrot.lane.b32.xlu1 %v14400_v60, %s15888_s15  ;;  %s15911_s15 = smov 40  }
 0x33c   : > { %13335 = vrot.lane.b32.xlu1 %v14400_v60, %s15901_s22  ;;  %s15905_s22 = smov 72  }
 0x340   : > { %2641 = vrot.lane.b32.xlu1 %v14408_v1, %s15894_s1 }
 0x36a   : > { %v11717_v2 = vpop.f32.mrb[8].mxu0 }
 0x36b   : > { %v11718_v24 = vpop.f32.mrb[9].mxu0 }
 0x36c   : > { %v11719_v25 = vadd.f32 %v11718_v24, %v11717_v2 }
 0x36e   : > { %v2309_v7 = vadd.f32 %v11719_v25, %v2101_v4 }
 0x370   : > { %v2317_v10 = vrot.slane %v2309_v7, %v14213_v15 }
 0x372   : > { %v14416_v11 = vadd.f32 %v2317_v10, %v2313_v9 }
 0x3a6   : > { %v2640_v21 = vpop.permute.xlu0 %2639 }
 0x3a7   : > { %12136 = vmatprep.mubr.msk.f32.mxu0 %vm2450_vm11, %v2640_v21 }
 0x3aa   : > { %v13331_v12 = vpop.permute.xlu1 %13330 }
 0x3ab   : > { %v13333_v13 = vunpack.i.h.bf16 %v13331_v12  ;;  %v13332_v35 = vunpack.i.l.bf16 %v13331_v12 }
 0x3ad   : > { %v12832_v16 = vpack.c.bf16 %v13333_v13, %v13332_v35 }
 0x3ae   : > { %v13336_v18 = vpop.permute.xlu1 %13335 }
 0x3af   : > { %v13338_v19 = vunpack.i.h.bf16 %v13336_v18  ;;  %v13337_v31 = vunpack.i.l.bf16 %v13336_v18  ;;  %12834 = vmatprep.subr.msk.bf16.mxu1 %vm14421_vm12, %v12832_v16 }
 0x3b0   : > { %12837 = vmatpush3.bf16.xpose.msk.msra.mxu1 %vm14421_vm12, %v12832_v16 }
 0x3b1   : > { %v12842_v26 = vpack.c.bf16 %v13338_v19, %v13337_v31  ;;  %12839 = vmatprep.subr.bf16.mxu1 %v12838_v61 }
 0x3b2   : > { %v2642_v28 = vpop.permute.xlu1 %2641 }
 0x3b3   : > { %12844 = vmatprep.subr.msk.bf16.mxu0 %vm14421_vm12, %v12842_v26 }
 0x3b4   : > { %12847 = vmatpush3.bf16.xpose.msk.msra.mxu0 %vm14421_vm12, %v12842_v26 }
 0x3b7   : > { %12123 = vmatmul.mubr.msk.f32.vlgmr.msra.gmra.mrb[10].mxu1 %vm2450_vm11, %v14408_v1 }
 0x3b8   : > { %12841 = vmatpush3.bf16.msra.mxu1 %v12838_v61 }
 0x3bb   : > { %12137 = vmatmul.mubr.msk.f32.vlgmr.msra.gmra.mrb[10].mxu0 %vm2450_vm11, %v2642_v28 }
 0x48a   : > { %v12124_v29 = vpop.f32.mrb[10].mxu1 }
 0x48b   : > { %v2533_v30 = vadd.f32 %v12124_v29, %v14441_v27  ;;  %v2527_v32 = vpop.f32.mrb[11].mxu1 }
 0x48c   : > { %v2528_v34 = vadd.f32 %v14441_v27, %v2527_v32 }
 0x48d   : > { %v2539_v36 = vsel %vm1503_vm0, %v2533_v30, -inf }
 0x48e   : > { %v12138_v37 = vpop.f32.mrb[10].mxu0  ;;  %2540 = vmax.xlane.f32.xlu1 %v2539_v36  ;;  %v2536_v38 = vsel %vm1503_vm0, %v2528_v34, -inf }
 0x48f   : > { %v2721_v39 = vpop.f32.mrb[11].mxu0  ;;  %2537 = vmax.xlane.f32.xlu0 %v2536_v38  ;;  %v2727_v33 = vadd.f32 %v12138_v37, %v14441_v27 }
 0x490   : > { %v2722_v40 = vadd.f32 %v14441_v27, %v2721_v39 }
 0x491   : > { %v2733_v43 = vsel %vm1503_vm0, %v2727_v33, -inf }
 0x492   : > { %v2730_v42 = vsel %vm1503_vm0, %v2722_v40, -inf }
 0x493   : > { %2731 = vmax.xlane.f32.xlu0 %v2730_v42 }
 0x497   : > { %2734 = vmax.xlane.f32.xlu0 %v2733_v43 }
 0x49f   : > { %13340 = vrot.lane.b32.xlu1 %v14402_v62, %s15894_s1  ;;  %s15899_s1 = smov 88  }
 0x51b   : > { %v2541_v44 = vpop.xlane.xlu1 %2540 }
 0x51c   : > { %v2543_v47 = vsub.f32 %v2533_v30, %v2541_v44  ;;  %v2538_v48 = vpop.xlane.xlu0 %2537 }
 0x51d   : > { %v2542_v50 = vsub.f32 %v2528_v34, %v2538_v48 }
 0x51e   : > { %v2546_v22 = vmul.f32 1.442695, %v2543_v47 }
 0x51f   : > { %v2544_v53 = vmul.f32 1.442695, %v2542_v50  ;;  %v13341_v46 = vpop.permute.xlu1 %13340 }
 0x520   : > { %13511 = vpow2.f32 %v2546_v22  ;;  %v13343_v49 = vunpack.i.h.bf16 %v13341_v46  ;;  %v13342_v56 = vunpack.i.l.bf16 %v13341_v46  ;;  %v2732_v20 = vpop.xlane.xlu0 %2731 }
 0x521   : > { %13513 = vpow2.f32 %v2544_v53  ;;  %v2736_v25 = vsub.f32 %v2722_v40, %v2732_v20 }
 0x522   : > { %v12848_v54 = vpack.c.bf16 %v13343_v49, %v13342_v56 }
 0x523   : > { %v2738_v3 = vmul.f32 1.442695, %v2736_v25 }
 0x524   : > { %12849 = vmatprep.subr.bf16.mxu1 %v12848_v54  ;;  %v2735_v57 = vpop.xlane.xlu0 %2734 }
 0x525   : > { %v2737_v58 = vsub.f32 %v2727_v33, %v2735_v57 }
 0x527   : > { %v2740_v55 = vmul.f32 1.442695, %v2737_v58 }
 0x529   : > { %13515 = vpow2.f32 %v2740_v55 }
 0x52a   : > { %v13512_v61 = vpop.eup %13511  ;;  %13517 = vpow2.f32 %v2738_v3 }
 0x52b   : > { %v13514_v59 = vpop.eup %13513  ;;  %v2551_v63 = vsel %vm1503_vm0, %v13512_v61, 0.0 }
 0x52c   : > { %2552 = vadd.xlane.f32.xlu0 %v2551_v63  ;;  %v2548_v0 = vsel %vm1503_vm0, %v13514_v59, 0.0 }
 0x52d   : > { %2549 = vadd.xlane.f32.xlu1 %v2548_v0 }
 0x533   : > { %v13516_v2 = vpop.eup %13515 }
 0x534   : > { %v2745_v24 = vsel %vm1503_vm0, %v13516_v2, 0.0  ;;  %v13518_v4 = vpop.eup %13517 }
 0x535   : > { %2746 = vadd.xlane.f32.xlu0 %v2745_v24  ;;  %v2742_v6 = vsel %vm1503_vm0, %v13518_v4, 0.0 }
 0x53e   : > { %2841 = vrot.lane.b32.xlu1 %v14394_v8, %s15890_s11 }
 0x54b   : > { %13345 = vrot.lane.b32.xlu0 %v14400_v60, %s15917_s18 }
 0x562   : > { %2743 = vadd.xlane.f32.xlu1 %v2742_v6 }
 0x573   : > { %2843 = vrot.lane.b32.xlu1 %v14408_v1, %s15890_s11 }
 0x5b9   : > { %v2553_v7 = vpop.xlane.xlu0 %2552 }
 0x5ba   : > { %13519 = vrcp.f32 %v2553_v7  ;;  %v2550_v23 = vpop.xlane.xlu1 %2549 }
 0x5bb   : > { %13521 = vrcp.f32 %v2550_v23 }
 0x5be   : > { %v2842_v31 = vpop.permute.xlu1 %2841 }
 0x5c2   : > { %v2747_v9 = vpop.xlane.xlu0 %2746 }
 0x5c3   : > { %13523 = vrcp.f32 %v2747_v9 }
 0x5c4   : > { %v13520_v10 = vpop.eup %13519 }
 0x5c5   : > { %v13522_v21 = vpop.eup %13521  ;;  %v2557_v18 = vmul.f32 %v13520_v10, %v13512_v61 }
 0x5c6   : > { %v13346_v12 = vpop.permute.xlu0 %13345  ;;  %v2556_v13 = vmul.f32 %v13522_v21, %v13514_v59 }
 0x5c7   : > { %v13348_v35 = vunpack.i.h.bf16 %v13346_v12  ;;  %v13347_v16 = vunpack.i.l.bf16 %v13346_v12 }
 0x5c8   : > { %12129 = vmatprep.mubr.msk.f32.mxu1 %vm1503_vm0, %v2556_v13 }
 0x5c9   : > { %v12852_v19 = vpack.c.bf16 %v13348_v35, %v13347_v16  ;;  %12130 = vmatmul.mubr.msk.f32.vlgmr.msra.gmra.mrb[12].mxu1 %vm1503_vm0, %v2557_v18 }
 0x5ca   : > { %12851 = vmatpush3.bf16.msra.mxu1 %v12848_v54 }
 0x5cb   : > { %12854 = vmatprep.subr.msk.bf16.mxu1 %vm14421_vm12, %v12852_v19 }
 0x5cd   : > { %v13524_v28 = vpop.eup %13523 }
 0x5ce   : > { %v2751_v32 = vmul.f32 %v13524_v28, %v13516_v2 }
 0x5ef   : > { %v2744_v26 = vpop.xlane.xlu1 %2743 }
 0x5f0   : > { %13525 = vrcp.f32 %v2744_v26 }
 0x5f3   : > { %v2844_v34 = vpop.permute.xlu1 %2843 }
 0x5fa   : > { %v13526_v29 = vpop.eup %13525 }
 0x5fb   : > { %v2750_v30 = vmul.f32 %v13526_v29, %v13518_v4 }
 0x5fd   : > { %12143 = vmatprep.mubr.msk.f32.mxu1 %vm1503_vm0, %v2750_v30 }
 0x5fe   : > { %12144 = vmatmul.mubr.msk.f32.vlgmr.msra.gmra.mrb[14].mxu1 %vm1503_vm0, %v2751_v32 }
 0x5ff   : > { %12857 = vmatpush3.bf16.xpose.msk.msra.mxu1 %vm14421_vm12, %v12852_v19  ;;  %12150 = vmatprep.mubr.msk.f32.mxu1 %vm2450_vm11, %v2842_v31 }
 0x606   : > { %12151 = vmatmul.mubr.msk.f32.vlgmr.msra.gmra.mrb[16].mxu1 %vm2450_vm11, %v2844_v34 }
 0x69c   : > { %v14473_v36 = vpop.f32.mrb[12].mxu1 }
 0x69d   : > { %v14475_v37 = vpop.f32.mrb[13].mxu1 }
 0x6d1   : > { %v14477_v38 = vpop.f32.mrb[14].mxu1 }
 0x6d2   : > { %v14479_v39 = vpop.f32.mrb[15].mxu1 }
 0x6d9   : > { %v12152_v40 = vpop.f32.mrb[16].mxu1 }
 0x6da   : > { %v2929_v33 = vadd.f32 %v12152_v40, %v14441_v27  ;;  %v2923_v42 = vpop.f32.mrb[17].mxu1 }
 0x6db   : > { %v2924_v43 = vadd.f32 %v14441_v27, %v2923_v42 }
 0x6dc   : > { %v2935_v44 = vsel %vm1503_vm0, %v2929_v33, -inf }
 0x6dd   : > { %2936 = vmax.xlane.f32.xlu1 %v2935_v44  ;;  %v2932_v47 = vsel %vm1503_vm0, %v2924_v43, -inf }
 0x6de   : > { %2933 = vmax.xlane.f32.xlu0 %v2932_v47 }
 0x6ee   : > { %13350 = vrot.lane.b32.xlu1 %v14402_v62, %s15890_s11  ;;  %s15896_s11 = smov 96  }
 0x6f2   : > { %3041 = vrot.lane.b32.xlu1 %v14394_v8, %s15892_s26 }
 0x6f6   : > { %3043 = vrot.lane.b32.xlu1 %v14408_v1, %s15892_s26 }
 0x76a   : > { %v2937_v48 = vpop.xlane.xlu1 %2936 }
 0x76b   : > { %v2939_v50 = vsub.f32 %v2929_v33, %v2937_v48  ;;  %v2934_v22 = vpop.xlane.xlu0 %2933 }
 0x76c   : > { %v2938_v53 = vsub.f32 %v2924_v43, %v2934_v22 }
 0x76d   : > { %v2942_v46 = vmul.f32 1.442695, %v2939_v50 }
 0x76e   : > { %v2940_v49 = vmul.f32 1.442695, %v2938_v53  ;;  %v13351_v56 = vpop.permute.xlu1 %13350 }
 0x76f   : > { %13527 = vpow2.f32 %v2942_v46  ;;  %v13353_v20 = vunpack.i.h.bf16 %v13351_v56  ;;  %v13352_v54 = vunpack.i.l.bf16 %v13351_v56 }
 0x770   : > { %13529 = vpow2.f32 %v2940_v49 }
 0x771   : > { %v12858_v57 = vpack.c.bf16 %v13353_v20, %v13352_v54 }
 0x772   : > { %v3042_v9 = vpop.permute.xlu1 %3041 }
 0x773   : > { %12859 = vmatprep.subr.bf16.mxu0 %v12858_v57 }
 0x774   : > { %12861 = vmatpush3.bf16.msra.mxu0 %v12858_v57 }
 0x776   : > { %v3044_v10 = vpop.permute.xlu1 %3043 }
 0x779   : > { %v13528_v58 = vpop.eup %13527 }
 0x77a   : > { %v2947_v55 = vsel %vm1503_vm0, %v13528_v58, 0.0  ;;  %v13530_v61 = vpop.eup %13529 }
 0x77b   : > { %2948 = vadd.xlane.f32.xlu0 %v2947_v55  ;;  %v2944_v59 = vsel %vm1503_vm0, %v13530_v61, 0.0 }
 0x77f   : > { %2945 = vadd.xlane.f32.xlu0 %v2944_v59 }
 0x795   : > { %13355 = vrot.lane.b32.xlu0 %v14400_v60, %s15911_s15 }
 0x808   : > { %v2949_v63 = vpop.xlane.xlu0 %2948 }
 0x809   : > { %13531 = vrcp.f32 %v2949_v63 }
 0x80c   : > { %v2946_v0 = vpop.xlane.xlu0 %2945 }
 0x80d   : > { %13533 = vrcp.f32 %v2946_v0 }
 0x810   : > { %v13356_v2 = vpop.permute.xlu0 %13355 }
 0x811   : > { %v13358_v24 = vunpack.i.h.bf16 %v13356_v2  ;;  %v13357_v25 = vunpack.i.l.bf16 %v13356_v2 }
 0x813   : > { %v12862_v3 = vpack.c.bf16 %v13358_v24, %v13357_v25  ;;  %v13532_v4 = vpop.eup %13531 }
 0x814   : > { %v2953_v23 = vmul.f32 %v13532_v4, %v13528_v58 }
 0x815   : > { %12864 = vmatprep.subr.msk.bf16.mxu0 %vm14421_vm12, %v12862_v3 }
 0x817   : > { %v13534_v6 = vpop.eup %13533 }
 0x818   : > { %v2952_v7 = vmul.f32 %v13534_v6, %v13530_v61 }
 0x81a   : > { %12157 = vmatprep.mubr.msk.f32.mxu0 %vm1503_vm0, %v2952_v7 }
 0x81b   : > { %12158 = vmatmul.mubr.msk.f32.vlgmr.msra.gmra.mrb[12].mxu0 %vm1503_vm0, %v2953_v23 }
 0x81c   : > { %12867 = vmatpush3.bf16.xpose.msk.msra.mxu0 %vm14421_vm12, %v12862_v3  ;;  %12164 = vmatprep.mubr.msk.f32.mxu0 %vm2450_vm11, %v3042_v9 }
 0x823   : > { %12165 = vmatmul.mubr.msk.f32.vlgmr.msra.gmra.mrb[14].mxu0 %vm2450_vm11, %v3044_v10 }
 0x8ee   : > { %v14503_v21 = vpop.f32.mrb[12].mxu0 }
 0x8ef   : > { %v14505_v12 = vpop.f32.mrb[13].mxu0 }
 0x8f6   : > { %v12166_v13 = vpop.f32.mrb[14].mxu0 }
 0x8f7   : > { %v3129_v35 = vadd.f32 %v12166_v13, %v14441_v27  ;;  %v3123_v16 = vpop.f32.mrb[15].mxu0 }
 0x8f8   : > { %v3124_v18 = vadd.f32 %v14441_v27, %v3123_v16 }
 0x8f9   : > { %v3135_v19 = vsel %vm1503_vm0, %v3129_v35, -inf }
 0x8fa   : > { %3136 = vmax.xlane.f32.xlu1 %v3135_v19  ;;  %v3132_v31 = vsel %vm1503_vm0, %v3124_v18, -inf }
 0x8fb   : > { %3133 = vmax.xlane.f32.xlu0 %v3132_v31 }
 0x90b   : > { %13360 = vrot.lane.b32.xlu1 %v14402_v62, %s15892_s26  ;;  %s15909_s26 = smov 32  }
 0x90f   : > { %3241 = vrot.lane.b32.xlu1 %v14394_v8, %s15896_s11 }
 0x913   : > { %3243 = vrot.lane.b32.xlu1 %v14408_v1, %s15896_s11 }
 0x987   : > { %v3137_v26 = vpop.xlane.xlu1 %3136 }
 0x988   : > { %v3139_v28 = vsub.f32 %v3129_v35, %v3137_v26  ;;  %v3134_v29 = vpop.xlane.xlu0 %3133 }
 0x989   : > { %v3138_v30 = vsub.f32 %v3124_v18, %v3134_v29 }
 0x98a   : > { %v3142_v32 = vmul.f32 1.442695, %v3139_v28 }
 0x98b   : > { %v3140_v34 = vmul.f32 1.442695, %v3138_v30  ;;  %v13361_v40 = vpop.permute.xlu1 %13360 }
 0x98c   : > { %13535 = vpow2.f32 %v3142_v32  ;;  %v13363_v33 = vunpack.i.h.bf16 %v13361_v40  ;;  %v13362_v42 = vunpack.i.l.bf16 %v13361_v40 }
 0x98d   : > { %13537 = vpow2.f32 %v3140_v34 }
 0x98e   : > { %v12868_v43 = vpack.c.bf16 %v13363_v33, %v13362_v42 }
 0x98f   : > { %v3242_v61 = vpop.permute.xlu1 %3241 }
 0x990   : > { %12869 = vmatprep.subr.bf16.mxu1 %v12868_v43 }
 0x991   : > { %12871 = vmatpush3.bf16.msra.mxu1 %v12868_v43 }
 0x993   : > { %v3244_v59 = vpop.permute.xlu1 %3243 }
 0x996   : > { %v13536_v44 = vpop.eup %13535 }
 0x997   : > { %v3147_v47 = vsel %vm1503_vm0, %v13536_v44, 0.0  ;;  %v13538_v48 = vpop.eup %13537 }
 0x998   : > { %3148 = vadd.xlane.f32.xlu0 %v3147_v47  ;;  %v3144_v50 = vsel %vm1503_vm0, %v13538_v48, 0.0 }
 0x99c   : > { %3145 = vadd.xlane.f32.xlu0 %v3144_v50 }
 0x9b2   : > { %13365 = vrot.lane.b32.xlu0 %v14400_v60, %s15909_s26 }
 0xa25   : > { %v3149_v22 = vpop.xlane.xlu0 %3148 }
 0xa26   : > { %13539 = vrcp.f32 %v3149_v22 }
 0xa29   : > { %v3146_v53 = vpop.xlane.xlu0 %3145 }
 0xa2a   : > { %13541 = vrcp.f32 %v3146_v53 }
 0xa2d   : > { %v13366_v46 = vpop.permute.xlu0 %13365 }
 0xa2e   : > { %v13368_v49 = vunpack.i.h.bf16 %v13366_v46  ;;  %v13367_v56 = vunpack.i.l.bf16 %v13366_v46 }
 0xa30   : > { %v12872_v20 = vpack.c.bf16 %v13368_v49, %v13367_v56  ;;  %v13540_v54 = vpop.eup %13539 }
 0xa31   : > { %v3153_v55 = vmul.f32 %v13540_v54, %v13536_v44 }
 0xa32   : > { %12874 = vmatprep.subr.msk.bf16.mxu1 %vm14421_vm12, %v12872_v20 }
 0xa34   : > { %v13542_v57 = vpop.eup %13541 }
 0xa35   : > { %v3152_v58 = vmul.f32 %v13542_v57, %v13538_v48 }
 0xa37   : > { %12171 = vmatprep.mubr.msk.f32.mxu1 %vm1503_vm0, %v3152_v58 }
 0xa38   : > { %12172 = vmatmul.mubr.msk.f32.vlgmr.msra.gmra.mrb[18].mxu1 %vm1503_vm0, %v3153_v55 }
 0xa39   : > { %12877 = vmatpush3.bf16.xpose.msk.msra.mxu1 %vm14421_vm12, %v12872_v20  ;;  %12178 = vmatprep.mubr.msk.f32.mxu1 %vm2450_vm11, %v3242_v61 }
 0xa40   : > { %12179 = vmatmul.mubr.msk.f32.vlgmr.msra.gmra.mrb[20].mxu1 %vm2450_vm11, %v3244_v59 }
 0xb0b   : > { %v14529_v63 = vpop.f32.mrb[18].mxu1 }
 0xb0c   : > { %v14531_v0 = vpop.f32.mrb[19].mxu1 }
 0xb13   : > { %v12180_v2 = vpop.f32.mrb[20].mxu1 }
 0xb14   : > { %v3329_v24 = vadd.f32 %v12180_v2, %v14441_v27  ;;  %v3323_v25 = vpop.f32.mrb[21].mxu1 }
 0xb15   : > { %v3324_v3 = vadd.f32 %v14441_v27, %v3323_v25 }
 0xb16   : > { %v3335_v4 = vsel %vm1503_vm0, %v3329_v24, -inf }
 0xb17   : > { %3336 = vmax.xlane.f32.xlu1 %v3335_v4  ;;  %v3332_v6 = vsel %vm1503_vm0, %v3324_v3, -inf }
 0xb18   : > { %3333 = vmax.xlane.f32.xlu0 %v3332_v6 }
 0xb28   : > { %13370 = vrot.lane.b32.xlu1 %v14402_v62, %s15896_s11  ;;  %s15915_s11 = smov 24  }
 0xb2c   : > { %3441 = vrot.lane.b32.xlu1 %v14394_v8, %s15899_s1 }
 0xb30   : > { %3443 = vrot.lane.b32.xlu1 %v14408_v1, %s15899_s1 }
 0xba4   : > { %v3337_v7 = vpop.xlane.xlu1 %3336 }
 0xba5   : > { %v3339_v23 = vsub.f32 %v3329_v24, %v3337_v7  ;;  %v3334_v9 = vpop.xlane.xlu0 %3333 }
 0xba6   : > { %v3338_v10 = vsub.f32 %v3324_v3, %v3334_v9 }
 0xba7   : > { %v3342_v13 = vmul.f32 1.442695, %v3339_v23 }
 0xba8   : > { %v3340_v35 = vmul.f32 1.442695, %v3338_v10  ;;  %v13371_v16 = vpop.permute.xlu1 %13370 }
 0xba9   : > { %13543 = vpow2.f32 %v3342_v13  ;;  %v13373_v18 = vunpack.i.h.bf16 %v13371_v16  ;;  %v13372_v19 = vunpack.i.l.bf16 %v13371_v16 }
 0xbaa   : > { %13545 = vpow2.f32 %v3340_v35 }
 0xbab   : > { %v12878_v31 = vpack.c.bf16 %v13373_v18, %v13372_v19 }
 0xbac   : > { %v3442_v22 = vpop.permute.xlu1 %3441 }
 0xbad   : > { %12879 = vmatprep.subr.bf16.mxu0 %v12878_v31 }
 0xbae   : > { %12881 = vmatpush3.bf16.msra.mxu0 %v12878_v31 }
 0xbb0   : > { %v3444_v53 = vpop.permute.xlu1 %3443 }
 0xbb3   : > { %v13544_v26 = vpop.eup %13543 }
 0xbb4   : > { %v3347_v28 = vsel %vm1503_vm0, %v13544_v26, 0.0  ;;  %v13546_v29 = vpop.eup %13545 }
 0xbb5   : > { %3348 = vadd.xlane.f32.xlu0 %v3347_v28  ;;  %v3344_v30 = vsel %vm1503_vm0, %v13546_v29, 0.0 }
 0xbb9   : > { %3345 = vadd.xlane.f32.xlu0 %v3344_v30 }
 0xbcf   : > { %13375 = vrot.lane.b32.xlu0 %v14400_v60, %s15915_s11 }
 0xc42   : > { %v3349_v32 = vpop.xlane.xlu0 %3348 }
 0xc43   : > { %13547 = vrcp.f32 %v3349_v32 }
 0xc46   : > { %v3346_v34 = vpop.xlane.xlu0 %3345 }
 0xc47   : > { %13549 = vrcp.f32 %v3346_v34 }
 0xc4a   : > { %v13376_v40 = vpop.permute.xlu0 %13375 }
 0xc4b   : > { %v13378_v33 = vunpack.i.h.bf16 %v13376_v40  ;;  %v13377_v42 = vunpack.i.l.bf16 %v13376_v40 }
 0xc4d   : > { %v12882_v43 = vpack.c.bf16 %v13378_v33, %v13377_v42  ;;  %v13548_v44 = vpop.eup %13547 }
 0xc4e   : > { %v3353_v50 = vmul.f32 %v13548_v44, %v13544_v26 }
 0xc4f   : > { %12884 = vmatprep.subr.msk.bf16.mxu0 %vm14421_vm12, %v12882_v43 }
 0xc51   : > { %v13550_v47 = vpop.eup %13549 }
 0xc52   : > { %v3352_v48 = vmul.f32 %v13550_v47, %v13546_v29 }
 0xc54   : > { %12185 = vmatprep.mubr.msk.f32.mxu0 %vm1503_vm0, %v3352_v48 }
 0xc55   : > { %12186 = vmatmul.mubr.msk.f32.vlgmr.msra.gmra.mrb[16].mxu0 %vm1503_vm0, %v3353_v50 }
 0xc56   : > { %12887 = vmatpush3.bf16.xpose.msk.msra.mxu0 %vm14421_vm12, %v12882_v43  ;;  %12192 = vmatprep.mubr.msk.f32.mxu0 %vm2450_vm11, %v3442_v22 }
 0xc5d   : > { %12193 = vmatmul.mubr.msk.f32.vlgmr.msra.gmra.mrb[18].mxu0 %vm2450_vm11, %v3444_v53 }
 0xd28   : > { %v14555_v46 = vpop.f32.mrb[16].mxu0 }
 0xd29   : > { %v14557_v49 = vpop.f32.mrb[17].mxu0 }
 0xd30   : > { %v12194_v56 = vpop.f32.mrb[18].mxu0 }
 0xd31   : > { %v3529_v20 = vadd.f32 %v12194_v56, %v14441_v27  ;;  %v3523_v54 = vpop.f32.mrb[19].mxu0 }
 0xd32   : > { %v3524_v57 = vadd.f32 %v14441_v27, %v3523_v54 }
 0xd33   : > { %v3535_v58 = vsel %vm1503_vm0, %v3529_v20, -inf }
 0xd34   : > { %3536 = vmax.xlane.f32.xlu1 %v3535_v58  ;;  %v3532_v55 = vsel %vm1503_vm0, %v3524_v57, -inf }
 0xd35   : > { %3533 = vmax.xlane.f32.xlu0 %v3532_v55 }
 0xd45   : > { %13380 = vrot.lane.b32.xlu1 %v14402_v62, %s15899_s1  ;;  %s15907_s1 = smov 16  }
 0xd49   : > { %3641 = vrot.lane.b32.xlu1 %v14394_v8, %s15903_s16 }
 0xd4d   : > { %3643 = vrot.lane.b32.xlu1 %v14408_v1, %s15903_s16 }
 0xdc1   : > { %v3537_v61 = vpop.xlane.xlu1 %3536 }
 0xdc2   : > { %v3539_v59 = vsub.f32 %v3529_v20, %v3537_v61  ;;  %v3534_v2 = vpop.xlane.xlu0 %3533 }
 0xdc3   : > { %v3538_v24 = vsub.f32 %v3524_v57, %v3534_v2 }
 0xdc4   : > { %v3542_v25 = vmul.f32 1.442695, %v3539_v59 }
 0xdc5   : > { %v3540_v3 = vmul.f32 1.442695, %v3538_v24  ;;  %v13381_v4 = vpop.permute.xlu1 %13380 }
 0xdc6   : > { %13551 = vpow2.f32 %v3542_v25  ;;  %v13383_v6 = vunpack.i.h.bf16 %v13381_v4  ;;  %v13382_v7 = vunpack.i.l.bf16 %v13381_v4 }
 0xdc7   : > { %13553 = vpow2.f32 %v3540_v3 }
 0xdc8   : > { %v12888_v23 = vpack.c.bf16 %v13383_v6, %v13382_v7 }
 0xdc9   : > { %v3642_v40 = vpop.permute.xlu1 %3641 }
 0xdca   : > { %12889 = vmatprep.subr.bf16.mxu1 %v12888_v23 }
 0xdcb   : > { %12891 = vmatpush3.bf16.msra.mxu1 %v12888_v23 }
 0xdcd   : > { %v3644_v33 = vpop.permute.xlu1 %3643 }
 0xdd0   : > { %v13552_v9 = vpop.eup %13551 }
 0xdd1   : > { %v3547_v10 = vsel %vm1503_vm0, %v13552_v9, 0.0  ;;  %v13554_v13 = vpop.eup %13553 }
 0xdd2   : > { %3548 = vadd.xlane.f32.xlu0 %v3547_v10  ;;  %v3544_v35 = vsel %vm1503_vm0, %v13554_v13, 0.0 }
 0xdd6   : > { %3545 = vadd.xlane.f32.xlu0 %v3544_v35 }
 0xdec   : > { %13385 = vrot.lane.b32.xlu0 %v14400_v60, %s15907_s1 }
 0xe5f   : > { %v3549_v16 = vpop.xlane.xlu0 %3548 }
 0xe60   : > { %13555 = vrcp.f32 %v3549_v16 }
 0xe63   : > { %v3546_v18 = vpop.xlane.xlu0 %3545 }
 0xe64   : > { %13557 = vrcp.f32 %v3546_v18 }
 0xe67   : > { %v13386_v19 = vpop.permute.xlu0 %13385 }
 0xe68   : > { %v13388_v31 = vunpack.i.h.bf16 %v13386_v19  ;;  %v13387_v26 = vunpack.i.l.bf16 %v13386_v19 }
 0xe6a   : > { %v12892_v28 = vpack.c.bf16 %v13388_v31, %v13387_v26  ;;  %v13556_v29 = vpop.eup %13555 }
 0xe6b   : > { %v3553_v34 = vmul.f32 %v13556_v29, %v13552_v9 }
 0xe6c   : > { %12894 = vmatprep.subr.msk.bf16.mxu1 %vm14421_vm12, %v12892_v28 }
 0xe6e   : > { %v13558_v30 = vpop.eup %13557 }
 0xe6f   : > { %v3552_v32 = vmul.f32 %v13558_v30, %v13554_v13 }
 0xe71   : > { %12199 = vmatprep.mubr.msk.f32.mxu1 %vm1503_vm0, %v3552_v32 }
 0xe72   : > { %12200 = vmatmul.mubr.msk.f32.vlgmr.msra.gmra.mrb[22].mxu1 %vm1503_vm0, %v3553_v34 }
 0xe73   : > { %12897 = vmatpush3.bf16.xpose.msk.msra.mxu1 %vm14421_vm12, %v12892_v28  ;;  %12206 = vmatprep.mubr.msk.f32.mxu1 %vm2450_vm11, %v3642_v40 }
 0xe7a   : > { %12207 = vmatmul.mubr.msk.f32.vlgmr.msra.gmra.mrb[24].mxu1 %vm2450_vm11, %v3644_v33 }
 0xf45   : > { %v14581_v42 = vpop.f32.mrb[22].mxu1 }
 0xf46   : > { %v14583_v43 = vpop.f32.mrb[23].mxu1 }
 0xf4d   : > { %v12208_v44 = vpop.f32.mrb[24].mxu1 }
 0xf4e   : > { %v3729_v47 = vadd.f32 %v12208_v44, %v14441_v27  ;;  %v3723_v48 = vpop.f32.mrb[25].mxu1 }
 0xf4f   : > { %v3724_v50 = vadd.f32 %v14441_v27, %v3723_v48 }
 0xf50   : > { %v3735_v22 = vsel %vm1503_vm0, %v3729_v47, -inf }
 0xf51   : > { %3736 = vmax.xlane.f32.xlu1 %v3735_v22  ;;  %v3732_v53 = vsel %vm1503_vm0, %v3724_v50, -inf }
 0xf52   : > { %3733 = vmax.xlane.f32.xlu0 %v3732_v53 }
 0xf62   : > { %13390 = vrot.lane.b32.xlu1 %v14402_v62, %s15903_s16  ;;  %s15913_s16 = smov 8  }
 0xf66   : > { %3841 = vrot.lane.b32.xlu1 %v14394_v8, %s15905_s22 }
 0xf6a   : > { %3843 = vrot.lane.b32.xlu1 %v14408_v1, %s15905_s22 }
 0xfde   : > { %v3737_v56 = vpop.xlane.xlu1 %3736 }
 0xfdf   : > { %v3739_v20 = vsub.f32 %v3729_v47, %v3737_v56  ;;  %v3734_v54 = vpop.xlane.xlu0 %3733 }
 0xfe0   : > { %v3738_v57 = vsub.f32 %v3724_v50, %v3734_v54 }
 0xfe1   : > { %v3742_v58 = vmul.f32 1.442695, %v3739_v20 }
 0xfe2   : > { %v3740_v55 = vmul.f32 1.442695, %v3738_v57  ;;  %v13391_v61 = vpop.permute.xlu1 %13390 }
 0xfe3   : > { %13559 = vpow2.f32 %v3742_v58  ;;  %v13393_v59 = vunpack.i.h.bf16 %v13391_v61  ;;  %v13392_v2 = vunpack.i.l.bf16 %v13391_v61 }
 0xfe4   : > { %13561 = vpow2.f32 %v3740_v55 }
 0xfe5   : > { %v12898_v24 = vpack.c.bf16 %v13393_v59, %v13392_v2 }
 0xfe6   : > { %v3842_v19 = vpop.permute.xlu1 %3841 }
 0xfe7   : > { %12899 = vmatprep.subr.bf16.mxu0 %v12898_v24 }
 0xfe8   : > { %12901 = vmatpush3.bf16.msra.mxu0 %v12898_v24 }
 0xfed   : > { %v13560_v25 = vpop.eup %13559 }
 0xfee   : > { %v3747_v8 = vsel %vm1503_vm0, %v13560_v25, 0.0  ;;  %v13562_v3 = vpop.eup %13561 }
 0xfef   : > { %3748 = vadd.xlane.f32.xlu0 %v3747_v8  ;;  %v3744_v1 = vsel %vm1503_vm0, %v13562_v3, 0.0 }
 0xff3   : > { %3745 = vadd.xlane.f32.xlu0 %v3744_v1 }
0x1009   : > { %13395 = vrot.lane.b32.xlu0 %v14400_v60, %s15913_s16  ;;  %v3844_v60 = vpop.permute.xlu1 %3843 }
0x107c   : > { %v3749_v4 = vpop.xlane.xlu0 %3748 }
0x107d   : > { %13563 = vrcp.f32 %v3749_v4 }
0x1080   : > { %v3746_v6 = vpop.xlane.xlu0 %3745 }
0x1081   : > { %13565 = vrcp.f32 %v3746_v6 }
0x1084   : > { %v13396_v7 = vpop.permute.xlu0 %13395 }
0x1085   : > { %v13398_v23 = vunpack.i.h.bf16 %v13396_v7  ;;  %v13397_v9 = vunpack.i.l.bf16 %v13396_v7 }
0x1087   : > { %v12902_v10 = vpack.c.bf16 %v13398_v23, %v13397_v9  ;;  %v13564_v13 = vpop.eup %13563 }
0x1088   : > { %v3753_v18 = vmul.f32 %v13564_v13, %v13560_v25 }
0x1089   : > { %12904 = vmatprep.subr.msk.bf16.mxu0 %vm14421_vm12, %v12902_v10 }
0x108b   : > { %v13566_v35 = vpop.eup %13565 }
0x108c   : > { %v3752_v16 = vmul.f32 %v13566_v35, %v13562_v3 }
0x108e   : > { %12213 = vmatprep.mubr.msk.f32.mxu0 %vm1503_vm0, %v3752_v16 }
0x108f   : > { %12214 = vmatmul.mubr.msk.f32.vlgmr.msra.gmra.mrb[20].mxu0 %vm1503_vm0, %v3753_v18 }
0x1090   : > { %12907 = vmatpush3.bf16.xpose.msk.msra.mxu0 %vm14421_vm12, %v12902_v10  ;;  %12220 = vmatprep.mubr.msk.f32.mxu0 %vm2450_vm11, %v3842_v19 }
0x1097   : > { %12221 = vmatmul.mubr.msk.f32.vlgmr.msra.gmra.mrb[22].mxu0 %vm2450_vm11, %v3844_v60 }
0x1162   : > { %v12215_v31 = vpop.f32.mrb[20].mxu0 }
0x1163   : > { %v3832_v26 = vpop.f32.mrb[21].mxu0 }
0x116a   : > { %v12222_v28 = vpop.f32.mrb[22].mxu0 }
0x116b   : > { %v3929_v29 = vadd.f32 %v12222_v28, %v14441_v27  ;;  %v3923_v30 = vpop.f32.mrb[23].mxu0 }
0x116c   : > { %v3924_v32 = vadd.f32 %v14441_v27, %v3923_v30 }
0x116d   : > { %v3935_v34 = vsel %vm1503_vm0, %v3929_v29, -inf }
0x116e   : > { %3936 = vmax.xlane.f32.xlu1 %v3935_v34  ;;  %v3932_v40 = vsel %vm1503_vm0, %v3924_v32, -inf }
0x116f   : > { %3933 = vmax.xlane.f32.xlu0 %v3932_v40 }
0x117f   : > { %13400 = vrot.lane.b32.xlu1 %v14402_v62, %s15905_s22  ;;  %s15999_s22 = sld [smem:[#allocation28_spill]] }
0x1183   : > { %4045 = vrot.lane.b32.xlu1 %v14477_v38, %s15913_s16 }
0x1185   : > { %v4116_v54 = vld [vmem:[%s15999_s22 + $0x8] sm:$0xff]  ;;  %v4117_v57 = vld [vmem:[%s15999_s22 + $0x10] sm:$0xff]  ;;  %v4118_v55 = vld [vmem:[%s15999_s22 + $0x18] sm:$0xff] }
0x1186   : > { %v12916_v61 = vpack.c.bf16 %v4118_v55, %v4117_v57  ;;  %v4119_v59 = vld [vmem:[%s15999_s22 + $0x20] sm:$0xff]  ;;  %v4120_v2 = vld [vmem:[%s15999_s22 + $0x28] sm:$0xff]  ;;  %v4121_v25 = vld [vmem:[%s15999_s22 + $0x30] sm:$0xff] }
0x1187   : > { %4051 = vrot.lane.b32.xlu1 %v14505_v12, %s15907_s1  ;;  %v12920_v24 = vpack.c.bf16 %v4120_v2, %v4119_v59  ;;  %v4122_v8 = vld [vmem:[%s15999_s22 + $0x38] sm:$0xff] }
0x1188   : > { %v12924_v3 = vpack.c.bf16 %v4122_v8, %v4121_v25 }
0x118b   : > { %4059 = vrot.lane.b32.xlu1 %v14531_v0, %s15915_s11 }
0x118f   : > { %4067 = vrot.lane.b32.xlu1 %v14557_v49, %s15909_s26 }
0x1193   : > { %4075 = vrot.lane.b32.xlu1 %v14583_v43, %s15911_s15 }
0x1197   : > { %4083 = vrot.lane.b32.xlu1 %v3832_v26, %s15917_s18 }
0x11fb   : > { %v3937_v27 = vpop.xlane.xlu1 %3936 }
0x11fc   : > { %v3939_v33 = vsub.f32 %v3929_v29, %v3937_v27  ;;  %v3934_v62 = vpop.xlane.xlu0 %3933 }
0x11fd   : > { %v3938_v44 = vsub.f32 %v3924_v32, %v3934_v62 }
0x11fe   : > { %v3942_v47 = vmul.f32 1.442695, %v3939_v33 }
0x11ff   : > { %v3940_v38 = vmul.f32 1.442695, %v3938_v44  ;;  %v13401_v48 = vpop.permute.xlu1 %13400 }
0x1200   : > { %v13403_v50 = vunpack.i.h.bf16 %v13401_v48  ;;  %v13402_v12 = vunpack.i.l.bf16 %v13401_v48 }
0x1201   : > { %13567 = vpow2.f32 %v3940_v38 }
0x1202   : > { %v12908_v22 = vpack.c.bf16 %v13403_v50, %v13402_v12  ;;  %13569 = vpow2.f32 %v3942_v47 }
0x1203   : > { %v4046_v7 = vpop.permute.xlu1 %4045 }
0x1204   : > { %12909 = vmatprep.subr.bf16.mxu1 %v12908_v22  ;;  %v4098_v30 = vsel %vm2450_vm11, %v14473_v36, %v4046_v7 }
0x1205   : > { %12911 = vmatpush3.bf16.msra.mxu1 %v12908_v22 }
0x1207   : > { %v4052_v9 = vpop.permute.xlu1 %4051 }
0x120b   : > { %v13568_v0 = vpop.eup %13567  ;;  %v4060_v13 = vpop.permute.xlu1 %4059 }
0x120c   : > { %v3944_v49 = vsel %vm1503_vm0, %v13568_v0, 0.0  ;;  %v13570_v43 = vpop.eup %13569 }
0x120d   : > { %3945 = vadd.xlane.f32.xlu0 %v3944_v49  ;;  %v3947_v53 = vsel %vm1503_vm0, %v13570_v43, 0.0 }
0x120f   : > { %v4068_v16 = vpop.permute.xlu1 %4067 }
0x1211   : > { %3948 = vadd.xlane.f32.xlu0 %v3947_v53 }
0x1227   : > { %4043 = vrot.lane.b32.xlu0 %v14479_v39, %s15913_s16  ;;  %s16003_s16 = sld [smem:[#allocation8_spill]] }
0x122b   : > { %4053 = vrot.lane.b32.xlu0 %v14503_v21, %s15907_s1  ;;  %s16000_s1 = smov 56  }
0x122f   : > { %4061 = vrot.lane.b32.xlu0 %v14529_v63, %s15915_s11  ;;  %s16004_s11 = sld [smem:[#allocation30_spill]] }
0x1233   : > { %4069 = vrot.lane.b32.xlu0 %v14555_v46, %s15909_s26  ;;  %s16001_s26 = sld [smem:[#allocation29_spill]] }
0x1235   : > { %v4259_v7 = vld [vmem:[%s16004_s11 + $0x8] sm:$0xff] }
0x1237   : > { %4077 = vrot.lane.b32.xlu0 %v14581_v42, %s15911_s15  ;;  %v4115_v42 = vld [vmem:[%s15999_s22] sm:$0xff]  ;;  %s16002_s15 = sld [smem:[#allocation32_spill]] }
0x1238   : > { %v12912_v58 = vpack.c.bf16 %v4116_v54, %v4115_v42 }
0x1239   : > { %v11321_v50 = vld [vmem:[%s16001_s26] ss:$0 sm:$0xff] }
0x123a   : > { %12913 = vmatprep.subr.bf16.mxu1 %v12912_v58 }
0x123b   : > { %4085 = vrot.lane.b32.xlu0 %v12215_v31, %s15917_s18  ;;  %v4076_v31 = vpop.permute.xlu1 %4075  ;;  %s16005_s18 = sshll.u32 %s16049_s10, 3  ;;  %s16021_s10 = smov 24  }
0x123c   : > { %s1435_s4 = scalar_lea.vmem %s16003_s16, %s16005_s18  ;;  %s16007_s16 = sld [smem:[#allocation37_spill]] }
0x123d   : > { %v4359_v25 = vld [vmem:[%s16002_s15 + $0x18] sm:$0xff]  ;;  %s16008_s18 = sld [smem:[#allocation33_spill]] }
0x123f   : > { %v4084_v32 = vpop.permute.xlu1 %4083 }
0x129a   : > { %v3946_v56 = vpop.xlane.xlu0 %3945 }
0x129b   : > { %13571 = vrcp.f32 %v3946_v56 }
0x129e   : > { %v3949_v39 = vpop.xlane.xlu0 %3948 }
0x129f   : > { %13573 = vrcp.f32 %v3949_v39 }
0x12a2   : > { %v4044_v6 = vpop.permute.xlu0 %4043 }
0x12a3   : > { %v4097_v18 = vsel %vm2450_vm11, %v14475_v37, %v4044_v6  ;;  %v4258_v6 = vld [vmem:[%s16004_s11] sm:$0xff] }
0x12a4   : > { %v4099_v19 = vsel %vm1503_vm0, %v4097_v18, %v4052_v9  ;;  %v4362_v9 = vld [vmem:[%s16002_s15 + $0x30] sm:$0xff]  ;;  %v4261_v18 = vld [vmem:[%s16004_s11 + $0x18] sm:$0xff] }
0x12a5   : > { %v13572_v21 = vpop.eup %13571  ;;  %v4102_v26 = vsel %vm4101_vm13, %v4099_v19, %v4060_v13  ;;  %v1449_v13 = vld [vmem:[%s1435_s4] sm:$0xff]  ;;  %s16006_s4 = sld [smem:[#allocation36_spill]] }
0x12a6   : > { %v3952_v20 = vmul.f32 %v13572_v21, %v13568_v0  ;;  %v4054_v23 = vpop.permute.xlu0 %4053  ;;  %v4104_v28 = vsel %vm1846_vm1, %v4102_v26, %v4068_v16  ;;  %v4356_v21 = vld [vmem:[%s16002_s15] sm:$0xff]  ;;  %v4260_v16 = vld [vmem:[%s16004_s11 + $0x10] sm:$0xff] }
0x12a7   : > { %v4100_v34 = vsel %vm1503_vm0, %v4098_v30, %v4054_v23  ;;  %v4107_v37 = vsel %vm4106_vm14, %v4104_v28, %v4076_v31  ;;  %v12928_v23 = vpack.c.bf16 %v4259_v7, %v4258_v6  ;;  %v12932_v19 = vpack.c.bf16 %v4261_v18, %v4260_v16  ;;  %v4263_v31 = vld [vmem:[%s16004_s11 + $0x28] sm:$0xff]  ;;  %v4264_v26 = vld [vmem:[%s16004_s11 + $0x30] sm:$0xff] }
0x12a8   : > { %12227 = vmatprep.mubr.msk.f32.mxu1 %vm1503_vm0, %v3952_v20  ;;  %v4110_v47 = vsel %vm4109_vm15, %v4107_v37, %v4084_v32  ;;  %v4357_v20 = vld [vmem:[%s16002_s15 + $0x8] sm:$0xff] }
0x12a9   : > { %v13574_v63 = vpop.eup %13573  ;;  %12929 = vmatprep.subr.bf16.mxu0 %v12928_v23 }
0x12aa   : > { %v3953_v46 = vmul.f32 %v13574_v63, %v13570_v43  ;;  %v4062_v10 = vpop.permute.xlu0 %4061  ;;  %v13903_v63 = vmov 0.0|0.0   ;;  %12931 = vmatpush3.bf16.msra.mxu0 %v12928_v23 }
0x12ab   : > { %v4103_v40 = vsel %vm4101_vm13, %v4100_v34, %v4062_v10  ;;  %v4363_v10 = vld [vmem:[%s16002_s15 + $0x38] sm:$0xff]  ;;  %12933 = vmatprep.subr.bf16.mxu0 %v12932_v19 }
0x12ac   : > { %12228 = vmatmul.mubr.msk.f32.vlgmr.msra.gmra.mrb[26].mxu1 %vm1503_vm0, %v3953_v46  ;;  %v12945_v46 = vpack.c.bf16 %v4357_v20, %v4356_v21  ;;  %v11326_v21 = vld [vmem:[%s16009_s5] ss:$0 sm:$0xff]  ;;  %s16030_s5 = sld [smem:[#allocation39_spill]] }
0x12ad   : > { %12915 = vmatpush3.bf16.msra.mxu1 %v12912_v58 }
0x12ae   : > { %12917 = vmatprep.subr.bf16.mxu1 %v12916_v61  ;;  %v4070_v35 = vpop.permute.xlu0 %4069  ;;  %12935 = vmatpush3.bf16.msra.mxu0 %v12932_v19 }
0x12af   : > { %v4105_v27 = vsel %vm1846_vm1, %v4103_v40, %v4070_v35  ;;  %v12954_v35 = vpack.c.bf16 %v4363_v10, %v4362_v9 }
0x12b1   : > { %12919 = vmatpush3.bf16.msra.mxu1 %v12916_v61 }
0x12b2   : > { %12921 = vmatprep.subr.bf16.mxu1 %v12920_v24  ;;  %v4078_v60 = vpop.permute.xlu0 %4077 }
0x12b3   : > { %v4108_v62 = vsel %vm4106_vm14, %v4105_v27, %v4078_v60  ;;  %v4262_v60 = vld [vmem:[%s16004_s11 + $0x20] sm:$0xff] }
0x12b4   : > { %v12936_v28 = vpack.c.bf16 %v4263_v31, %v4262_v60 }
0x12b5   : > { %12923 = vmatpush3.bf16.msra.mxu1 %v12920_v24  ;;  %v4358_v24 = vld [vmem:[%s16002_s15 + $0x10] sm:$0xff] }
0x12b6   : > { %12925 = vmatprep.subr.bf16.mxu1 %v12924_v3  ;;  %v4086_v29 = vpop.permute.xlu0 %4085  ;;  %v12948_v8 = vpack.c.bf16 %v4359_v25, %v4358_v24  ;;  %12937 = vmatprep.subr.bf16.mxu0 %v12936_v28 }
0x12b7   : > { %v4111_v36 = vsel %vm4109_vm15, %v4108_v62, %v4086_v29  ;;  %v4265_v29 = vld [vmem:[%s16004_s11 + $0x38] sm:$0xff]  ;;  %12939 = vmatpush3.bf16.msra.mxu0 %v12936_v28 }
0x12b8   : > { %v12940_v30 = vpack.c.bf16 %v4265_v29, %v4264_v26 }
0x12b9   : > { %12927 = vmatpush3.bf16.msra.mxu1 %v12924_v3  ;;  %v4360_v3 = vld [vmem:[%s16002_s15 + $0x20] sm:$0xff] }
0x12ba   : > { %12944 = vmatprep.subr.bf16.mxu1 %v13903_v63  ;;  %12941 = vmatprep.subr.bf16.mxu0 %v12940_v30 }
0x12bb   : > { %12943 = vmatpush3.bf16.msra.mxu0 %v12940_v30 }
0x137f   : > { %v12229_v1 = vpop.f32.mrb[26].mxu1 }
0x1380   : > { %4093 = vrot.lane.b32.xlu0 %v12229_v1, %s16000_s1  ;;  %v4032_v4 = vpop.f32.mrb[27].mxu1  ;;  %v4361_v1 = vld [vmem:[%s16002_s15 + $0x28] sm:$0xff] }
0x1381   : > { %4091 = vrot.lane.b32.xlu1 %v4032_v4, %s16000_s1  ;;  %v12951_v4 = vpack.c.bf16 %v4361_v1, %v4360_v3 }
0x13f2   : > { %v4094_v33 = vpop.permute.xlu0 %4093 }
0x13f3   : > { %v4092_v44 = vpop.permute.xlu1 %4091  ;;  %v4114_v48 = vsel %vm4112_vm2, %v4111_v36, %v4094_v33  ;;  %v11324_v36 = vld [vmem:[%s16006_s4] ss:$0 sm:$0xff] }
0x13f4   : > { %v4113_v38 = vsel %vm4112_vm2, %v4110_v47, %v4092_v44 }
0x13f5   : > { %12246 = vmatprep.mubr.msk.f32.mxu1 %vm2113_vm6, %v4113_v38 }
0x13f6   : > { %12247 = vmatmul.mubr.msk.f32.vlgmr.msra.gmra.mrb[28].mxu1 %vm2113_vm6, %v4114_v48 }
0x13f7   : > { %12946 = vmatpush3.bf16.msra.mxu1 %v12945_v46  ;;  %12284 = vmatprep.mubr.msk.f32.mxu1 %vm13904_vm3, %v13886_v5 }
0x13f8   : > { %12947 = vmatprep.subr.bf16.mxu1 %v13903_v63 }
0x13fb   : > { %12949 = vmatpush3.bf16.msra.mxu1 %v12948_v8 }
0x13fc   : > { %12950 = vmatprep.subr.bf16.mxu1 %v13903_v63 }
0x13ff   : > { %12952 = vmatpush3.bf16.msra.mxu1 %v12951_v4 }
0x1400   : > { %12953 = vmatprep.subr.bf16.mxu1 %v13903_v63 }
0x1403   : > { %12955 = vmatpush3.bf16.msra.mxu1 %v12954_v35 }
0x14c9   : > { %v12248_v12 = vpop.f32.mrb[28].mxu1 }
0x14ca   : > { %v4208_v22 = vadd.f32 %v12248_v12, %v11321_v50  ;;  %v4202_v0 = vpop.f32.mrb[29].mxu1  ;;  %v11325_v12 = vld [vmem:[%s16007_s16] ss:$0 sm:$0xff] }
0x14cb   : > { %v4203_v49 = vadd.f32 %v11321_v50, %v4202_v0 }
0x14cc   : > { %v4212_v43 = vadd.f32 %v4208_v22, %v14385_v52 }
0x14cd   : > { %v4211_v53 = vadd.f32 %v4203_v49, %v14376_v45 }
0x14ce   : > { %v4218_v56 = vsel %vm2113_vm6, %v4212_v43, 0.0 }
0x14cf   : > { %4219 = vadd.xlane.f32.xlu0 %v4218_v56  ;;  %v4215_v39 = vsel %vm2113_vm6, %v4211_v53, 0.0 }
0x14d0   : > { %4216 = vadd.xlane.f32.xlu1 %v4215_v39 }
0x155c   : > { %v4220_v52 = vpop.xlane.xlu0 %4219 }
0x155d   : > { %v4223_v42 = vmul.f32 0.015625, %v4220_v52  ;;  %v4217_v45 = vpop.xlane.xlu1 %4216 }
0x155e   : > { %v4222_v54 = vmul.f32 0.015625, %v4217_v45 }
0x155f   : > { %v4225_v57 = vsub.f32 %v4212_v43, %v4223_v42 }
0x1560   : > { %v4224_v58 = vsub.f32 %v4211_v53, %v4222_v54 }
0x1561   : > { %v4227_v55 = vmul.f32 %v4225_v57, %v4225_v57 }
0x1562   : > { %v4226_v61 = vmul.f32 %v4224_v58, %v4224_v58 }
0x1563   : > { %v4231_v59 = vsel %vm2113_vm6, %v4227_v55, 0.0 }
0x1564   : > { %4232 = vadd.xlane.f32.xlu1 %v4231_v59  ;;  %v4228_v2 = vsel %vm2113_vm6, %v4226_v61, 0.0  ;;  %v14767_v59 = vld [vmem:[%s14764_s24] ss:$0 sm:$0xff]  ;;  %s16028_s24 = sld [smem:[#allocation42_spill]] }
0x1565   : > { %4229 = vadd.xlane.f32.xlu0 %v4228_v2 }
0x157b   : > { %2321 = vperm.xlu0 %13328, %v1449_v13  }
0x15f1   : > { %v4233_v32 = vpop.xlane.xlu1 %4232 }
0x15f2   : > { %v4235_v34 = vmul.f32 0.015625, %v4233_v32  ;;  %v4230_v37 = vpop.xlane.xlu0 %4229 }
0x15f3   : > { %v4234_v40 = vmul.f32 0.015625, %v4230_v37 }
0x15f4   : > { %v4237_v27 = vadd.f32 1e-05, %v4235_v34 }
0x15f5   : > { %v4236_v33 = vadd.f32 1e-05, %v4234_v40 }
0x15f6   : > { %13575 = vrsqrt.f32 %v4237_v27 }
0x15f7   : > { %13577 = vrsqrt.f32 %v4236_v33 }
0x15fa   : > { %v2322_v62 = vpop.permute.xlu0 %2321 }
0x15fb   : > { %v14700_v44 = vmul.f32 %v2322_v62, %v14416_v11  ;;  %v11329_v11 = vld [vmem:[%s16008_s18] ss:$0 sm:$0xff] }
0x15fd   : > { %12285 = vmatmul.mubr.msk.f32.vlgmr.msra.gmra.mrb[30].mxu1 %vm2113_vm6, %v14700_v44 }
0x1600   : > { %v13576_v47 = vpop.eup %13575 }
0x1601   : > { %v13578_v38 = vpop.eup %13577  ;;  %v4241_v48 = vmul.f32 %v13576_v47, %v4225_v57 }
0x1602   : > { %v4240_v50 = vmul.f32 %v13578_v38, %v4224_v58 }
0x1603   : > { %v4249_v22 = vmul.f32 %v11324_v36, %v4241_v48 }
0x1604   : > { %v4248_v0 = vmul.f32 %v11324_v36, %v4240_v50 }
0x1605   : > { %v14708_v43 = vadd.f32 %v11325_v12, %v4249_v22 }
0x1606   : > { %v14706_v49 = vadd.f32 %v11325_v12, %v4248_v0 }
0x1608   : > { %12265 = vmatprep.mubr.msk.f32.mxu0 %vm2113_vm6, %v14706_v49 }
0x1609   : > { %12266 = vmatmul.mubr.msk.f32.vlgmr.msra.gmra.mrb[24].mxu0 %vm2113_vm6, %v14708_v43 }
0x16d0   : > { %v4440_v53 = vpop.f32.mrb[30].mxu1 }
0x16d1   : > { %v14715_v56 = vadd.f32 %v11329_v11, %v4440_v53  ;;  %v12286_v39 = vpop.f32.mrb[31].mxu1 }
0x16d3   : > { %4644 = vrot.lane.b32.xlu0 %v14715_v56, %s16010_s6  ;;  %12287 = vmatprep.subr.msk.mxu0 %vm2450_vm11, %v14715_v56 }
0x16d4   : > { %12288 = vmatpush3.xpose.msk.msra.mxu0 %vm2450_vm11, %v14715_v56 }
0x16dc   : > { %v12267_v20 = vpop.f32.mrb[24].mxu0 }
0x16dd   : > { %v4351_v46 = vadd.f32 %v12267_v20, %v11326_v21  ;;  %v4345_v52 = vpop.f32.mrb[25].mxu0 }
0x16de   : > { %v4346_v42 = vadd.f32 %v11326_v21, %v4345_v52 }
0x16df   : > { %v14726_v54 = vmul.f32 0.35355338, %v4351_v46 }
0x16e0   : > { %v14724_v45 = vmul.f32 0.35355338, %v4346_v42 }
0x16e2   : > { %4640 = vrot.lane.b32.xlu0 %v14724_v45, %s16010_s6  ;;  %12289 = vmatprep.mubr.msk.f32.mxu0 %vm2450_vm11, %v14724_v45 }
0x16e3   : > { %12290 = vmatmul.mubr.msk.f32.vlgmr.msra.gmra.mrb[26].mxu0 %vm2450_vm11, %v14726_v54 }
0x16e6   : > { %4642 = vrot.lane.b32.xlu0 %v14726_v54, %s16010_s6 }
0x16ea   : > { %4837 = vrot.lane.b32.xlu0 %v14715_v56, %s16011_s9 }
0x16ee   : > { %4835 = vrot.lane.b32.xlu0 %v14726_v54, %s16011_s9 }
0x16f2   : > { %5026 = vrot.lane.b32.xlu0 %v14724_v45, %s16013_s13 }
0x16f6   : > { %5223 = vrot.lane.b32.xlu0 %v14715_v56, %s16014_s14 }
0x16fa   : > { %5221 = vrot.lane.b32.xlu0 %v14726_v54, %s16014_s14 }
0x16fe   : > { %5412 = vrot.lane.b32.xlu0 %v14724_v45, %s16015_s19 }
0x1702   : > { %5609 = vrot.lane.b32.xlu0 %v14715_v56, %s16016_s20 }
0x1706   : > { %5607 = vrot.lane.b32.xlu0 %v14726_v54, %s16016_s20 }
0x170a   : > { %5798 = vrot.lane.b32.xlu0 %v14724_v45, %s16017_s23 }
0x1745   : > { %v14754_v57 = vpop.permute.xlu0 %4644 }
0x1754   : > { %v14756_v58 = vpop.permute.xlu0 %4640 }
0x1758   : > { %v14758_v55 = vpop.permute.xlu0 %4642 }
0x175c   : > { %v4838_v61 = vpop.permute.xlu0 %4837 }
0x175d   : > { %12307 = vmatprep.subr.msk.mxu1 %vm2450_vm11, %v4838_v61 }
0x175e   : > { %12308 = vmatpush3.xpose.msk.msra.mxu1 %vm2450_vm11, %v4838_v61 }
0x1760   : > { %v4836_v9 = vpop.permute.xlu0 %4835 }
0x1764   : > { %v5027_v16 = vpop.permute.xlu0 %5026 }
0x1768   : > { %v5224_v60 = vpop.permute.xlu0 %5223 }
0x176c   : > { %v5222_v32 = vpop.permute.xlu0 %5221 }
0x1770   : > { %v5413_v37 = vpop.permute.xlu0 %5412 }
0x1774   : > { %v5610_v33 = vpop.permute.xlu0 %5609 }
0x1778   : > { %v5608_v38 = vpop.permute.xlu0 %5607 }
0x177c   : > { %v5799_v0 = vpop.permute.xlu0 %5798 }
0x17b6   : > { %v12291_v2 = vpop.f32.mrb[26].mxu0 }
0x17b7   : > { %v4525_v24 = vpop.f32.mrb[27].mxu0  ;;  %v4531_v8 = vadd.f32 %v12291_v2, %v14767_v59 }
0x17b8   : > { %v4526_v25 = vadd.f32 %v14767_v59, %v4525_v24 }
0x17b9   : > { %v4537_v1 = vsel %vm2450_vm11, %v4531_v8, -inf }
0x17ba   : > { %v4534_v3 = vsel %vm2450_vm11, %v4526_v25, -inf }
0x17bb   : > { %4535 = vmax.xlane.f32.xlu1 %v4534_v3 }
0x17bf   : > { %4538 = vmax.xlane.f32.xlu1 %v4537_v1 }
0x17d0   : > { %4556 = vrot.lane.b32.xlu1 %v14715_v56, %s16019_s25 }
0x17d4   : > { %4833 = vrot.lane.b32.xlu1 %v14724_v45, %s16011_s9 }
0x17d8   : > { %5030 = vrot.lane.b32.xlu1 %v14715_v56, %s16013_s13 }
0x17dc   : > { %5028 = vrot.lane.b32.xlu1 %v14726_v54, %s16013_s13 }
0x1848   : > { %v4536_v4 = vpop.xlane.xlu1 %4535 }
0x1849   : > { %v4540_v6 = vsub.f32 %v4526_v25, %v4536_v4 }
0x184b   : > { %v4542_v10 = vmul.f32 1.442695, %v4540_v6 }
0x184c   : > { %v4539_v7 = vpop.xlane.xlu1 %4538 }
0x184d   : > { %v4541_v23 = vsub.f32 %v4531_v8, %v4539_v7 }
0x184f   : > { %v4544_v13 = vmul.f32 1.442695, %v4541_v23 }
0x1850   : > { %v4557_v35 = vpop.permute.xlu1 %4556 }
0x1851   : > { %13579 = vpow2.f32 %v4544_v13  ;;  %12292 = vmatprep.subr.mxu0 %v4557_v35 }
0x1852   : > { %12293 = vmatpush3.msra.mxu0 %v4557_v35  ;;  %13581 = vpow2.f32 %v4542_v10 }
0x1853   : > { %12297 = vmatprep.subr.msk.mxu0 %vm2450_vm11, %v14754_v57 }
0x1854   : > { %v4834_v18 = vpop.permute.xlu1 %4833 }
0x1855   : > { %12309 = vmatprep.mubr.msk.f32.mxu1 %vm2450_vm11, %v4834_v18 }
0x1856   : > { %12310 = vmatmul.mubr.msk.f32.vlgmr.msra.gmra.mrb[32].mxu1 %vm2450_vm11, %v4836_v9 }
0x1857   : > { %12319 = vmatprep.mubr.msk.f32.mxu1 %vm2450_vm11, %v5027_v16 }
0x1858   : > { %v5031_v19 = vpop.permute.xlu1 %5030 }
0x1859   : > { %12317 = vmatprep.subr.msk.mxu1 %vm2450_vm11, %v5031_v19 }
0x185a   : > { %12318 = vmatpush3.xpose.msk.msra.mxu1 %vm2450_vm11, %v5031_v19 }
0x185b   : > { %v13580_v31 = vpop.eup %13579  ;;  %12327 = vmatprep.subr.msk.mxu1 %vm2450_vm11, %v5224_v60 }
0x185c   : > { %v5029_v26 = vpop.permute.xlu1 %5028  ;;  %v4549_v28 = vsel %vm2450_vm11, %v13580_v31, 0.0  ;;  %v13582_v29 = vpop.eup %13581 }
0x185d   : > { %4550 = vadd.xlane.f32.xlu1 %v4549_v28  ;;  %12320 = vmatmul.mubr.msk.f32.vlgmr.msra.gmra.mrb[34].mxu1 %vm2450_vm11, %v5029_v26  ;;  %v4546_v30 = vsel %vm2450_vm11, %v13582_v29, 0.0 }
0x185e   : > { %12328 = vmatpush3.xpose.msk.msra.mxu1 %vm2450_vm11, %v5224_v60 }
0x1861   : > { %4547 = vadd.xlane.f32.xlu1 %v4546_v30 }
0x1872   : > { %5219 = vrot.lane.b32.xlu1 %v14724_v45, %s16014_s14 }
0x1876   : > { %5416 = vrot.lane.b32.xlu1 %v14715_v56, %s16015_s19 }
0x187a   : > { %5414 = vrot.lane.b32.xlu1 %v14726_v54, %s16015_s19 }
0x187e   : > { %5605 = vrot.lane.b32.xlu1 %v14724_v45, %s16016_s20 }
0x1882   : > { %5802 = vrot.lane.b32.xlu1 %v14715_v56, %s16017_s23 }
0x1886   : > { %5800 = vrot.lane.b32.xlu1 %v14726_v54, %s16017_s23 }
0x18ea   : > { %v4551_v34 = vpop.xlane.xlu1 %4550 }
0x18eb   : > { %13583 = vrcp.f32 %v4551_v34 }
0x18ee   : > { %v4548_v40 = vpop.xlane.xlu1 %4547 }
0x18ef   : > { %13585 = vrcp.f32 %v4548_v40 }
0x18f2   : > { %v5220_v27 = vpop.permute.xlu1 %5219 }
0x18f3   : > { %12329 = vmatprep.mubr.msk.f32.mxu1 %vm2450_vm11, %v5220_v27 }
0x18f4   : > { %12330 = vmatmul.mubr.msk.f32.vlgmr.msra.gmra.mrb[36].mxu1 %vm2450_vm11, %v5222_v32 }
0x18f5   : > { %12339 = vmatprep.mubr.msk.f32.mxu1 %vm2450_vm11, %v5413_v37  ;;  %v13584_v47 = vpop.eup %13583 }
0x18f6   : > { %v5417_v62 = vpop.permute.xlu1 %5416  ;;  %v4555_v12 = vmul.f32 %v13584_v47, %v13580_v31 }
0x18f7   : > { %12337 = vmatprep.subr.msk.mxu1 %vm2450_vm11, %v5417_v62 }
0x18f8   : > { %12338 = vmatpush3.xpose.msk.msra.mxu1 %vm2450_vm11, %v5417_v62 }
0x18f9   : > { %v13586_v36 = vpop.eup %13585  ;;  %12347 = vmatprep.subr.msk.mxu1 %vm2450_vm11, %v5610_v33 }
0x18fa   : > { %v5415_v48 = vpop.permute.xlu1 %5414  ;;  %v4554_v50 = vmul.f32 %v13586_v36, %v13582_v29 }
0x18fb   : > { %12340 = vmatmul.mubr.msk.f32.vlgmr.msra.gmra.mrb[38].mxu1 %vm2450_vm11, %v5415_v48 }
0x18fc   : > { %12294 = vmatprep.mubr.msk.f32.mxu0 %vm2450_vm11, %v4554_v50  ;;  %12348 = vmatpush3.xpose.msk.msra.mxu1 %vm2450_vm11, %v5610_v33 }
0x18fd   : > { %12295 = vmatmul.mubr.msk.f32.vlgmr.msra.gmra.mrb[28].mxu0 %vm2450_vm11, %v4555_v12 }
0x18fe   : > { %12298 = vmatpush3.xpose.msk.msra.mxu0 %vm2450_vm11, %v14754_v57  ;;  %12299 = vmatprep.mubr.msk.f32.mxu0 %vm2450_vm11, %v14756_v58  ;;  %v5606_v22 = vpop.permute.xlu1 %5605 }
0x18ff   : > { %12349 = vmatprep.mubr.msk.f32.mxu1 %vm2450_vm11, %v5606_v22 }
0x1900   : > { %12350 = vmatmul.mubr.msk.f32.vlgmr.msra.gmra.mrb[40].mxu1 %vm2450_vm11, %v5608_v38 }
0x1901   : > { %12300 = vmatmul.mubr.msk.f32.vlgmr.msra.gmra.mrb[30].mxu0 %vm2450_vm11, %v14758_v55  ;;  %12359 = vmatprep.mubr.msk.f32.mxu1 %vm2450_vm11, %v5799_v0 }
0x1902   : > { %v5803_v11 = vpop.permute.xlu1 %5802 }
0x1903   : > { %12357 = vmatprep.subr.msk.mxu1 %vm2450_vm11, %v5803_v11 }
0x1904   : > { %12358 = vmatpush3.xpose.msk.msra.mxu1 %vm2450_vm11, %v5803_v11 }
0x1906   : > { %v5801_v53 = vpop.permute.xlu1 %5800 }
0x1907   : > { %12360 = vmatmul.mubr.msk.f32.vlgmr.msra.gmra.mrb[42].mxu1 %vm2450_vm11, %v5801_v53 }
0x1929   : > { %v12311_v39 = vpop.f32.mrb[32].mxu1 }
0x192a   : > { %v4911_v21 = vpop.f32.mrb[33].mxu1  ;;  %v4917_v13 = vadd.f32 %v12311_v39, %v14767_v59 }
0x192b   : > { %v4912_v4 = vadd.f32 %v14767_v59, %v4911_v21 }
0x192c   : > { %v4923_v60 = vsel %vm2450_vm11, %v4917_v13, -inf }
0x192d   : > { %v4920_v35 = vsel %vm2450_vm11, %v4912_v4, -inf }
0x1930   : > { %v12321_v20 = vpop.f32.mrb[34].mxu1 }
0x1931   : > { %v5104_v46 = vpop.f32.mrb[35].mxu1  ;;  %v5110_v19 = vadd.f32 %v12321_v20, %v14767_v59 }
0x1932   : > { %v5105_v3 = vadd.f32 %v14767_v59, %v5104_v46 }
0x1933   : > { %v5116_v29 = vsel %vm2450_vm11, %v5110_v19, -inf }
0x1934   : > { %v5113_v10 = vsel %vm2450_vm11, %v5105_v3, -inf }
0x19c7   : > { %v12331_v52 = vpop.f32.mrb[36].mxu1 }
0x19c8   : > { %v5297_v42 = vpop.f32.mrb[37].mxu1  ;;  %v5303_v28 = vadd.f32 %v12331_v52, %v14767_v59 }
0x19c9   : > { %v5298_v23 = vadd.f32 %v14767_v59, %v5297_v42 }
0x19ca   : > { %v5309_v37 = vsel %vm2450_vm11, %v5303_v28, -inf }
0x19cb   : > { %v5306_v18 = vsel %vm2450_vm11, %v5298_v23, -inf }
0x19ce   : > { %v12341_v45 = vpop.f32.mrb[38].mxu1 }
0x19cf   : > { %v5490_v54 = vpop.f32.mrb[39].mxu1  ;;  %v5496_v34 = vadd.f32 %v12341_v45, %v14767_v59 }
0x19d0   : > { %v14827_v57 = vpop.f32.mrb[28].mxu0  ;;  %v5491_v16 = vadd.f32 %v14767_v59, %v5490_v54 }
0x19d1   : > { %v14829_v58 = vpop.f32.mrb[29].mxu0  ;;  %v5502_v33 = vsel %vm2450_vm11, %v5496_v34, -inf }
0x19d2   : > { %v5499_v26 = vsel %vm2450_vm11, %v5491_v16, -inf }
0x19d3   : > { %v12351_v55 = vpop.f32.mrb[40].mxu1 }
0x19d4   : > { %v12301_v61 = vpop.f32.mrb[30].mxu0  ;;  %v5683_v2 = vpop.f32.mrb[41].mxu1  ;;  %v14861_v27 = vadd.f32 %v12351_v55, %v14767_v59 }
0x19d5   : > { %v14832_v24 = vadd.f32 %v12301_v61, %v14767_v59  ;;  %v4718_v25 = vpop.f32.mrb[31].mxu0  ;;  %v5684_v31 = vadd.f32 %v14767_v59, %v5683_v2 }
0x19d6   : > { %v14835_v8 = vadd.f32 %v14767_v59, %v4718_v25  ;;  %v5695_v47 = vsel %vm2450_vm11, %v14861_v27, -inf }
0x19d7   : > { %v4730_v1 = vsel %vm2450_vm11, %v14832_v24, -inf  ;;  %v5692_v32 = vsel %vm2450_vm11, %v5684_v31, -inf }
0x19d8   : > { %4731 = vmax.xlane.f32.xlu1 %v4730_v1  ;;  %v4727_v6 = vsel %vm2450_vm11, %v14835_v8, -inf }
0x19d9   : > { %4728 = vmax.xlane.f32.xlu0 %v4727_v6 }
0x19da   : > { %v12361_v7 = vpop.f32.mrb[42].mxu1 }
0x19db   : > { %v5876_v9 = vpop.f32.mrb[43].mxu1  ;;  %v14865_v62 = vadd.f32 %v12361_v7, %v14767_v59 }
0x19dc   : > { %5114 = vmax.xlane.f32.xlu1 %v5113_v10  ;;  %v5877_v30 = vadd.f32 %v14767_v59, %v5876_v9 }
0x19dd   : > { %4921 = vmax.xlane.f32.xlu0 %v4920_v35  ;;  %v5888_v36 = vsel %vm2450_vm11, %v14865_v62, -inf }
0x19de   : > { %v5885_v40 = vsel %vm2450_vm11, %v5877_v30, -inf }
0x19e0   : > { %5307 = vmax.xlane.f32.xlu1 %v5306_v18 }
0x19e1   : > { %4924 = vmax.xlane.f32.xlu0 %v4923_v60 }
0x19e4   : > { %5500 = vmax.xlane.f32.xlu1 %v5499_v26 }
0x19e5   : > { %5117 = vmax.xlane.f32.xlu0 %v5116_v29 }
0x19e8   : > { %5693 = vmax.xlane.f32.xlu1 %v5692_v32 }
0x19e9   : > { %5310 = vmax.xlane.f32.xlu0 %v5309_v37 }
0x19ec   : > { %5886 = vmax.xlane.f32.xlu1 %v5885_v40 }
0x19ed   : > { %5503 = vmax.xlane.f32.xlu0 %v5502_v33 }
0x19f1   : > { %5696 = vmax.xlane.f32.xlu0 %v5695_v47 }
0x19f5   : > { %5889 = vmax.xlane.f32.xlu0 %v5888_v36 }
0x1a65   : > { %v14871_v38 = vpop.xlane.xlu1 %4731 }
0x1a66   : > { %v14873_v48 = vpop.xlane.xlu0 %4728  ;;  %v4734_v37 = vsub.f32 %v14832_v24, %v14871_v38 }
0x1a69   : > { %v5115_v50 = vpop.xlane.xlu1 %5114 }
0x1a6a   : > { %v5119_v12 = vsub.f32 %v5105_v3, %v5115_v50  ;;  %v4922_v22 = vpop.xlane.xlu0 %4921 }
0x1a6b   : > { %v4926_v0 = vsub.f32 %v4912_v4, %v4922_v22  ;;  %v4737_v22 = vmul.f32 1.442695, %v4734_v37 }
0x1a6c   : > { %v5121_v11 = vmul.f32 1.442695, %v5119_v12 }
0x1a6d   : > { %v4928_v53 = vmul.f32 1.442695, %v4926_v0  ;;  %v5308_v59 = vpop.xlane.xlu1 %5307 }
0x1a6e   : > { %v5312_v39 = vsub.f32 %v5298_v23, %v5308_v59  ;;  %v4925_v21 = vpop.xlane.xlu0 %4924 }
0x1a6f   : > { %13587 = vpow2.f32 %v4928_v53  ;;  %v4927_v20 = vsub.f32 %v4917_v13, %v4925_v21 }
0x1a70   : > { %13589 = vpow2.f32 %v5121_v11  ;;  %v5314_v46 = vmul.f32 1.442695, %v5312_v39 }
0x1a71   : > { %v4930_v52 = vmul.f32 1.442695, %v4927_v20  ;;  %v5501_v42 = vpop.xlane.xlu1 %5500 }
0x1a72   : > { %v5505_v45 = vsub.f32 %v5491_v16, %v5501_v42  ;;  %v5118_v54 = vpop.xlane.xlu0 %5117 }
0x1a73   : > { %13591 = vpow2.f32 %v4930_v52  ;;  %v5120_v55 = vsub.f32 %v5110_v19, %v5118_v54 }
0x1a74   : > { %13593 = vpow2.f32 %v5314_v46  ;;  %v5507_v61 = vmul.f32 1.442695, %v5505_v45 }
0x1a75   : > { %v5123_v2 = vmul.f32 1.442695, %v5120_v55  ;;  %v5694_v25 = vpop.xlane.xlu1 %5693  ;;  %v4733_v55 = vsub.f32 %v14835_v8, %v14873_v48 }
0x1a76   : > { %v5698_v3 = vsub.f32 %v5684_v31, %v5694_v25  ;;  %v5311_v1 = vpop.xlane.xlu0 %5310 }
0x1a77   : > { %13595 = vpow2.f32 %v5123_v2  ;;  %v5313_v4 = vsub.f32 %v5303_v28, %v5311_v1 }
0x1a78   : > { %13597 = vpow2.f32 %v5507_v61  ;;  %v5700_v7 = vmul.f32 1.442695, %v5698_v3  ;;  %v4735_v61 = vmul.f32 1.442695, %v4733_v55 }
0x1a79   : > { %v14875_v6 = vpop.eup %13587  ;;  %v5316_v23 = vmul.f32 1.442695, %v5313_v4  ;;  %v5887_v9 = vpop.xlane.xlu1 %5886 }
0x1a7a   : > { %v5891_v10 = vsub.f32 %v5877_v30, %v5887_v9  ;;  %v5504_v13 = vpop.xlane.xlu0 %5503  ;;  %v4932_v35 = vsel %vm2450_vm11, %v14875_v6, 0.0  ;;  %v14879_v16 = vpop.eup %13589 }
0x1a7b   : > { %13599 = vpow2.f32 %v5316_v23  ;;  %v5506_v18 = vsub.f32 %v5496_v34, %v5504_v13  ;;  %4933 = vadd.xlane.f32.xlu1 %v4932_v35  ;;  %v5125_v29 = vsel %vm2450_vm11, %v14879_v16, 0.0 }
0x1a7c   : > { %13601 = vpow2.f32 %v5700_v7  ;;  %v5893_v60 = vmul.f32 1.442695, %v5891_v10 }
0x1a7d   : > { %v14881_v19 = vpop.eup %13591  ;;  %v5509_v31 = vmul.f32 1.442695, %v5506_v18 }
0x1a7e   : > { %v5697_v26 = vpop.xlane.xlu0 %5696  ;;  %v4935_v28 = vsel %vm2450_vm11, %v14881_v19, 0.0  ;;  %v14887_v30 = vpop.eup %13593 }
0x1a7f   : > { %13603 = vpow2.f32 %v5509_v31  ;;  %v5699_v32 = vsub.f32 %v14861_v27, %v5697_v26  ;;  %4936 = vadd.xlane.f32.xlu0 %v4935_v28  ;;  %5126 = vadd.xlane.f32.xlu1 %v5125_v29  ;;  %v5318_v36 = vsel %vm2450_vm11, %v14887_v30, 0.0 }
0x1a80   : > { %13605 = vpow2.f32 %v5893_v60 }
0x1a81   : > { %v14890_v34 = vpop.eup %13595  ;;  %v5702_v40 = vmul.f32 1.442695, %v5699_v32 }
0x1a82   : > { %v5890_v33 = vpop.xlane.xlu0 %5889  ;;  %v5128_v47 = vsel %vm2450_vm11, %v14890_v34, 0.0  ;;  %v14898_v50 = vpop.eup %13597 }
0x1a83   : > { %13607 = vpow2.f32 %v5702_v40  ;;  %v5892_v27 = vsub.f32 %v14865_v62, %v5890_v33  ;;  %5129 = vadd.xlane.f32.xlu0 %v5128_v47  ;;  %5319 = vadd.xlane.f32.xlu1 %v5318_v36  ;;  %v5511_v0 = vsel %vm2450_vm11, %v14898_v50, 0.0 }
0x1a85   : > { %v14901_v12 = vpop.eup %13599  ;;  %v5895_v24 = vmul.f32 1.442695, %v5892_v27 }
0x1a86   : > { %v5321_v38 = vsel %vm2450_vm11, %v14901_v12, 0.0  ;;  %v14907_v11 = vpop.eup %13601 }
0x1a87   : > { %13609 = vpow2.f32 %v5895_v24  ;;  %5322 = vadd.xlane.f32.xlu0 %v5321_v38  ;;  %5512 = vadd.xlane.f32.xlu1 %v5511_v0  ;;  %v5704_v59 = vsel %vm2450_vm11, %v14907_v11, 0.0 }
0x1a88   : > { %13611 = vpow2.f32 %v4737_v22 }
0x1a89   : > { %v14909_v53 = vpop.eup %13603  ;;  %13613 = vpow2.f32 %v4735_v61 }
0x1a8a   : > { %v5514_v62 = vsel %vm2450_vm11, %v14909_v53, 0.0  ;;  %v14915_v39 = vpop.eup %13605 }
0x1a8b   : > { %5515 = vadd.xlane.f32.xlu0 %v5514_v62  ;;  %5705 = vadd.xlane.f32.xlu1 %v5704_v59  ;;  %v5897_v46 = vsel %vm2450_vm11, %v14915_v39, 0.0 }
0x1a8d   : > { %v14917_v21 = vpop.eup %13607 }
0x1a8e   : > { %v5707_v20 = vsel %vm2450_vm11, %v14917_v21, 0.0 }
0x1a8f   : > { %5708 = vadd.xlane.f32.xlu0 %v5707_v20  ;;  %5898 = vadd.xlane.f32.xlu1 %v5897_v46 }
0x1a91   : > { %v14923_v52 = vpop.eup %13609 }
0x1a92   : > { %v5900_v42 = vsel %vm2450_vm11, %v14923_v52, 0.0  ;;  %v13612_v45 = vpop.eup %13611 }
0x1a93   : > { %5901 = vadd.xlane.f32.xlu0 %v5900_v42  ;;  %v4742_v54 = vsel %vm2450_vm11, %v13612_v45, 0.0  ;;  %v13614_v2 = vpop.eup %13613 }
0x1a94   : > { %v4739_v25 = vsel %vm2450_vm11, %v13614_v2, 0.0 }
0x1a97   : > { %4743 = vadd.xlane.f32.xlu0 %v4742_v54 }
0x1aa0   : > { %4749 = vrot.lane.b32.xlu1 %v14715_v56, %s16000_s1 }
0x1aad   : > { %4942 = vrot.lane.b32.xlu0 %v14715_v56, %s16020_s12 }
0x1ab1   : > { %5521 = vrot.lane.b32.xlu0 %v14715_v56, %s16021_s10 }
0x1ab5   : > { %5907 = vrot.lane.b32.xlu0 %v14715_v56, %s16022_s29 }
0x1ac4   : > { %4740 = vadd.xlane.f32.xlu1 %v4739_v25 }
0x1ad5   : > { %5135 = vrot.lane.b32.xlu1 %v14715_v56, %s16023_s30 }
0x1ad9   : > { %5328 = vrot.lane.b32.xlu1 %v14715_v56, %s16024_s7 }
0x1add   : > { %5714 = vrot.lane.b32.xlu1 %v14715_v56, %s16025_s17 }
0x1b08   : > { %v4934_v8 = vpop.xlane.xlu1 %4933 }
0x1b09   : > { %13615 = vrcp.f32 %v4934_v8 }
0x1b0c   : > { %v4937_v48 = vpop.xlane.xlu0 %4936  ;;  %v5127_v3 = vpop.xlane.xlu1 %5126 }
0x1b10   : > { %v5130_v1 = vpop.xlane.xlu0 %5129  ;;  %v5320_v4 = vpop.xlane.xlu1 %5319 }
0x1b13   : > { %v13616_v28 = vpop.eup %13615 }
0x1b14   : > { %v5323_v7 = vpop.xlane.xlu0 %5322  ;;  %v5513_v23 = vpop.xlane.xlu1 %5512  ;;  %v4940_v36 = vmul.f32 %v13616_v28, %v14875_v6 }
0x1b18   : > { %v5516_v9 = vpop.xlane.xlu0 %5515  ;;  %v5706_v10 = vpop.xlane.xlu1 %5705 }
0x1b1c   : > { %v5709_v13 = vpop.xlane.xlu0 %5708  ;;  %v5899_v35 = vpop.xlane.xlu1 %5898 }
0x1b20   : > { %v5902_v18 = vpop.xlane.xlu0 %5901  ;;  %v4750_v60 = vpop.permute.xlu1 %4749 }
0x1b21   : > { %12302 = vmatprep.subr.mxu0 %v4750_v60 }
0x1b22   : > { %12303 = vmatpush3.msra.mxu0 %v4750_v60  ;;  %v6067_v60 = vld [vmem:[%s16026_s0 + $0x30] sm:$0xff] }
0x1b24   : > { %v4744_v31 = vpop.xlane.xlu0 %4743 }
0x1b25   : > { %13617 = vrcp.f32 %v4744_v31  ;;  %v6068_v31 = vld [vmem:[%s16026_s0 + $0x38] sm:$0xff] }
0x1b28   : > { %v4943_v26 = vpop.permute.xlu0 %4942 }
0x1b29   : > { %12312 = vmatprep.subr.mxu0 %v4943_v26 }
0x1b2f   : > { %v13618_v29 = vpop.eup %13617 }
0x1b30   : > { %v4748_v40 = vmul.f32 %v13618_v29, %v13612_v45 }
0x1b51   : > { %v4741_v56 = vpop.xlane.xlu1 %4740 }
0x1b52   : > { %13619 = vrcp.f32 %v4741_v56 }
0x1b53   : > { %13621 = vrcp.f32 %v4937_v48  ;;  %v6062_v48 = vld [vmem:[%s16026_s0 + $0x8] sm:$0xff] }
0x1b54   : > { %13623 = vrcp.f32 %v5127_v3 }
0x1b55   : > { %13625 = vrcp.f32 %v5130_v1  ;;  %v5136_v47 = vpop.permute.xlu1 %5135  ;;  %v6063_v1 = vld [vmem:[%s16026_s0 + $0x10] sm:$0xff] }
0x1b56   : > { %13627 = vrcp.f32 %v5320_v4  ;;  %v6064_v4 = vld [vmem:[%s16026_s0 + $0x18] sm:$0xff] }
0x1b57   : > { %13629 = vrcp.f32 %v5323_v7 }
0x1b58   : > { %13631 = vrcp.f32 %v5513_v23 }
0x1b59   : > { %13633 = vrcp.f32 %v5516_v9  ;;  %v5329_v62 = vpop.permute.xlu1 %5328  ;;  %v6065_v9 = vld [vmem:[%s16026_s0 + $0x20] sm:$0xff] }
0x1b5a   : > { %13635 = vrcp.f32 %v5706_v10  ;;  %v6066_v10 = vld [vmem:[%s16026_s0 + $0x28] sm:$0xff] }
0x1b5b   : > { %13637 = vrcp.f32 %v5709_v13  ;;  %v12964_v13 = vpack.c.bf16 %v6066_v10, %v6065_v9 }
0x1b5c   : > { %v13620_v32 = vpop.eup %13619  ;;  %13639 = vrcp.f32 %v5899_v35 }
0x1b5d   : > { %v4747_v37 = vmul.f32 %v13620_v32, %v13614_v2  ;;  %v13622_v33 = vpop.eup %13621  ;;  %13641 = vrcp.f32 %v5902_v18 }
0x1b5e   : > { %v13624_v27 = vpop.eup %13623  ;;  %v4941_v22 = vmul.f32 %v13622_v33, %v14881_v19 }
0x1b5f   : > { %12304 = vmatprep.mubr.msk.f32.mxu0 %vm2450_vm11, %v4747_v37  ;;  %v13626_v24 = vpop.eup %13625  ;;  %v5133_v38 = vmul.f32 %v13624_v27, %v14879_v16  ;;  %v5522_v16 = vpop.permute.xlu0 %5521 }
0x1b60   : > { %12305 = vmatmul.mubr.msk.f32.vlgmr.msra.gmra.mrb[32].mxu0 %vm2450_vm11, %v4748_v40  ;;  %v13628_v0 = vpop.eup %13627  ;;  %v5134_v6 = vmul.f32 %v13626_v24, %v14890_v34  ;;  %v5715_v34 = vpop.permute.xlu1 %5714 }
0x1b61   : > { %12313 = vmatpush3.msra.mxu0 %v4943_v26  ;;  %12314 = vmatprep.mubr.msk.f32.mxu0 %vm2450_vm11, %v4940_v36  ;;  %v13630_v59 = vpop.eup %13629  ;;  %v5326_v20 = vmul.f32 %v13628_v0, %v14887_v30  ;;  %v12968_v26 = vpack.c.bf16 %v6068_v31, %v6067_v60 }
0x1b62   : > { %12322 = vmatprep.subr.mxu0 %v5136_v47  ;;  %v13632_v46 = vpop.eup %13631  ;;  %v5327_v19 = vmul.f32 %v13630_v59, %v14901_v12 }
0x1b63   : > { %v13634_v42 = vpop.eup %13633  ;;  %v5519_v45 = vmul.f32 %v13632_v46, %v14898_v50  ;;  %v5908_v12 = vpop.permute.xlu0 %5907 }
0x1b64   : > { %12315 = vmatmul.mubr.msk.f32.vlgmr.msra.gmra.mrb[34].mxu0 %vm2450_vm11, %v4941_v22  ;;  %v13636_v54 = vpop.eup %13635  ;;  %v5520_v30 = vmul.f32 %v13634_v42, %v14909_v53  ;;  %v6061_v53 = vld [vmem:[%s16026_s0] sm:$0xff]  ;;  %s16027_s0 = sld [smem:[#allocation35_spill]] }
0x1b65   : > { %12323 = vmatpush3.msra.mxu0 %v5136_v47  ;;  %12324 = vmatprep.mubr.msk.f32.mxu0 %vm2450_vm11, %v5133_v38  ;;  %v13638_v55 = vpop.eup %13637  ;;  %v5712_v61 = vmul.f32 %v13636_v54, %v14907_v11 }
0x1b66   : > { %12332 = vmatprep.subr.mxu0 %v5329_v62  ;;  %v13640_v2 = vpop.eup %13639  ;;  %v5713_v50 = vmul.f32 %v13638_v55, %v14917_v21  ;;  %v12956_v21 = vpack.c.bf16 %v6062_v48, %v6061_v53 }
0x1b67   : > { %v13642_v25 = vpop.eup %13641  ;;  %v5905_v8 = vmul.f32 %v13640_v2, %v14915_v39 }
0x1b68   : > { %12325 = vmatmul.mubr.msk.f32.vlgmr.msra.gmra.mrb[36].mxu0 %vm2450_vm11, %v5134_v6  ;;  %v5906_v11 = vmul.f32 %v13642_v25, %v14923_v52  ;;  %12957 = vmatprep.subr.bf16.mxu1 %v12956_v21  ;;  %v12960_v52 = vpack.c.bf16 %v6064_v4, %v6063_v1 }
0x1b69   : > { %12333 = vmatpush3.msra.mxu0 %v5329_v62  ;;  %12334 = vmatprep.mubr.msk.f32.mxu0 %vm2450_vm11, %v5326_v20 }
0x1b6a   : > { %12342 = vmatprep.subr.mxu0 %v5522_v16  ;;  %12959 = vmatpush3.bf16.msra.mxu1 %v12956_v21  ;;  %v11372_v53 = vld [vmem:[%s16027_s0] ss:$0 sm:$0xff]  ;;  %s16029_s0 = sld [smem:[#allocation38_spill]] }
0x1b6b   : > { %12961 = vmatprep.subr.bf16.mxu1 %v12960_v52 }
0x1b6c   : > { %12335 = vmatmul.mubr.msk.f32.vlgmr.msra.gmra.mrb[38].mxu0 %vm2450_vm11, %v5327_v19 }
0x1b6d   : > { %12343 = vmatpush3.msra.mxu0 %v5522_v16  ;;  %12344 = vmatprep.mubr.msk.f32.mxu0 %vm2450_vm11, %v5519_v45 }
0x1b6e   : > { %12352 = vmatprep.subr.mxu0 %v5715_v34  ;;  %12963 = vmatpush3.bf16.msra.mxu1 %v12960_v52 }
0x1b6f   : > { %12965 = vmatprep.subr.bf16.mxu1 %v12964_v13 }
0x1b70   : > { %12345 = vmatmul.mubr.msk.f32.vlgmr.msra.gmra.mrb[40].mxu0 %vm2450_vm11, %v5520_v30 }
0x1b71   : > { %12353 = vmatpush3.msra.mxu0 %v5715_v34  ;;  %12354 = vmatprep.mubr.msk.f32.mxu0 %vm2450_vm11, %v5712_v61 }
0x1b72   : > { %12362 = vmatprep.subr.mxu0 %v5908_v12  ;;  %12967 = vmatpush3.bf16.msra.mxu1 %v12964_v13 }
0x1b73   : > { %12969 = vmatprep.subr.bf16.mxu1 %v12968_v26 }
0x1b74   : > { %12355 = vmatmul.mubr.msk.f32.vlgmr.msra.gmra.mrb[42].mxu0 %vm2450_vm11, %v5713_v50 }
0x1b75   : > { %12363 = vmatpush3.msra.mxu0 %v5908_v12  ;;  %12364 = vmatprep.mubr.msk.f32.mxu0 %vm2450_vm11, %v5905_v8 }
0x1b76   : > { %12971 = vmatpush3.bf16.msra.mxu1 %v12968_v26  ;;  %v6204_v26 = vld [vmem:[%s16028_s24 + $0x8] sm:$0xff] }
0x1b78   : > { %12365 = vmatmul.mubr.msk.f32.vlgmr.msra.gmra.mrb[44].mxu0 %vm2450_vm11, %v5906_v11 }
0x1b79   : > { %6334 = vmatprep.mubr.f32.mxu0 %v13886_v5 }
0x1c33   : > { %v12306_v3 = vpop.f32.mrb[32].mxu0 }
0x1c34   : > { %5995 = vrot.lane.b32.xlu0 %v12306_v3, %s16022_s29  ;;  %v4824_v39 = vpop.f32.mrb[33].mxu0 }
0x1c35   : > { %5993 = vrot.lane.b32.xlu1 %v4824_v39, %s16022_s29 }
0x1c37   : > { %v12316_v7 = vpop.f32.mrb[34].mxu0 }
0x1c38   : > { %6003 = vrot.lane.b32.xlu0 %v12316_v7, %s16025_s17  ;;  %v5017_v23 = vpop.f32.mrb[35].mxu0 }
0x1c39   : > { %6001 = vrot.lane.b32.xlu1 %v5017_v23, %s16025_s17 }
0x1c3b   : > { %v12326_v35 = vpop.f32.mrb[36].mxu0 }
0x1c3c   : > { %6011 = vrot.lane.b32.xlu0 %v12326_v35, %s16021_s10  ;;  %v5210_v18 = vpop.f32.mrb[37].mxu0 }
0x1c3d   : > { %6009 = vrot.lane.b32.xlu1 %v5210_v18, %s16021_s10 }
0x1c3f   : > { %v12336_v56 = vpop.f32.mrb[38].mxu0 }
0x1c40   : > { %6019 = vrot.lane.b32.xlu0 %v12336_v56, %s16024_s7  ;;  %v5403_v28 = vpop.f32.mrb[39].mxu0  ;;  %v6206_v56 = vld [vmem:[%s16028_s24 + $0x18] sm:$0xff] }
0x1c41   : > { %6017 = vrot.lane.b32.xlu1 %v5403_v28, %s16024_s7  ;;  %v12972_v28 = vpack.c.bf16 %v6206_v56, %v6204_v26  ;;  %v6225_v26 = vld [vmem:[%s14128_s8 + $0x28] sm:$0xff] }
0x1c43   : > { %v12346_v29 = vpop.f32.mrb[40].mxu0  ;;  %12973 = vmatprep.subr.bf16.mxu0 %v12972_v28  ;;  %v6242_v28 = vld [vmem:[%s14128_s8 + $0xb0] sm:$0xff] }
0x1c44   : > { %6027 = vrot.lane.b32.xlu0 %v12346_v29, %s16023_s30  ;;  %v5596_v32 = vpop.f32.mrb[41].mxu0  ;;  %v6203_v29 = vld [vmem:[%s16028_s24] sm:$0xff] }
0x1c45   : > { %6025 = vrot.lane.b32.xlu1 %v5596_v32, %s16023_s30  ;;  %v6205_v32 = vld [vmem:[%s16028_s24 + $0x10] sm:$0xff] }
0x1c47   : > { %v12356_v37 = vpop.f32.mrb[42].mxu0 }
0x1c48   : > { %6035 = vrot.lane.b32.xlu0 %v12356_v37, %s16020_s12  ;;  %v5789_v40 = vpop.f32.mrb[43].mxu0  ;;  %v12974_v37 = vpack.c.bf16 %v6205_v32, %v6203_v29  ;;  %v6243_v29 = vld [vmem:[%s14128_s8 + $0xb8] sm:$0xff] }
0x1c49   : > { %6033 = vrot.lane.b32.xlu1 %v5789_v40, %s16020_s12  ;;  %v6208_v40 = vld [vmem:[%s16028_s24 + $0x28] sm:$0xff]  ;;  %v13000_v32 = vpack.c.bf16 %v6243_v29, %v6242_v28 }
0x1c4a   : > { %12975 = vmatpush1.bf16.msra.mxu0 %v12974_v37  ;;  %v6226_v37 = vld [vmem:[%s14128_s8 + $0x30] sm:$0xff] }
0x1c4b   : > { %v12366_v33 = vpop.f32.mrb[44].mxu0 }
0x1c4c   : > { %6043 = vrot.lane.b32.xlu0 %v12366_v33, %s16000_s1  ;;  %v5982_v47 = vpop.f32.mrb[45].mxu0  ;;  %v6210_v33 = vld [vmem:[%s16028_s24 + $0x38] sm:$0xff] }
0x1c4d   : > { %6041 = vrot.lane.b32.xlu1 %v5982_v47, %s16000_s1  ;;  %v12976_v47 = vpack.c.bf16 %v6210_v33, %v6208_v40  ;;  %v6227_v40 = vld [vmem:[%s14128_s8 + $0x38] sm:$0xff] }
0x1c4e   : > { %v13002_v33 = vpack.c.bf16 %v6227_v40, %v6226_v37 }
0x1c4f   : > { %12977 = vmatprep.subr.bf16.mxu0 %v12976_v47  ;;  %v6244_v47 = vld [vmem:[%s14128_s8 + $0xc0] sm:$0xff] }
0x1ca6   : > { %v5996_v36 = vpop.permute.xlu0 %5995 }
0x1ca7   : > { %v5994_v27 = vpop.permute.xlu1 %5993  ;;  %v6048_v19 = vsel %vm2450_vm11, %v14827_v57, %v5996_v36  ;;  %v6207_v36 = vld [vmem:[%s16028_s24 + $0x20] sm:$0xff] }
0x1ca8   : > { %v6047_v46 = vsel %vm2450_vm11, %v14829_v58, %v5994_v27  ;;  %v6209_v27 = vld [vmem:[%s16028_s24 + $0x30] sm:$0xff] }
0x1caa   : > { %v6004_v22 = vpop.permute.xlu0 %6003 }
0x1cab   : > { %v6002_v24 = vpop.permute.xlu1 %6001  ;;  %v6050_v54 = vsel %vm1503_vm0, %v6048_v19, %v6004_v22  ;;  %v12978_v22 = vpack.c.bf16 %v6209_v27, %v6207_v36  ;;  %v6245_v36 = vld [vmem:[%s14128_s8 + $0xc8] sm:$0xff] }
0x1cac   : > { %v6049_v42 = vsel %vm1503_vm0, %v6047_v46, %v6002_v24  ;;  %v6212_v24 = vld [vmem:[%s16028_s24 + $0x48] sm:$0xff]  ;;  %v6218_v46 = vld [vmem:[%s16028_s24 + $0x78] sm:$0xff]  ;;  %v13004_v27 = vpack.c.bf16 %v6245_v36, %v6244_v47 }
0x1cad   : > { %12979 = vmatpush1.bf16.msra.mxu0 %v12978_v22  ;;  %v6228_v22 = vld [vmem:[%s14128_s8 + $0x40] sm:$0xff] }
0x1cae   : > { %v6012_v38 = vpop.permute.xlu0 %6011 }
0x1caf   : > { %v6010_v0 = vpop.permute.xlu1 %6009  ;;  %v6052_v30 = vsel %vm4101_vm13, %v6050_v54, %v6012_v38  ;;  %v6214_v38 = vld [vmem:[%s16028_s24 + $0x58] sm:$0xff] }
0x1cb0   : > { %v6051_v34 = vsel %vm4101_vm13, %v6049_v42, %v6010_v0  ;;  %v12980_v0 = vpack.c.bf16 %v6214_v38, %v6212_v24  ;;  %v6217_v42 = vld [vmem:[%s16028_s24 + $0x70] sm:$0xff]  ;;  %v6229_v24 = vld [vmem:[%s14128_s8 + $0x48] sm:$0xff] }
0x1cb1   : > { %v13006_v38 = vpack.c.bf16 %v6229_v24, %v6228_v22 }
0x1cb2   : > { %v6020_v62 = vpop.permute.xlu0 %6019  ;;  %12981 = vmatprep.subr.bf16.mxu0 %v12980_v0  ;;  %v6246_v0 = vld [vmem:[%s14128_s8 + $0xd0] sm:$0xff] }
0x1cb3   : > { %v6018_v6 = vpop.permute.xlu1 %6017  ;;  %v6054_v61 = vsel %vm1846_vm1, %v6052_v30, %v6020_v62  ;;  %v6211_v62 = vld [vmem:[%s16028_s24 + $0x40] sm:$0xff] }
0x1cb4   : > { %v6053_v55 = vsel %vm1846_vm1, %v6051_v34, %v6018_v6  ;;  %v6213_v6 = vld [vmem:[%s16028_s24 + $0x50] sm:$0xff] }
0x1cb6   : > { %v6028_v59 = vpop.permute.xlu0 %6027 }
0x1cb7   : > { %v6026_v20 = vpop.permute.xlu1 %6025  ;;  %v6056_v12 = vsel %vm4106_vm14, %v6054_v61, %v6028_v59  ;;  %v12982_v59 = vpack.c.bf16 %v6213_v6, %v6211_v62  ;;  %v6247_v62 = vld [vmem:[%s14128_s8 + $0xd8] sm:$0xff] }
0x1cb8   : > { %v6055_v58 = vsel %vm4106_vm14, %v6053_v55, %v6026_v20  ;;  %v6216_v20 = vld [vmem:[%s16028_s24 + $0x68] sm:$0xff]  ;;  %v13008_v6 = vpack.c.bf16 %v6247_v62, %v6246_v0 }
0x1cb9   : > { %12983 = vmatpush1.bf16.msra.mxu0 %v12982_v59  ;;  %v12984_v19 = vpack.c.bf16 %v6218_v46, %v6216_v20  ;;  %v6230_v59 = vld [vmem:[%s14128_s8 + $0x50] sm:$0xff]  ;;  %v6231_v20 = vld [vmem:[%s14128_s8 + $0x58] sm:$0xff] }
0x1cba   : > { %v6036_v16 = vpop.permute.xlu0 %6035  ;;  %v13010_v46 = vpack.c.bf16 %v6231_v20, %v6230_v59 }
0x1cbb   : > { %v6034_v45 = vpop.permute.xlu1 %6033  ;;  %v6058_v25 = vsel %vm4109_vm15, %v6056_v12, %v6036_v16  ;;  %v6215_v16 = vld [vmem:[%s16028_s24 + $0x60] sm:$0xff]  ;;  %12985 = vmatprep.subr.bf16.mxu0 %v12984_v19  ;;  %v6249_v19 = vld [vmem:[%s14128_s8 + $0xe8] sm:$0xff] }
0x1cbc   : > { %v6057_v57 = vsel %vm4109_vm15, %v6055_v58, %v6034_v45  ;;  %v12986_v45 = vpack.c.bf16 %v6217_v42, %v6215_v16  ;;  %v6248_v16 = vld [vmem:[%s14128_s8 + $0xe0] sm:$0xff] }
0x1cbd   : > { %v13012_v42 = vpack.c.bf16 %v6249_v19, %v6248_v16 }
0x1cbe   : > { %v6044_v2 = vpop.permute.xlu0 %6043  ;;  %12987 = vmatpush1.bf16.msra.mxu0 %v12986_v45  ;;  %v6232_v45 = vld [vmem:[%s14128_s8 + $0x60] sm:$0xff] }
0x1cbf   : > { %v6042_v50 = vpop.permute.xlu1 %6041  ;;  %v6060_v11 = vsel %vm4112_vm2, %v6058_v25, %v6044_v2 }
0x1cc0   : > { %v6059_v8 = vsel %vm4112_vm2, %v6057_v57, %v6042_v50  ;;  %v11375_v57 = vld [vmem:[%s16029_s0] ss:$0 sm:$0xff] }
0x1cc1   : > { %12383 = vmatprep.mubr.msk.f32.mxu1 %vm2113_vm6, %v6059_v8  ;;  %v11376_v8 = vld [vmem:[%s16030_s5] ss:$0 sm:$0xff] }
0x1cc2   : > { %12384 = vmatmul.mubr.msk.f32.vlgmr.msra.gmra.mrb[44].mxu1 %vm2113_vm6, %v6060_v11 }
0x1d95   : > { %v12385_v48 = vpop.f32.mrb[44].mxu1 }
0x1d96   : > { %v6154_v21 = vadd.f32 %v12385_v48, %v11372_v53  ;;  %v6148_v3 = vpop.f32.mrb[45].mxu1 }
0x1d97   : > { %v6149_v39 = vadd.f32 %v11372_v53, %v6148_v3  ;;  %v6236_v3 = vld [vmem:[%s14128_s8 + $0x80] sm:$0xff] }
0x1d98   : > { %v6158_v1 = vadd.f32 %v6154_v21, %v14708_v43 }
0x1d99   : > { %v6157_v4 = vadd.f32 %v6149_v39, %v14706_v49  ;;  %v6237_v39 = vld [vmem:[%s14128_s8 + $0x88] sm:$0xff] }
0x1d9a   : > { %v6164_v52 = vsel %vm2113_vm6, %v6158_v1, 0.0 }
0x1d9b   : > { %6165 = vadd.xlane.f32.xlu0 %v6164_v52  ;;  %v6161_v7 = vsel %vm2113_vm6, %v6157_v4, 0.0  ;;  %v6221_v52 = vld [vmem:[%s14128_s8 + $0x8] sm:$0xff] }
0x1d9c   : > { %6162 = vadd.xlane.f32.xlu1 %v6161_v7 }
0x1e28   : > { %v6166_v23 = vpop.xlane.xlu0 %6165 }
0x1e29   : > { %v6168_v9 = vmul.f32 0.015625, %v6166_v23  ;;  %v6163_v10 = vpop.xlane.xlu1 %6162  ;;  %v6238_v23 = vld [vmem:[%s14128_s8 + $0x90] sm:$0xff] }
0x1e2a   : > { %v6167_v13 = vmul.f32 0.015625, %v6163_v10 }
0x1e2b   : > { %v6170_v35 = vsub.f32 %v6158_v1, %v6168_v9  ;;  %v12988_v1 = vpack.c.bf16 %v6237_v39, %v6236_v3  ;;  %v6239_v9 = vld [vmem:[%s14128_s8 + $0x98] sm:$0xff] }
0x1e2c   : > { %v6169_v18 = vsub.f32 %v6157_v4, %v6167_v13  ;;  %v6220_v4 = vld [vmem:[%s14128_s8] sm:$0xff]  ;;  %v12992_v10 = vpack.c.bf16 %v6239_v9, %v6238_v23  ;;  %v6222_v13 = vld [vmem:[%s14128_s8 + $0x10] sm:$0xff] }
0x1e2d   : > { %v6172_v43 = vmul.f32 %v6170_v35, %v6170_v35  ;;  %v12990_v7 = vpack.c.bf16 %v6221_v52, %v6220_v4  ;;  %12989 = vmatprep.subr.bf16.mxu1 %v12988_v1 }
0x1e2e   : > { %v6171_v49 = vmul.f32 %v6169_v18, %v6169_v18 }
0x1e2f   : > { %v6176_v60 = vsel %vm2113_vm6, %v6172_v43, 0.0  ;;  %12991 = vmatpush3.bf16.msra.mxu1 %v12990_v7  ;;  %v6240_v43 = vld [vmem:[%s14128_s8 + $0xa0] sm:$0xff] }
0x1e30   : > { %6177 = vadd.xlane.f32.xlu1 %v6176_v60  ;;  %v6173_v31 = vsel %vm2113_vm6, %v6171_v49, 0.0  ;;  %12993 = vmatprep.subr.bf16.mxu1 %v12992_v10  ;;  %v6241_v49 = vld [vmem:[%s14128_s8 + $0xa8] sm:$0xff] }
0x1e31   : > { %6174 = vadd.xlane.f32.xlu0 %v6173_v31  ;;  %v12996_v60 = vpack.c.bf16 %v6241_v49, %v6240_v43  ;;  %v6224_v31 = vld [vmem:[%s14128_s8 + $0x20] sm:$0xff] }
0x1e32   : > { %v12998_v56 = vpack.c.bf16 %v6225_v26, %v6224_v31 }
0x1ebd   : > { %v6178_v54 = vpop.xlane.xlu1 %6177 }
0x1ebe   : > { %v6180_v34 = vmul.f32 0.015625, %v6178_v54  ;;  %v6175_v30 = vpop.xlane.xlu0 %6174  ;;  %v6233_v54 = vld [vmem:[%s14128_s8 + $0x68] sm:$0xff] }
0x1ebf   : > { %v6179_v55 = vmul.f32 0.015625, %v6175_v30  ;;  %v6250_v30 = vld [vmem:[%s14128_s8 + $0xf0] sm:$0xff] }
0x1ec0   : > { %v6182_v61 = vadd.f32 1e-05, %v6180_v34  ;;  %v13014_v34 = vpack.c.bf16 %v6233_v54, %v6232_v45 }
0x1ec1   : > { %v6181_v58 = vadd.f32 1e-05, %v6179_v55  ;;  %v6251_v55 = vld [vmem:[%s14128_s8 + $0xf8] sm:$0xff] }
0x1ec2   : > { %13643 = vrsqrt.f32 %v6182_v61  ;;  %v13016_v61 = vpack.c.bf16 %v6251_v55, %v6250_v30 }
0x1ec3   : > { %13645 = vrsqrt.f32 %v6181_v58  ;;  %v6234_v58 = vld [vmem:[%s14128_s8 + $0x70] sm:$0xff] }
0x1ecc   : > { %v13644_v2 = vpop.eup %13643 }
0x1ecd   : > { %v13646_v12 = vpop.eup %13645  ;;  %v6186_v25 = vmul.f32 %v13644_v2, %v6170_v35  ;;  %v6223_v35 = vld [vmem:[%s14128_s8 + $0x18] sm:$0xff] }
0x1ece   : > { %v6185_v50 = vmul.f32 %v13646_v12, %v6169_v18  ;;  %v12994_v18 = vpack.c.bf16 %v6223_v35, %v6222_v13  ;;  %v6235_v2 = vld [vmem:[%s14128_s8 + $0x78] sm:$0xff] }
0x1ecf   : > { %v6194_v48 = vmul.f32 %v11375_v57, %v6186_v25  ;;  %v13018_v12 = vpack.c.bf16 %v6235_v2, %v6234_v58 }
0x1ed0   : > { %v6193_v11 = vmul.f32 %v11375_v57, %v6185_v50  ;;  %12995 = vmatpush3.bf16.msra.mxu1 %v12994_v18  ;;  %v6219_v57 = vld [vmem:[%s16031_s27] sm:$0x3]  ;;  %s16034_s27 = sld [smem:[#allocation41_spill]] }
0x1ed1   : > { %v15042_v21 = vadd.f32 %v11376_v8, %v6194_v48  ;;  %12997 = vmatprep.subr.bf16.mxu1 %v12996_v60  ;;  %v6257_v50 = vrot.slane %v6219_v57, %v14213_v15  ;;  %v6261_v25 = vrot.slane %v6219_v57, %v14216_v17 }
0x1ed2   : > { %v15037_v53 = vadd.f32 %v11376_v8, %v6193_v11 }
0x1ed4   : > { %11377 = vmatmul.mubr.msk.f32.vlgmr.msra.gmra.mrb[46].mxu0 %vm2113_vm6, %v15037_v53  ;;  %12999 = vmatpush3.bf16.msra.mxu1 %v12998_v56 }
0x1ed5   : > { %6340 = vmatprep.mubr.f32.mxu0 %v13886_v5  ;;  %13001 = vmatprep.subr.bf16.mxu1 %v13000_v32 }
0x1ed8   : > { %11378 = vmatmul.mubr.msk.f32.gmra.mrb[48].mxu0 %vm2113_vm6, %v15042_v21  ;;  %13003 = vmatpush3.bf16.msra.mxu1 %v13002_v33 }
0x1ed9   : > { %6682 = vmatprep.mubr.f32.mxu0 %v13886_v5  ;;  %13005 = vmatprep.subr.bf16.mxu1 %v13004_v27 }
0x1edc   : > { %13007 = vmatpush3.bf16.msra.mxu1 %v13006_v38 }
0x1edd   : > { %13009 = vmatprep.subr.bf16.mxu1 %v13008_v6 }
0x1ee0   : > { %13011 = vmatpush3.bf16.msra.mxu1 %v13010_v46 }
0x1ee1   : > { %13013 = vmatprep.subr.bf16.mxu1 %v13012_v42 }
0x1ee4   : > { %13015 = vmatpush3.bf16.msra.mxu1 %v13014_v34 }
0x1ee5   : > { %13017 = vmatprep.subr.bf16.mxu1 %v13016_v61 }
0x1ee8   : > { %13019 = vmatpush3.bf16.msra.mxu1 %v13018_v12 }
0x1fa7   : > { %v6336_v8 = vpop.f32.mrb[46].mxu0 }
0x1fa8   : > { %v15082_v11 = vadd.f32 %v6336_v8, %v6257_v50  ;;  %v6338_v48 = vpop.f32.mrb[47].mxu0 }
0x1fa9   : > { %v15084_v3 = vadd.f32 %v6338_v48, %v6261_v25 }
0x1faa   : > { %v15087_v39 = vmul.f32 0.70710677, %v15082_v11 }
0x1fab   : > { %v15090_v1 = vmul.f32 0.70710677, %v15084_v3  ;;  %v6342_v4 = vpop.f32.mrb[48].mxu0 }
0x1fac   : > { %v6351_v52 = vand.u32 2147483647, %v15087_v39  ;;  %v15093_v7 = vadd.f32 %v6342_v4, %v6257_v50  ;;  %v6344_v23 = vpop.f32.mrb[49].mxu0  ;;  %vm6431_vm4 = vcmp.ge.f32.partialorder %v15087_v39, 0.0 }
0x1fad   : > { %v6352_v9 = vand.u32 2147483647, %v15090_v1  ;;  %v15096_v10 = vadd.f32 %v6344_v23, %v6261_v25  ;;  %vm6432_vm5 = vcmp.ge.f32.partialorder %v15090_v1, 0.0 }
0x1fae   : > { %v6355_v13 = vmul.f32 0.3275911, %v6351_v52  ;;  %v15099_v35 = vmul.f32 0.70710677, %v15093_v7  ;;  %v6407_v37 = vsub.f32 0.0, %v6351_v52 }
0x1faf   : > { %v6356_v18 = vmul.f32 0.3275911, %v6352_v9  ;;  %v15102_v43 = vmul.f32 0.70710677, %v15096_v10  ;;  %v6408_v40 = vsub.f32 0.0, %v6352_v9 }
0x1fb0   : > { %v6359_v49 = vadd.f32 1.0, %v6355_v13  ;;  %v6353_v60 = vand.u32 2147483647, %v15099_v35  ;;  %v6411_v47 = vmul.f32 %v6407_v37, %v6351_v52  ;;  %vm6433_vm7 = vcmp.ge.f32.partialorder %v15099_v35, 0.0 }
0x1fb1   : > { %v6360_v31 = vadd.f32 1.0, %v6356_v18  ;;  %v6354_v26 = vand.u32 2147483647, %v15102_v43  ;;  %v6412_v24 = vmul.f32 %v6408_v40, %v6352_v9  ;;  %vm6434_vm8 = vcmp.ge.f32.partialorder %v15102_v43, 0.0 }
0x1fb2   : > { %13647 = vrcp.f32 %v6359_v49  ;;  %v6357_v56 = vmul.f32 0.3275911, %v6353_v60  ;;  %v6409_v36 = vsub.f32 0.0, %v6353_v60  ;;  %v6415_v59 = vmul.f32 1.442695, %v6411_v47 }
0x1fb3   : > { %13649 = vrcp.f32 %v6360_v31  ;;  %v6358_v28 = vmul.f32 0.3275911, %v6354_v26  ;;  %v6410_v38 = vsub.f32 0.0, %v6354_v26  ;;  %v6417_v42 = vmul.f32 1.442695, %v6412_v24 }
0x1fb4   : > { %v6361_v29 = vadd.f32 1.0, %v6357_v56  ;;  %v6413_v20 = vmul.f32 %v6409_v36, %v6353_v60 }
0x1fb5   : > { %v6362_v32 = vadd.f32 1.0, %v6358_v28  ;;  %v6414_v45 = vmul.f32 %v6410_v38, %v6354_v26 }
0x1fb6   : > { %13651 = vrcp.f32 %v6361_v29  ;;  %v6419_v58 = vmul.f32 1.442695, %v6413_v20 }
0x1fb7   : > { %13653 = vrcp.f32 %v6362_v32  ;;  %v6421_v50 = vmul.f32 1.442695, %v6414_v45 }
0x1fb8   : > { %13655 = vpow2.f32 %v6415_v59 }
0x1fb9   : > { %13657 = vpow2.f32 %v6417_v42 }
0x1fba   : > { %13659 = vpow2.f32 %v6419_v58 }
0x1fbb   : > { %13661 = vpow2.f32 %v6421_v50 }
0x1fbc   : > { %v13648_v33 = vpop.eup %13647 }
0x1fbd   : > { %v13650_v27 = vpop.eup %13649  ;;  %v6371_v22 = vmul.f32 1.0614054, %v13648_v33 }
0x1fbe   : > { %v6372_v0 = vmul.f32 1.0614054, %v13650_v27 }
0x1fbf   : > { %v6375_v62 = vadd.f32 -1.4531521, %v6371_v22 }
0x1fc0   : > { %v13652_v6 = vpop.eup %13651  ;;  %v6376_v46 = vadd.f32 -1.4531521, %v6372_v0 }
0x1fc1   : > { %v13654_v16 = vpop.eup %13653  ;;  %v6379_v19 = vmul.f32 %v13648_v33, %v6375_v62  ;;  %v6373_v54 = vmul.f32 1.0614054, %v13652_v6 }
0x1fc2   : > { %v6380_v34 = vmul.f32 %v13650_v27, %v6376_v46  ;;  %v6374_v30 = vmul.f32 1.0614054, %v13654_v16  ;;  %v13656_v37 = vpop.eup %13655 }
0x1fc3   : > { %v6383_v55 = vadd.f32 1.4214138, %v6379_v19  ;;  %v6377_v61 = vadd.f32 -1.4531521, %v6373_v54  ;;  %v13658_v36 = vpop.eup %13657 }
0x1fc4   : > { %v6384_v2 = vadd.f32 1.4214138, %v6380_v34  ;;  %v6378_v12 = vadd.f32 -1.4531521, %v6374_v30  ;;  %v13660_v20 = vpop.eup %13659 }
0x1fc5   : > { %v6387_v57 = vmul.f32 %v13648_v33, %v6383_v55  ;;  %v6381_v25 = vmul.f32 %v13652_v6, %v6377_v61  ;;  %v13662_v42 = vpop.eup %13661 }
0x1fc6   : > { %v6388_v8 = vmul.f32 %v13650_v27, %v6384_v2  ;;  %v6382_v48 = vmul.f32 %v13654_v16, %v6378_v12  ;;  %v6444_v2 = vmul.f32 0.5, %v15084_v3  ;;  %v6445_v3 = vmul.f32 0.5, %v15093_v7 }
0x1fc7   : > { %v6391_v4 = vadd.f32 -0.28449672, %v6387_v57  ;;  %v6385_v52 = vadd.f32 1.4214138, %v6381_v25 }
0x1fc8   : > { %v6392_v23 = vadd.f32 -0.28449672, %v6388_v8  ;;  %v6386_v9 = vadd.f32 1.4214138, %v6382_v48  ;;  %v6446_v48 = vmul.f32 0.5, %v15096_v10 }
0x1fc9   : > { %v6395_v13 = vmul.f32 %v13648_v33, %v6391_v4  ;;  %v6389_v18 = vmul.f32 %v13652_v6, %v6385_v52 }
0x1fca   : > { %v6396_v49 = vmul.f32 %v13650_v27, %v6392_v23  ;;  %v6390_v60 = vmul.f32 %v13654_v16, %v6386_v9  ;;  %v11379_v23 = vld [vmem:[%s16032_s3] ss:$0 sm:$0xff]  ;;  %s16033_s3 = sld [smem:[#allocation40_spill]] }
0x1fcb   : > { %v6399_v31 = vadd.f32 0.2548296, %v6395_v13  ;;  %v6393_v26 = vadd.f32 -0.28449672, %v6389_v18 }
0x1fcc   : > { %v6400_v56 = vadd.f32 0.2548296, %v6396_v49  ;;  %v6394_v28 = vadd.f32 -0.28449672, %v6390_v60 }
0x1fcd   : > { %v6403_v29 = vmul.f32 %v13648_v33, %v6399_v31  ;;  %v6397_v32 = vmul.f32 %v13652_v6, %v6393_v26 }
0x1fce   : > { %v6404_v40 = vmul.f32 %v13650_v27, %v6400_v56  ;;  %v6398_v47 = vmul.f32 %v13654_v16, %v6394_v28 }
0x1fcf   : > { %v6423_v22 = vmul.f32 %v13656_v37, %v6403_v29  ;;  %v6401_v24 = vadd.f32 0.2548296, %v6397_v32 }
0x1fd0   : > { %v6424_v38 = vmul.f32 %v13658_v36, %v6404_v40  ;;  %v6402_v0 = vadd.f32 0.2548296, %v6398_v47 }
0x1fd1   : > { %v6427_v62 = vsub.f32 1.0, %v6423_v22  ;;  %v6405_v59 = vmul.f32 %v13652_v6, %v6401_v24  ;;  %v11383_v24 = vld [vmem:[%s14038_s21 + $0x88] sm:$0xff] }
0x1fd2   : > { %v6428_v46 = vsub.f32 1.0, %v6424_v38  ;;  %v6406_v19 = vmul.f32 %v13654_v16, %v6402_v0  ;;  %v6443_v16 = vmul.f32 0.5, %v15082_v11  ;;  %v11385_v38 = vld [vmem:[%s14038_s21 + $0x98] sm:$0xff] }
0x1fd3   : > { %v6435_v45 = vsub.f32 0.0, %v6427_v62  ;;  %v6425_v54 = vmul.f32 %v13660_v20, %v6405_v59  ;;  %v13020_v0 = vpack.c.bf16 %v11385_v38, %v11383_v24  ;;  %v11384_v59 = vld [vmem:[%s14038_s21 + $0x90] sm:$0xff] }
0x1fd4   : > { %v6436_v33 = vsub.f32 0.0, %v6428_v46  ;;  %v6426_v34 = vmul.f32 %v13662_v42, %v6406_v19  ;;  %v11389_v19 = vld [vmem:[%s14038_s21 + $0xb8] sm:$0xff] }
0x1fd5   : > { %v6439_v30 = vsel %vm6431_vm4, %v6427_v62, %v6435_v45  ;;  %v6429_v27 = vsub.f32 1.0, %v6425_v54  ;;  %v11382_v62 = vld [vmem:[%s14038_s21 + $0x80] sm:$0xff]  ;;  %13021 = vmatprep.subr.bf16.mxu0 %v13020_v0  ;;  %v11388_v54 = vld [vmem:[%s14038_s21 + $0xb0] sm:$0xff] }
0x1fd6   : > { %v6447_v55 = vadd.f32 1.0, %v6439_v30  ;;  %v6440_v61 = vsel %vm6432_vm5, %v6428_v46, %v6436_v33  ;;  %v6430_v58 = vsub.f32 1.0, %v6426_v34  ;;  %v13022_v20 = vpack.c.bf16 %v11384_v59, %v11382_v62  ;;  %v11387_v46 = vld [vmem:[%s14038_s21 + $0xa8] sm:$0xff]  ;;  %v11386_v45 = vld [vmem:[%s14038_s21 + $0xa0] sm:$0xff]  ;;  %v11393_v30 = vld [vmem:[%s14038_s21 + $0xd8] sm:$0xff] }
0x1fd7   : > { %v6448_v6 = vadd.f32 1.0, %v6440_v61  ;;  %v6437_v12 = vsub.f32 0.0, %v6429_v27  ;;  %v13024_v42 = vpack.c.bf16 %v11389_v19, %v11387_v46  ;;  %v13026_v33 = vpack.c.bf16 %v11388_v54, %v11386_v45  ;;  %v11391_v34 = vld [vmem:[%s14038_s21 + $0xc8] sm:$0xff]  ;;  %v11392_v61 = vld [vmem:[%s14038_s21 + $0xd0] sm:$0xff]  ;;  %v15178_v46 = vld [vmem:[%s14438_s2] ss:$0 sm:$0xff] }
0x1fd8   : > { %v6438_v57 = vsub.f32 0.0, %v6430_v58  ;;  %v6451_v25 = vmul.f32 %v6447_v55, %v6443_v16  ;;  %13023 = vmatpush1.bf16.msra.mxu0 %v13022_v20  ;;  %v11390_v55 = vld [vmem:[%s14038_s21 + $0xc0] sm:$0xff]  ;;  %s16035_s2 = sld [smem:[#allocation31_spill]] }
0x1fd9   : > { %v6452_v39 = vmul.f32 %v6448_v6, %v6444_v2  ;;  %v6441_v50 = vsel %vm6433_vm7, %v6429_v27, %v6437_v12  ;;  %13025 = vmatprep.subr.bf16.mxu0 %v13024_v42  ;;  %v13028_v27 = vpack.c.bf16 %v11393_v30, %v11391_v34  ;;  %v11395_v2 = vld [vmem:[%s14038_s21 + $0xe8] sm:$0xff]  ;;  %v11397_v6 = vld [vmem:[%s14038_s21 + $0xf8] sm:$0xff]  ;;  %v11394_v16 = vld [vmem:[%s14038_s21 + $0xe0] sm:$0xff] }
0x1fda   : > { %v6442_v1 = vsel %vm6434_vm8, %v6430_v58, %v6438_v57  ;;  %v6449_v8 = vadd.f32 1.0, %v6441_v50  ;;  %v13030_v58 = vpack.c.bf16 %v11392_v61, %v11390_v55  ;;  %v13032_v12 = vpack.c.bf16 %v11397_v6, %v11395_v2  ;;  %v11396_v57 = vld [vmem:[%s14038_s21 + $0xf0] sm:$0xff] }
0x1fdb   : > { %6525 = vmatprep.mubr.f32.mxu1 %v6452_v39  ;;  %v6450_v4 = vadd.f32 1.0, %v6442_v1  ;;  %v13034_v39 = vpack.c.bf16 %v11396_v57, %v11394_v16 }
0x1fdc   : > { %6526 = vmatmul.mubr.f32.vlgmr.msra.gmra.mrb[46].mxu1 %v6451_v25  ;;  %v6453_v11 = vmul.f32 %v6449_v8, %v6445_v3  ;;  %13027 = vmatpush1.bf16.msra.mxu0 %v13026_v33 }
0x1fdd   : > { %v6454_v52 = vmul.f32 %v6450_v4, %v6446_v48  ;;  %13029 = vmatprep.subr.bf16.mxu0 %v13028_v27 }
0x1fdf   : > { %6530 = vmatprep.mubr.f32.mxu1 %v6454_v52  ;;  %v11380_v52 = vld [vmem:[%s16033_s3] ss:$0 sm:$0xff] }
0x1fe0   : > { %6531 = vmatmul.mubr.f32.gmra.mrb[48].mxu1 %v6453_v11  ;;  %13031 = vmatpush1.bf16.msra.mxu0 %v13030_v58 }
0x1fe1   : > { %13033 = vmatprep.subr.bf16.mxu0 %v13032_v12 }
0x1fe4   : > { %13035 = vmatpush1.bf16.msra.mxu0 %v13034_v39 }
0x20af   : > { %v11903_v35 = vpop.f32.mrb[46].mxu1 }
0x20b0   : > { %v11904_v43 = vpop.f32.mrb[47].mxu1 }
0x20b1   : > { %v11905_v9 = vadd.f32 %v11904_v43, %v11903_v35  ;;  %v11381_v35 = vld [vmem:[%s16034_s27] ss:$0 sm:$0xff] }
0x20b3   : > { %v6528_v13 = vadd.f32 %v11905_v9, %v11379_v23  ;;  %v11906_v18 = vpop.f32.mrb[48].mxu1 }
0x20b4   : > { %v11907_v49 = vpop.f32.mrb[49].mxu1 }
0x20b5   : > { %v11908_v60 = vadd.f32 %v11907_v49, %v11906_v18  ;;  %v6536_v31 = vadd.f32 %v6528_v13, %v15037_v53 }
0x20b7   : > { %v6533_v10 = vadd.f32 %v11908_v60, %v11379_v23  ;;  %v6540_v26 = vsel %vm2113_vm6, %v6536_v31, 0.0  ;;  %v11398_v60 = vld [vmem:[%s15992_s28 + $0x2] sm:$0x3] }
0x20b8   : > { %6541 = vadd.xlane.f32.xlu0 %v6540_v26 }
0x20b9   : > { %v6537_v7 = vadd.f32 %v6533_v10, %v15042_v21 }
0x20bb   : > { %v6543_v56 = vsel %vm2113_vm6, %v6537_v7, 0.0 }
0x20bc   : > { %6544 = vadd.xlane.f32.xlu1 %v6543_v56  ;;  %v6609_v56 = vrot.slane %v11398_v60, %v14216_v17 }
0x2145   : > { %v6542_v28 = vpop.xlane.xlu0 %6541 }
0x2146   : > { %v6546_v29 = vmul.f32 0.015625, %v6542_v28 }
0x2148   : > { %v6548_v32 = vsub.f32 %v6536_v31, %v6546_v29  ;;  %v6605_v31 = vrot.slane %v11398_v60, %v14213_v15 }
0x2149   : > { %v6545_v37 = vpop.xlane.xlu1 %6544 }
0x214a   : > { %v6547_v40 = vmul.f32 0.015625, %v6545_v37  ;;  %v6550_v53 = vmul.f32 %v6548_v32, %v6548_v32 }
0x214c   : > { %v6549_v47 = vsub.f32 %v6537_v7, %v6547_v40  ;;  %v6552_v36 = vsel %vm2113_vm6, %v6550_v53, 0.0 }
0x214d   : > { %6553 = vadd.xlane.f32.xlu0 %v6552_v36 }
0x214e   : > { %v6551_v21 = vmul.f32 %v6549_v47, %v6549_v47 }
0x2150   : > { %v6555_v22 = vsel %vm2113_vm6, %v6551_v21, 0.0 }
0x2151   : > { %6556 = vadd.xlane.f32.xlu1 %v6555_v22 }
0x21da   : > { %v6554_v50 = vpop.xlane.xlu0 %6553 }
0x21db   : > { %v6558_v25 = vmul.f32 0.015625, %v6554_v50 }
0x21dd   : > { %v6560_v1 = vadd.f32 1e-05, %v6558_v25 }
0x21de   : > { %v6557_v8 = vpop.xlane.xlu1 %6556 }
0x21df   : > { %13663 = vrsqrt.f32 %v6560_v1  ;;  %v6559_v48 = vmul.f32 0.015625, %v6557_v8 }
0x21e1   : > { %v6561_v4 = vadd.f32 1e-05, %v6559_v48 }
0x21e3   : > { %13665 = vrsqrt.f32 %v6561_v4 }
0x21e9   : > { %v13664_v3 = vpop.eup %13663 }
0x21ea   : > { %v6564_v11 = vmul.f32 %v13664_v3, %v6548_v32 }
0x21ec   : > { %v6572_v23 = vmul.f32 %v11380_v52, %v6564_v11 }
0x21ed   : > { %v13666_v43 = vpop.eup %13665 }
0x21ee   : > { %v15139_v9 = vadd.f32 %v11381_v35, %v6572_v23  ;;  %v6565_v13 = vmul.f32 %v13666_v43, %v6549_v47 }
0x21f0   : > { %11399 = vmatmul.mubr.msk.f32.vlgmr.msra.gmra.mrb[50].mxu0 %vm2113_vm6, %v15139_v9  ;;  %v6573_v18 = vmul.f32 %v11380_v52, %v6565_v13 }
0x21f1   : > { %6688 = vmatprep.mubr.f32.mxu0 %v13886_v5 }
0x21f2   : > { %v15144_v49 = vadd.f32 %v11381_v35, %v6573_v18 }
0x21f4   : > { %11400 = vmatmul.mubr.msk.f32.gmra.mrb[52].mxu0 %vm2113_vm6, %v15144_v49 }
0x22c3   : > { %v6684_v10 = vpop.f32.mrb[50].mxu0 }
0x22c4   : > { %v6685_v26 = vadd.f32 %v6684_v10, %v6605_v31  ;;  %v6686_v7 = vpop.f32.mrb[51].mxu0 }
0x22c5   : > { %v6687_v40 = vadd.f32 %v6686_v7, %v6609_v56 }
0x22c6   : > { %v15151_v28 = vmul.f32 0.35355338, %v6685_v26 }
0x22c7   : > { %v6690_v29 = vpop.f32.mrb[52].mxu0 }
0x22c8   : > { %v6691_v32 = vadd.f32 %v6690_v29, %v6605_v31  ;;  %v6692_v37 = vpop.f32.mrb[53].mxu0  ;;  %12390 = vmatprep.mubr.msk.f32.mxu0 %vm2450_vm11, %v15151_v28 }
0x22c9   : > { %v6693_v53 = vadd.f32 %v6692_v37, %v6609_v56 }
0x22ca   : > { %v15155_v47 = vpack.i.bf16 %v6691_v32, %v6685_v26  ;;  %v15165_v22 = vmul.f32 0.35355338, %v6691_v32 }
0x22cb   : > { %v13042_v36 = vpack.c.bf16 %v6693_v53, %v6687_v40  ;;  %v15157_v21 = vpack.i.bf16 %v6693_v53, %v6687_v40 }
0x22cc   : > { %13405 = vrot.lane.b32.xlu0 %v15155_v47, %s16019_s25 }
0x22d0   : > { %6891 = vrot.lane.b32.xlu0 %v15151_v28, %s16010_s6 }
0x22d4   : > { %13415 = vrot.lane.b32.xlu0 %v15155_v47, %s16020_s12 }
0x22d8   : > { %6893 = vrot.lane.b32.xlu0 %v15165_v22, %s16010_s6 }
0x22dc   : > { %7093 = vrot.lane.b32.xlu0 %v15151_v28, %s16011_s9 }
0x233e   : > { %v13406_v24 = vpop.permute.xlu0 %13405 }
0x233f   : > { %v13408_v38 = vunpack.i.h.bf16 %v13406_v24  ;;  %v13407_v0 = vunpack.i.l.bf16 %v13406_v24 }
0x2341   : > { %v13036_v62 = vpack.c.bf16 %v13408_v38, %v13407_v0 }
0x2342   : > { %v6892_v39 = vpop.permute.xlu0 %6891 }
0x2343   : > { %13038 = vmatprep.subr.msk.bf16.mxu0 %vm14421_vm12, %v13036_v62 }
0x2344   : > { %13041 = vmatpush3.bf16.xpose.msk.msra.mxu0 %vm14421_vm12, %v13036_v62 }
0x2345   : > { %13043 = vmatprep.subr.bf16.mxu0 %v13042_v36 }
0x2346   : > { %v13416_v48 = vpop.permute.xlu0 %13415 }
0x2347   : > { %v13418_v52 = vunpack.i.h.bf16 %v13416_v48  ;;  %v13417_v11 = vunpack.i.l.bf16 %v13416_v48 }
0x2349   : > { %v13056_v43 = vpack.c.bf16 %v13418_v52, %v13417_v11 }
0x234a   : > { %v6894_v13 = vpop.permute.xlu0 %6893 }
0x234b   : > { %12391 = vmatmul.mubr.msk.f32.vlgmr.msra.gmra.mrb[54].mxu0 %vm2450_vm11, %v15165_v22 }
0x234c   : > { %13045 = vmatpush3.bf16.msra.mxu0 %v13042_v36 }
0x234e   : > { %v7094_v18 = vpop.permute.xlu0 %7093 }
0x241e   : > { %v12392_v59 = vpop.f32.mrb[54].mxu0 }
0x241f   : > { %v6779_v20 = vpop.f32.mrb[55].mxu0  ;;  %v6785_v42 = vadd.f32 %v15178_v46, %v12392_v59 }
0x2420   : > { %v6780_v19 = vadd.f32 %v15178_v46, %v6779_v20 }
0x2421   : > { %v6791_v54 = vsel %vm1503_vm0, %v6785_v42, -inf }
0x2422   : > { %v6788_v45 = vsel %vm1503_vm0, %v6780_v19, -inf }
0x2423   : > { %6789 = vmax.xlane.f32.xlu1 %v6788_v45 }
0x2427   : > { %6792 = vmax.xlane.f32.xlu1 %v6791_v54 }
0x24b0   : > { %v6790_v33 = vpop.xlane.xlu1 %6789 }
0x24b1   : > { %v6794_v34 = vsub.f32 %v6780_v19, %v6790_v33 }
0x24b3   : > { %v6796_v55 = vmul.f32 1.442695, %v6794_v34 }
0x24b4   : > { %v6793_v30 = vpop.xlane.xlu1 %6792 }
0x24b5   : > { %v6795_v27 = vsub.f32 %v6785_v42, %v6793_v30 }
0x24b7   : > { %v6798_v61 = vmul.f32 1.442695, %v6795_v27 }
0x24b9   : > { %13667 = vpow2.f32 %v6798_v61 }
0x24ba   : > { %13669 = vpow2.f32 %v6796_v55 }
0x24c3   : > { %v13668_v58 = vpop.eup %13667 }
0x24c4   : > { %v6803_v2 = vsel %vm1503_vm0, %v13668_v58, 0.0  ;;  %v13670_v6 = vpop.eup %13669 }
0x24c5   : > { %6804 = vadd.xlane.f32.xlu1 %v6803_v2  ;;  %v6800_v12 = vsel %vm1503_vm0, %v13670_v6, 0.0 }
0x24c9   : > { %6801 = vadd.xlane.f32.xlu1 %v6800_v12 }
0x24da   : > { %13410 = vrot.lane.b32.xlu1 %v15155_v47, %s16000_s1 }
0x24de   : > { %7095 = vrot.lane.b32.xlu1 %v15165_v22, %s16011_s9 }
0x2552   : > { %v6805_v16 = vpop.xlane.xlu1 %6804 }
0x2553   : > { %13671 = vrcp.f32 %v6805_v16 }
0x2556   : > { %v6802_v57 = vpop.xlane.xlu1 %6801 }
0x2557   : > { %13673 = vrcp.f32 %v6802_v57 }
0x255a   : > { %v13411_v50 = vpop.permute.xlu1 %13410 }
0x255b   : > { %v13413_v25 = vunpack.i.h.bf16 %v13411_v50  ;;  %v13412_v1 = vunpack.i.l.bf16 %v13411_v50 }
0x255d   : > { %v13046_v8 = vpack.c.bf16 %v13413_v25, %v13412_v1  ;;  %v13672_v4 = vpop.eup %13671 }
0x255e   : > { %v6809_v23 = vmul.f32 %v13672_v4, %v13668_v58  ;;  %v7096_v60 = vpop.permute.xlu1 %7095 }
0x255f   : > { %13048 = vmatprep.subr.msk.bf16.mxu0 %vm14421_vm12, %v13046_v8 }
0x2561   : > { %v13674_v3 = vpop.eup %13673 }
0x2562   : > { %v6808_v35 = vmul.f32 %v13674_v3, %v13670_v6 }
0x2564   : > { %12397 = vmatprep.mubr.msk.f32.mxu0 %vm1503_vm0, %v6808_v35 }
0x2565   : > { %12398 = vmatmul.mubr.msk.f32.vlgmr.msra.gmra.mrb[56].mxu0 %vm1503_vm0, %v6809_v23 }
0x2566   : > { %13051 = vmatpush3.bf16.xpose.msk.msra.mxu0 %vm14421_vm12, %v13046_v8  ;;  %12404 = vmatprep.mubr.msk.f32.mxu0 %vm2450_vm11, %v6892_v39 }
0x2567   : > { %13058 = vmatprep.subr.msk.bf16.mxu0 %vm14421_vm12, %v13056_v43 }
0x256d   : > { %12405 = vmatmul.mubr.msk.f32.vlgmr.msra.gmra.mrb[58].mxu0 %vm2450_vm11, %v6894_v13 }
0x256e   : > { %13061 = vmatpush3.bf16.xpose.msk.msra.mxu0 %vm14421_vm12, %v13056_v43  ;;  %12418 = vmatprep.mubr.msk.f32.mxu0 %vm2450_vm11, %v7094_v18 }
0x2575   : > { %12419 = vmatmul.mubr.msk.f32.vlgmr.msra.gmra.mrb[60].mxu0 %vm2450_vm11, %v7096_v60 }
0x2638   : > { %v15204_v31 = vpop.f32.mrb[56].mxu0 }
0x2639   : > { %v15206_v10 = vpop.f32.mrb[57].mxu0 }
0x2640   : > { %v12406_v26 = vpop.f32.mrb[58].mxu0 }
0x2641   : > { %v6979_v7 = vadd.f32 %v15178_v46, %v12406_v26  ;;  %v6973_v56 = vpop.f32.mrb[59].mxu0 }
0x2642   : > { %v6974_v29 = vadd.f32 %v15178_v46, %v6973_v56 }
0x2643   : > { %v6985_v32 = vsel %vm1503_vm0, %v6979_v7, -inf }
0x2644   : > { %6986 = vmax.xlane.f32.xlu1 %v6985_v32  ;;  %v6982_v37 = vsel %vm1503_vm0, %v6974_v29, -inf }
0x2645   : > { %6983 = vmax.xlane.f32.xlu0 %v6982_v37 }
0x2648   : > { %v12420_v40 = vpop.f32.mrb[60].mxu0 }
0x2649   : > { %v7175_v53 = vpop.f32.mrb[61].mxu0  ;;  %v7181_v24 = vadd.f32 %v15178_v46, %v12420_v40 }
0x264a   : > { %v7176_v36 = vadd.f32 %v15178_v46, %v7175_v53 }
0x264b   : > { %v7187_v0 = vsel %vm1503_vm0, %v7181_v24, -inf }
0x264c   : > { %v7184_v38 = vsel %vm1503_vm0, %v7176_v36, -inf }
0x264d   : > { %7185 = vmax.xlane.f32.xlu0 %v7184_v38 }
0x2651   : > { %7188 = vmax.xlane.f32.xlu0 %v7187_v0 }
0x2655   : > { %13420 = vrot.lane.b32.xlu1 %v15157_v21, %s16010_s6 }
0x26d1   : > { %v6987_v62 = vpop.xlane.xlu1 %6986 }
0x26d2   : > { %v6989_v59 = vsub.f32 %v6979_v7, %v6987_v62  ;;  %v6984_v20 = vpop.xlane.xlu0 %6983 }
0x26d3   : > { %v6988_v19 = vsub.f32 %v6974_v29, %v6984_v20 }
0x26d4   : > { %v6992_v42 = vmul.f32 1.442695, %v6989_v59 }
0x26d5   : > { %v6990_v45 = vmul.f32 1.442695, %v6988_v19  ;;  %v13421_v54 = vpop.permute.xlu1 %13420 }
0x26d6   : > { %13675 = vpow2.f32 %v6992_v42  ;;  %v13423_v33 = vunpack.i.h.bf16 %v13421_v54  ;;  %v13422_v34 = vunpack.i.l.bf16 %v13421_v54 }
0x26d7   : > { %13677 = vpow2.f32 %v6990_v45 }
0x26d8   : > { %v13052_v30 = vpack.c.bf16 %v13423_v33, %v13422_v34 }
0x26da   : > { %13053 = vmatprep.subr.bf16.mxu1 %v13052_v30  ;;  %v7186_v27 = vpop.xlane.xlu0 %7185 }
0x26db   : > { %13055 = vmatpush3.bf16.msra.mxu1 %v13052_v30  ;;  %v7190_v50 = vsub.f32 %v7176_v36, %v7186_v27 }
0x26dd   : > { %v7192_v25 = vmul.f32 1.442695, %v7190_v50 }
0x26de   : > { %v7189_v55 = vpop.xlane.xlu0 %7188 }
0x26df   : > { %v7191_v61 = vsub.f32 %v7181_v24, %v7189_v55 }
0x26e0   : > { %v13676_v58 = vpop.eup %13675 }
0x26e1   : > { %v13678_v2 = vpop.eup %13677  ;;  %v7194_v6 = vmul.f32 1.442695, %v7191_v61  ;;  %v6997_v12 = vsel %vm1503_vm0, %v13676_v58, 0.0 }
0x26e2   : > { %6998 = vadd.xlane.f32.xlu0 %v6997_v12  ;;  %v6994_v16 = vsel %vm1503_vm0, %v13678_v2, 0.0 }
0x26e3   : > { %13679 = vpow2.f32 %v7194_v6  ;;  %6995 = vadd.xlane.f32.xlu1 %v6994_v16 }
0x26e4   : > { %13681 = vpow2.f32 %v7192_v25 }
0x26ed   : > { %v13680_v57 = vpop.eup %13679 }
0x26ee   : > { %v7199_v39 = vsel %vm1503_vm0, %v13680_v57, 0.0  ;;  %v13682_v1 = vpop.eup %13681 }
0x26ef   : > { %7200 = vadd.xlane.f32.xlu0 %v7199_v39  ;;  %v7196_v8 = vsel %vm1503_vm0, %v13682_v1, 0.0 }
0x26f4   : > { %13430 = vrot.lane.b32.xlu1 %v15155_v47, %s16023_s30 }
0x2705   : > { %13425 = vrot.lane.b32.xlu0 %v15157_v21, %s16011_s9 }
0x2709   : > { %7295 = vrot.lane.b32.xlu0 %v15165_v22, %s16013_s13 }
0x2718   : > { %7197 = vadd.xlane.f32.xlu1 %v7196_v8 }
0x2729   : > { %7293 = vrot.lane.b32.xlu1 %v15151_v28, %s16013_s13 }
0x276f   : > { %v6999_v48 = vpop.xlane.xlu0 %6998 }
0x2770   : > { %13683 = vrcp.f32 %v6999_v48  ;;  %v6996_v4 = vpop.xlane.xlu1 %6995 }
0x2771   : > { %13685 = vrcp.f32 %v6996_v4 }
0x2774   : > { %v13431_v43 = vpop.permute.xlu1 %13430 }
0x2775   : > { %v13433_v18 = vunpack.i.h.bf16 %v13431_v43  ;;  %v13432_v60 = vunpack.i.l.bf16 %v13431_v43 }
0x2777   : > { %v13066_v29 = vpack.c.bf16 %v13433_v18, %v13432_v60 }
0x277a   : > { %v13684_v3 = vpop.eup %13683 }
0x277b   : > { %v13686_v52 = vpop.eup %13685  ;;  %v7003_v23 = vmul.f32 %v13684_v3, %v13676_v58 }
0x277c   : > { %v7201_v11 = vpop.xlane.xlu0 %7200  ;;  %v7002_v35 = vmul.f32 %v13686_v52, %v13678_v2 }
0x277d   : > { %13687 = vrcp.f32 %v7201_v11 }
0x277e   : > { %12411 = vmatprep.mubr.msk.f32.mxu1 %vm1503_vm0, %v7002_v35 }
0x277f   : > { %12412 = vmatmul.mubr.msk.f32.vlgmr.msra.gmra.mrb[50].mxu1 %vm1503_vm0, %v7003_v23 }
0x2780   : > { %v13426_v13 = vpop.permute.xlu0 %13425 }
0x2781   : > { %v13428_v26 = vunpack.i.h.bf16 %v13426_v13  ;;  %v13427_v7 = vunpack.i.l.bf16 %v13426_v13 }
0x2783   : > { %v13062_v56 = vpack.c.bf16 %v13428_v26, %v13427_v7 }
0x2784   : > { %v7296_v38 = vpop.permute.xlu0 %7295 }
0x2785   : > { %13063 = vmatprep.subr.bf16.mxu1 %v13062_v56 }
0x2786   : > { %13065 = vmatpush3.bf16.msra.mxu1 %v13062_v56 }
0x2787   : > { %13068 = vmatprep.subr.msk.bf16.mxu1 %vm14421_vm12, %v13066_v29  ;;  %v13688_v37 = vpop.eup %13687 }
0x2788   : > { %v7205_v36 = vmul.f32 %v13688_v37, %v13680_v57 }
0x27a5   : > { %v7198_v32 = vpop.xlane.xlu1 %7197 }
0x27a6   : > { %13689 = vrcp.f32 %v7198_v32 }
0x27a9   : > { %v7294_v24 = vpop.permute.xlu1 %7293 }
0x27b0   : > { %v13690_v40 = vpop.eup %13689 }
0x27b1   : > { %v7204_v53 = vmul.f32 %v13690_v40, %v13682_v1 }
0x27b3   : > { %12425 = vmatprep.mubr.msk.f32.mxu1 %vm1503_vm0, %v7204_v53 }
0x27b4   : > { %12426 = vmatmul.mubr.msk.f32.vlgmr.msra.gmra.mrb[52].mxu1 %vm1503_vm0, %v7205_v36 }
0x27b5   : > { %13071 = vmatpush3.bf16.xpose.msk.msra.mxu1 %vm14421_vm12, %v13066_v29  ;;  %12432 = vmatprep.mubr.msk.f32.mxu1 %vm2450_vm11, %v7294_v24 }
0x27bc   : > { %12433 = vmatmul.mubr.msk.f32.vlgmr.msra.gmra.mrb[54].mxu1 %vm2450_vm11, %v7296_v38 }
0x2852   : > { %v15240_v0 = vpop.f32.mrb[50].mxu1 }
0x2853   : > { %v15242_v62 = vpop.f32.mrb[51].mxu1 }
0x2887   : > { %v15244_v59 = vpop.f32.mrb[52].mxu1 }
0x2888   : > { %v15246_v20 = vpop.f32.mrb[53].mxu1 }
0x288f   : > { %v12434_v19 = vpop.f32.mrb[54].mxu1 }
0x2890   : > { %v7381_v42 = vadd.f32 %v15178_v46, %v12434_v19  ;;  %v7375_v45 = vpop.f32.mrb[55].mxu1 }
0x2891   : > { %v7376_v54 = vadd.f32 %v15178_v46, %v7375_v45 }
0x2892   : > { %v7387_v33 = vsel %vm1503_vm0, %v7381_v42, -inf }
0x2893   : > { %7388 = vmax.xlane.f32.xlu0 %v7387_v33  ;;  %v7384_v34 = vsel %vm1503_vm0, %v7376_v54, -inf }
0x2894   : > { %7385 = vmax.xlane.f32.xlu1 %v7384_v34 }
0x2920   : > { %v7389_v30 = vpop.xlane.xlu0 %7388 }
0x2921   : > { %v7391_v27 = vsub.f32 %v7381_v42, %v7389_v30  ;;  %v7386_v55 = vpop.xlane.xlu1 %7385 }
0x2922   : > { %v7390_v61 = vsub.f32 %v7376_v54, %v7386_v55 }
0x2923   : > { %v7394_v58 = vmul.f32 1.442695, %v7391_v27 }
0x2924   : > { %v7392_v2 = vmul.f32 1.442695, %v7390_v61 }
0x2925   : > { %13691 = vpow2.f32 %v7394_v58 }
0x2926   : > { %13693 = vpow2.f32 %v7392_v2 }
0x292f   : > { %v13692_v6 = vpop.eup %13691 }
0x2930   : > { %v13694_v12 = vpop.eup %13693  ;;  %v7399_v16 = vsel %vm1503_vm0, %v13692_v6, 0.0 }
0x2931   : > { %7400 = vadd.xlane.f32.xlu1 %v7399_v16  ;;  %v7396_v57 = vsel %vm1503_vm0, %v13694_v12, 0.0 }
0x2932   : > { %7397 = vadd.xlane.f32.xlu0 %v7396_v57 }
0x2942   : > { %13440 = vrot.lane.b32.xlu1 %v15155_v47, %s16024_s7 }
0x2946   : > { %7493 = vrot.lane.b32.xlu1 %v15151_v28, %s16014_s14 }
0x2948   : > { %13435 = vrot.lane.b32.xlu0 %v15157_v21, %s16013_s13 }
0x294c   : > { %7495 = vrot.lane.b32.xlu0 %v15165_v22, %s16014_s14 }
0x29be   : > { %v7401_v39 = vpop.xlane.xlu1 %7400 }
0x29bf   : > { %13695 = vrcp.f32 %v7401_v39  ;;  %v7398_v50 = vpop.xlane.xlu0 %7397 }
0x29c0   : > { %13697 = vrcp.f32 %v7398_v50 }
0x29c2   : > { %v13441_v25 = vpop.permute.xlu1 %13440 }
0x29c3   : > { %v13436_v1 = vpop.permute.xlu0 %13435  ;;  %v13443_v8 = vunpack.i.h.bf16 %v13441_v25  ;;  %v13442_v48 = vunpack.i.l.bf16 %v13441_v25 }
0x29c4   : > { %v13438_v4 = vunpack.i.h.bf16 %v13436_v1  ;;  %v13437_v3 = vunpack.i.l.bf16 %v13436_v1 }
0x29c5   : > { %v13076_v11 = vpack.c.bf16 %v13443_v8, %v13442_v48 }
0x29c6   : > { %v13072_v52 = vpack.c.bf16 %v13438_v4, %v13437_v3  ;;  %v7494_v18 = vpop.permute.xlu1 %7493 }
0x29c7   : > { %v7496_v60 = vpop.permute.xlu0 %7495 }
0x29c8   : > { %13073 = vmatprep.subr.bf16.mxu0 %v13072_v52 }
0x29c9   : > { %v13696_v35 = vpop.eup %13695  ;;  %13075 = vmatpush3.bf16.msra.mxu0 %v13072_v52 }
0x29ca   : > { %v13698_v23 = vpop.eup %13697  ;;  %13078 = vmatprep.subr.msk.bf16.mxu0 %vm14421_vm12, %v13076_v11  ;;  %v7405_v13 = vmul.f32 %v13696_v35, %v13692_v6 }
0x29cb   : > { %v7404_v43 = vmul.f32 %v13698_v23, %v13694_v12 }
0x29cd   : > { %12439 = vmatprep.mubr.msk.f32.mxu0 %vm1503_vm0, %v7404_v43 }
0x29ce   : > { %12440 = vmatmul.mubr.msk.f32.vlgmr.msra.gmra.mrb[62].mxu0 %vm1503_vm0, %v7405_v13 }
0x29cf   : > { %12446 = vmatprep.mubr.msk.f32.mxu0 %vm2450_vm11, %v7494_v18 }
0x29d2   : > { %13081 = vmatpush3.bf16.xpose.msk.msra.mxu0 %vm14421_vm12, %v13076_v11 }
0x29d9   : > { %12447 = vmatmul.mubr.msk.f32.vlgmr.msra.gmra.mrb[64].mxu0 %vm2450_vm11, %v7496_v60 }
0x2aa1   : > { %v15270_v26 = vpop.f32.mrb[62].mxu0 }
0x2aa2   : > { %v15272_v7 = vpop.f32.mrb[63].mxu0 }
0x2aac   : > { %v12448_v56 = vpop.f32.mrb[64].mxu0 }
0x2aad   : > { %v7581_v29 = vadd.f32 %v15178_v46, %v12448_v56  ;;  %v7575_v32 = vpop.f32.mrb[65].mxu0 }
0x2aae   : > { %v7576_v37 = vadd.f32 %v15178_v46, %v7575_v32 }
0x2aaf   : > { %v7587_v40 = vsel %vm1503_vm0, %v7581_v29, -inf }
0x2ab0   : > { %7588 = vmax.xlane.f32.xlu0 %v7587_v40  ;;  %v7584_v53 = vsel %vm1503_vm0, %v7576_v37, -inf }
0x2ab1   : > { %7585 = vmax.xlane.f32.xlu1 %v7584_v53 }
0x2b3d   : > { %v7589_v36 = vpop.xlane.xlu0 %7588 }
0x2b3e   : > { %v7591_v24 = vsub.f32 %v7581_v29, %v7589_v36  ;;  %v7586_v38 = vpop.xlane.xlu1 %7585 }
0x2b3f   : > { %v7590_v19 = vsub.f32 %v7576_v37, %v7586_v38 }
0x2b40   : > { %v7594_v42 = vmul.f32 1.442695, %v7591_v24 }
0x2b41   : > { %v7592_v45 = vmul.f32 1.442695, %v7590_v19 }
0x2b42   : > { %13699 = vpow2.f32 %v7594_v42 }
0x2b43   : > { %13701 = vpow2.f32 %v7592_v45 }
0x2b4c   : > { %v13700_v54 = vpop.eup %13699 }
0x2b4d   : > { %v13702_v33 = vpop.eup %13701  ;;  %v7599_v34 = vsel %vm1503_vm0, %v13700_v54, 0.0 }
0x2b4e   : > { %7600 = vadd.xlane.f32.xlu1 %v7599_v34  ;;  %v7596_v30 = vsel %vm1503_vm0, %v13702_v33, 0.0 }
0x2b4f   : > { %7597 = vadd.xlane.f32.xlu0 %v7596_v30 }
0x2b5f   : > { %13450 = vrot.lane.b32.xlu1 %v15155_v47, %s16021_s10 }
0x2b63   : > { %7693 = vrot.lane.b32.xlu1 %v15151_v28, %s16015_s19 }
0x2b65   : > { %13445 = vrot.lane.b32.xlu0 %v15157_v21, %s16014_s14 }
0x2b69   : > { %7695 = vrot.lane.b32.xlu0 %v15165_v22, %s16015_s19 }
0x2bdb   : > { %v7601_v27 = vpop.xlane.xlu1 %7600 }
0x2bdc   : > { %13703 = vrcp.f32 %v7601_v27  ;;  %v7598_v55 = vpop.xlane.xlu0 %7597 }
0x2bdd   : > { %13705 = vrcp.f32 %v7598_v55 }
0x2bdf   : > { %v13451_v61 = vpop.permute.xlu1 %13450 }
0x2be0   : > { %v13446_v58 = vpop.permute.xlu0 %13445  ;;  %v13453_v2 = vunpack.i.h.bf16 %v13451_v61  ;;  %v13452_v6 = vunpack.i.l.bf16 %v13451_v61 }
0x2be1   : > { %v13448_v12 = vunpack.i.h.bf16 %v13446_v58  ;;  %v13447_v16 = vunpack.i.l.bf16 %v13446_v58 }
0x2be2   : > { %v13086_v39 = vpack.c.bf16 %v13453_v2, %v13452_v6 }
0x2be3   : > { %v13082_v57 = vpack.c.bf16 %v13448_v12, %v13447_v16  ;;  %v7694_v48 = vpop.permute.xlu1 %7693 }
0x2be4   : > { %v7696_v4 = vpop.permute.xlu0 %7695 }
0x2be5   : > { %13083 = vmatprep.subr.bf16.mxu1 %v13082_v57 }
0x2be6   : > { %v13704_v50 = vpop.eup %13703  ;;  %13085 = vmatpush3.bf16.msra.mxu1 %v13082_v57 }
0x2be7   : > { %v13706_v25 = vpop.eup %13705  ;;  %13088 = vmatprep.subr.msk.bf16.mxu1 %vm14421_vm12, %v13086_v39  ;;  %v7605_v8 = vmul.f32 %v13704_v50, %v13700_v54 }
0x2be8   : > { %v7604_v1 = vmul.f32 %v13706_v25, %v13702_v33 }
0x2bea   : > { %12453 = vmatprep.mubr.msk.f32.mxu1 %vm1503_vm0, %v7604_v1 }
0x2beb   : > { %12454 = vmatmul.mubr.msk.f32.vlgmr.msra.gmra.mrb[56].mxu1 %vm1503_vm0, %v7605_v8 }
0x2bec   : > { %12460 = vmatprep.mubr.msk.f32.mxu1 %vm2450_vm11, %v7694_v48 }
0x2bef   : > { %13091 = vmatpush3.bf16.xpose.msk.msra.mxu1 %vm14421_vm12, %v13086_v39 }
0x2bf6   : > { %12461 = vmatmul.mubr.msk.f32.vlgmr.msra.gmra.mrb[58].mxu1 %vm2450_vm11, %v7696_v4 }
0x2cbe   : > { %v15296_v3 = vpop.f32.mrb[56].mxu1 }
0x2cbf   : > { %v15298_v52 = vpop.f32.mrb[57].mxu1 }
0x2cc9   : > { %v12462_v11 = vpop.f32.mrb[58].mxu1 }
0x2cca   : > { %v7781_v35 = vadd.f32 %v15178_v46, %v12462_v11  ;;  %v7775_v23 = vpop.f32.mrb[59].mxu1 }
0x2ccb   : > { %v7776_v43 = vadd.f32 %v15178_v46, %v7775_v23 }
0x2ccc   : > { %v7787_v13 = vsel %vm1503_vm0, %v7781_v35, -inf }
0x2ccd   : > { %7788 = vmax.xlane.f32.xlu0 %v7787_v13  ;;  %v7784_v18 = vsel %vm1503_vm0, %v7776_v43, -inf }
0x2cce   : > { %7785 = vmax.xlane.f32.xlu1 %v7784_v18 }
0x2d5a   : > { %v7789_v60 = vpop.xlane.xlu0 %7788 }
0x2d5b   : > { %v7791_v56 = vsub.f32 %v7781_v35, %v7789_v60  ;;  %v7786_v29 = vpop.xlane.xlu1 %7785 }
0x2d5c   : > { %v7790_v32 = vsub.f32 %v7776_v43, %v7786_v29 }
0x2d5d   : > { %v7794_v37 = vmul.f32 1.442695, %v7791_v56 }
0x2d5e   : > { %v7792_v40 = vmul.f32 1.442695, %v7790_v32 }
0x2d5f   : > { %13707 = vpow2.f32 %v7794_v37 }
0x2d60   : > { %13709 = vpow2.f32 %v7792_v40 }
0x2d69   : > { %v13708_v53 = vpop.eup %13707 }
0x2d6a   : > { %v13710_v36 = vpop.eup %13709  ;;  %v7799_v24 = vsel %vm1503_vm0, %v13708_v53, 0.0 }
0x2d6b   : > { %7800 = vadd.xlane.f32.xlu1 %v7799_v24  ;;  %v7796_v38 = vsel %vm1503_vm0, %v13710_v36, 0.0 }
0x2d6c   : > { %7797 = vadd.xlane.f32.xlu0 %v7796_v38 }
0x2d7c   : > { %13460 = vrot.lane.b32.xlu1 %v15155_v47, %s16025_s17 }
0x2d80   : > { %7893 = vrot.lane.b32.xlu1 %v15151_v28, %s16016_s20 }
0x2d82   : > { %13455 = vrot.lane.b32.xlu0 %v15157_v21, %s16015_s19 }
0x2d86   : > { %7895 = vrot.lane.b32.xlu0 %v15165_v22, %s16016_s20 }
0x2df8   : > { %v7801_v19 = vpop.xlane.xlu1 %7800 }
0x2df9   : > { %13711 = vrcp.f32 %v7801_v19  ;;  %v7798_v42 = vpop.xlane.xlu0 %7797 }
0x2dfa   : > { %13713 = vrcp.f32 %v7798_v42 }
0x2dfc   : > { %v13461_v45 = vpop.permute.xlu1 %13460 }
0x2dfd   : > { %v13456_v54 = vpop.permute.xlu0 %13455  ;;  %v13463_v33 = vunpack.i.h.bf16 %v13461_v45  ;;  %v13462_v34 = vunpack.i.l.bf16 %v13461_v45 }
0x2dfe   : > { %v13458_v30 = vunpack.i.h.bf16 %v13456_v54  ;;  %v13457_v27 = vunpack.i.l.bf16 %v13456_v54 }
0x2dff   : > { %v13096_v61 = vpack.c.bf16 %v13463_v33, %v13462_v34 }
0x2e00   : > { %v13092_v55 = vpack.c.bf16 %v13458_v30, %v13457_v27  ;;  %v7894_v16 = vpop.permute.xlu1 %7893 }
0x2e01   : > { %v7896_v57 = vpop.permute.xlu0 %7895 }
0x2e02   : > { %13093 = vmatprep.subr.bf16.mxu0 %v13092_v55 }
0x2e03   : > { %v13712_v58 = vpop.eup %13711  ;;  %13095 = vmatpush3.bf16.msra.mxu0 %v13092_v55 }
0x2e04   : > { %v13714_v2 = vpop.eup %13713  ;;  %13098 = vmatprep.subr.msk.bf16.mxu0 %vm14421_vm12, %v13096_v61  ;;  %v7805_v12 = vmul.f32 %v13712_v58, %v13708_v53 }
0x2e05   : > { %v7804_v6 = vmul.f32 %v13714_v2, %v13710_v36 }
0x2e07   : > { %12467 = vmatprep.mubr.msk.f32.mxu0 %vm1503_vm0, %v7804_v6 }
0x2e08   : > { %12468 = vmatmul.mubr.msk.f32.vlgmr.msra.gmra.mrb[66].mxu0 %vm1503_vm0, %v7805_v12 }
0x2e09   : > { %12474 = vmatprep.mubr.msk.f32.mxu0 %vm2450_vm11, %v7894_v16 }
0x2e0c   : > { %13101 = vmatpush3.bf16.xpose.msk.msra.mxu0 %vm14421_vm12, %v13096_v61 }
0x2e13   : > { %12475 = vmatmul.mubr.msk.f32.vlgmr.msra.gmra.mrb[68].mxu0 %vm2450_vm11, %v7896_v57 }
0x2edb   : > { %v15322_v39 = vpop.f32.mrb[66].mxu0 }
0x2edc   : > { %v15324_v50 = vpop.f32.mrb[67].mxu0 }
0x2ee6   : > { %v12476_v25 = vpop.f32.mrb[68].mxu0 }
0x2ee7   : > { %v7981_v1 = vadd.f32 %v15178_v46, %v12476_v25  ;;  %v7975_v8 = vpop.f32.mrb[69].mxu0 }
0x2ee8   : > { %v7976_v48 = vadd.f32 %v15178_v46, %v7975_v8 }
0x2ee9   : > { %v7987_v4 = vsel %vm1503_vm0, %v7981_v1, -inf }
0x2eea   : > { %7988 = vmax.xlane.f32.xlu0 %v7987_v4  ;;  %v7984_v11 = vsel %vm1503_vm0, %v7976_v48, -inf }
0x2eeb   : > { %7985 = vmax.xlane.f32.xlu1 %v7984_v11 }
0x2f77   : > { %v7989_v35 = vpop.xlane.xlu0 %7988 }
0x2f78   : > { %v7991_v23 = vsub.f32 %v7981_v1, %v7989_v35  ;;  %v7986_v43 = vpop.xlane.xlu1 %7985 }
0x2f79   : > { %v7990_v13 = vsub.f32 %v7976_v48, %v7986_v43  ;;  %v11450_v43 = vld [vmem:[%s15999_s22 + $0x48] sm:$0xff] }
0x2f7a   : > { %v7994_v18 = vmul.f32 1.442695, %v7991_v23 }
0x2f7b   : > { %v7992_v60 = vmul.f32 1.442695, %v7990_v13  ;;  %v11451_v13 = vld [vmem:[%s15999_s22 + $0x50] sm:$0xff] }
0x2f7c   : > { %13715 = vpow2.f32 %v7994_v18 }
0x2f7d   : > { %13717 = vpow2.f32 %v7992_v60  ;;  %v11452_v60 = vld [vmem:[%s15999_s22 + $0x58] sm:$0xff] }
0x2f86   : > { %v13716_v56 = vpop.eup %13715 }
0x2f87   : > { %v13718_v29 = vpop.eup %13717  ;;  %v7999_v32 = vsel %vm1503_vm0, %v13716_v56, 0.0 }
0x2f88   : > { %8000 = vadd.xlane.f32.xlu1 %v7999_v32  ;;  %v7996_v37 = vsel %vm1503_vm0, %v13718_v29, 0.0  ;;  %v11454_v32 = vld [vmem:[%s15999_s22 + $0x68] sm:$0xff] }
0x2f89   : > { %7997 = vadd.xlane.f32.xlu0 %v7996_v37 }
0x2f99   : > { %13470 = vrot.lane.b32.xlu1 %v15155_v47, %s16022_s29 }
0x2f9d   : > { %8093 = vrot.lane.b32.xlu1 %v15151_v28, %s16017_s23 }
0x2f9f   : > { %13465 = vrot.lane.b32.xlu0 %v15157_v21, %s16016_s20 }
0x2fa3   : > { %8095 = vrot.lane.b32.xlu0 %v15165_v22, %s16017_s23 }
0x3015   : > { %v8001_v40 = vpop.xlane.xlu1 %8000 }
0x3016   : > { %13719 = vrcp.f32 %v8001_v40  ;;  %v7998_v53 = vpop.xlane.xlu0 %7997  ;;  %v11455_v40 = vld [vmem:[%s15999_s22 + $0x70] sm:$0xff] }
0x3017   : > { %13721 = vrcp.f32 %v7998_v53  ;;  %v11456_v53 = vld [vmem:[%s15999_s22 + $0x78] sm:$0xff] }
0x3019   : > { %v13471_v36 = vpop.permute.xlu1 %13470 }
0x301a   : > { %v13466_v24 = vpop.permute.xlu0 %13465  ;;  %v13473_v38 = vunpack.i.h.bf16 %v13471_v36  ;;  %v13472_v19 = vunpack.i.l.bf16 %v13471_v36  ;;  %v13128_v36 = vpack.c.bf16 %v11456_v53, %v11455_v40  ;;  %v11458_v40 = vld [vmem:[%s16001_s26 + $0x1] ss:$0 sm:$0xff] }
0x301b   : > { %v13468_v42 = vunpack.i.h.bf16 %v13466_v24  ;;  %v13467_v45 = vunpack.i.l.bf16 %v13466_v24 }
0x301c   : > { %v13106_v54 = vpack.c.bf16 %v13473_v38, %v13472_v19 }
0x301d   : > { %v13102_v47 = vpack.c.bf16 %v13468_v42, %v13467_v45  ;;  %v8094_v30 = vpop.permute.xlu1 %8093 }
0x301e   : > { %v8096_v27 = vpop.permute.xlu0 %8095 }
0x301f   : > { %13103 = vmatprep.subr.bf16.mxu1 %v13102_v47 }
0x3020   : > { %v13720_v28 = vpop.eup %13719  ;;  %13105 = vmatpush3.bf16.msra.mxu1 %v13102_v47 }
0x3021   : > { %v13722_v33 = vpop.eup %13721  ;;  %13108 = vmatprep.subr.msk.bf16.mxu1 %vm14421_vm12, %v13106_v54  ;;  %v8005_v34 = vmul.f32 %v13720_v28, %v13716_v56  ;;  %v13120_v56 = vpack.c.bf16 %v11452_v60, %v11451_v13  ;;  %v11467_v13 = vld [vmem:[%s16004_s11 + $0x50] sm:$0xff] }
0x3022   : > { %v8004_v22 = vmul.f32 %v13722_v33, %v13718_v29  ;;  %v11453_v29 = vld [vmem:[%s15999_s22 + $0x60] sm:$0xff] }
0x3023   : > { %v13124_v37 = vpack.c.bf16 %v11454_v32, %v11453_v29  ;;  %v11470_v29 = vld [vmem:[%s16004_s11 + $0x68] sm:$0xff] }
0x3024   : > { %12481 = vmatprep.mubr.msk.f32.mxu1 %vm1503_vm0, %v8004_v22 }
0x3025   : > { %12482 = vmatmul.mubr.msk.f32.vlgmr.msra.gmra.mrb[60].mxu1 %vm1503_vm0, %v8005_v34 }
0x3026   : > { %12488 = vmatprep.mubr.msk.f32.mxu1 %vm2450_vm11, %v8094_v30 }
0x3029   : > { %13111 = vmatpush3.bf16.xpose.msk.msra.mxu1 %vm14421_vm12, %v13106_v54 }
0x3030   : > { %12489 = vmatmul.mubr.msk.f32.vlgmr.msra.gmra.mrb[62].mxu1 %vm2450_vm11, %v8096_v27 }
0x30f8   : > { %v12483_v55 = vpop.f32.mrb[60].mxu1 }
0x30f9   : > { %v8084_v61 = vpop.f32.mrb[61].mxu1 }
0x3103   : > { %v12490_v58 = vpop.f32.mrb[62].mxu1 }
0x3104   : > { %v8181_v2 = vadd.f32 %v15178_v46, %v12490_v58  ;;  %v8175_v6 = vpop.f32.mrb[63].mxu1 }
0x3105   : > { %v8176_v12 = vadd.f32 %v15178_v46, %v8175_v6 }
0x3106   : > { %v8187_v16 = vsel %vm1503_vm0, %v8181_v2, -inf }
0x3107   : > { %8188 = vmax.xlane.f32.xlu0 %v8187_v16  ;;  %v8184_v57 = vsel %vm1503_vm0, %v8176_v12, -inf  ;;  %v11477_v16 = vld [vmem:[%s16002_s15 + $0x40] sm:$0xff] }
0x3108   : > { %8185 = vmax.xlane.f32.xlu1 %v8184_v57  ;;  %v11478_v57 = vld [vmem:[%s16002_s15 + $0x48] sm:$0xff] }
0x3194   : > { %v8189_v25 = vpop.xlane.xlu0 %8188 }
0x3195   : > { %v8191_v14 = vsub.f32 %v8181_v2, %v8189_v25  ;;  %v8186_v1 = vpop.xlane.xlu1 %8185 }
0x3196   : > { %v8190_v8 = vsub.f32 %v8176_v12, %v8186_v1 }
0x3197   : > { %v8194_v48 = vmul.f32 1.442695, %v8191_v14 }
0x3198   : > { %v8192_v4 = vmul.f32 1.442695, %v8190_v8 }
0x3199   : > { %13723 = vpow2.f32 %v8194_v48 }
0x319a   : > { %13725 = vpow2.f32 %v8192_v4 }
0x31a3   : > { %v13724_v11 = vpop.eup %13723 }
0x31a4   : > { %v13726_v35 = vpop.eup %13725  ;;  %v8199_v23 = vsel %vm1503_vm0, %v13724_v11, 0.0 }
0x31a5   : > { %8200 = vadd.xlane.f32.xlu1 %v8199_v23  ;;  %v8196_v46 = vsel %vm1503_vm0, %v13726_v35, 0.0 }
0x31a6   : > { %8197 = vadd.xlane.f32.xlu0 %v8196_v46  ;;  %v11479_v46 = vld [vmem:[%s16002_s15 + $0x50] sm:$0xff] }
0x31b6   : > { %8295 = vrot.lane.b32.xlu1 %v15242_v62, %s16022_s29 }
0x31ba   : > { %8297 = vrot.lane.b32.xlu1 %v15240_v0, %s16022_s29 }
0x31bc   : > { %13475 = vrot.lane.b32.xlu0 %v15157_v21, %s16017_s23 }
0x31be   : > { %8305 = vrot.lane.b32.xlu1 %v15244_v59, %s16025_s17 }
0x31c0   : > { %8303 = vrot.lane.b32.xlu0 %v15246_v20, %s16025_s17 }
0x31c2   : > { %8313 = vrot.lane.b32.xlu1 %v15270_v26, %s16021_s10 }
0x31c4   : > { %8311 = vrot.lane.b32.xlu0 %v15272_v7, %s16021_s10 }
0x31c6   : > { %8321 = vrot.lane.b32.xlu1 %v15296_v3, %s16024_s7 }
0x31c8   : > { %8319 = vrot.lane.b32.xlu0 %v15298_v52, %s16024_s7 }
0x31ca   : > { %8329 = vrot.lane.b32.xlu1 %v15322_v39, %s16023_s30 }
0x31cc   : > { %8327 = vrot.lane.b32.xlu0 %v15324_v50, %s16023_s30  ;;  %v11449_v50 = vld [vmem:[%s15999_s22 + $0x40] sm:$0xff] }
0x31cd   : > { %v13116_v18 = vpack.c.bf16 %v11450_v43, %v11449_v50  ;;  %v11466_v50 = vld [vmem:[%s16004_s11 + $0x48] sm:$0xff] }
0x31ce   : > { %8337 = vrot.lane.b32.xlu1 %v12483_v55, %s16020_s12 }
0x31d0   : > { %8335 = vrot.lane.b32.xlu0 %v8084_v61, %s16020_s12 }
0x3232   : > { %v8201_v21 = vpop.xlane.xlu1 %8200 }
0x3233   : > { %13727 = vrcp.f32 %v8201_v21  ;;  %v8198_v0 = vpop.xlane.xlu0 %8197  ;;  %v11480_v21 = vld [vmem:[%s16002_s15 + $0x58] sm:$0xff] }
0x3234   : > { %13729 = vrcp.f32 %v8198_v0 }
0x3236   : > { %v8296_v19 = vpop.permute.xlu1 %8295 }
0x3237   : > { %v13476_v62 = vpop.permute.xlu0 %13475  ;;  %v8349_v27 = vsel %vm2450_vm11, %v15206_v10, %v8296_v19 }
0x3238   : > { %v13478_v59 = vunpack.i.h.bf16 %v13476_v62  ;;  %v13477_v20 = vunpack.i.l.bf16 %v13476_v62  ;;  %v13152_v62 = vpack.c.bf16 %v11480_v21, %v11479_v46 }
0x323a   : > { %v13112_v26 = vpack.c.bf16 %v13478_v59, %v13477_v20  ;;  %v8298_v42 = vpop.permute.xlu1 %8297  ;;  %v11481_v59 = vld [vmem:[%s16002_s15 + $0x60] sm:$0xff]  ;;  %v11482_v20 = vld [vmem:[%s16002_s15 + $0x68] sm:$0xff] }
0x323b   : > { %v8304_v47 = vpop.permute.xlu0 %8303  ;;  %v8350_v61 = vsel %vm2450_vm11, %v15204_v31, %v8298_v42 }
0x323c   : > { %13113 = vmatprep.subr.bf16.mxu0 %v13112_v26  ;;  %v8351_v58 = vsel %vm1503_vm0, %v8349_v27, %v8304_v47 }
0x323d   : > { %v13728_v7 = vpop.eup %13727  ;;  %13115 = vmatpush3.bf16.msra.mxu0 %v13112_v26  ;;  %v13155_v26 = vpack.c.bf16 %v11482_v20, %v11481_v59 }
0x323e   : > { %v13730_v3 = vpop.eup %13729  ;;  %v8205_v39 = vmul.f32 %v13728_v7, %v13724_v11  ;;  %13117 = vmatprep.subr.bf16.mxu0 %v13116_v18  ;;  %v8306_v45 = vpop.permute.xlu1 %8305  ;;  %v13149_v11 = vpack.c.bf16 %v11478_v57, %v11477_v16  ;;  %v11483_v7 = vld [vmem:[%s16002_s15 + $0x70] sm:$0xff] }
0x323f   : > { %v8204_v52 = vmul.f32 %v13730_v3, %v13726_v35  ;;  %v8312_v28 = vpop.permute.xlu0 %8311  ;;  %v8352_v6 = vsel %vm1503_vm0, %v8350_v61, %v8306_v45  ;;  %v11484_v3 = vld [vmem:[%s16002_s15 + $0x78] sm:$0xff] }
0x3240   : > { %v8353_v12 = vsel %vm4101_vm13, %v8351_v58, %v8312_v28 }
0x3241   : > { %12495 = vmatprep.mubr.msk.f32.mxu0 %vm1503_vm0, %v8204_v52  ;;  %v13158_v52 = vpack.c.bf16 %v11484_v3, %v11483_v7 }
0x3242   : > { %12496 = vmatmul.mubr.msk.f32.vlgmr.msra.gmra.mrb[70].mxu0 %vm1503_vm0, %v8205_v39  ;;  %v8314_v54 = vpop.permute.xlu1 %8313  ;;  %v11465_v39 = vld [vmem:[%s16004_s11 + $0x40] sm:$0xff] }
0x3243   : > { %13119 = vmatpush3.bf16.msra.mxu0 %v13116_v18  ;;  %v8320_v22 = vpop.permute.xlu0 %8319  ;;  %v8354_v25 = vsel %vm4101_vm13, %v8352_v6, %v8314_v54  ;;  %v13132_v43 = vpack.c.bf16 %v11466_v50, %v11465_v39  ;;  %v11468_v18 = vld [vmem:[%s16004_s11 + $0x58] sm:$0xff]  ;;  %v11486_v54 = vld [vmem:[%s16008_s18 + $0x1] ss:$0 sm:$0xff] }
0x3244   : > { %13121 = vmatprep.subr.bf16.mxu0 %v13120_v56  ;;  %v8355_v14 = vsel %vm1846_vm1, %v8353_v12, %v8320_v22  ;;  %v13136_v60 = vpack.c.bf16 %v11468_v18, %v11467_v13 }
0x3245   : > { %13133 = vmatprep.subr.bf16.mxu1 %v13132_v43 }
0x3246   : > { %v8322_v33 = vpop.permute.xlu1 %8321  ;;  %13135 = vmatpush3.bf16.msra.mxu1 %v13132_v43 }
0x3247   : > { %13123 = vmatpush3.bf16.msra.mxu0 %v13120_v56  ;;  %v8328_v30 = vpop.permute.xlu0 %8327  ;;  %v8356_v10 = vsel %vm1846_vm1, %v8354_v25, %v8322_v33  ;;  %v11469_v56 = vld [vmem:[%s16004_s11 + $0x60] sm:$0xff]  ;;  %13137 = vmatprep.subr.bf16.mxu1 %v13136_v60 }
0x3248   : > { %13125 = vmatprep.subr.bf16.mxu0 %v13124_v37  ;;  %v8357_v1 = vsel %vm4106_vm14, %v8355_v14, %v8328_v30  ;;  %v13140_v32 = vpack.c.bf16 %v11470_v29, %v11469_v56 }
0x324a   : > { %v8330_v34 = vpop.permute.xlu1 %8329  ;;  %13139 = vmatpush3.bf16.msra.mxu1 %v13136_v60 }
0x324b   : > { %13127 = vmatpush3.bf16.msra.mxu0 %v13124_v37  ;;  %v8336_v2 = vpop.permute.xlu0 %8335  ;;  %v8358_v8 = vsel %vm4106_vm14, %v8356_v10, %v8330_v34  ;;  %13141 = vmatprep.subr.bf16.mxu1 %v13140_v32 }
0x324c   : > { %13129 = vmatprep.subr.bf16.mxu0 %v13128_v36  ;;  %v8359_v48 = vsel %vm4109_vm15, %v8357_v1, %v8336_v2 }
0x324e   : > { %v8338_v55 = vpop.permute.xlu1 %8337  ;;  %13143 = vmatpush3.bf16.msra.mxu1 %v13140_v32 }
0x324f   : > { %13131 = vmatpush3.bf16.msra.mxu0 %v13128_v36  ;;  %v8360_v35 = vsel %vm4109_vm15, %v8358_v8, %v8338_v55 }
0x3250   : > { %13148 = vmatprep.subr.bf16.mxu0 %v13903_v63 }
0x3315   : > { %v12497_v24 = vpop.f32.mrb[70].mxu0 }
0x3316   : > { %8345 = vrot.lane.b32.xlu1 %v12497_v24, %s16000_s1  ;;  %v8284_v38 = vpop.f32.mrb[71].mxu0 }
0x3317   : > { %8343 = vrot.lane.b32.xlu0 %v8284_v38, %s16000_s1 }
0x3388   : > { %v8346_v31 = vpop.permute.xlu1 %8345 }
0x3389   : > { %v8344_v4 = vpop.permute.xlu0 %8343  ;;  %v8362_v0 = vsel %vm4112_vm2, %v8360_v35, %v8346_v31  ;;  %v11463_v31 = vld [vmem:[%s16006_s4 + $0x1] ss:$0 sm:$0xff] }
0x338a   : > { %v8361_v23 = vsel %vm4112_vm2, %v8359_v48, %v8344_v4  ;;  %v11464_v48 = vld [vmem:[%s16007_s16 + $0x1] ss:$0 sm:$0xff] }
0x338b   : > { %12514 = vmatprep.mubr.msk.f32.mxu0 %vm2113_vm6, %v8361_v23 }
0x338c   : > { %12515 = vmatmul.mubr.msk.f32.vlgmr.msra.gmra.mrb[72].mxu0 %vm2113_vm6, %v8362_v0  ;;  %v11474_v0 = vld [vmem:[%s16035_s2 + $0x1] ss:$0 sm:$0xff] }
0x338d   : > { %13150 = vmatpush3.bf16.msra.mxu0 %v13149_v11  ;;  %12552 = vmatprep.mubr.msk.f32.mxu0 %vm13904_vm3, %v13886_v5 }
0x338e   : > { %13151 = vmatprep.subr.bf16.mxu0 %v13903_v63 }
0x3391   : > { %13153 = vmatpush3.bf16.msra.mxu0 %v13152_v62 }
0x3392   : > { %13154 = vmatprep.subr.bf16.mxu0 %v13903_v63 }
0x3395   : > { %13156 = vmatpush3.bf16.msra.mxu0 %v13155_v26 }
0x3396   : > { %13157 = vmatprep.subr.bf16.mxu0 %v13903_v63  ;;  %v11471_v63 = vld [vmem:[%s16004_s11 + $0x70] sm:$0xff] }
0x3399   : > { %13159 = vmatpush3.bf16.msra.mxu0 %v13158_v52 }
0x339c   : > { %12553 = vmatmul.mubr.msk.f32.vlgmr.msra.gmra.mrb[74].mxu0 %vm2113_vm6, %v14700_v44  ;;  %v11472_v44 = vld [vmem:[%s16004_s11 + $0x78] sm:$0xff]  ;;  %s16036_s11 = sld [smem:[#allocation48_spill]] }
0x339d   : > { %v13144_v37 = vpack.c.bf16 %v11472_v44, %v11471_v63 }
0x339f   : > { %13145 = vmatprep.subr.bf16.mxu1 %v13144_v37 }
0x33a0   : > { %13147 = vmatpush3.bf16.msra.mxu1 %v13144_v37 }
0x33a2   : > { %v15463_v39 = vld [vmem:[%s16036_s11] ss:$0 sm:$0xff] }
0x345f   : > { %v12516_v53 = vpop.f32.mrb[72].mxu0 }
0x3460   : > { %v8458_v36 = vadd.f32 %v12516_v53, %v11458_v40  ;;  %v8452_v24 = vpop.f32.mrb[73].mxu0 }
0x3461   : > { %v8453_v38 = vadd.f32 %v11458_v40, %v8452_v24 }
0x3462   : > { %v8462_v19 = vadd.f32 %v8458_v36, %v15144_v49 }
0x3463   : > { %v8461_v42 = vadd.f32 %v8453_v38, %v15139_v9 }
0x3464   : > { %v8470_v45 = vsel %vm2113_vm6, %v8462_v19, 0.0 }
0x3465   : > { %8471 = vadd.xlane.f32.xlu1 %v8470_v45  ;;  %v8467_v47 = vsel %vm2113_vm6, %v8461_v42, 0.0 }
0x3466   : > { %8468 = vadd.xlane.f32.xlu0 %v8467_v47 }
0x346f   : > { %v8692_v28 = vpop.f32.mrb[74].mxu0 }
0x3470   : > { %v15438_v33 = vadd.f32 %v11486_v54, %v8692_v28  ;;  %v12554_v22 = vpop.f32.mrb[75].mxu0 }
0x3472   : > { %12555 = vmatprep.subr.msk.mxu1 %vm2450_vm11, %v15438_v33 }
0x34f2   : > { %v8472_v34 = vpop.xlane.xlu1 %8471 }
0x34f3   : > { %v8474_v30 = vmul.f32 0.015625, %v8472_v34  ;;  %v8469_v27 = vpop.xlane.xlu0 %8468 }
0x34f4   : > { %v8473_v49 = vmul.f32 0.015625, %v8469_v27 }
0x34f5   : > { %v8476_v55 = vsub.f32 %v8462_v19, %v8474_v30 }
0x34f6   : > { %v8475_v9 = vsub.f32 %v8461_v42, %v8473_v49 }
0x34f7   : > { %v8478_v2 = vmul.f32 %v8476_v55, %v8476_v55 }
0x34f8   : > { %v8477_v61 = vmul.f32 %v8475_v9, %v8475_v9 }
0x34f9   : > { %v8482_v6 = vsel %vm2113_vm6, %v8478_v2, 0.0 }
0x34fa   : > { %v8479_v58 = vsel %vm2113_vm6, %v8477_v61, 0.0 }
0x34fb   : > { %8480 = vadd.xlane.f32.xlu0 %v8479_v58 }
0x34ff   : > { %8483 = vadd.xlane.f32.xlu0 %v8482_v6 }
0x3588   : > { %v8481_v12 = vpop.xlane.xlu0 %8480 }
0x3589   : > { %v8485_v16 = vmul.f32 0.015625, %v8481_v12 }
0x358b   : > { %v8487_v57 = vadd.f32 1e-05, %v8485_v16 }
0x358c   : > { %v8484_v25 = vpop.xlane.xlu0 %8483 }
0x358d   : > { %13731 = vrsqrt.f32 %v8487_v57  ;;  %v8486_v14 = vmul.f32 0.015625, %v8484_v25 }
0x358f   : > { %v8488_v10 = vadd.f32 1e-05, %v8486_v14 }
0x3591   : > { %13733 = vrsqrt.f32 %v8488_v10 }
0x3597   : > { %v13732_v1 = vpop.eup %13731 }
0x3598   : > { %v8491_v8 = vmul.f32 %v13732_v1, %v8475_v9 }
0x359a   : > { %v8499_v4 = vmul.f32 %v11463_v31, %v8491_v8 }
0x359b   : > { %v13734_v11 = vpop.eup %13733 }
0x359c   : > { %v8492_v35 = vmul.f32 %v13734_v11, %v8476_v55  ;;  %v15446_v23 = vadd.f32 %v11464_v48, %v8499_v4 }
0x359e   : > { %v8500_v46 = vmul.f32 %v11463_v31, %v8492_v35  ;;  %12533 = vmatprep.mubr.msk.f32.mxu1 %vm2113_vm6, %v15446_v23 }
0x35a0   : > { %v15450_v21 = vadd.f32 %v11464_v48, %v8500_v46 }
0x35a2   : > { %12534 = vmatmul.mubr.msk.f32.vlgmr.msra.gmra.mrb[64].mxu1 %vm2113_vm6, %v15450_v21 }
0x35a3   : > { %12556 = vmatpush3.xpose.msk.msra.mxu1 %vm2450_vm11, %v15438_v33 }
0x3675   : > { %v12535_v62 = vpop.f32.mrb[64].mxu1 }
0x3676   : > { %v8604_v59 = vadd.f32 %v12535_v62, %v11474_v0  ;;  %v8598_v20 = vpop.f32.mrb[65].mxu1 }
0x3677   : > { %v8599_v26 = vadd.f32 %v11474_v0, %v8598_v20 }
0x3678   : > { %v8608_v3 = vmul.f32 0.35355338, %v8604_v59 }
0x3679   : > { %v15457_v7 = vmul.f32 0.35355338, %v8599_v26 }
0x367b   : > { %12557 = vmatprep.mubr.msk.f32.mxu1 %vm2450_vm11, %v15457_v7 }
0x367c   : > { %12558 = vmatmul.mubr.msk.f32.vlgmr.msra.gmra.mrb[66].mxu1 %vm2450_vm11, %v8608_v3 }
0x374f   : > { %v12559_v52 = vpop.f32.mrb[66].mxu1 }
0x3750   : > { %v8777_v50 = vadd.f32 %v15463_v39, %v12559_v52  ;;  %v8771_v43 = vpop.f32.mrb[67].mxu1 }
0x3751   : > { %v8772_v13 = vadd.f32 %v15463_v39, %v8771_v43 }
0x3752   : > { %v8783_v18 = vsel %vm2450_vm11, %v8777_v50, -inf }
0x3753   : > { %8784 = vmax.xlane.f32.xlu0 %v8783_v18  ;;  %v8780_v60 = vsel %vm2450_vm11, %v8772_v13, -inf }
0x3754   : > { %8781 = vmax.xlane.f32.xlu1 %v8780_v60 }
0x3765   : > { %8802 = vrot.lane.b32.xlu1 %v15438_v33, %s16019_s25  ;;  %s16040_s25 = sld [smem:[#allocation44_spill]] }
0x3769   : > { %8890 = vrot.lane.b32.xlu0 %v15438_v33, %s16010_s6  ;;  %8886 = vrot.lane.b32.xlu1 %v15457_v7, %s16010_s6 }
0x376d   : > { %9083 = vrot.lane.b32.xlu0 %v15438_v33, %s16011_s9  ;;  %8888 = vrot.lane.b32.xlu1 %v8608_v3, %s16010_s6  ;;  %s16045_s6 = sld [smem:[#allocation47_spill]] }
0x3771   : > { %9081 = vrot.lane.b32.xlu0 %v8608_v3, %s16011_s9  ;;  %9079 = vrot.lane.b32.xlu1 %v15457_v7, %s16011_s9  ;;  %s16037_s9 = sld [smem:[#allocation34_spill]] }
0x3775   : > { %9276 = vrot.lane.b32.xlu1 %v15438_v33, %s16013_s13 }
0x3779   : > { %9274 = vrot.lane.b32.xlu1 %v8608_v3, %s16013_s13 }
0x37e0   : > { %v8785_v56 = vpop.xlane.xlu0 %8784 }
0x37e1   : > { %v8787_v29 = vsub.f32 %v8777_v50, %v8785_v56  ;;  %v8782_v32 = vpop.xlane.xlu1 %8781 }
0x37e2   : > { %v8786_v63 = vsub.f32 %v8772_v13, %v8782_v32 }
0x37e3   : > { %v8790_v44 = vmul.f32 1.442695, %v8787_v29 }
0x37e4   : > { %v8788_v37 = vmul.f32 1.442695, %v8786_v63  ;;  %v15484_v40 = vpop.permute.xlu0 %8890 }
0x37e5   : > { %13735 = vpow2.f32 %v8790_v44  ;;  %v8803_v53 = vpop.permute.xlu1 %8802 }
0x37e6   : > { %13737 = vpow2.f32 %v8788_v37  ;;  %12560 = vmatprep.subr.mxu1 %v8803_v53 }
0x37e7   : > { %12561 = vmatpush3.msra.mxu1 %v8803_v53 }
0x37e8   : > { %v9084_v36 = vpop.permute.xlu0 %9083  ;;  %12565 = vmatprep.subr.msk.mxu1 %vm2450_vm11, %v15484_v40 }
0x37e9   : > { %12575 = vmatprep.subr.msk.mxu0 %vm2450_vm11, %v9084_v36  ;;  %v8887_v24 = vpop.permute.xlu1 %8886 }
0x37ea   : > { %12576 = vmatpush3.xpose.msk.msra.mxu0 %vm2450_vm11, %v9084_v36 }
0x37ec   : > { %v9082_v28 = vpop.permute.xlu0 %9081 }
0x37ed   : > { %v8889_v38 = vpop.permute.xlu1 %8888 }
0x37ef   : > { %v13736_v19 = vpop.eup %13735 }
0x37f0   : > { %v13738_v42 = vpop.eup %13737  ;;  %v8795_v45 = vsel %vm2450_vm11, %v13736_v19, 0.0 }
0x37f1   : > { %8796 = vadd.xlane.f32.xlu0 %v8795_v45  ;;  %v9080_v47 = vpop.permute.xlu1 %9079  ;;  %v8792_v54 = vsel %vm2450_vm11, %v13738_v42, 0.0 }
0x37f2   : > { %8793 = vadd.xlane.f32.xlu1 %v8792_v54  ;;  %12577 = vmatprep.mubr.msk.f32.mxu0 %vm2450_vm11, %v9080_v47 }
0x37f3   : > { %12578 = vmatmul.mubr.msk.f32.vlgmr.msra.gmra.mrb[76].mxu0 %vm2450_vm11, %v9082_v28 }
0x37f5   : > { %v9277_v22 = vpop.permute.xlu1 %9276 }
0x37f6   : > { %12585 = vmatprep.subr.msk.mxu0 %vm2450_vm11, %v9277_v22 }
0x37f7   : > { %12586 = vmatpush3.xpose.msk.msra.mxu0 %vm2450_vm11, %v9277_v22 }
0x37f9   : > { %v9275_v34 = vpop.permute.xlu1 %9274 }
0x3803   : > { %9465 = vrot.lane.b32.xlu1 %v15457_v7, %s16014_s14 }
0x3807   : > { %9272 = vrot.lane.b32.xlu0 %v15457_v7, %s16013_s13  ;;  %9662 = vrot.lane.b32.xlu1 %v15438_v33, %s16015_s19  ;;  %s16038_s13 = sld [smem:[#allocation35_spill]] }
0x380b   : > { %9469 = vrot.lane.b32.xlu0 %v15438_v33, %s16014_s14  ;;  %9660 = vrot.lane.b32.xlu1 %v8608_v3, %s16015_s19 }
0x380f   : > { %9467 = vrot.lane.b32.xlu0 %v8608_v3, %s16014_s14  ;;  %9851 = vrot.lane.b32.xlu1 %v15457_v7, %s16016_s20  ;;  %s16042_s14 = sld [smem:[#allocation25_spill]] }
0x3813   : > { %9658 = vrot.lane.b32.xlu0 %v15457_v7, %s16015_s19  ;;  %10048 = vrot.lane.b32.xlu1 %v15438_v33, %s16017_s23  ;;  %s16043_s19 = sld [smem:[#allocation24_spill]] }
0x3817   : > { %9855 = vrot.lane.b32.xlu0 %v15438_v33, %s16016_s20  ;;  %10046 = vrot.lane.b32.xlu1 %v8608_v3, %s16017_s23 }
0x381b   : > { %9853 = vrot.lane.b32.xlu0 %v8608_v3, %s16016_s20  ;;  %s16046_s20 = sld [smem:[#allocation45_spill]] }
0x381f   : > { %10044 = vrot.lane.b32.xlu0 %v15457_v7, %s16017_s23 }
0x387e   : > { %v8797_v30 = vpop.xlane.xlu0 %8796 }
0x387f   : > { %13739 = vrcp.f32 %v8797_v30  ;;  %v8794_v27 = vpop.xlane.xlu1 %8793 }
0x3880   : > { %13741 = vrcp.f32 %v8794_v27 }
0x3882   : > { %v9273_v49 = vpop.permute.xlu0 %9272 }
0x3883   : > { %12587 = vmatprep.mubr.msk.f32.mxu0 %vm2450_vm11, %v9273_v49  ;;  %v9466_v55 = vpop.permute.xlu1 %9465 }
0x3884   : > { %12588 = vmatmul.mubr.msk.f32.vlgmr.msra.gmra.mrb[78].mxu0 %vm2450_vm11, %v9275_v34 }
0x3885   : > { %12597 = vmatprep.mubr.msk.f32.mxu0 %vm2450_vm11, %v9466_v55 }
0x3886   : > { %v9470_v9 = vpop.permute.xlu0 %9469 }
0x3887   : > { %12595 = vmatprep.subr.msk.mxu0 %vm2450_vm11, %v9470_v9  ;;  %v9663_v61 = vpop.permute.xlu1 %9662 }
0x3888   : > { %12596 = vmatpush3.xpose.msk.msra.mxu0 %vm2450_vm11, %v9470_v9 }
0x3889   : > { %v13740_v58 = vpop.eup %13739  ;;  %12605 = vmatprep.subr.msk.mxu0 %vm2450_vm11, %v9663_v61 }
0x388a   : > { %v13742_v2 = vpop.eup %13741  ;;  %v9468_v6 = vpop.permute.xlu0 %9467  ;;  %v8801_v57 = vmul.f32 %v13740_v58, %v13736_v19 }
0x388b   : > { %12598 = vmatmul.mubr.msk.f32.vlgmr.msra.gmra.mrb[80].mxu0 %vm2450_vm11, %v9468_v6  ;;  %v9661_v12 = vpop.permute.xlu1 %9660  ;;  %v8800_v16 = vmul.f32 %v13742_v2, %v13738_v42 }
0x388c   : > { %12606 = vmatpush3.xpose.msk.msra.mxu0 %vm2450_vm11, %v9663_v61 }
0x388d   : > { %12562 = vmatprep.mubr.msk.f32.mxu1 %vm2450_vm11, %v8800_v16 }
0x388e   : > { %v9659_v25 = vpop.permute.xlu0 %9658  ;;  %12563 = vmatmul.mubr.msk.f32.vlgmr.msra.gmra.mrb[68].mxu1 %vm2450_vm11, %v8801_v57 }
0x388f   : > { %12566 = vmatpush3.xpose.msk.msra.mxu1 %vm2450_vm11, %v15484_v40  ;;  %12567 = vmatprep.mubr.msk.f32.mxu1 %vm2450_vm11, %v8887_v24  ;;  %v9852_v14 = vpop.permute.xlu1 %9851 }
0x3890   : > { %12607 = vmatprep.mubr.msk.f32.mxu0 %vm2450_vm11, %v9659_v25 }
0x3891   : > { %12608 = vmatmul.mubr.msk.f32.vlgmr.msra.gmra.mrb[82].mxu0 %vm2450_vm11, %v9661_v12 }
0x3892   : > { %12617 = vmatprep.mubr.msk.f32.mxu0 %vm2450_vm11, %v9852_v14  ;;  %v9856_v10 = vpop.permute.xlu0 %9855  ;;  %12568 = vmatmul.mubr.msk.f32.vlgmr.msra.gmra.mrb[70].mxu1 %vm2450_vm11, %v8889_v38 }
0x3893   : > { %12615 = vmatprep.subr.msk.mxu0 %vm2450_vm11, %v9856_v10  ;;  %v10049_v1 = vpop.permute.xlu1 %10048 }
0x3894   : > { %12616 = vmatpush3.xpose.msk.msra.mxu0 %vm2450_vm11, %v9856_v10 }
0x3895   : > { %12625 = vmatprep.subr.msk.mxu0 %vm2450_vm11, %v10049_v1 }
0x3896   : > { %v9854_v31 = vpop.permute.xlu0 %9853 }
0x3897   : > { %12618 = vmatmul.mubr.msk.f32.vlgmr.msra.gmra.mrb[84].mxu0 %vm2450_vm11, %v9854_v31  ;;  %v10047_v48 = vpop.permute.xlu1 %10046 }
0x3898   : > { %12626 = vmatpush3.xpose.msk.msra.mxu0 %vm2450_vm11, %v10049_v1 }
0x389a   : > { %v10045_v8 = vpop.permute.xlu0 %10044 }
0x389b   : > { %12627 = vmatprep.mubr.msk.f32.mxu0 %vm2450_vm11, %v10045_v8 }
0x389c   : > { %12628 = vmatmul.mubr.msk.f32.vlgmr.msra.gmra.mrb[86].mxu0 %vm2450_vm11, %v10047_v48 }
0x38c6   : > { %v12579_v4 = vpop.f32.mrb[76].mxu0 }
0x38c7   : > { %v9157_v11 = vpop.f32.mrb[77].mxu0  ;;  %v9163_v37 = vadd.f32 %v15463_v39, %v12579_v4 }
0x38c8   : > { %v9158_v60 = vadd.f32 %v15463_v39, %v9157_v11 }
0x38c9   : > { %v9169_v42 = vsel %vm2450_vm11, %v9163_v37, -inf }
0x38ca   : > { %v9166_v40 = vsel %vm2450_vm11, %v9158_v60, -inf }
0x3957   : > { %v12589_v35 = vpop.f32.mrb[78].mxu0 }
0x3958   : > { %v9350_v46 = vpop.f32.mrb[79].mxu0  ;;  %v9356_v19 = vadd.f32 %v15463_v39, %v12589_v35 }
0x3959   : > { %v9351_v13 = vadd.f32 %v15463_v39, %v9350_v46 }
0x395a   : > { %v9362_v28 = vsel %vm2450_vm11, %v9356_v19, -inf }
0x395b   : > { %v9359_v44 = vsel %vm2450_vm11, %v9351_v13, -inf }
0x395e   : > { %v12599_v0 = vpop.f32.mrb[80].mxu0 }
0x395f   : > { %v9543_v62 = vpop.f32.mrb[81].mxu0  ;;  %v9549_v54 = vadd.f32 %v15463_v39, %v12599_v0 }
0x3960   : > { %v9544_v63 = vadd.f32 %v15463_v39, %v9543_v62 }
0x3961   : > { %v15542_v59 = vpop.f32.mrb[68].mxu1  ;;  %v9555_v27 = vsel %vm2450_vm11, %v9549_v54, -inf }
0x3962   : > { %v15544_v20 = vpop.f32.mrb[69].mxu1  ;;  %v9552_v38 = vsel %vm2450_vm11, %v9544_v63, -inf }
0x3964   : > { %v12609_v26 = vpop.f32.mrb[82].mxu0 }
0x3965   : > { %v9736_v7 = vpop.f32.mrb[83].mxu0  ;;  %v12569_v3 = vpop.f32.mrb[70].mxu1  ;;  %v9742_v30 = vadd.f32 %v15463_v39, %v12609_v26 }
0x3966   : > { %v15547_v52 = vadd.f32 %v15463_v39, %v12569_v3  ;;  %v8964_v50 = vpop.f32.mrb[71].mxu1  ;;  %v9737_v36 = vadd.f32 %v15463_v39, %v9736_v7 }
0x3967   : > { %v15550_v43 = vadd.f32 %v15463_v39, %v8964_v50  ;;  %v9748_v9 = vsel %vm2450_vm11, %v9742_v30, -inf }
0x3968   : > { %v8976_v18 = vsel %vm2450_vm11, %v15547_v52, -inf  ;;  %v9745_v47 = vsel %vm2450_vm11, %v9737_v36, -inf }
0x3969   : > { %8977 = vmax.xlane.f32.xlu1 %v8976_v18  ;;  %v8973_v56 = vsel %vm2450_vm11, %v15550_v43, -inf }
0x396a   : > { %8974 = vmax.xlane.f32.xlu0 %v8973_v56  ;;  %v12619_v29 = vpop.f32.mrb[84].mxu0 }
0x396b   : > { %v9929_v32 = vpop.f32.mrb[85].mxu0  ;;  %v15576_v55 = vadd.f32 %v15463_v39, %v12619_v29 }
0x396c   : > { %v9930_v45 = vadd.f32 %v15463_v39, %v9929_v32 }
0x396d   : > { %9360 = vmax.xlane.f32.xlu1 %v9359_v44  ;;  %v9941_v58 = vsel %vm2450_vm11, %v15576_v55, -inf }
0x396e   : > { %9167 = vmax.xlane.f32.xlu0 %v9166_v40  ;;  %v9938_v34 = vsel %vm2450_vm11, %v9930_v45, -inf }
0x396f   : > { %v12629_v53 = vpop.f32.mrb[86].mxu0 }
0x3970   : > { %v10122_v24 = vpop.f32.mrb[87].mxu0  ;;  %v15580_v61 = vadd.f32 %v15463_v39, %v12629_v53 }
0x3971   : > { %9553 = vmax.xlane.f32.xlu1 %v9552_v38  ;;  %v10123_v22 = vadd.f32 %v15463_v39, %v10122_v24 }
0x3972   : > { %9170 = vmax.xlane.f32.xlu0 %v9169_v42  ;;  %v10134_v2 = vsel %vm2450_vm11, %v15580_v61, -inf }
0x3973   : > { %v10131_v49 = vsel %vm2450_vm11, %v10123_v22, -inf }
0x3975   : > { %9746 = vmax.xlane.f32.xlu1 %v9745_v47 }
0x3976   : > { %9363 = vmax.xlane.f32.xlu0 %v9362_v28 }
0x3979   : > { %9939 = vmax.xlane.f32.xlu1 %v9938_v34 }
0x397a   : > { %9556 = vmax.xlane.f32.xlu0 %v9555_v27 }
0x397d   : > { %10132 = vmax.xlane.f32.xlu1 %v10131_v49 }
0x397e   : > { %9749 = vmax.xlane.f32.xlu0 %v9748_v9 }
0x3982   : > { %9942 = vmax.xlane.f32.xlu0 %v9941_v58 }
0x3986   : > { %10135 = vmax.xlane.f32.xlu0 %v10134_v2 }
0x39f6   : > { %v15586_v6 = vpop.xlane.xlu1 %8977 }
0x39f7   : > { %v15588_v12 = vpop.xlane.xlu0 %8974 }
0x39fa   : > { %v9361_v16 = vpop.xlane.xlu1 %9360 }
0x39fb   : > { %v9365_v57 = vsub.f32 %v9351_v13, %v9361_v16  ;;  %v9168_v25 = vpop.xlane.xlu0 %9167 }
0x39fc   : > { %v9172_v14 = vsub.f32 %v9158_v60, %v9168_v25 }
0x39fd   : > { %v9367_v10 = vmul.f32 1.442695, %v9365_v57 }
0x39fe   : > { %v9174_v1 = vmul.f32 1.442695, %v9172_v14  ;;  %v9554_v39 = vpop.xlane.xlu1 %9553 }
0x39ff   : > { %v9558_v31 = vsub.f32 %v9544_v63, %v9554_v39  ;;  %v9171_v8 = vpop.xlane.xlu0 %9170 }
0x3a00   : > { %13743 = vpow2.f32 %v9174_v1  ;;  %v9173_v48 = vsub.f32 %v9163_v37, %v9171_v8 }
0x3a01   : > { %13745 = vpow2.f32 %v9367_v10  ;;  %v9560_v4 = vmul.f32 1.442695, %v9558_v31 }
0x3a02   : > { %v9176_v11 = vmul.f32 1.442695, %v9173_v48  ;;  %v9747_v35 = vpop.xlane.xlu1 %9746 }
0x3a03   : > { %v9751_v46 = vsub.f32 %v9737_v36, %v9747_v35  ;;  %v9364_v0 = vpop.xlane.xlu0 %9363  ;;  %v8979_v35 = vsub.f32 %v15550_v43, %v15588_v12 }
0x3a04   : > { %13747 = vpow2.f32 %v9176_v11  ;;  %v9366_v62 = vsub.f32 %v9356_v19, %v9364_v0 }
0x3a05   : > { %13749 = vpow2.f32 %v9560_v4  ;;  %v9753_v26 = vmul.f32 1.442695, %v9751_v46  ;;  %v8981_v46 = vmul.f32 1.442695, %v8979_v35 }
0x3a06   : > { %v9369_v7 = vmul.f32 1.442695, %v9366_v62  ;;  %v9940_v3 = vpop.xlane.xlu1 %9939 }
0x3a07   : > { %v9944_v50 = vsub.f32 %v9930_v45, %v9940_v3  ;;  %v9557_v13 = vpop.xlane.xlu0 %9556 }
0x3a08   : > { %13751 = vpow2.f32 %v9369_v7  ;;  %v9559_v18 = vsub.f32 %v9549_v54, %v9557_v13 }
0x3a09   : > { %13753 = vpow2.f32 %v9753_v26  ;;  %v9946_v56 = vmul.f32 1.442695, %v9944_v50 }
0x3a0a   : > { %v15590_v60 = vpop.eup %13743  ;;  %v9562_v29 = vmul.f32 1.442695, %v9559_v18  ;;  %v10133_v32 = vpop.xlane.xlu1 %10132 }
0x3a0b   : > { %v10137_v63 = vsub.f32 %v10123_v22, %v10133_v32  ;;  %v9750_v44 = vpop.xlane.xlu0 %9749  ;;  %v9178_v37 = vsel %vm2450_vm11, %v15590_v60, 0.0  ;;  %v15594_v40 = vpop.eup %13745  ;;  %v8980_v22 = vsub.f32 %v15547_v52, %v15586_v6 }
0x3a0c   : > { %13755 = vpow2.f32 %v9562_v29  ;;  %v9752_v53 = vsub.f32 %v9742_v30, %v9750_v44  ;;  %9179 = vadd.xlane.f32.xlu1 %v9178_v37  ;;  %v9371_v45 = vsel %vm2450_vm11, %v15594_v40, 0.0 }
0x3a0d   : > { %13757 = vpow2.f32 %v9946_v56  ;;  %v10139_v24 = vmul.f32 1.442695, %v10137_v63  ;;  %v8983_v2 = vmul.f32 1.442695, %v8980_v22 }
0x3a0e   : > { %v15596_v36 = vpop.eup %13747  ;;  %v9755_v38 = vmul.f32 1.442695, %v9752_v53 }
0x3a0f   : > { %v9943_v19 = vpop.xlane.xlu0 %9942  ;;  %v9181_v42 = vsel %vm2450_vm11, %v15596_v36, 0.0  ;;  %v15602_v47 = vpop.eup %13749 }
0x3a10   : > { %13759 = vpow2.f32 %v9755_v38  ;;  %v9945_v54 = vsub.f32 %v15576_v55, %v9943_v19  ;;  %9182 = vadd.xlane.f32.xlu0 %v9181_v42  ;;  %9372 = vadd.xlane.f32.xlu1 %v9371_v45  ;;  %v9564_v49 = vsel %vm2450_vm11, %v15602_v47, 0.0 }
0x3a11   : > { %13761 = vpow2.f32 %v10139_v24 }
0x3a12   : > { %v15605_v28 = vpop.eup %13751  ;;  %v9948_v34 = vmul.f32 1.442695, %v9945_v54 }
0x3a13   : > { %v10136_v30 = vpop.xlane.xlu0 %10135  ;;  %v9374_v27 = vsel %vm2450_vm11, %v15605_v28, 0.0  ;;  %v15613_v9 = vpop.eup %13753 }
0x3a14   : > { %13763 = vpow2.f32 %v9948_v34  ;;  %v10138_v55 = vsub.f32 %v15580_v61, %v10136_v30  ;;  %9375 = vadd.xlane.f32.xlu0 %v9374_v27  ;;  %9565 = vadd.xlane.f32.xlu1 %v9564_v49  ;;  %v9757_v16 = vsel %vm2450_vm11, %v15613_v9, 0.0 }
0x3a16   : > { %v15616_v58 = vpop.eup %13755  ;;  %v10141_v52 = vmul.f32 1.442695, %v10138_v55 }
0x3a17   : > { %v9567_v6 = vsel %vm2450_vm11, %v15616_v58, 0.0  ;;  %v15622_v57 = vpop.eup %13757 }
0x3a18   : > { %13765 = vpow2.f32 %v10141_v52  ;;  %9568 = vadd.xlane.f32.xlu0 %v9567_v6  ;;  %9758 = vadd.xlane.f32.xlu1 %v9757_v16  ;;  %v9950_v14 = vsel %vm2450_vm11, %v15622_v57, 0.0 }
0x3a19   : > { %13767 = vpow2.f32 %v8983_v2 }
0x3a1a   : > { %v15624_v25 = vpop.eup %13759  ;;  %13769 = vpow2.f32 %v8981_v46  ;;  %v11528_v46 = vld [vmem:[%s16037_s9 + $0x40] sm:$0xff] }
0x3a1b   : > { %v9760_v61 = vsel %vm2450_vm11, %v15624_v25, 0.0  ;;  %v15630_v10 = vpop.eup %13761 }
0x3a1c   : > { %9761 = vadd.xlane.f32.xlu0 %v9760_v61  ;;  %9951 = vadd.xlane.f32.xlu1 %v9950_v14  ;;  %v10143_v31 = vsel %vm2450_vm11, %v15630_v10, 0.0 }
0x3a1e   : > { %v15632_v1 = vpop.eup %13763 }
0x3a1f   : > { %v9953_v39 = vsel %vm2450_vm11, %v15632_v1, 0.0 }
0x3a20   : > { %9954 = vadd.xlane.f32.xlu0 %v9953_v39  ;;  %10144 = vadd.xlane.f32.xlu1 %v10143_v31 }
0x3a22   : > { %v15638_v8 = vpop.eup %13765 }
0x3a23   : > { %v10146_v48 = vsel %vm2450_vm11, %v15638_v8, 0.0  ;;  %v13768_v4 = vpop.eup %13767 }
0x3a24   : > { %10147 = vadd.xlane.f32.xlu0 %v10146_v48  ;;  %v8988_v11 = vsel %vm2450_vm11, %v13768_v4, 0.0  ;;  %v13770_v0 = vpop.eup %13769 }
0x3a25   : > { %v8985_v62 = vsel %vm2450_vm11, %v13770_v0, 0.0 }
0x3a28   : > { %8989 = vadd.xlane.f32.xlu0 %v8988_v11 }
0x3a31   : > { %8995 = vrot.lane.b32.xlu1 %v15438_v33, %s16000_s1 }
0x3a3e   : > { %9188 = vrot.lane.b32.xlu0 %v15438_v33, %s16020_s12 }
0x3a42   : > { %9767 = vrot.lane.b32.xlu0 %v15438_v33, %s16021_s10 }
0x3a46   : > { %10153 = vrot.lane.b32.xlu0 %v15438_v33, %s16022_s29 }
0x3a55   : > { %8986 = vadd.xlane.f32.xlu1 %v8985_v62 }
0x3a66   : > { %9381 = vrot.lane.b32.xlu1 %v15438_v33, %s16023_s30 }
0x3a6a   : > { %9574 = vrot.lane.b32.xlu1 %v15438_v33, %s16024_s7 }
0x3a6e   : > { %9960 = vrot.lane.b32.xlu1 %v15438_v33, %s16025_s17 }
0x3a99   : > { %v9180_v43 = vpop.xlane.xlu1 %9179 }
0x3a9a   : > { %13771 = vrcp.f32 %v9180_v43  ;;  %v11530_v43 = vld [vmem:[%s16037_s9 + $0x50] sm:$0xff] }
0x3a9d   : > { %v9183_v12 = vpop.xlane.xlu0 %9182  ;;  %v9373_v26 = vpop.xlane.xlu1 %9372 }
0x3aa1   : > { %v9376_v7 = vpop.xlane.xlu0 %9375  ;;  %v9566_v3 = vpop.xlane.xlu1 %9565 }
0x3aa4   : > { %v13772_v24 = vpop.eup %13771 }
0x3aa5   : > { %v9569_v50 = vpop.xlane.xlu0 %9568  ;;  %v9759_v13 = vpop.xlane.xlu1 %9758  ;;  %v9186_v34 = vmul.f32 %v13772_v24, %v15590_v60 }
0x3aa9   : > { %v9762_v18 = vpop.xlane.xlu0 %9761  ;;  %v9952_v56 = vpop.xlane.xlu1 %9951 }
0x3aad   : > { %v9955_v29 = vpop.xlane.xlu0 %9954  ;;  %v10145_v32 = vpop.xlane.xlu1 %10144 }
0x3ab1   : > { %v10148_v63 = vpop.xlane.xlu0 %10147  ;;  %v8996_v44 = vpop.permute.xlu1 %8995 }
0x3ab2   : > { %12570 = vmatprep.subr.mxu1 %v8996_v44 }
0x3ab3   : > { %12571 = vmatpush3.msra.mxu1 %v8996_v44 }
0x3ab5   : > { %v8990_v37 = vpop.xlane.xlu0 %8989 }
0x3ab6   : > { %13773 = vrcp.f32 %v8990_v37 }
0x3ab9   : > { %v9189_v53 = vpop.permute.xlu0 %9188 }
0x3aba   : > { %12580 = vmatprep.subr.mxu1 %v9189_v53 }
0x3ac0   : > { %v13774_v38 = vpop.eup %13773 }
0x3ac1   : > { %v8994_v45 = vmul.f32 %v13774_v38, %v13768_v4 }
0x3ae2   : > { %v8987_v33 = vpop.xlane.xlu1 %8986 }
0x3ae3   : > { %13775 = vrcp.f32 %v8987_v33 }
0x3ae4   : > { %13777 = vrcp.f32 %v9183_v12  ;;  %v11531_v12 = vld [vmem:[%s16037_s9 + $0x58] sm:$0xff] }
0x3ae5   : > { %13779 = vrcp.f32 %v9373_v26 }
0x3ae6   : > { %13781 = vrcp.f32 %v9376_v7  ;;  %v9382_v22 = vpop.permute.xlu1 %9381 }
0x3ae7   : > { %13783 = vrcp.f32 %v9566_v3  ;;  %v11532_v3 = vld [vmem:[%s16037_s9 + $0x60] sm:$0xff] }
0x3ae8   : > { %13785 = vrcp.f32 %v9569_v50  ;;  %v11533_v50 = vld [vmem:[%s16037_s9 + $0x68] sm:$0xff] }
0x3ae9   : > { %13787 = vrcp.f32 %v9759_v13  ;;  %v13168_v13 = vpack.c.bf16 %v11533_v50, %v11532_v3 }
0x3aea   : > { %13789 = vrcp.f32 %v9762_v18  ;;  %v9575_v52 = vpop.permute.xlu1 %9574 }
0x3aeb   : > { %13791 = vrcp.f32 %v9952_v56 }
0x3aec   : > { %13793 = vrcp.f32 %v9955_v29  ;;  %v11534_v29 = vld [vmem:[%s16037_s9 + $0x70] sm:$0xff] }
0x3aed   : > { %v13776_v19 = vpop.eup %13775  ;;  %13795 = vrcp.f32 %v10145_v32  ;;  %v11535_v32 = vld [vmem:[%s16037_s9 + $0x78] sm:$0xff] }
0x3aee   : > { %v8993_v42 = vmul.f32 %v13776_v19, %v13770_v0  ;;  %v13778_v54 = vpop.eup %13777  ;;  %13797 = vrcp.f32 %v10148_v63  ;;  %v9961_v31 = vpop.permute.xlu1 %9960  ;;  %v11529_v0 = vld [vmem:[%s16037_s9 + $0x48] sm:$0xff]  ;;  %v13172_v63 = vpack.c.bf16 %v11535_v32, %v11534_v29  ;;  %v11547_v29 = vld [vmem:[%s16028_s24 + $0x98] sm:$0xff] }
0x3aef   : > { %v13780_v30 = vpop.eup %13779  ;;  %v9187_v27 = vmul.f32 %v13778_v54, %v15596_v36 }
0x3af0   : > { %12572 = vmatprep.mubr.msk.f32.mxu1 %vm2450_vm11, %v8993_v42  ;;  %v13782_v49 = vpop.eup %13781  ;;  %v9379_v55 = vmul.f32 %v13780_v30, %v15594_v40  ;;  %v9768_v40 = vpop.permute.xlu0 %9767 }
0x3af1   : > { %12573 = vmatmul.mubr.msk.f32.vlgmr.msra.gmra.mrb[72].mxu1 %vm2450_vm11, %v8994_v45  ;;  %v13784_v2 = vpop.eup %13783  ;;  %v9380_v60 = vmul.f32 %v13782_v49, %v15605_v28 }
0x3af2   : > { %12581 = vmatpush3.msra.mxu1 %v9189_v53  ;;  %12582 = vmatprep.mubr.msk.f32.mxu1 %vm2450_vm11, %v9186_v34  ;;  %v13786_v6 = vpop.eup %13785  ;;  %v9572_v36 = vmul.f32 %v13784_v2, %v15602_v47 }
0x3af3   : > { %12590 = vmatprep.subr.mxu1 %v9382_v22  ;;  %v13788_v16 = vpop.eup %13787  ;;  %v9573_v61 = vmul.f32 %v13786_v6, %v15616_v58 }
0x3af4   : > { %v13790_v14 = vpop.eup %13789  ;;  %v9765_v39 = vmul.f32 %v13788_v16, %v15613_v9  ;;  %v10154_v58 = vpop.permute.xlu0 %10153 }
0x3af5   : > { %12583 = vmatmul.mubr.msk.f32.vlgmr.msra.gmra.mrb[74].mxu1 %vm2450_vm11, %v9187_v27  ;;  %v13792_v28 = vpop.eup %13791  ;;  %v9766_v47 = vmul.f32 %v13790_v14, %v15624_v25 }
0x3af6   : > { %12591 = vmatpush3.msra.mxu1 %v9382_v22  ;;  %12592 = vmatprep.mubr.msk.f32.mxu1 %vm2450_vm11, %v9379_v55  ;;  %v13794_v48 = vpop.eup %13793  ;;  %v9958_v4 = vmul.f32 %v13792_v28, %v15622_v57 }
0x3af7   : > { %12600 = vmatprep.subr.mxu1 %v9575_v52  ;;  %v13796_v11 = vpop.eup %13795  ;;  %v9959_v9 = vmul.f32 %v13794_v48, %v15632_v1  ;;  %v13160_v1 = vpack.c.bf16 %v11529_v0, %v11528_v46 }
0x3af8   : > { %v13798_v35 = vpop.eup %13797  ;;  %v10151_v25 = vmul.f32 %v13796_v11, %v15630_v10 }
0x3af9   : > { %12593 = vmatmul.mubr.msk.f32.vlgmr.msra.gmra.mrb[76].mxu1 %vm2450_vm11, %v9380_v60  ;;  %v10152_v57 = vmul.f32 %v13798_v35, %v15638_v8  ;;  %13161 = vmatprep.subr.bf16.mxu0 %v13160_v1  ;;  %v13164_v8 = vpack.c.bf16 %v11531_v12, %v11530_v43  ;;  %v11537_v35 = vld [vmem:[%s16038_s13 + $0x1] ss:$0 sm:$0xff] }
0x3afa   : > { %12601 = vmatpush3.msra.mxu1 %v9575_v52  ;;  %12602 = vmatprep.mubr.msk.f32.mxu1 %vm2450_vm11, %v9572_v36 }
0x3afb   : > { %12610 = vmatprep.subr.mxu1 %v9768_v40  ;;  %13163 = vmatpush3.bf16.msra.mxu0 %v13160_v1 }
0x3afc   : > { %13165 = vmatprep.subr.bf16.mxu0 %v13164_v8 }
0x3afd   : > { %12603 = vmatmul.mubr.msk.f32.vlgmr.msra.gmra.mrb[78].mxu1 %vm2450_vm11, %v9573_v61 }
0x3afe   : > { %12611 = vmatpush3.msra.mxu1 %v9768_v40  ;;  %12612 = vmatprep.mubr.msk.f32.mxu1 %vm2450_vm11, %v9765_v39 }
0x3aff   : > { %12620 = vmatprep.subr.mxu1 %v9961_v31  ;;  %13167 = vmatpush3.bf16.msra.mxu0 %v13164_v8 }
0x3b00   : > { %13169 = vmatprep.subr.bf16.mxu0 %v13168_v13 }
0x3b01   : > { %12613 = vmatmul.mubr.msk.f32.vlgmr.msra.gmra.mrb[80].mxu1 %vm2450_vm11, %v9766_v47 }
0x3b02   : > { %12621 = vmatpush3.msra.mxu1 %v9961_v31  ;;  %12622 = vmatprep.mubr.msk.f32.mxu1 %vm2450_vm11, %v9958_v4 }
0x3b03   : > { %12630 = vmatprep.subr.mxu1 %v10154_v58  ;;  %13171 = vmatpush3.bf16.msra.mxu0 %v13168_v13 }
0x3b04   : > { %13173 = vmatprep.subr.bf16.mxu0 %v13172_v63 }
0x3b05   : > { %12623 = vmatmul.mubr.msk.f32.vlgmr.msra.gmra.mrb[82].mxu1 %vm2450_vm11, %v9959_v9 }
0x3b06   : > { %12631 = vmatpush3.msra.mxu1 %v10154_v58  ;;  %12632 = vmatprep.mubr.msk.f32.mxu1 %vm2450_vm11, %v10151_v25 }
0x3b07   : > { %13175 = vmatpush3.bf16.msra.mxu0 %v13172_v63  ;;  %v11544_v63 = vld [vmem:[%s16028_s24 + $0x80] sm:$0xff] }
0x3b09   : > { %12633 = vmatmul.mubr.msk.f32.vlgmr.msra.gmra.mrb[84].mxu1 %vm2450_vm11, %v10152_v57 }
0x3b0a   : > { %10588 = vmatprep.mubr.f32.mxu1 %v13886_v5 }
0x3bc4   : > { %v12574_v62 = vpop.f32.mrb[72].mxu1 }
0x3bc5   : > { %10241 = vrot.lane.b32.xlu0 %v12574_v62, %s16022_s29  ;;  %v9070_v10 = vpop.f32.mrb[73].mxu1 }
0x3bc6   : > { %10239 = vrot.lane.b32.xlu1 %v9070_v10, %s16022_s29  ;;  %s16041_s29 = sld [smem:[#allocation23_spill]] }
0x3bc8   : > { %v12584_v26 = vpop.f32.mrb[74].mxu1 }
0x3bc9   : > { %10249 = vrot.lane.b32.xlu0 %v12584_v26, %s16025_s17  ;;  %v9263_v7 = vpop.f32.mrb[75].mxu1 }
0x3bca   : > { %10247 = vrot.lane.b32.xlu1 %v9263_v7, %s16025_s17  ;;  %s16039_s17 = sld [smem:[#allocation43_spill]] }
0x3bcc   : > { %v12594_v18 = vpop.f32.mrb[76].mxu1 }
0x3bcd   : > { %10257 = vrot.lane.b32.xlu0 %v12594_v18, %s16021_s10  ;;  %v9456_v56 = vpop.f32.mrb[77].mxu1 }
0x3bce   : > { %10255 = vrot.lane.b32.xlu1 %v9456_v56, %s16021_s10  ;;  %v11545_v56 = vld [vmem:[%s16028_s24 + $0x88] sm:$0xff] }
0x3bcf   : > { %v13176_v32 = vpack.c.bf16 %v11547_v29, %v11545_v56  ;;  %v11567_v29 = vld [vmem:[%s14128_s8 + $0x130] sm:$0xff] }
0x3bd0   : > { %v12604_v44 = vpop.f32.mrb[78].mxu1 }
0x3bd1   : > { %10265 = vrot.lane.b32.xlu0 %v12604_v44, %s16024_s7  ;;  %v9649_v37 = vpop.f32.mrb[79].mxu1  ;;  %v11546_v44 = vld [vmem:[%s16028_s24 + $0x90] sm:$0xff]  ;;  %13177 = vmatprep.subr.bf16.mxu1 %v13176_v32  ;;  %v11568_v32 = vld [vmem:[%s14128_s8 + $0x138] sm:$0xff] }
0x3bd2   : > { %10263 = vrot.lane.b32.xlu1 %v9649_v37, %s16024_s7  ;;  %v13178_v37 = vpack.c.bf16 %v11546_v44, %v11544_v63  ;;  %v13206_v63 = vpack.c.bf16 %v11568_v32, %v11567_v29  ;;  %v11585_v44 = vld [vmem:[%s14128_s8 + $0x1c0] sm:$0xff]  ;;  %s1446_s7 = scalar_lea.vmem %s16046_s20, %s16045_s6 }
0x3bd4   : > { %v12614_v53 = vpop.f32.mrb[80].mxu1  ;;  %13179 = vmatpush1.bf16.msra.mxu1 %v13178_v37  ;;  %v11586_v37 = vld [vmem:[%s14128_s8 + $0x1c8] sm:$0xff] }
0x3bd5   : > { %10273 = vrot.lane.b32.xlu0 %v12614_v53, %s16023_s30  ;;  %v9842_v33 = vpop.f32.mrb[81].mxu1  ;;  %v11549_v53 = vld [vmem:[%s16028_s24 + $0xa8] sm:$0xff] }
0x3bd6   : > { %10271 = vrot.lane.b32.xlu1 %v9842_v33, %s16023_s30  ;;  %v11551_v33 = vld [vmem:[%s16028_s24 + $0xb8] sm:$0xff]  ;;  %s16044_s30 = sld [smem:[#allocation26_spill]] }
0x3bd8   : > { %v12624_v24 = vpop.f32.mrb[82].mxu1 }
0x3bd9   : > { %10281 = vrot.lane.b32.xlu0 %v12624_v24, %s16020_s12  ;;  %v10035_v38 = vpop.f32.mrb[83].mxu1  ;;  %v13180_v24 = vpack.c.bf16 %v11551_v33, %v11549_v53  ;;  %v13208_v53 = vpack.c.bf16 %v11586_v37, %v11585_v44  ;;  %v11569_v33 = vld [vmem:[%s14128_s8 + $0x140] sm:$0xff] }
0x3bda   : > { %10279 = vrot.lane.b32.xlu1 %v10035_v38, %s16020_s12  ;;  %v11548_v38 = vld [vmem:[%s16028_s24 + $0xa0] sm:$0xff] }
0x3bdb   : > { %13181 = vmatprep.subr.bf16.mxu1 %v13180_v24  ;;  %v11570_v24 = vld [vmem:[%s14128_s8 + $0x148] sm:$0xff] }
0x3bdc   : > { %v12634_v19 = vpop.f32.mrb[84].mxu1 }
0x3bdd   : > { %10289 = vrot.lane.b32.xlu0 %v12634_v19, %s16000_s1  ;;  %v10228_v42 = vpop.f32.mrb[85].mxu1  ;;  %v11550_v19 = vld [vmem:[%s16028_s24 + $0xb0] sm:$0xff] }
0x3bde   : > { %10287 = vrot.lane.b32.xlu1 %v10228_v42, %s16000_s1  ;;  %v13182_v42 = vpack.c.bf16 %v11550_v19, %v11548_v38  ;;  %v13210_v38 = vpack.c.bf16 %v11570_v24, %v11569_v33  ;;  %v11587_v19 = vld [vmem:[%s14128_s8 + $0x1d0] sm:$0xff] }
0x3be0   : > { %13183 = vmatpush1.bf16.msra.mxu1 %v13182_v42  ;;  %v11588_v42 = vld [vmem:[%s14128_s8 + $0x1d8] sm:$0xff] }
0x3c37   : > { %v10242_v45 = vpop.permute.xlu0 %10241 }
0x3c38   : > { %v10240_v54 = vpop.permute.xlu1 %10239  ;;  %v10294_v36 = vsel %vm2450_vm11, %v15542_v59, %v10242_v45  ;;  %v11553_v45 = vld [vmem:[%s16028_s24 + $0xc8] sm:$0xff] }
0x3c39   : > { %v10293_v60 = vsel %vm2450_vm11, %v15544_v20, %v10240_v54  ;;  %v11555_v54 = vld [vmem:[%s16028_s24 + $0xd8] sm:$0xff] }
0x3c3b   : > { %v10250_v22 = vpop.permute.xlu0 %10249 }
0x3c3c   : > { %v10248_v34 = vpop.permute.xlu1 %10247  ;;  %v10296_v61 = vsel %vm1503_vm0, %v10294_v36, %v10250_v22  ;;  %v13184_v22 = vpack.c.bf16 %v11555_v54, %v11553_v45  ;;  %v13212_v45 = vpack.c.bf16 %v11588_v42, %v11587_v19  ;;  %v11571_v54 = vld [vmem:[%s14128_s8 + $0x150] sm:$0xff] }
0x3c3d   : > { %v10295_v16 = vsel %vm1503_vm0, %v10293_v60, %v10248_v34  ;;  %v11552_v34 = vld [vmem:[%s16028_s24 + $0xc0] sm:$0xff]  ;;  %v11558_v60 = vld [vmem:[%s16028_s24 + $0xf0] sm:$0xff] }
0x3c3e   : > { %13185 = vmatprep.subr.bf16.mxu1 %v13184_v22  ;;  %v11572_v22 = vld [vmem:[%s14128_s8 + $0x158] sm:$0xff] }
0x3c3f   : > { %v10258_v30 = vpop.permute.xlu0 %10257 }
0x3c40   : > { %v10256_v27 = vpop.permute.xlu1 %10255  ;;  %v10298_v39 = vsel %vm4101_vm13, %v10296_v61, %v10258_v30  ;;  %v11554_v30 = vld [vmem:[%s16028_s24 + $0xd0] sm:$0xff] }
0x3c41   : > { %v10297_v14 = vsel %vm4101_vm13, %v10295_v16, %v10256_v27  ;;  %v13186_v27 = vpack.c.bf16 %v11554_v30, %v11552_v34  ;;  %v13214_v34 = vpack.c.bf16 %v11572_v22, %v11571_v54  ;;  %v11589_v30 = vld [vmem:[%s14128_s8 + $0x1e0] sm:$0xff] }
0x3c43   : > { %v10266_v49 = vpop.permute.xlu0 %10265  ;;  %13187 = vmatpush1.bf16.msra.mxu1 %v13186_v27  ;;  %v11590_v27 = vld [vmem:[%s14128_s8 + $0x1e8] sm:$0xff] }
0x3c44   : > { %v10264_v55 = vpop.permute.xlu1 %10263  ;;  %v10300_v31 = vsel %vm1846_vm1, %v10298_v39, %v10266_v49  ;;  %v11557_v49 = vld [vmem:[%s16028_s24 + $0xe8] sm:$0xff] }
0x3c45   : > { %v10299_v28 = vsel %vm1846_vm1, %v10297_v14, %v10264_v55  ;;  %v11559_v55 = vld [vmem:[%s16028_s24 + $0xf8] sm:$0xff] }
0x3c47   : > { %v10274_v2 = vpop.permute.xlu0 %10273 }
0x3c48   : > { %v10272_v52 = vpop.permute.xlu1 %10271  ;;  %v10302_v48 = vsel %vm4106_vm14, %v10300_v31, %v10274_v2  ;;  %v11556_v2 = vld [vmem:[%s16028_s24 + $0xe0] sm:$0xff] }
0x3c49   : > { %v10301_v20 = vsel %vm4106_vm14, %v10299_v28, %v10272_v52  ;;  %v13188_v52 = vpack.c.bf16 %v11559_v55, %v11557_v49  ;;  %v13216_v49 = vpack.c.bf16 %v11590_v27, %v11589_v30  ;;  %v11573_v55 = vld [vmem:[%s14128_s8 + $0x160] sm:$0xff] }
0x3c4b   : > { %v10282_v6 = vpop.permute.xlu0 %10281  ;;  %13189 = vmatprep.subr.bf16.mxu1 %v13188_v52 }
0x3c4c   : > { %v10280_v40 = vpop.permute.xlu1 %10279  ;;  %v10304_v11 = vsel %vm4109_vm15, %v10302_v48, %v10282_v6  ;;  %v13190_v6 = vpack.c.bf16 %v11558_v60, %v11556_v2  ;;  %v11574_v2 = vld [vmem:[%s14128_s8 + $0x168] sm:$0xff]  ;;  %v11591_v60 = vld [vmem:[%s14128_s8 + $0x1f0] sm:$0xff] }
0x3c4d   : > { %v10303_v59 = vsel %vm4109_vm15, %v10301_v20, %v10280_v40  ;;  %v11542_v20 = vld [vmem:[%s16029_s0 + $0x1] ss:$0 sm:$0xff]  ;;  %v13218_v52 = vpack.c.bf16 %v11574_v2, %v11573_v55 }
0x3c4e   : > { %13191 = vmatpush1.bf16.msra.mxu1 %v13190_v6  ;;  %v11592_v6 = vld [vmem:[%s14128_s8 + $0x1f8] sm:$0xff] }
0x3c4f   : > { %v10290_v47 = vpop.permute.xlu0 %10289 }
0x3c50   : > { %v10288_v4 = vpop.permute.xlu1 %10287  ;;  %v10306_v9 = vsel %vm4112_vm2, %v10304_v11, %v10290_v47 }
0x3c51   : > { %v10305_v58 = vsel %vm4112_vm2, %v10303_v59, %v10288_v4  ;;  %v11543_v59 = vld [vmem:[%s16030_s5 + $0x1] ss:$0 sm:$0xff] }
0x3c52   : > { %12651 = vmatprep.mubr.msk.f32.mxu0 %vm2113_vm6, %v10305_v58 }
0x3c53   : > { %12652 = vmatmul.mubr.msk.f32.vlgmr.msra.gmra.mrb[88].mxu0 %vm2113_vm6, %v10306_v9 }
0x3d26   : > { %v12653_v25 = vpop.f32.mrb[88].mxu0 }
0x3d27   : > { %v10402_v57 = vadd.f32 %v12653_v25, %v11537_v35  ;;  %v10396_v46 = vpop.f32.mrb[89].mxu0  ;;  %v11578_v25 = vld [vmem:[%s14128_s8 + $0x188] sm:$0xff] }
0x3d28   : > { %v10397_v0 = vadd.f32 %v11537_v35, %v10396_v46  ;;  %v11577_v35 = vld [vmem:[%s14128_s8 + $0x180] sm:$0xff] }
0x3d29   : > { %v10406_v1 = vadd.f32 %v10402_v57, %v15450_v21  ;;  %v13192_v57 = vpack.c.bf16 %v11578_v25, %v11577_v35  ;;  %v11561_v46 = vld [vmem:[%s14128_s8 + $0x100] sm:$0xff] }
0x3d2a   : > { %v10405_v62 = vadd.f32 %v10397_v0, %v15446_v23  ;;  %v11562_v0 = vld [vmem:[%s14128_s8 + $0x108] sm:$0xff] }
0x3d2b   : > { %v10414_v10 = vsel %vm2113_vm6, %v10406_v1, 0.0  ;;  %13193 = vmatprep.subr.bf16.mxu0 %v13192_v57 }
0x3d2c   : > { %10415 = vadd.xlane.f32.xlu0 %v10414_v10  ;;  %v10411_v43 = vsel %vm2113_vm6, %v10405_v62, 0.0 }
0x3d2d   : > { %10412 = vadd.xlane.f32.xlu1 %v10411_v43  ;;  %v11563_v43 = vld [vmem:[%s14128_s8 + $0x110] sm:$0xff] }
0x3db9   : > { %v10416_v12 = vpop.xlane.xlu0 %10415 }
0x3dba   : > { %v10418_v8 = vmul.f32 0.015625, %v10416_v12  ;;  %v10413_v26 = vpop.xlane.xlu1 %10412  ;;  %v11564_v12 = vld [vmem:[%s14128_s8 + $0x118] sm:$0xff] }
0x3dbb   : > { %v10417_v7 = vmul.f32 0.015625, %v10413_v26  ;;  %v11581_v26 = vld [vmem:[%s14128_s8 + $0x1a0] sm:$0xff] }
0x3dbc   : > { %v10420_v3 = vsub.f32 %v10406_v1, %v10418_v8  ;;  %v13194_v1 = vpack.c.bf16 %v11562_v0, %v11561_v46  ;;  %v13198_v8 = vpack.c.bf16 %v11564_v12, %v11563_v43 }
0x3dbd   : > { %v10419_v50 = vsub.f32 %v10405_v62, %v10417_v7  ;;  %v11579_v62 = vld [vmem:[%s14128_s8 + $0x190] sm:$0xff]  ;;  %v11582_v7 = vld [vmem:[%s14128_s8 + $0x1a8] sm:$0xff] }
0x3dbe   : > { %v10422_v21 = vmul.f32 %v10420_v3, %v10420_v3  ;;  %13195 = vmatpush3.bf16.msra.mxu0 %v13194_v1 }
0x3dbf   : > { %v10421_v23 = vmul.f32 %v10419_v50, %v10419_v50 }
0x3dc0   : > { %v10426_v13 = vsel %vm2113_vm6, %v10422_v21, 0.0  ;;  %v11566_v21 = vld [vmem:[%s14128_s8 + $0x128] sm:$0xff] }
0x3dc1   : > { %10427 = vadd.xlane.f32.xlu1 %v10426_v13  ;;  %v10423_v18 = vsel %vm2113_vm6, %v10421_v23, 0.0  ;;  %v11583_v13 = vld [vmem:[%s14128_s8 + $0x1b0] sm:$0xff] }
0x3dc2   : > { %10424 = vadd.xlane.f32.xlu0 %v10423_v18  ;;  %v11584_v18 = vld [vmem:[%s14128_s8 + $0x1b8] sm:$0xff] }
0x3dc3   : > { %v13204_v56 = vpack.c.bf16 %v11584_v18, %v11583_v13 }
0x3e4e   : > { %v10428_v36 = vpop.xlane.xlu1 %10427 }
0x3e4f   : > { %v10430_v16 = vmul.f32 0.015625, %v10428_v36  ;;  %v10425_v40 = vpop.xlane.xlu0 %10424  ;;  %v13220_v36 = vpack.c.bf16 %v11592_v6, %v11591_v60 }
0x3e50   : > { %v10429_v61 = vmul.f32 0.015625, %v10425_v40  ;;  %v11576_v40 = vld [vmem:[%s14128_s8 + $0x178] sm:$0xff] }
0x3e51   : > { %v10432_v14 = vadd.f32 1e-05, %v10430_v16  ;;  %v11575_v16 = vld [vmem:[%s14128_s8 + $0x170] sm:$0xff] }
0x3e52   : > { %v10431_v39 = vadd.f32 1e-05, %v10429_v61  ;;  %v13222_v61 = vpack.c.bf16 %v11576_v40, %v11575_v16 }
0x3e53   : > { %13799 = vrsqrt.f32 %v10432_v14  ;;  %v11560_v14 = vld [vmem:[%s16039_s17 + $0x2] sm:$0x3] }
0x3e54   : > { %13801 = vrsqrt.f32 %v10431_v39  ;;  %v10511_v39 = vrot.slane %v11560_v14, %v14213_v15 }
0x3e5d   : > { %v13800_v28 = vpop.eup %13799 }
0x3e5e   : > { %v13802_v31 = vpop.eup %13801  ;;  %v10436_v48 = vmul.f32 %v13800_v28, %v10420_v3  ;;  %v13200_v3 = vpack.c.bf16 %v11582_v7, %v11581_v26  ;;  %v10515_v28 = vrot.slane %v11560_v14, %v14216_v17 }
0x3e5f   : > { %v10435_v47 = vmul.f32 %v13802_v31, %v10419_v50  ;;  %v11565_v50 = vld [vmem:[%s14128_s8 + $0x120] sm:$0xff] }
0x3e60   : > { %v10444_v58 = vmul.f32 %v11542_v20, %v10436_v48  ;;  %v13202_v23 = vpack.c.bf16 %v11566_v21, %v11565_v50 }
0x3e61   : > { %v10443_v4 = vmul.f32 %v11542_v20, %v10435_v47 }
0x3e62   : > { %v15757_v9 = vadd.f32 %v11543_v59, %v10444_v58 }
0x3e63   : > { %v15752_v11 = vadd.f32 %v11543_v59, %v10443_v4 }
0x3e65   : > { %11594 = vmatmul.mubr.msk.f32.vlgmr.msra.gmra.mrb[86].mxu1 %vm2113_vm6, %v15752_v11 }
0x3e66   : > { %10594 = vmatprep.mubr.f32.mxu1 %v13886_v5  ;;  %v11580_v5 = vld [vmem:[%s14128_s8 + $0x198] sm:$0xff] }
0x3e67   : > { %v13196_v10 = vpack.c.bf16 %v11580_v5, %v11579_v62 }
0x3e69   : > { %11595 = vmatmul.mubr.msk.f32.gmra.mrb[88].mxu1 %vm2113_vm6, %v15757_v9  ;;  %13197 = vmatprep.subr.bf16.mxu0 %v13196_v10 }
0x3e6a   : > { %13199 = vmatpush3.bf16.msra.mxu0 %v13198_v8 }
0x3e6b   : > { %13201 = vmatprep.subr.bf16.mxu0 %v13200_v3 }
0x3e6e   : > { %13203 = vmatpush3.bf16.msra.mxu0 %v13202_v23 }
0x3e6f   : > { %13205 = vmatprep.subr.bf16.mxu0 %v13204_v56 }
0x3e72   : > { %13207 = vmatpush3.bf16.msra.mxu0 %v13206_v63 }
0x3e73   : > { %13209 = vmatprep.subr.bf16.mxu0 %v13208_v53 }
0x3e76   : > { %13211 = vmatpush3.bf16.msra.mxu0 %v13210_v38 }
0x3e77   : > { %13213 = vmatprep.subr.bf16.mxu0 %v13212_v45 }
0x3e7a   : > { %13215 = vmatpush3.bf16.msra.mxu0 %v13214_v34 }
0x3e7b   : > { %13217 = vmatprep.subr.bf16.mxu0 %v13216_v49 }
0x3e7e   : > { %13219 = vmatpush3.bf16.msra.mxu0 %v13218_v52 }
0x3e7f   : > { %13221 = vmatprep.subr.bf16.mxu0 %v13220_v36 }
0x3e82   : > { %13223 = vmatpush3.bf16.msra.mxu0 %v13222_v61 }
0x3f38   : > { %v10590_v31 = vpop.f32.mrb[86].mxu1 }
0x3f39   : > { %v15796_v20 = vadd.f32 %v10590_v31, %v10511_v39  ;;  %v10592_v47 = vpop.f32.mrb[87].mxu1 }
0x3f3a   : > { %v15798_v48 = vadd.f32 %v10592_v47, %v10515_v28 }
0x3f3b   : > { %v15801_v59 = vmul.f32 0.70710677, %v15796_v20 }
0x3f3c   : > { %v15804_v4 = vmul.f32 0.70710677, %v15798_v48  ;;  %v10596_v58 = vpop.f32.mrb[88].mxu1 }
0x3f3d   : > { %v10605_v35 = vand.u32 2147483647, %v15801_v59  ;;  %v15807_v25 = vadd.f32 %v10596_v58, %v10511_v39  ;;  %v10598_v15 = vpop.f32.mrb[89].mxu1  ;;  %vm10685_vm1 = vcmp.ge.f32.partialorder %v15801_v59, 0.0 }
0x3f3e   : > { %v10606_v17 = vand.u32 2147483647, %v15804_v4  ;;  %v15810_v57 = vadd.f32 %v10598_v15, %v10515_v28  ;;  %vm10686_vm9 = vcmp.ge.f32.partialorder %v15804_v4, 0.0 }
0x3f3f   : > { %v10609_v46 = vmul.f32 0.3275911, %v10605_v35  ;;  %v15813_v0 = vmul.f32 0.70710677, %v15807_v25  ;;  %v10661_v50 = vsub.f32 0.0, %v10605_v35 }
0x3f40   : > { %v10610_v1 = vmul.f32 0.3275911, %v10606_v17  ;;  %v15816_v62 = vmul.f32 0.70710677, %v15810_v57  ;;  %v10662_v21 = vsub.f32 0.0, %v10606_v17 }
0x3f41   : > { %v10613_v5 = vadd.f32 1.0, %v10609_v46  ;;  %v10607_v10 = vand.u32 2147483647, %v15813_v0  ;;  %v10665_v13 = vmul.f32 %v10661_v50, %v10605_v35  ;;  %vm10687_vm10 = vcmp.ge.f32.partialorder %v15813_v0, 0.0 }
0x3f42   : > { %v10614_v43 = vadd.f32 1.0, %v10610_v1  ;;  %v10608_v12 = vand.u32 2147483647, %v15816_v62  ;;  %v10666_v32 = vmul.f32 %v10662_v21, %v10606_v17  ;;  %vm10688_vm11 = vcmp.ge.f32.partialorder %v15816_v62, 0.0 }
0x3f43   : > { %13803 = vrcp.f32 %v10613_v5  ;;  %v10611_v8 = vmul.f32 0.3275911, %v10607_v10  ;;  %v10663_v18 = vsub.f32 0.0, %v10607_v10  ;;  %v10669_v33 = vmul.f32 1.442695, %v10665_v13 }
0x3f44   : > { %13805 = vrcp.f32 %v10614_v43  ;;  %v10612_v26 = vmul.f32 0.3275911, %v10608_v12  ;;  %v10664_v63 = vsub.f32 0.0, %v10608_v12  ;;  %v10671_v45 = vmul.f32 1.442695, %v10666_v32 }
0x3f45   : > { %v10615_v7 = vadd.f32 1.0, %v10611_v8  ;;  %v10667_v24 = vmul.f32 %v10663_v18, %v10607_v10 }
0x3f46   : > { %v10616_v3 = vadd.f32 1.0, %v10612_v26  ;;  %v10668_v54 = vmul.f32 %v10664_v63, %v10608_v12 }
0x3f47   : > { %13807 = vrcp.f32 %v10615_v7  ;;  %v10673_v55 = vmul.f32 1.442695, %v10667_v24 }
0x3f48   : > { %13809 = vrcp.f32 %v10616_v3  ;;  %v10675_v6 = vmul.f32 1.442695, %v10668_v54 }
0x3f49   : > { %13811 = vpow2.f32 %v10669_v33 }
0x3f4a   : > { %13813 = vpow2.f32 %v10671_v45 }
0x3f4b   : > { %13815 = vpow2.f32 %v10673_v55 }
0x3f4c   : > { %13817 = vpow2.f32 %v10675_v6  ;;  %v11596_v6 = vld [vmem:[%s16040_s25 + $0x1] ss:$0 sm:$0xff] }
0x3f4d   : > { %v13804_v23 = vpop.eup %13803 }
0x3f4e   : > { %v13806_v56 = vpop.eup %13805  ;;  %v10625_v29 = vmul.f32 1.0614054, %v13804_v23 }
0x3f4f   : > { %v10626_v44 = vmul.f32 1.0614054, %v13806_v56 }
0x3f50   : > { %v10629_v37 = vadd.f32 -1.4531521, %v10625_v29 }
0x3f51   : > { %v13808_v53 = vpop.eup %13807  ;;  %v10630_v38 = vadd.f32 -1.4531521, %v10626_v44 }
0x3f52   : > { %v13810_v19 = vpop.eup %13809  ;;  %v10633_v42 = vmul.f32 %v13804_v23, %v10629_v37  ;;  %v10627_v22 = vmul.f32 1.0614054, %v13808_v53 }
0x3f53   : > { %v10634_v34 = vmul.f32 %v13806_v56, %v10630_v38  ;;  %v10628_v30 = vmul.f32 1.0614054, %v13810_v19  ;;  %v13812_v43 = vpop.eup %13811 }
0x3f54   : > { %v10637_v27 = vadd.f32 1.4214138, %v10633_v42  ;;  %v10631_v49 = vadd.f32 -1.4531521, %v10627_v22  ;;  %v13814_v26 = vpop.eup %13813  ;;  %v10698_v22 = vmul.f32 0.5, %v15798_v48  ;;  %v10699_v48 = vmul.f32 0.5, %v15807_v25 }
0x3f55   : > { %v10638_v2 = vadd.f32 1.4214138, %v10634_v34  ;;  %v10632_v52 = vadd.f32 -1.4531521, %v10628_v30  ;;  %v13816_v29 = vpop.eup %13815 }
0x3f56   : > { %v10641_v60 = vmul.f32 %v13804_v23, %v10637_v27  ;;  %v10635_v36 = vmul.f32 %v13808_v53, %v10631_v49  ;;  %v13818_v44 = vpop.eup %13817 }
0x3f57   : > { %v10642_v16 = vmul.f32 %v13806_v56, %v10638_v2  ;;  %v10636_v40 = vmul.f32 %v13810_v19, %v10632_v52  ;;  %v10700_v2 = vmul.f32 0.5, %v15810_v57 }
0x3f58   : > { %v10645_v61 = vadd.f32 -0.28449672, %v10641_v60  ;;  %v10639_v14 = vadd.f32 1.4214138, %v10635_v36 }
0x3f59   : > { %v10646_v39 = vadd.f32 -0.28449672, %v10642_v16  ;;  %v10640_v28 = vadd.f32 1.4214138, %v10636_v40 }
0x3f5a   : > { %v10649_v31 = vmul.f32 %v13804_v23, %v10645_v61  ;;  %v10643_v47 = vmul.f32 %v13808_v53, %v10639_v14 }
0x3f5b   : > { %v10650_v58 = vmul.f32 %v13806_v56, %v10646_v39  ;;  %v10644_v35 = vmul.f32 %v13810_v19, %v10640_v28 }
0x3f5c   : > { %v10653_v15 = vadd.f32 0.2548296, %v10649_v31  ;;  %v10647_v17 = vadd.f32 -0.28449672, %v10643_v47 }
0x3f5d   : > { %v10654_v46 = vadd.f32 0.2548296, %v10650_v58  ;;  %v10648_v1 = vadd.f32 -0.28449672, %v10644_v35 }
0x3f5e   : > { %v10657_v5 = vmul.f32 %v13804_v23, %v10653_v15  ;;  %v10651_v10 = vmul.f32 %v13808_v53, %v10647_v17 }
0x3f5f   : > { %v10658_v12 = vmul.f32 %v13806_v56, %v10654_v46  ;;  %v10652_v8 = vmul.f32 %v13810_v19, %v10648_v1 }
0x3f60   : > { %v10677_v7 = vmul.f32 %v13812_v43, %v10657_v5  ;;  %v10655_v3 = vadd.f32 0.2548296, %v10651_v10  ;;  %v10838_v10 = vld [vmem:[%s16041_s29] sm:$0xff]  ;;  %v10839_v43 = vld [vmem:[%s16041_s29 + $0x8] sm:$0xff] }
0x3f61   : > { %v10678_v50 = vmul.f32 %v13814_v26, %v10658_v12  ;;  %v10656_v21 = vadd.f32 0.2548296, %v10652_v8  ;;  %v13224_v12 = vpack.c.bf16 %v10839_v43, %v10838_v10  ;;  %v10840_v8 = vld [vmem:[%s16041_s29 + $0x10] sm:$0xff]  ;;  %v10841_v26 = vld [vmem:[%s16041_s29 + $0x18] sm:$0xff] }
0x3f62   : > { %v10681_v13 = vsub.f32 1.0, %v10677_v7  ;;  %v10659_v18 = vmul.f32 %v13808_v53, %v10655_v3  ;;  %v13228_v7 = vpack.c.bf16 %v10841_v26, %v10840_v8  ;;  %v10842_v3 = vld [vmem:[%s16041_s29 + $0x20] sm:$0xff] }
0x3f63   : > { %v10682_v32 = vsub.f32 1.0, %v10678_v50  ;;  %v10660_v63 = vmul.f32 %v13810_v19, %v10656_v21  ;;  %v10697_v19 = vmul.f32 0.5, %v15796_v20  ;;  %13225 = vmatprep.subr.bf16.mxu1 %v13224_v12  ;;  %v10843_v50 = vld [vmem:[%s16041_s29 + $0x28] sm:$0xff] }
0x3f64   : > { %v10689_v37 = vsub.f32 0.0, %v10681_v13  ;;  %v10679_v33 = vmul.f32 %v13816_v29, %v10659_v18  ;;  %13227 = vmatpush3.bf16.msra.mxu1 %v13224_v12  ;;  %v13232_v21 = vpack.c.bf16 %v10843_v50, %v10842_v3  ;;  %v10845_v18 = vld [vmem:[%s16041_s29 + $0x38] sm:$0xff] }
0x3f65   : > { %v10690_v23 = vsub.f32 0.0, %v10682_v32  ;;  %v10680_v24 = vmul.f32 %v13818_v44, %v10660_v63  ;;  %13229 = vmatprep.subr.bf16.mxu1 %v13228_v7 }
0x3f66   : > { %v10693_v38 = vsel %vm10685_vm1, %v10681_v13, %v10689_v37  ;;  %v10683_v56 = vsub.f32 1.0, %v10679_v33  ;;  %v10844_v13 = vld [vmem:[%s16041_s29 + $0x30] sm:$0xff] }
0x3f67   : > { %v10701_v42 = vadd.f32 1.0, %v10693_v38  ;;  %v10694_v45 = vsel %vm10686_vm9, %v10682_v32, %v10690_v23  ;;  %v10684_v54 = vsub.f32 1.0, %v10680_v24  ;;  %v13236_v29 = vpack.c.bf16 %v10845_v18, %v10844_v13  ;;  %v11599_v38 = vld [vmem:[%s16033_s3 + $0x1] ss:$0 sm:$0xff] }
0x3f68   : > { %v10702_v53 = vadd.f32 1.0, %v10694_v45  ;;  %v10691_v34 = vsub.f32 0.0, %v10683_v56  ;;  %13231 = vmatpush3.bf16.msra.mxu1 %v13228_v7 }
0x3f69   : > { %v10692_v30 = vsub.f32 0.0, %v10684_v54  ;;  %v10705_v49 = vmul.f32 %v10701_v42, %v10697_v19  ;;  %13233 = vmatprep.subr.bf16.mxu1 %v13232_v21  ;;  %v11600_v42 = vld [vmem:[%s16034_s27 + $0x1] ss:$0 sm:$0xff] }
0x3f6a   : > { %v10706_v59 = vmul.f32 %v10702_v53, %v10698_v22  ;;  %v10695_v27 = vsel %vm10687_vm10, %v10683_v56, %v10691_v34 }
0x3f6b   : > { %v10696_v4 = vsel %vm10688_vm11, %v10684_v54, %v10692_v30  ;;  %v10703_v55 = vadd.f32 1.0, %v10695_v27  ;;  %v10847_v30 = vld [vmem:[%s16042_s14] sm:$0xff] }
0x3f6c   : > { %10779 = vmatprep.mubr.f32.mxu0 %v10706_v59  ;;  %v10704_v52 = vadd.f32 1.0, %v10696_v4  ;;  %13235 = vmatpush3.bf16.msra.mxu1 %v13232_v21  ;;  %v10848_v59 = vld [vmem:[%s16042_s14 + $0x8] sm:$0xff]  ;;  %v10850_v4 = vld [vmem:[%s16042_s14 + $0x18] sm:$0xff] }
0x3f6d   : > { %10780 = vmatmul.mubr.f32.vlgmr.msra.gmra.mrb[90].mxu0 %v10705_v49  ;;  %v10707_v20 = vmul.f32 %v10703_v55, %v10699_v48  ;;  %13237 = vmatprep.subr.bf16.mxu1 %v13236_v29  ;;  %v13240_v27 = vpack.c.bf16 %v10848_v59, %v10847_v30  ;;  %v10849_v49 = vld [vmem:[%s16042_s14 + $0x10] sm:$0xff] }
0x3f6e   : > { %v10708_v60 = vmul.f32 %v10704_v52, %v10700_v2  ;;  %v13244_v55 = vpack.c.bf16 %v10850_v4, %v10849_v49  ;;  %v10851_v2 = vld [vmem:[%s16042_s14 + $0x20] sm:$0xff]  ;;  %v10852_v52 = vld [vmem:[%s16042_s14 + $0x28] sm:$0xff] }
0x3f6f   : > { %v13248_v48 = vpack.c.bf16 %v10852_v52, %v10851_v2 }
0x3f70   : > { %10784 = vmatprep.mubr.f32.mxu0 %v10708_v60  ;;  %13239 = vmatpush3.bf16.msra.mxu1 %v13236_v29  ;;  %v10853_v60 = vld [vmem:[%s16042_s14 + $0x30] sm:$0xff] }
0x3f71   : > { %10785 = vmatmul.mubr.f32.gmra.mrb[92].mxu0 %v10707_v20  ;;  %13241 = vmatprep.subr.bf16.mxu1 %v13240_v27  ;;  %v10854_v20 = vld [vmem:[%s16042_s14 + $0x38] sm:$0xff] }
0x4040   : > { %v12092_v0 = vpop.f32.mrb[90].mxu0 }
0x4041   : > { %v12093_v62 = vpop.f32.mrb[91].mxu0 }
0x4042   : > { %v12094_v36 = vadd.f32 %v12093_v62, %v12092_v0  ;;  %v13252_v0 = vpack.c.bf16 %v10854_v20, %v10853_v60 }
0x4044   : > { %v10782_v16 = vadd.f32 %v12094_v36, %v11596_v6  ;;  %v12095_v40 = vpop.f32.mrb[92].mxu0 }
0x4045   : > { %v12096_v61 = vpop.f32.mrb[93].mxu0 }
0x4046   : > { %v12097_v14 = vadd.f32 %v12096_v61, %v12095_v40  ;;  %v10790_v39 = vadd.f32 %v10782_v16, %v15752_v11 }
0x4048   : > { %v10787_v57 = vadd.f32 %v12097_v14, %v11596_v6  ;;  %v10796_v28 = vsel %vm2113_vm6, %v10790_v39, 0.0  ;;  %v11601_v6 = vld [vmem:[%s16043_s19] ss:$0 sm:$0xff] }
0x4049   : > { %10797 = vadd.xlane.f32.xlu0 %v10796_v28 }
0x404a   : > { %v10791_v25 = vadd.f32 %v10787_v57, %v15757_v9 }
0x404c   : > { %v10799_v31 = vsel %vm2113_vm6, %v10791_v25, 0.0 }
0x404d   : > { %10800 = vadd.xlane.f32.xlu1 %v10799_v31 }
0x40d6   : > { %v10798_v47 = vpop.xlane.xlu0 %10797 }
0x40d7   : > { %v10802_v58 = vmul.f32 0.015625, %v10798_v47 }
0x40d9   : > { %v10804_v35 = vsub.f32 %v10790_v39, %v10802_v58 }
0x40da   : > { %v10801_v15 = vpop.xlane.xlu1 %10800 }
0x40db   : > { %v10803_v17 = vmul.f32 0.015625, %v10801_v15  ;;  %v10806_v46 = vmul.f32 %v10804_v35, %v10804_v35 }
0x40dd   : > { %v10805_v11 = vsub.f32 %v10791_v25, %v10803_v17  ;;  %v10808_v1 = vsel %vm2113_vm6, %v10806_v46, 0.0 }
0x40de   : > { %10809 = vadd.xlane.f32.xlu0 %v10808_v1 }
0x40df   : > { %v10807_v5 = vmul.f32 %v10805_v11, %v10805_v11 }
0x40e1   : > { %v10811_v9 = vsel %vm2113_vm6, %v10807_v5, 0.0 }
0x40e2   : > { %10812 = vadd.xlane.f32.xlu1 %v10811_v9 }
0x416b   : > { %v10810_v32 = vpop.xlane.xlu0 %10809 }
0x416c   : > { %v10814_v63 = vmul.f32 0.015625, %v10810_v32 }
0x416e   : > { %v10816_v44 = vadd.f32 1e-05, %v10814_v63 }
0x416f   : > { %v10813_v37 = vpop.xlane.xlu1 %10812 }
0x4170   : > { %13819 = vrsqrt.f32 %v10816_v44  ;;  %v10815_v33 = vmul.f32 0.015625, %v10813_v37 }
0x4172   : > { %v10817_v23 = vadd.f32 1e-05, %v10815_v33 }
0x4174   : > { %13821 = vrsqrt.f32 %v10817_v23 }
0x417a   : > { %v13820_v24 = vpop.eup %13819 }
0x417b   : > { %v10820_v56 = vmul.f32 %v13820_v24, %v10804_v35 }
0x417d   : > { %v10828_v45 = vmul.f32 %v11599_v38, %v10820_v56 }
0x417e   : > { %v13822_v54 = vpop.eup %13821 }
0x417f   : > { %v10821_v22 = vmul.f32 %v13822_v54, %v10805_v11  ;;  %v10836_v53 = vadd.f32 %v11600_v42, %v10828_v45 }
0x4181   : > { %v10829_v34 = vmul.f32 %v11599_v38, %v10821_v22  ;;  %12670 = vmatprep.mubr.msk.f32.mxu1 %vm2113_vm6, %v10836_v53 }
0x4183   : > { %v10837_v19 = vadd.f32 %v11600_v42, %v10829_v34 }
0x4185   : > { %12671 = vmatmul.mubr.msk.f32.vlgmr.msra.gmra.mrb[90].mxu1 %vm2113_vm6, %v10837_v19 }
0x4186   : > { %13243 = vmatpush3.bf16.msra.mxu1 %v13240_v27 }
0x4187   : > { %13245 = vmatprep.subr.bf16.mxu1 %v13244_v55 }
0x418a   : > { %13247 = vmatpush3.bf16.msra.mxu1 %v13244_v55  ;;  %v11604_v55 = vld [vmem:[%s16044_s30] ss:$0 sm:$0xff] }
0x418b   : > { %13249 = vmatprep.subr.bf16.mxu1 %v13248_v48 }
0x418e   : > { %13251 = vmatpush3.bf16.msra.mxu1 %v13248_v48 }
0x418f   : > { %13253 = vmatprep.subr.bf16.mxu1 %v13252_v0 }
0x4192   : > { %13255 = vmatpush3.bf16.msra.mxu1 %v13252_v0 }
0x4258   : > { %v12672_v62 = vpop.f32.mrb[90].mxu1 }
0x4259   : > { %v10940_v36 = vadd.f32 %v12672_v62, %v11601_v6  ;;  %v10934_v16 = vpop.f32.mrb[91].mxu1 }
0x425a   : > { %v10935_v40 = vadd.f32 %v11601_v6, %v10934_v16 }
0x425b   : > { %v10944_v61 = vmul.f32 0.70710677, %v10940_v36  ;;  %v10992_v27 = vmul.f32 0.5, %v10940_v36 }
0x425c   : > { %v10943_v14 = vmul.f32 0.70710677, %v10935_v40  ;;  %v10991_v30 = vmul.f32 0.5, %v10935_v40 }
0x425d   : > { %v10946_v39 = vand.u32 2147483647, %v10944_v61  ;;  %vm10986_vm12 = vcmp.ge.f32.partialorder %v10944_v61, 0.0 }
0x425e   : > { %v10945_v57 = vand.u32 2147483647, %v10943_v14  ;;  %vm10985_vm13 = vcmp.ge.f32.partialorder %v10943_v14, 0.0 }
0x425f   : > { %v10948_v28 = vmul.f32 0.3275911, %v10946_v39  ;;  %v10974_v58 = vsub.f32 0.0, %v10946_v39 }
0x4260   : > { %v10947_v25 = vmul.f32 0.3275911, %v10945_v57  ;;  %v10973_v35 = vsub.f32 0.0, %v10945_v57 }
0x4261   : > { %v10950_v31 = vadd.f32 1.0, %v10948_v28  ;;  %v10976_v17 = vmul.f32 %v10974_v58, %v10946_v39 }
0x4262   : > { %v10949_v47 = vadd.f32 1.0, %v10947_v25  ;;  %v10975_v1 = vmul.f32 %v10973_v35, %v10945_v57 }
0x4263   : > { %13823 = vrcp.f32 %v10950_v31  ;;  %v10979_v10 = vmul.f32 1.442695, %v10976_v17 }
0x4264   : > { %13825 = vrcp.f32 %v10949_v47  ;;  %v10977_v8 = vmul.f32 1.442695, %v10975_v1 }
0x4265   : > { %13827 = vpow2.f32 %v10979_v10 }
0x4266   : > { %13829 = vpow2.f32 %v10977_v8 }
0x426d   : > { %v13824_v15 = vpop.eup %13823 }
0x426e   : > { %v13826_v46 = vpop.eup %13825  ;;  %v10956_v11 = vmul.f32 1.0614054, %v13824_v15 }
0x426f   : > { %v10955_v5 = vmul.f32 1.0614054, %v13826_v46  ;;  %v13828_v33 = vpop.eup %13827 }
0x4270   : > { %v10958_v9 = vadd.f32 -1.4531521, %v10956_v11  ;;  %v13830_v24 = vpop.eup %13829 }
0x4271   : > { %v10957_v43 = vadd.f32 -1.4531521, %v10955_v5 }
0x4272   : > { %v10960_v12 = vmul.f32 %v13824_v15, %v10958_v9 }
0x4273   : > { %v10959_v26 = vmul.f32 %v13826_v46, %v10957_v43 }
0x4274   : > { %v10962_v7 = vadd.f32 1.4214138, %v10960_v12 }
0x4275   : > { %v10961_v3 = vadd.f32 1.4214138, %v10959_v26 }
0x4276   : > { %v10964_v50 = vmul.f32 %v13824_v15, %v10962_v7 }
0x4277   : > { %v10963_v21 = vmul.f32 %v13826_v46, %v10961_v3 }
0x4278   : > { %v10966_v13 = vadd.f32 -0.28449672, %v10964_v50 }
0x4279   : > { %v10965_v18 = vadd.f32 -0.28449672, %v10963_v21 }
0x427a   : > { %v10968_v29 = vmul.f32 %v13824_v15, %v10966_v13 }
0x427b   : > { %v10967_v32 = vmul.f32 %v13826_v46, %v10965_v18 }
0x427c   : > { %v10970_v63 = vadd.f32 0.2548296, %v10968_v29 }
0x427d   : > { %v10969_v44 = vadd.f32 0.2548296, %v10967_v32 }
0x427e   : > { %v10972_v37 = vmul.f32 %v13824_v15, %v10970_v63 }
0x427f   : > { %v10971_v23 = vmul.f32 %v13826_v46, %v10969_v44 }
0x4280   : > { %v10982_v38 = vmul.f32 %v13828_v33, %v10972_v37 }
0x4281   : > { %v10981_v56 = vmul.f32 %v13830_v24, %v10971_v23 }
0x4282   : > { %v10984_v42 = vsub.f32 1.0, %v10982_v38 }
0x4283   : > { %v10983_v45 = vsub.f32 1.0, %v10981_v56 }
0x4284   : > { %v10988_v54 = vsub.f32 0.0, %v10984_v42 }
0x4285   : > { %v10987_v22 = vsub.f32 0.0, %v10983_v45 }
0x4286   : > { %v10990_v53 = vsel %vm10986_vm12, %v10984_v42, %v10988_v54 }
0x4287   : > { %v10994_v34 = vadd.f32 1.0, %v10990_v53  ;;  %v10989_v19 = vsel %vm10985_vm13, %v10983_v45, %v10987_v22 }
0x4288   : > { %v10993_v59 = vadd.f32 1.0, %v10989_v19 }
0x4289   : > { %v10996_v4 = vmul.f32 %v10994_v34, %v10992_v27 }
0x428a   : > { %v10995_v49 = vmul.f32 %v10993_v59, %v10991_v30 }
0x428c   : > { %12689 = vmatprep.mubr.msk.f32.mxu1 %vm2113_vm6, %v10995_v49 }
0x428d   : > { %12690 = vmatmul.mubr.msk.f32.vlgmr.msra.gmra.mrb[92].mxu1 %vm2113_vm6, %v10996_v4 }
0x4360   : > { %v12691_v2 = vpop.f32.mrb[92].mxu1 }
0x4361   : > { %v11081_v52 = vadd.f32 %v12691_v2, %v11604_v55  ;;  %v11075_v48 = vpop.f32.mrb[93].mxu1 }
0x4362   : > { %v11076_v60 = vadd.f32 %v11604_v55, %v11075_v48 }
0x4363   : > { %v11085_v20 = vmul.f32 %v11081_v52, %v14381_v51 }
0x4364   : > { %v11084_v0 = vmul.f32 %v11076_v60, %v14372_v41 }
0x4365   : > { %11087 = vst.msk [vmem:[%s1446_s7 + $0x8] sm:$0xff] %vm1503_vm0, %v11085_v20 }
0x4366   : > { %11086 = vst.msk [vmem:[%s1446_s7] sm:$0xff] %vm1503_vm0, %v11084_v0 }
0x4367 PF: > { %s16047_s23 = sld [smem:[#allocation46_spill]] }
0x436d   : > { %s101_s7 = sadd.s32 1, %s16047_s23  }
0x436e   : > { %p98_p4 = scmp.ge.s32.totalorder %s101_s7, 4  }
0x4370   :  { %100 = sbr.rel (!%p98_p4) target bundleno = 96 (0x60), region = 313 }

</bundles_post_ra>
